<compile_context>
chip_gen: v7x
topology: tpu7x:2x2x1
jax: 0.10.0
libtpu: 0.0.40
codegen_flags: <defaults>
</compile_context>

<pallas_src>
import jax
import jax.numpy as jnp
from jax.experimental import pallas as pl
from jax.experimental.pallas import tpu as pltpu

LANES = 128


# ---------------------------------------------------------------------------
# In-kernel helpers.
# ---------------------------------------------------------------------------
def _conv3x3(src_ref, w_ref, b_ref, rows, row_stride):
    """3x3 'same' conv as 9 shifted-window MXU matmuls over a zero-padded,
    row-major flattened input.  Per-tap results are summed as values (the
    caller does a single store), then bias + ReLU."""
    acc = None
    for k in range(9):
        kh, kw = divmod(k, 3)
        tap = src_ref[pl.ds(kh * row_stride + kw, rows), :]
        d = jnp.dot(tap, w_ref[k], preferred_element_type=jnp.float32)
        acc = d if acc is None else acc + d
    return jnp.maximum(acc + b_ref[...], 0.0)


def _pool2x2(src_ref, row_a, row_b, n):
    """2x2 max-pool: stride-2 selection over rows {row_a,row_a+1} and
    {row_b,row_b+1}; returns an (n, 128) value."""
    p00 = src_ref[pl.ds(row_a, n, stride=2), :]
    p01 = src_ref[pl.ds(row_a + 1, n, stride=2), :]
    p10 = src_ref[pl.ds(row_b, n, stride=2), :]
    p11 = src_ref[pl.ds(row_b + 1, n, stride=2), :]
    return jnp.maximum(jnp.maximum(p00, p01), jnp.maximum(p10, p11))


# ---------------------------------------------------------------------------
# The fully fused forward kernel (one batch tile of B images per grid step).
# ---------------------------------------------------------------------------
def _fused_net_kernel(x_ref, w1_ref, w2_ref, b2_ref, w3_ref, b3_ref,
                      wf1_ref, bf1_ref, wf2_ref, bf2_ref,
                      o_ref,
                      acc1, x2p, acc2, x3p, acc3, p3):
    B = x_ref.shape[0]

    # Rows never written by the per-image loop (the 2 tap-overrun rows of the
    # conv2 padded layout and all border rows of the conv3 padded layout) are
    # zeroed once per grid step; everything else is overwritten per image, so
    # no cross-step scratch state is relied upon.
    x2p[pl.ds(256, 2), :] = jnp.zeros((2, LANES), jnp.float32)
    x3p[...] = jnp.zeros_like(x3p)

    def per_image(b, carry):
        # ---- conv1: one K-packed matmul (9 taps + bias ones-lane in K). ----
        # acc1 row = u*32 + v; real conv1 outputs sit at (u, v) = (h+2, w+2);
        # every other row of the 32x32 grid is exactly zero (its K-packed
        # input row is all-zero, bias lane included).
        acc1[...] = jnp.dot(x_ref[b], w1_ref[...],
                            preferred_element_type=jnp.float32)

        # ---- 2x2 max-pool + ReLU, emitting conv2's zero-padded 16x16 input
        # layout directly with aligned 16-row stores (borders are exact 0). --
        for u2 in range(16):
            m = _pool2x2(acc1, 64 * u2, 64 * u2 + 32, 16)
            x2p[pl.ds(16 * u2, 16), :] = jnp.maximum(m, 0.0)

        # ---- conv2 (32->64): 9 shifted-window matmuls over x2p. ------------
        # INVARIANT: output columns w2 >= 14 of each 16-wide row are junk
        # (their windows wrap into the next padded row); they are never read
        # because the pool below only touches w2 = 2*w3 + {0,1}, w3 <= 6.
        acc2[...] = _conv3x3(x2p, w2_ref, b2_ref, rows=224, row_stride=16)

        # ---- 2x2 max-pool -> interior of conv3's zero-padded (9-wide rows)
        # layout; borders stay zero from the per-step init above. ------------
        for h3 in range(7):
            x3p[pl.ds((h3 + 1) * 9 + 1, 7), :] = _pool2x2(
                acc2, 32 * h3, 32 * h3 + 16, 7)

        # ---- conv3 (64->64).  Junk columns w3 >= 7 are never pooled. -------
        acc3[...] = _conv3x3(x3p, w3_ref, b3_ref, rows=63, row_stride=9)

        # ---- 2x2 max-pool (7 -> 3, floor): one 128-lane row per pooled
        # spatial position, stored position-major for the batched fc1. -------
        for hp in range(3):
            for wp in range(3):
                r = (2 * hp) * 9 + 2 * wp
                p3[hp * 3 + wp, pl.ds(b, 1), :] = _pool2x2(acc3, r, r + 9, 1)
        return carry

    jax.lax.fori_loop(0, B, per_image, 0)

    # ---- fc1 + ReLU + fc2 + masked log_softmax, batched over the tile. -----
    # The NCHW flatten permutation is folded into wf1's per-position blocks.
    h = None
    for k in range(9):
        d = jnp.dot(p3[k], wf1_ref[k], preferred_element_type=jnp.float32)
        h = d if h is None else h + d
    h = jnp.maximum(h + bf1_ref[...], 0.0)
    # dropout(p=0.5) is the identity in eval mode.
    logits = jnp.dot(h, wf2_ref[...], preferred_element_type=jnp.float32)
    logits = logits + bf2_ref[...]

    # log_softmax over the 10 real classes (lanes >= 10 are zero padding and
    # are sliced off outside the kernel).
    lane = jax.lax.broadcasted_iota(jnp.int32, logits.shape, 1)
    masked = jnp.where(lane < 10, logits, -jnp.inf)
    m = jnp.max(masked, axis=-1, keepdims=True)
    lse = jnp.log(jnp.sum(jnp.exp(masked - m), axis=-1, keepdims=True)) + m
    o_ref[...] = logits - lse


def _run_fused_net(x, prep, B):
    n_pad = x.shape[0]
    mm = (1024 * 16 * LANES + 9 * 224 * LANES * LANES
          + 9 * 63 * LANES * LANES + 10 * LANES * LANES)
    w_bytes = 4 * (16 * LANES + 3 * 9 * LANES * LANES + LANES * LANES
                   + 4 * LANES)
    return pl.pallas_call(
        _fused_net_kernel,
        out_shape=jax.ShapeDtypeStruct((n_pad, LANES), jnp.float32),
        grid=(n_pad // B,),
        in_specs=[
            pl.BlockSpec((B, 1024, 16), lambda i: (i, 0, 0)),      # K-packed img
            pl.BlockSpec((16, LANES), lambda i: (0, 0)),           # w1 (taps+bias)
            pl.BlockSpec((9, LANES, LANES), lambda i: (0, 0, 0)),  # w2
            pl.BlockSpec((1, LANES), lambda i: (0, 0)),            # b2
            pl.BlockSpec((9, LANES, LANES), lambda i: (0, 0, 0)),  # w3
            pl.BlockSpec((1, LANES), lambda i: (0, 0)),            # b3
            pl.BlockSpec((9, LANES, LANES), lambda i: (0, 0, 0)),  # fc1 (folded)
            pl.BlockSpec((1, LANES), lambda i: (0, 0)),            # b_fc1
            pl.BlockSpec((LANES, LANES), lambda i: (0, 0)),        # fc2
            pl.BlockSpec((1, LANES), lambda i: (0, 0)),            # b_fc2
        ],
        out_specs=pl.BlockSpec((B, LANES), lambda i: (i, 0)),
        scratch_shapes=[
            pltpu.VMEM((1024, LANES), jnp.float32),   # acc1: conv1 on 32x32 grid
            pltpu.VMEM((258, LANES), jnp.float32),    # x2p : conv2 padded input
            pltpu.VMEM((224, LANES), jnp.float32),    # acc2: conv2 output
            pltpu.VMEM((83, LANES), jnp.float32),     # x3p : conv3 padded input
            pltpu.VMEM((63, LANES), jnp.float32),     # acc3: conv3 output
            pltpu.VMEM((9, B, LANES), jnp.float32),   # p3  : pooled conv3 / fc in
        ],
        compiler_params=pltpu.CompilerParams(
            dimension_semantics=("parallel",),
            vmem_limit_bytes=32 * 1024 * 1024,
        ),
        cost_estimate=pl.CostEstimate(
            flops=2 * mm * n_pad,
            transcendentals=n_pad * LANES,
            bytes_accessed=4 * x.size + w_bytes + 4 * n_pad * LANES),
    )(x, prep["w1"], prep["w2"], prep["b2"], prep["w3"], prep["b3"],
      prep["wf1"], prep["bf1"], prep["wf2"], prep["bf2"])


# ---------------------------------------------------------------------------
# Host-side input packing (cheap XLA ops on the tiny 28x28 images).
# ---------------------------------------------------------------------------
def _build_conv1_input(img):
    """img: (N, 28, 28) -> K-packed conv1 input of shape (N, 1024, 16).

    Row r = u*32 + v of a 32x32 output grid; real conv1 output positions sit
    at (u, v) = (h+2, w+2) so that the fused 2x2 pool inside the kernel emits
    conv2's zero-padded 16x16 input layout directly.  Lanes 0..8 hold the 3x3
    taps, lane 9 holds 1.0 (bias lane); grid-border rows are all-zero so their
    conv1 output -- and hence the pooled padding -- is exactly 0.
    """
    n = img.shape[0]
    xp = jnp.pad(img, ((0, 0), (1, 1), (1, 1)))
    taps = [xp[:, kh:kh + 28, kw:kw + 28] for kh in range(3) for kw in range(3)]
    ones = jnp.ones((n, 28, 28), jnp.float32)
    feat = jnp.stack(taps + [ones], axis=-1)                  # (N, 28, 28, 10)
    feat = jnp.pad(feat, ((0, 0), (0, 0), (0, 0), (0, 6)))    # (N, 28, 28, 16)
    grid = jnp.zeros((n, 32, 32, 16), jnp.float32)
    grid = grid.at[:, 2:30, 2:30, :].set(feat)
    return grid.reshape(n, 1024, 16)


# ---------------------------------------------------------------------------
# Parameters (deterministic, synthetic), preparation (lane padding, K-packing
# conv1, folding the NCHW flatten into fc1), forward pass, pure-JAX reference.
# ---------------------------------------------------------------------------
def init_params(key):
    ks = jax.random.split(key, 10)
    s = 0.05
    return {
        # conv weights in HWIO layout (3, 3, Cin, Cout)
        "w_conv1": jax.random.normal(ks[0], (3, 3, 1, 32), jnp.float32) * s,
        "b_conv1": jax.random.normal(ks[1], (32,), jnp.float32) * s,
        "w_conv2": jax.random.normal(ks[2], (3, 3, 32, 64), jnp.float32) * s,
        "b_conv2": jax.random.normal(ks[3], (64,), jnp.float32) * s,
        "w_conv3": jax.random.normal(ks[4], (3, 3, 64, 64), jnp.float32) * s,
        "b_conv3": jax.random.normal(ks[5], (64,), jnp.float32) * s,
        # fc weights stored transposed (in, out); fc1 rows follow PyTorch's
        # NCHW flatten order (c*9 + hp*3 + wp).
        "w_fc1": jax.random.normal(ks[6], (64 * 3 * 3, 64), jnp.float32) * s,
        "b_fc1": jax.random.normal(ks[7], (64,), jnp.float32) * s,
        "w_fc2": jax.random.normal(ks[8], (64, 10), jnp.float32) * s,
        "b_fc2": jax.random.normal(ks[9], (10,), jnp.float32) * s,
    }


def prepare_params(p):
    def conv_w(w):
        _, _, cin, cout = w.shape
        wk = w.reshape(9, cin, cout)
        return jnp.zeros((9, LANES, LANES), jnp.float32).at[:, :cin, :cout].set(wk)

    def vec_pad(b):
        return jnp.zeros((1, LANES), jnp.float32).at[0, :b.shape[0]].set(b)

    # conv1: K-packed -- rows 0..8 = the 9 taps, row 9 = bias (ones-lane).
    w1p = jnp.zeros((16, LANES), jnp.float32)
    w1p = w1p.at[:9, :32].set(p["w_conv1"].reshape(9, 32))
    w1p = w1p.at[9, :32].set(p["b_conv1"])

    # fc1: rows are c*9 + k (NCHW flatten) -> one (128,128) block per pooled
    # spatial position k, channel- and output-padded with zeros.
    wf1 = p["w_fc1"].reshape(64, 9, 64).transpose(1, 0, 2)     # (9, cin, out)
    wf1p = jnp.zeros((9, LANES, LANES), jnp.float32).at[:, :64, :64].set(wf1)
    wf2p = jnp.zeros((LANES, LANES), jnp.float32).at[:64, :10].set(p["w_fc2"])
    return {
        "w1": w1p,
        "w2": conv_w(p["w_conv2"]), "b2": vec_pad(p["b_conv2"]),
        "w3": conv_w(p["w_conv3"]), "b3": vec_pad(p["b_conv3"]),
        "wf1": wf1p, "bf1": vec_pad(p["b_fc1"]),
        "wf2": wf2p, "bf2": vec_pad(p["b_fc2"]),
    }


@jax.jit
def net_forward(prep, x_nchw):
    """x_nchw: (N, 1, 28, 28) float32 -> (N, 10) log-probabilities."""
    N = x_nchw.shape[0]
    B = min(8, N)                              # images per grid step
    n_pad = ((N + B - 1) // B) * B
    img = x_nchw.reshape(N, 28, 28).astype(jnp.float32)
    if n_pad != N:
        img = jnp.pad(img, ((0, n_pad - N), (0, 0), (0, 0)))
    x = _build_conv1_input(img)
    out = _run_fused_net(x, prep, B)
    return out[:N, :10]


def reference_forward(p, x_nchw):
    """Pure-JAX (XLA) reference with identical semantics, for validation."""
    x = jnp.transpose(x_nchw, (0, 2, 3, 1))

    def conv_relu(x, w, b):
        y = jax.lax.conv_general_dilated(
            x, w, window_strides=(1, 1), padding="SAME",
            dimension_numbers=("NHWC", "HWIO", "NHWC"),
            precision=jax.lax.Precision.HIGHEST)
        return jax.nn.relu(y + b)

    def pool(x):
        return jax.lax.reduce_window(x, -jnp.inf, jax.lax.max,
                                     (1, 2, 2, 1), (1, 2, 2, 1), "VALID")

    x = pool(conv_relu(x, p["w_conv1"], p["b_conv1"]))
    x = pool(conv_relu(x, p["w_conv2"], p["b_conv2"]))
    x = pool(conv_relu(x, p["w_conv3"], p["b_conv3"]))
    n = x.shape[0]
    flat = jnp.transpose(x, (0, 3, 1, 2)).reshape(n, 64 * 3 * 3)  # NCHW flatten
    h = jax.nn.relu(jnp.dot(flat, p["w_fc1"], precision="highest") + p["b_fc1"])
    logits = jnp.dot(h, p["w_fc2"], precision="highest") + p["b_fc2"]
    return jax.nn.log_softmax(logits, axis=-1)


if __name__ == "__main__":
    key = jax.random.PRNGKey(0)
    pkey, xkey = jax.random.split(key)
    params = init_params(pkey)
    prep = prepare_params(params)

    # MNIST-shaped input (the fc1 layer's 64*3*3 inputs force 28x28 spatial).
    x = jax.random.normal(xkey, (2, 1, 28, 28), jnp.float32)

    out = jax.block_until_ready(net_forward(prep, x))
    assert out.shape == (2, 10)

    # log_softmax rows must exponentiate-sum to ~1.
    row_sums = jnp.sum(jnp.exp(out), axis=1)
    assert bool(jnp.all(jnp.abs(row_sums - 1.0) < 1e-3))

    # Validate against a pure-JAX reference of the same forward pass.
    ref = jax.block_until_ready(jax.jit(reference_forward)(params, x))
    assert bool(jnp.allclose(out, ref, atol=2e-3, rtol=2e-3)), \
        float(jnp.max(jnp.abs(out - ref)))

    print("KERNEL_OK")
</pallas_src>

<mosaic_0001>
module attributes {stable_mosaic.version = 11 : i64} {
  func.func @_fused_net_kernel(%arg0: i32, %arg1: memref<2x1024x16xf32, #tpu.memory_space<vmem>>, %arg2: memref<16x128xf32, #tpu.memory_space<vmem>>, %arg3: memref<9x128x128xf32, #tpu.memory_space<vmem>>, %arg4: memref<1x128xf32, #tpu.memory_space<vmem>>, %arg5: memref<9x128x128xf32, #tpu.memory_space<vmem>>, %arg6: memref<1x128xf32, #tpu.memory_space<vmem>>, %arg7: memref<9x128x128xf32, #tpu.memory_space<vmem>>, %arg8: memref<1x128xf32, #tpu.memory_space<vmem>>, %arg9: memref<128x128xf32, #tpu.memory_space<vmem>>, %arg10: memref<1x128xf32, #tpu.memory_space<vmem>>, %arg11: memref<2x128xf32, #tpu.memory_space<vmem>>, %arg12: memref<1024x128xf32, #tpu.memory_space<vmem>>, %arg13: memref<258x128xf32, #tpu.memory_space<vmem>>, %arg14: memref<224x128xf32, #tpu.memory_space<vmem>>, %arg15: memref<83x128xf32, #tpu.memory_space<vmem>>, %arg16: memref<63x128xf32, #tpu.memory_space<vmem>>, %arg17: memref<9x2x128xf32, #tpu.memory_space<vmem>>) attributes {dimension_semantics = [#tpu.dimension_semantics<parallel>], iteration_bounds = array<i64: 1>, scalar_prefetch = 0 : i64, scratch_operands = 6 : i64, tpu.core_type = #tpu.core_type<tc>, window_params = [{transform_indices = @transform_0, window_bounds = array<i64: 2, 1024, 16>}, {pipeline_mode = #tpu.pipeline_mode<synchronous>, transform_indices = @transform_1, window_bounds = array<i64: 16, 128>}, {pipeline_mode = #tpu.pipeline_mode<synchronous>, transform_indices = @transform_2, window_bounds = array<i64: 9, 128, 128>}, {pipeline_mode = #tpu.pipeline_mode<synchronous>, transform_indices = @transform_3, window_bounds = array<i64: 1, 128>}, {pipeline_mode = #tpu.pipeline_mode<synchronous>, transform_indices = @transform_4, window_bounds = array<i64: 9, 128, 128>}, {pipeline_mode = #tpu.pipeline_mode<synchronous>, transform_indices = @transform_5, window_bounds = array<i64: 1, 128>}, {pipeline_mode = #tpu.pipeline_mode<synchronous>, transform_indices = @transform_6, window_bounds = array<i64: 9, 128, 128>}, {pipeline_mode = #tpu.pipeline_mode<synchronous>, transform_indices = @transform_7, window_bounds = array<i64: 1, 128>}, {pipeline_mode = #tpu.pipeline_mode<synchronous>, transform_indices = @transform_8, window_bounds = array<i64: 128, 128>}, {pipeline_mode = #tpu.pipeline_mode<synchronous>, transform_indices = @transform_9, window_bounds = array<i64: 1, 128>}, {transform_indices = @transform_10, window_bounds = array<i64: 2, 128>}]} {
    %cst = arith.constant 0.000000e+00 : f32
    %0 = vector.broadcast %cst : f32 to vector<2x128xf32>
    %c256 = arith.constant 256 : index
    %c0 = arith.constant 0 : index
    %1 = vector.load %arg13[%c256, %c0] : memref<258x128xf32, #tpu.memory_space<vmem>>, vector<2x128xf32>
    tpu.vector_store %arg13[%c256, %c0], %0 {strides = array<i32>} : memref<258x128xf32, #tpu.memory_space<vmem>>, vector<2x128xf32>,
    %cst_0 = arith.constant 0.000000e+00 : f32
    %2 = vector.broadcast %cst_0 : f32 to vector<83x128xf32>
    %c0_1 = arith.constant 0 : index
    %c0_2 = arith.constant 0 : index
    %3 = vector.load %arg15[%c0_1, %c0_2] : memref<83x128xf32, #tpu.memory_space<vmem>>, vector<83x128xf32>
    tpu.vector_store %arg15[%c0_1, %c0_2], %2 {strides = array<i32>} : memref<83x128xf32, #tpu.memory_space<vmem>>, vector<83x128xf32>,
    %c0_i32 = arith.constant 0 : i32
    %c2_i32 = arith.constant 2 : i32
    %4 = arith.addi %c0_i32, %c2_i32 : i32
    %c1_i32 = arith.constant 1 : i32
    scf.for %arg18 = %c0_i32 to %4 step %c1_i32  : i32 {
      %85 = arith.index_cast %arg18 : i32 to index
      %c0_72 = arith.constant 0 : index
      %c0_73 = arith.constant 0 : index
      %86 = vector.load %arg1[%85, %c0_72, %c0_73] : memref<2x1024x16xf32, #tpu.memory_space<vmem>>, vector<1x1024x16xf32>
      %87 = vector.shape_cast %86 : vector<1x1024x16xf32> to vector<1024x16xf32>
      %c0_74 = arith.constant 0 : index
      %c0_75 = arith.constant 0 : index
      %88 = vector.load %arg2[%c0_74, %c0_75] : memref<16x128xf32, #tpu.memory_space<vmem>>, vector<16x128xf32>
      %cst_76 = arith.constant dense<0.000000e+00> : vector<1024x128xf32>
      %89 = tpu.matmul %87, %88, %cst_76 {dimension_numbers = #tpu.dot_dimension_numbers<[1], [0], [0], [1], [0, 0, 1, 1], [], []>} : vector<1024x16xf32>, vector<16x128xf32>, vector<1024x128xf32> -> vector<1024x128xf32>
      %c0_77 = arith.constant 0 : index
      %c0_78 = arith.constant 0 : index
      %90 = vector.load %arg12[%c0_77, %c0_78] : memref<1024x128xf32, #tpu.memory_space<vmem>>, vector<1024x128xf32>
      tpu.vector_store %arg12[%c0_77, %c0_78], %89 {strides = array<i32>} : memref<1024x128xf32, #tpu.memory_space<vmem>>, vector<1024x128xf32>,
      %c0_79 = arith.constant 0 : index
      %c0_80 = arith.constant 0 : index
      %91 = tpu.strided_load %arg12[%c0_79, %c0_80] {strides = array<i32: 2, 1>} : memref<1024x128xf32, #tpu.memory_space<vmem>>, vector<16x128xf32>
      %c1_81 = arith.constant 1 : index
      %c0_82 = arith.constant 0 : index
      %92 = tpu.strided_load %arg12[%c1_81, %c0_82] {strides = array<i32: 2, 1>} : memref<1024x128xf32, #tpu.memory_space<vmem>>, vector<16x128xf32>
      %c32 = arith.constant 32 : index
      %c0_83 = arith.constant 0 : index
      %93 = tpu.strided_load %arg12[%c32, %c0_83] {strides = array<i32: 2, 1>} : memref<1024x128xf32, #tpu.memory_space<vmem>>, vector<16x128xf32>
      %c33 = arith.constant 33 : index
      %c0_84 = arith.constant 0 : index
      %94 = tpu.strided_load %arg12[%c33, %c0_84] {strides = array<i32: 2, 1>} : memref<1024x128xf32, #tpu.memory_space<vmem>>, vector<16x128xf32>
      %95 = arith.maximumf %91, %92 : vector<16x128xf32>
      %96 = arith.maximumf %93, %94 : vector<16x128xf32>
      %97 = arith.maximumf %95, %96 : vector<16x128xf32>
      %cst_85 = arith.constant 0.000000e+00 : f32
      %98 = vector.broadcast %cst_85 : f32 to vector<16x128xf32>
      %99 = arith.maximumf %97, %98 : vector<16x128xf32>
      %c0_86 = arith.constant 0 : index
      %c0_87 = arith.constant 0 : index
      %100 = vector.load %arg13[%c0_86, %c0_87] : memref<258x128xf32, #tpu.memory_space<vmem>>, vector<16x128xf32>
      tpu.vector_store %arg13[%c0_86, %c0_87], %99 {strides = array<i32>} : memref<258x128xf32, #tpu.memory_space<vmem>>, vector<16x128xf32>,
      %c64 = arith.constant 64 : index
      %c0_88 = arith.constant 0 : index
      %101 = tpu.strided_load %arg12[%c64, %c0_88] {strides = array<i32: 2, 1>} : memref<1024x128xf32, #tpu.memory_space<vmem>>, vector<16x128xf32>
      %c65 = arith.constant 65 : index
      %c0_89 = arith.constant 0 : index
      %102 = tpu.strided_load %arg12[%c65, %c0_89] {strides = array<i32: 2, 1>} : memref<1024x128xf32, #tpu.memory_space<vmem>>, vector<16x128xf32>
      %c96 = arith.constant 96 : index
      %c0_90 = arith.constant 0 : index
      %103 = tpu.strided_load %arg12[%c96, %c0_90] {strides = array<i32: 2, 1>} : memref<1024x128xf32, #tpu.memory_space<vmem>>, vector<16x128xf32>
      %c97 = arith.constant 97 : index
      %c0_91 = arith.constant 0 : index
      %104 = tpu.strided_load %arg12[%c97, %c0_91] {strides = array<i32: 2, 1>} : memref<1024x128xf32, #tpu.memory_space<vmem>>, vector<16x128xf32>
      %105 = arith.maximumf %101, %102 : vector<16x128xf32>
      %106 = arith.maximumf %103, %104 : vector<16x128xf32>
      %107 = arith.maximumf %105, %106 : vector<16x128xf32>
      %cst_92 = arith.constant 0.000000e+00 : f32
      %108 = vector.broadcast %cst_92 : f32 to vector<16x128xf32>
      %109 = arith.maximumf %107, %108 : vector<16x128xf32>
      %c16 = arith.constant 16 : index
      %c0_93 = arith.constant 0 : index
      %110 = vector.load %arg13[%c16, %c0_93] : memref<258x128xf32, #tpu.memory_space<vmem>>, vector<16x128xf32>
      tpu.vector_store %arg13[%c16, %c0_93], %109 {strides = array<i32>} : memref<258x128xf32, #tpu.memory_space<vmem>>, vector<16x128xf32>,
      %c128 = arith.constant 128 : index
      %c0_94 = arith.constant 0 : index
      %111 = tpu.strided_load %arg12[%c128, %c0_94] {strides = array<i32: 2, 1>} : memref<1024x128xf32, #tpu.memory_space<vmem>>, vector<16x128xf32>
      %c129 = arith.constant 129 : index
      %c0_95 = arith.constant 0 : index
      %112 = tpu.strided_load %arg12[%c129, %c0_95] {strides = array<i32: 2, 1>} : memref<1024x128xf32, #tpu.memory_space<vmem>>, vector<16x128xf32>
      %c160 = arith.constant 160 : index
      %c0_96 = arith.constant 0 : index
      %113 = tpu.strided_load %arg12[%c160, %c0_96] {strides = array<i32: 2, 1>} : memref<1024x128xf32, #tpu.memory_space<vmem>>, vector<16x128xf32>
      %c161 = arith.constant 161 : index
      %c0_97 = arith.constant 0 : index
      %114 = tpu.strided_load %arg12[%c161, %c0_97] {strides = array<i32: 2, 1>} : memref<1024x128xf32, #tpu.memory_space<vmem>>, vector<16x128xf32>
      %115 = arith.maximumf %111, %112 : vector<16x128xf32>
      %116 = arith.maximumf %113, %114 : vector<16x128xf32>
      %117 = arith.maximumf %115, %116 : vector<16x128xf32>
      %cst_98 = arith.constant 0.000000e+00 : f32
      %118 = vector.broadcast %cst_98 : f32 to vector<16x128xf32>
      %119 = arith.maximumf %117, %118 : vector<16x128xf32>
      %c32_99 = arith.constant 32 : index
      %c0_100 = arith.constant 0 : index
      %120 = vector.load %arg13[%c32_99, %c0_100] : memref<258x128xf32, #tpu.memory_space<vmem>>, vector<16x128xf32>
      tpu.vector_store %arg13[%c32_99, %c0_100], %119 {strides = array<i32>} : memref<258x128xf32, #tpu.memory_space<vmem>>, vector<16x128xf32>,
      %c192 = arith.constant 192 : index
      %c0_101 = arith.constant 0 : index
      %121 = tpu.strided_load %arg12[%c192, %c0_101] {strides = array<i32: 2, 1>} : memref<1024x128xf32, #tpu.memory_space<vmem>>, vector<16x128xf32>
      %c193 = arith.constant 193 : index
      %c0_102 = arith.constant 0 : index
      %122 = tpu.strided_load %arg12[%c193, %c0_102] {strides = array<i32: 2, 1>} : memref<1024x128xf32, #tpu.memory_space<vmem>>, vector<16x128xf32>
      %c224 = arith.constant 224 : index
      %c0_103 = arith.constant 0 : index
      %123 = tpu.strided_load %arg12[%c224, %c0_103] {strides = array<i32: 2, 1>} : memref<1024x128xf32, #tpu.memory_space<vmem>>, vector<16x128xf32>
      %c225 = arith.constant 225 : index
      %c0_104 = arith.constant 0 : index
      %124 = tpu.strided_load %arg12[%c225, %c0_104] {strides = array<i32: 2, 1>} : memref<1024x128xf32, #tpu.memory_space<vmem>>, vector<16x128xf32>
      %125 = arith.maximumf %121, %122 : vector<16x128xf32>
      %126 = arith.maximumf %123, %124 : vector<16x128xf32>
      %127 = arith.maximumf %125, %126 : vector<16x128xf32>
      %cst_105 = arith.constant 0.000000e+00 : f32
      %128 = vector.broadcast %cst_105 : f32 to vector<16x128xf32>
      %129 = arith.maximumf %127, %128 : vector<16x128xf32>
      %c48 = arith.constant 48 : index
      %c0_106 = arith.constant 0 : index
      %130 = vector.load %arg13[%c48, %c0_106] : memref<258x128xf32, #tpu.memory_space<vmem>>, vector<16x128xf32>
      tpu.vector_store %arg13[%c48, %c0_106], %129 {strides = array<i32>} : memref<258x128xf32, #tpu.memory_space<vmem>>, vector<16x128xf32>,
      %c256_107 = arith.constant 256 : index
      %c0_108 = arith.constant 0 : index
      %131 = tpu.strided_load %arg12[%c256_107, %c0_108] {strides = array<i32: 2, 1>} : memref<1024x128xf32, #tpu.memory_space<vmem>>, vector<16x128xf32>
      %c257 = arith.constant 257 : index
      %c0_109 = arith.constant 0 : index
      %132 = tpu.strided_load %arg12[%c257, %c0_109] {strides = array<i32: 2, 1>} : memref<1024x128xf32, #tpu.memory_space<vmem>>, vector<16x128xf32>
      %c288 = arith.constant 288 : index
      %c0_110 = arith.constant 0 : index
      %133 = tpu.strided_load %arg12[%c288, %c0_110] {strides = array<i32: 2, 1>} : memref<1024x128xf32, #tpu.memory_space<vmem>>, vector<16x128xf32>
      %c289 = arith.constant 289 : index
      %c0_111 = arith.constant 0 : index
      %134 = tpu.strided_load %arg12[%c289, %c0_111] {strides = array<i32: 2, 1>} : memref<1024x128xf32, #tpu.memory_space<vmem>>, vector<16x128xf32>
      %135 = arith.maximumf %131, %132 : vector<16x128xf32>
      %136 = arith.maximumf %133, %134 : vector<16x128xf32>
      %137 = arith.maximumf %135, %136 : vector<16x128xf32>
      %cst_112 = arith.constant 0.000000e+00 : f32
      %138 = vector.broadcast %cst_112 : f32 to vector<16x128xf32>
      %139 = arith.maximumf %137, %138 : vector<16x128xf32>
      %c64_113 = arith.constant 64 : index
      %c0_114 = arith.constant 0 : index
      %140 = vector.load %arg13[%c64_113, %c0_114] : memref<258x128xf32, #tpu.memory_space<vmem>>, vector<16x128xf32>
      tpu.vector_store %arg13[%c64_113, %c0_114], %139 {strides = array<i32>} : memref<258x128xf32, #tpu.memory_space<vmem>>, vector<16x128xf32>,
      %c320 = arith.constant 320 : index
      %c0_115 = arith.constant 0 : index
      %141 = tpu.strided_load %arg12[%c320, %c0_115] {strides = array<i32: 2, 1>} : memref<1024x128xf32, #tpu.memory_space<vmem>>, vector<16x128xf32>
      %c321 = arith.constant 321 : index
      %c0_116 = arith.constant 0 : index
      %142 = tpu.strided_load %arg12[%c321, %c0_116] {strides = array<i32: 2, 1>} : memref<1024x128xf32, #tpu.memory_space<vmem>>, vector<16x128xf32>
      %c352 = arith.constant 352 : index
      %c0_117 = arith.constant 0 : index
      %143 = tpu.strided_load %arg12[%c352, %c0_117] {strides = array<i32: 2, 1>} : memref<1024x128xf32, #tpu.memory_space<vmem>>, vector<16x128xf32>
      %c353 = arith.constant 353 : index
      %c0_118 = arith.constant 0 : index
      %144 = tpu.strided_load %arg12[%c353, %c0_118] {strides = array<i32: 2, 1>} : memref<1024x128xf32, #tpu.memory_space<vmem>>, vector<16x128xf32>
      %145 = arith.maximumf %141, %142 : vector<16x128xf32>
      %146 = arith.maximumf %143, %144 : vector<16x128xf32>
      %147 = arith.maximumf %145, %146 : vector<16x128xf32>
      %cst_119 = arith.constant 0.000000e+00 : f32
      %148 = vector.broadcast %cst_119 : f32 to vector<16x128xf32>
      %149 = arith.maximumf %147, %148 : vector<16x128xf32>
      %c80 = arith.constant 80 : index
      %c0_120 = arith.constant 0 : index
      %150 = vector.load %arg13[%c80, %c0_120] : memref<258x128xf32, #tpu.memory_space<vmem>>, vector<16x128xf32>
      tpu.vector_store %arg13[%c80, %c0_120], %149 {strides = array<i32>} : memref<258x128xf32, #tpu.memory_space<vmem>>, vector<16x128xf32>,
      %c384 = arith.constant 384 : index
      %c0_121 = arith.constant 0 : index
      %151 = tpu.strided_load %arg12[%c384, %c0_121] {strides = array<i32: 2, 1>} : memref<1024x128xf32, #tpu.memory_space<vmem>>, vector<16x128xf32>
      %c385 = arith.constant 385 : index
      %c0_122 = arith.constant 0 : index
      %152 = tpu.strided_load %arg12[%c385, %c0_122] {strides = array<i32: 2, 1>} : memref<1024x128xf32, #tpu.memory_space<vmem>>, vector<16x128xf32>
      %c416 = arith.constant 416 : index
      %c0_123 = arith.constant 0 : index
      %153 = tpu.strided_load %arg12[%c416, %c0_123] {strides = array<i32: 2, 1>} : memref<1024x128xf32, #tpu.memory_space<vmem>>, vector<16x128xf32>
      %c417 = arith.constant 417 : index
      %c0_124 = arith.constant 0 : index
      %154 = tpu.strided_load %arg12[%c417, %c0_124] {strides = array<i32: 2, 1>} : memref<1024x128xf32, #tpu.memory_space<vmem>>, vector<16x128xf32>
      %155 = arith.maximumf %151, %152 : vector<16x128xf32>
      %156 = arith.maximumf %153, %154 : vector<16x128xf32>
      %157 = arith.maximumf %155, %156 : vector<16x128xf32>
      %cst_125 = arith.constant 0.000000e+00 : f32
      %158 = vector.broadcast %cst_125 : f32 to vector<16x128xf32>
      %159 = arith.maximumf %157, %158 : vector<16x128xf32>
      %c96_126 = arith.constant 96 : index
      %c0_127 = arith.constant 0 : index
      %160 = vector.load %arg13[%c96_126, %c0_127] : memref<258x128xf32, #tpu.memory_space<vmem>>, vector<16x128xf32>
      tpu.vector_store %arg13[%c96_126, %c0_127], %159 {strides = array<i32>} : memref<258x128xf32, #tpu.memory_space<vmem>>, vector<16x128xf32>,
      %c448 = arith.constant 448 : index
      %c0_128 = arith.constant 0 : index
      %161 = tpu.strided_load %arg12[%c448, %c0_128] {strides = array<i32: 2, 1>} : memref<1024x128xf32, #tpu.memory_space<vmem>>, vector<16x128xf32>
      %c449 = arith.constant 449 : index
      %c0_129 = arith.constant 0 : index
      %162 = tpu.strided_load %arg12[%c449, %c0_129] {strides = array<i32: 2, 1>} : memref<1024x128xf32, #tpu.memory_space<vmem>>, vector<16x128xf32>
      %c480 = arith.constant 480 : index
      %c0_130 = arith.constant 0 : index
      %163 = tpu.strided_load %arg12[%c480, %c0_130] {strides = array<i32: 2, 1>} : memref<1024x128xf32, #tpu.memory_space<vmem>>, vector<16x128xf32>
      %c481 = arith.constant 481 : index
      %c0_131 = arith.constant 0 : index
      %164 = tpu.strided_load %arg12[%c481, %c0_131] {strides = array<i32: 2, 1>} : memref<1024x128xf32, #tpu.memory_space<vmem>>, vector<16x128xf32>
      %165 = arith.maximumf %161, %162 : vector<16x128xf32>
      %166 = arith.maximumf %163, %164 : vector<16x128xf32>
      %167 = arith.maximumf %165, %166 : vector<16x128xf32>
      %cst_132 = arith.constant 0.000000e+00 : f32
      %168 = vector.broadcast %cst_132 : f32 to vector<16x128xf32>
      %169 = arith.maximumf %167, %168 : vector<16x128xf32>
      %c112 = arith.constant 112 : index
      %c0_133 = arith.constant 0 : index
      %170 = vector.load %arg13[%c112, %c0_133] : memref<258x128xf32, #tpu.memory_space<vmem>>, vector<16x128xf32>
      tpu.vector_store %arg13[%c112, %c0_133], %169 {strides = array<i32>} : memref<258x128xf32, #tpu.memory_space<vmem>>, vector<16x128xf32>,
      %c512 = arith.constant 512 : index
      %c0_134 = arith.constant 0 : index
      %171 = tpu.strided_load %arg12[%c512, %c0_134] {strides = array<i32: 2, 1>} : memref<1024x128xf32, #tpu.memory_space<vmem>>, vector<16x128xf32>
      %c513 = arith.constant 513 : index
      %c0_135 = arith.constant 0 : index
      %172 = tpu.strided_load %arg12[%c513, %c0_135] {strides = array<i32: 2, 1>} : memref<1024x128xf32, #tpu.memory_space<vmem>>, vector<16x128xf32>
      %c544 = arith.constant 544 : index
      %c0_136 = arith.constant 0 : index
      %173 = tpu.strided_load %arg12[%c544, %c0_136] {strides = array<i32: 2, 1>} : memref<1024x128xf32, #tpu.memory_space<vmem>>, vector<16x128xf32>
      %c545 = arith.constant 545 : index
      %c0_137 = arith.constant 0 : index
      %174 = tpu.strided_load %arg12[%c545, %c0_137] {strides = array<i32: 2, 1>} : memref<1024x128xf32, #tpu.memory_space<vmem>>, vector<16x128xf32>
      %175 = arith.maximumf %171, %172 : vector<16x128xf32>
      %176 = arith.maximumf %173, %174 : vector<16x128xf32>
      %177 = arith.maximumf %175, %176 : vector<16x128xf32>
      %cst_138 = arith.constant 0.000000e+00 : f32
      %178 = vector.broadcast %cst_138 : f32 to vector<16x128xf32>
      %179 = arith.maximumf %177, %178 : vector<16x128xf32>
      %c128_139 = arith.constant 128 : index
      %c0_140 = arith.constant 0 : index
      %180 = vector.load %arg13[%c128_139, %c0_140] : memref<258x128xf32, #tpu.memory_space<vmem>>, vector<16x128xf32>
      tpu.vector_store %arg13[%c128_139, %c0_140], %179 {strides = array<i32>} : memref<258x128xf32, #tpu.memory_space<vmem>>, vector<16x128xf32>,
      %c576 = arith.constant 576 : index
      %c0_141 = arith.constant 0 : index
      %181 = tpu.strided_load %arg12[%c576, %c0_141] {strides = array<i32: 2, 1>} : memref<1024x128xf32, #tpu.memory_space<vmem>>, vector<16x128xf32>
      %c577 = arith.constant 577 : index
      %c0_142 = arith.constant 0 : index
      %182 = tpu.strided_load %arg12[%c577, %c0_142] {strides = array<i32: 2, 1>} : memref<1024x128xf32, #tpu.memory_space<vmem>>, vector<16x128xf32>
      %c608 = arith.constant 608 : index
      %c0_143 = arith.constant 0 : index
      %183 = tpu.strided_load %arg12[%c608, %c0_143] {strides = array<i32: 2, 1>} : memref<1024x128xf32, #tpu.memory_space<vmem>>, vector<16x128xf32>
      %c609 = arith.constant 609 : index
      %c0_144 = arith.constant 0 : index
      %184 = tpu.strided_load %arg12[%c609, %c0_144] {strides = array<i32: 2, 1>} : memref<1024x128xf32, #tpu.memory_space<vmem>>, vector<16x128xf32>
      %185 = arith.maximumf %181, %182 : vector<16x128xf32>
      %186 = arith.maximumf %183, %184 : vector<16x128xf32>
      %187 = arith.maximumf %185, %186 : vector<16x128xf32>
      %cst_145 = arith.constant 0.000000e+00 : f32
      %188 = vector.broadcast %cst_145 : f32 to vector<16x128xf32>
      %189 = arith.maximumf %187, %188 : vector<16x128xf32>
      %c144 = arith.constant 144 : index
      %c0_146 = arith.constant 0 : index
      %190 = vector.load %arg13[%c144, %c0_146] : memref<258x128xf32, #tpu.memory_space<vmem>>, vector<16x128xf32>
      tpu.vector_store %arg13[%c144, %c0_146], %189 {strides = array<i32>} : memref<258x128xf32, #tpu.memory_space<vmem>>, vector<16x128xf32>,
      %c640 = arith.constant 640 : index
      %c0_147 = arith.constant 0 : index
      %191 = tpu.strided_load %arg12[%c640, %c0_147] {strides = array<i32: 2, 1>} : memref<1024x128xf32, #tpu.memory_space<vmem>>, vector<16x128xf32>
      %c641 = arith.constant 641 : index
      %c0_148 = arith.constant 0 : index
      %192 = tpu.strided_load %arg12[%c641, %c0_148] {strides = array<i32: 2, 1>} : memref<1024x128xf32, #tpu.memory_space<vmem>>, vector<16x128xf32>
      %c672 = arith.constant 672 : index
      %c0_149 = arith.constant 0 : index
      %193 = tpu.strided_load %arg12[%c672, %c0_149] {strides = array<i32: 2, 1>} : memref<1024x128xf32, #tpu.memory_space<vmem>>, vector<16x128xf32>
      %c673 = arith.constant 673 : index
      %c0_150 = arith.constant 0 : index
      %194 = tpu.strided_load %arg12[%c673, %c0_150] {strides = array<i32: 2, 1>} : memref<1024x128xf32, #tpu.memory_space<vmem>>, vector<16x128xf32>
      %195 = arith.maximumf %191, %192 : vector<16x128xf32>
      %196 = arith.maximumf %193, %194 : vector<16x128xf32>
      %197 = arith.maximumf %195, %196 : vector<16x128xf32>
      %cst_151 = arith.constant 0.000000e+00 : f32
      %198 = vector.broadcast %cst_151 : f32 to vector<16x128xf32>
      %199 = arith.maximumf %197, %198 : vector<16x128xf32>
      %c160_152 = arith.constant 160 : index
      %c0_153 = arith.constant 0 : index
      %200 = vector.load %arg13[%c160_152, %c0_153] : memref<258x128xf32, #tpu.memory_space<vmem>>, vector<16x128xf32>
      tpu.vector_store %arg13[%c160_152, %c0_153], %199 {strides = array<i32>} : memref<258x128xf32, #tpu.memory_space<vmem>>, vector<16x128xf32>,
      %c704 = arith.constant 704 : index
      %c0_154 = arith.constant 0 : index
      %201 = tpu.strided_load %arg12[%c704, %c0_154] {strides = array<i32: 2, 1>} : memref<1024x128xf32, #tpu.memory_space<vmem>>, vector<16x128xf32>
      %c705 = arith.constant 705 : index
      %c0_155 = arith.constant 0 : index
      %202 = tpu.strided_load %arg12[%c705, %c0_155] {strides = array<i32: 2, 1>} : memref<1024x128xf32, #tpu.memory_space<vmem>>, vector<16x128xf32>
      %c736 = arith.constant 736 : index
      %c0_156 = arith.constant 0 : index
      %203 = tpu.strided_load %arg12[%c736, %c0_156] {strides = array<i32: 2, 1>} : memref<1024x128xf32, #tpu.memory_space<vmem>>, vector<16x128xf32>
      %c737 = arith.constant 737 : index
      %c0_157 = arith.constant 0 : index
      %204 = tpu.strided_load %arg12[%c737, %c0_157] {strides = array<i32: 2, 1>} : memref<1024x128xf32, #tpu.memory_space<vmem>>, vector<16x128xf32>
      %205 = arith.maximumf %201, %202 : vector<16x128xf32>
      %206 = arith.maximumf %203, %204 : vector<16x128xf32>
      %207 = arith.maximumf %205, %206 : vector<16x128xf32>
      %cst_158 = arith.constant 0.000000e+00 : f32
      %208 = vector.broadcast %cst_158 : f32 to vector<16x128xf32>
      %209 = arith.maximumf %207, %208 : vector<16x128xf32>
      %c176 = arith.constant 176 : index
      %c0_159 = arith.constant 0 : index
      %210 = vector.load %arg13[%c176, %c0_159] : memref<258x128xf32, #tpu.memory_space<vmem>>, vector<16x128xf32>
      tpu.vector_store %arg13[%c176, %c0_159], %209 {strides = array<i32>} : memref<258x128xf32, #tpu.memory_space<vmem>>, vector<16x128xf32>,
      %c768 = arith.constant 768 : index
      %c0_160 = arith.constant 0 : index
      %211 = tpu.strided_load %arg12[%c768, %c0_160] {strides = array<i32: 2, 1>} : memref<1024x128xf32, #tpu.memory_space<vmem>>, vector<16x128xf32>
      %c769 = arith.constant 769 : index
      %c0_161 = arith.constant 0 : index
      %212 = tpu.strided_load %arg12[%c769, %c0_161] {strides = array<i32: 2, 1>} : memref<1024x128xf32, #tpu.memory_space<vmem>>, vector<16x128xf32>
      %c800 = arith.constant 800 : index
      %c0_162 = arith.constant 0 : index
      %213 = tpu.strided_load %arg12[%c800, %c0_162] {strides = array<i32: 2, 1>} : memref<1024x128xf32, #tpu.memory_space<vmem>>, vector<16x128xf32>
      %c801 = arith.constant 801 : index
      %c0_163 = arith.constant 0 : index
      %214 = tpu.strided_load %arg12[%c801, %c0_163] {strides = array<i32: 2, 1>} : memref<1024x128xf32, #tpu.memory_space<vmem>>, vector<16x128xf32>
      %215 = arith.maximumf %211, %212 : vector<16x128xf32>
      %216 = arith.maximumf %213, %214 : vector<16x128xf32>
      %217 = arith.maximumf %215, %216 : vector<16x128xf32>
      %cst_164 = arith.constant 0.000000e+00 : f32
      %218 = vector.broadcast %cst_164 : f32 to vector<16x128xf32>
      %219 = arith.maximumf %217, %218 : vector<16x128xf32>
      %c192_165 = arith.constant 192 : index
      %c0_166 = arith.constant 0 : index
      %220 = vector.load %arg13[%c192_165, %c0_166] : memref<258x128xf32, #tpu.memory_space<vmem>>, vector<16x128xf32>
      tpu.vector_store %arg13[%c192_165, %c0_166], %219 {strides = array<i32>} : memref<258x128xf32, #tpu.memory_space<vmem>>, vector<16x128xf32>,
      %c832 = arith.constant 832 : index
      %c0_167 = arith.constant 0 : index
      %221 = tpu.strided_load %arg12[%c832, %c0_167] {strides = array<i32: 2, 1>} : memref<1024x128xf32, #tpu.memory_space<vmem>>, vector<16x128xf32>
      %c833 = arith.constant 833 : index
      %c0_168 = arith.constant 0 : index
      %222 = tpu.strided_load %arg12[%c833, %c0_168] {strides = array<i32: 2, 1>} : memref<1024x128xf32, #tpu.memory_space<vmem>>, vector<16x128xf32>
      %c864 = arith.constant 864 : index
      %c0_169 = arith.constant 0 : index
      %223 = tpu.strided_load %arg12[%c864, %c0_169] {strides = array<i32: 2, 1>} : memref<1024x128xf32, #tpu.memory_space<vmem>>, vector<16x128xf32>
      %c865 = arith.constant 865 : index
      %c0_170 = arith.constant 0 : index
      %224 = tpu.strided_load %arg12[%c865, %c0_170] {strides = array<i32: 2, 1>} : memref<1024x128xf32, #tpu.memory_space<vmem>>, vector<16x128xf32>
      %225 = arith.maximumf %221, %222 : vector<16x128xf32>
      %226 = arith.maximumf %223, %224 : vector<16x128xf32>
      %227 = arith.maximumf %225, %226 : vector<16x128xf32>
      %cst_171 = arith.constant 0.000000e+00 : f32
      %228 = vector.broadcast %cst_171 : f32 to vector<16x128xf32>
      %229 = arith.maximumf %227, %228 : vector<16x128xf32>
      %c208 = arith.constant 208 : index
      %c0_172 = arith.constant 0 : index
      %230 = vector.load %arg13[%c208, %c0_172] : memref<258x128xf32, #tpu.memory_space<vmem>>, vector<16x128xf32>
      tpu.vector_store %arg13[%c208, %c0_172], %229 {strides = array<i32>} : memref<258x128xf32, #tpu.memory_space<vmem>>, vector<16x128xf32>,
      %c896 = arith.constant 896 : index
      %c0_173 = arith.constant 0 : index
      %231 = tpu.strided_load %arg12[%c896, %c0_173] {strides = array<i32: 2, 1>} : memref<1024x128xf32, #tpu.memory_space<vmem>>, vector<16x128xf32>
      %c897 = arith.constant 897 : index
      %c0_174 = arith.constant 0 : index
      %232 = tpu.strided_load %arg12[%c897, %c0_174] {strides = array<i32: 2, 1>} : memref<1024x128xf32, #tpu.memory_space<vmem>>, vector<16x128xf32>
      %c928 = arith.constant 928 : index
      %c0_175 = arith.constant 0 : index
      %233 = tpu.strided_load %arg12[%c928, %c0_175] {strides = array<i32: 2, 1>} : memref<1024x128xf32, #tpu.memory_space<vmem>>, vector<16x128xf32>
      %c929 = arith.constant 929 : index
      %c0_176 = arith.constant 0 : index
      %234 = tpu.strided_load %arg12[%c929, %c0_176] {strides = array<i32: 2, 1>} : memref<1024x128xf32, #tpu.memory_space<vmem>>, vector<16x128xf32>
      %235 = arith.maximumf %231, %232 : vector<16x128xf32>
      %236 = arith.maximumf %233, %234 : vector<16x128xf32>
      %237 = arith.maximumf %235, %236 : vector<16x128xf32>
      %cst_177 = arith.constant 0.000000e+00 : f32
      %238 = vector.broadcast %cst_177 : f32 to vector<16x128xf32>
      %239 = arith.maximumf %237, %238 : vector<16x128xf32>
      %c224_178 = arith.constant 224 : index
      %c0_179 = arith.constant 0 : index
      %240 = vector.load %arg13[%c224_178, %c0_179] : memref<258x128xf32, #tpu.memory_space<vmem>>, vector<16x128xf32>
      tpu.vector_store %arg13[%c224_178, %c0_179], %239 {strides = array<i32>} : memref<258x128xf32, #tpu.memory_space<vmem>>, vector<16x128xf32>,
      %c960 = arith.constant 960 : index
      %c0_180 = arith.constant 0 : index
      %241 = tpu.strided_load %arg12[%c960, %c0_180] {strides = array<i32: 2, 1>} : memref<1024x128xf32, #tpu.memory_space<vmem>>, vector<16x128xf32>
      %c961 = arith.constant 961 : index
      %c0_181 = arith.constant 0 : index
      %242 = tpu.strided_load %arg12[%c961, %c0_181] {strides = array<i32: 2, 1>} : memref<1024x128xf32, #tpu.memory_space<vmem>>, vector<16x128xf32>
      %c992 = arith.constant 992 : index
      %c0_182 = arith.constant 0 : index
      %243 = tpu.strided_load %arg12[%c992, %c0_182] {strides = array<i32: 2, 1>} : memref<1024x128xf32, #tpu.memory_space<vmem>>, vector<16x128xf32>
      %c993 = arith.constant 993 : index
      %c0_183 = arith.constant 0 : index
      %244 = tpu.strided_load %arg12[%c993, %c0_183] {strides = array<i32: 2, 1>} : memref<1024x128xf32, #tpu.memory_space<vmem>>, vector<16x128xf32>
      %245 = arith.maximumf %241, %242 : vector<16x128xf32>
      %246 = arith.maximumf %243, %244 : vector<16x128xf32>
      %247 = arith.maximumf %245, %246 : vector<16x128xf32>
      %cst_184 = arith.constant 0.000000e+00 : f32
      %248 = vector.broadcast %cst_184 : f32 to vector<16x128xf32>
      %249 = arith.maximumf %247, %248 : vector<16x128xf32>
      %c240 = arith.constant 240 : index
      %c0_185 = arith.constant 0 : index
      %250 = vector.load %arg13[%c240, %c0_185] : memref<258x128xf32, #tpu.memory_space<vmem>>, vector<16x128xf32>
      tpu.vector_store %arg13[%c240, %c0_185], %249 {strides = array<i32>} : memref<258x128xf32, #tpu.memory_space<vmem>>, vector<16x128xf32>,
      %c0_186 = arith.constant 0 : index
      %c0_187 = arith.constant 0 : index
      %251 = vector.load %arg13[%c0_186, %c0_187] : memref<258x128xf32, #tpu.memory_space<vmem>>, vector<224x128xf32>
      %c0_188 = arith.constant 0 : index
      %c0_189 = arith.constant 0 : index
      %c0_190 = arith.constant 0 : index
      %252 = vector.load %arg3[%c0_188, %c0_189, %c0_190] : memref<9x128x128xf32, #tpu.memory_space<vmem>>, vector<1x128x128xf32>
      %253 = vector.shape_cast %252 : vector<1x128x128xf32> to vector<128x128xf32>
      %cst_191 = arith.constant dense<0.000000e+00> : vector<224x128xf32>
      %254 = tpu.matmul %251, %253, %cst_191 {dimension_numbers = #tpu.dot_dimension_numbers<[1], [0], [0], [1], [0, 0, 1, 1], [], []>} : vector<224x128xf32>, vector<128x128xf32>, vector<224x128xf32> -> vector<224x128xf32>
      %c1_192 = arith.constant 1 : index
      %c0_193 = arith.constant 0 : index
      %255 = vector.load %arg13[%c1_192, %c0_193] : memref<258x128xf32, #tpu.memory_space<vmem>>, vector<224x128xf32>
      %c1_194 = arith.constant 1 : index
      %c0_195 = arith.constant 0 : index
      %c0_196 = arith.constant 0 : index
      %256 = vector.load %arg3[%c1_194, %c0_195, %c0_196] : memref<9x128x128xf32, #tpu.memory_space<vmem>>, vector<1x128x128xf32>
      %257 = vector.shape_cast %256 : vector<1x128x128xf32> to vector<128x128xf32>
      %cst_197 = arith.constant dense<0.000000e+00> : vector<224x128xf32>
      %258 = tpu.matmul %255, %257, %cst_197 {dimension_numbers = #tpu.dot_dimension_numbers<[1], [0], [0], [1], [0, 0, 1, 1], [], []>} : vector<224x128xf32>, vector<128x128xf32>, vector<224x128xf32> -> vector<224x128xf32>
      %259 = arith.addf %254, %258 : vector<224x128xf32>
      %c2_198 = arith.constant 2 : index
      %c0_199 = arith.constant 0 : index
      %260 = vector.load %arg13[%c2_198, %c0_199] : memref<258x128xf32, #tpu.memory_space<vmem>>, vector<224x128xf32>
      %c2_200 = arith.constant 2 : index
      %c0_201 = arith.constant 0 : index
      %c0_202 = arith.constant 0 : index
      %261 = vector.load %arg3[%c2_200, %c0_201, %c0_202] : memref<9x128x128xf32, #tpu.memory_space<vmem>>, vector<1x128x128xf32>
      %262 = vector.shape_cast %261 : vector<1x128x128xf32> to vector<128x128xf32>
      %cst_203 = arith.constant dense<0.000000e+00> : vector<224x128xf32>
      %263 = tpu.matmul %260, %262, %cst_203 {dimension_numbers = #tpu.dot_dimension_numbers<[1], [0], [0], [1], [0, 0, 1, 1], [], []>} : vector<224x128xf32>, vector<128x128xf32>, vector<224x128xf32> -> vector<224x128xf32>
      %264 = arith.addf %259, %263 : vector<224x128xf32>
      %c16_204 = arith.constant 16 : index
      %c0_205 = arith.constant 0 : index
      %265 = vector.load %arg13[%c16_204, %c0_205] : memref<258x128xf32, #tpu.memory_space<vmem>>, vector<224x128xf32>
      %c3_206 = arith.constant 3 : index
      %c0_207 = arith.constant 0 : index
      %c0_208 = arith.constant 0 : index
      %266 = vector.load %arg3[%c3_206, %c0_207, %c0_208] : memref<9x128x128xf32, #tpu.memory_space<vmem>>, vector<1x128x128xf32>
      %267 = vector.shape_cast %266 : vector<1x128x128xf32> to vector<128x128xf32>
      %cst_209 = arith.constant dense<0.000000e+00> : vector<224x128xf32>
      %268 = tpu.matmul %265, %267, %cst_209 {dimension_numbers = #tpu.dot_dimension_numbers<[1], [0], [0], [1], [0, 0, 1, 1], [], []>} : vector<224x128xf32>, vector<128x128xf32>, vector<224x128xf32> -> vector<224x128xf32>
      %269 = arith.addf %264, %268 : vector<224x128xf32>
      %c17 = arith.constant 17 : index
      %c0_210 = arith.constant 0 : index
      %270 = vector.load %arg13[%c17, %c0_210] : memref<258x128xf32, #tpu.memory_space<vmem>>, vector<224x128xf32>
      %c4_211 = arith.constant 4 : index
      %c0_212 = arith.constant 0 : index
      %c0_213 = arith.constant 0 : index
      %271 = vector.load %arg3[%c4_211, %c0_212, %c0_213] : memref<9x128x128xf32, #tpu.memory_space<vmem>>, vector<1x128x128xf32>
      %272 = vector.shape_cast %271 : vector<1x128x128xf32> to vector<128x128xf32>
      %cst_214 = arith.constant dense<0.000000e+00> : vector<224x128xf32>
      %273 = tpu.matmul %270, %272, %cst_214 {dimension_numbers = #tpu.dot_dimension_numbers<[1], [0], [0], [1], [0, 0, 1, 1], [], []>} : vector<224x128xf32>, vector<128x128xf32>, vector<224x128xf32> -> vector<224x128xf32>
      %274 = arith.addf %269, %273 : vector<224x128xf32>
      %c18 = arith.constant 18 : index
      %c0_215 = arith.constant 0 : index
      %275 = vector.load %arg13[%c18, %c0_215] : memref<258x128xf32, #tpu.memory_space<vmem>>, vector<224x128xf32>
      %c5_216 = arith.constant 5 : index
      %c0_217 = arith.constant 0 : index
      %c0_218 = arith.constant 0 : index
      %276 = vector.load %arg3[%c5_216, %c0_217, %c0_218] : memref<9x128x128xf32, #tpu.memory_space<vmem>>, vector<1x128x128xf32>
      %277 = vector.shape_cast %276 : vector<1x128x128xf32> to vector<128x128xf32>
      %cst_219 = arith.constant dense<0.000000e+00> : vector<224x128xf32>
      %278 = tpu.matmul %275, %277, %cst_219 {dimension_numbers = #tpu.dot_dimension_numbers<[1], [0], [0], [1], [0, 0, 1, 1], [], []>} : vector<224x128xf32>, vector<128x128xf32>, vector<224x128xf32> -> vector<224x128xf32>
      %279 = arith.addf %274, %278 : vector<224x128xf32>
      %c32_220 = arith.constant 32 : index
      %c0_221 = arith.constant 0 : index
      %280 = vector.load %arg13[%c32_220, %c0_221] : memref<258x128xf32, #tpu.memory_space<vmem>>, vector<224x128xf32>
      %c6_222 = arith.constant 6 : index
      %c0_223 = arith.constant 0 : index
      %c0_224 = arith.constant 0 : index
      %281 = vector.load %arg3[%c6_222, %c0_223, %c0_224] : memref<9x128x128xf32, #tpu.memory_space<vmem>>, vector<1x128x128xf32>
      %282 = vector.shape_cast %281 : vector<1x128x128xf32> to vector<128x128xf32>
      %cst_225 = arith.constant dense<0.000000e+00> : vector<224x128xf32>
      %283 = tpu.matmul %280, %282, %cst_225 {dimension_numbers = #tpu.dot_dimension_numbers<[1], [0], [0], [1], [0, 0, 1, 1], [], []>} : vector<224x128xf32>, vector<128x128xf32>, vector<224x128xf32> -> vector<224x128xf32>
      %284 = arith.addf %279, %283 : vector<224x128xf32>
      %c33_226 = arith.constant 33 : index
      %c0_227 = arith.constant 0 : index
      %285 = vector.load %arg13[%c33_226, %c0_227] : memref<258x128xf32, #tpu.memory_space<vmem>>, vector<224x128xf32>
      %c7_228 = arith.constant 7 : index
      %c0_229 = arith.constant 0 : index
      %c0_230 = arith.constant 0 : index
      %286 = vector.load %arg3[%c7_228, %c0_229, %c0_230] : memref<9x128x128xf32, #tpu.memory_space<vmem>>, vector<1x128x128xf32>
      %287 = vector.shape_cast %286 : vector<1x128x128xf32> to vector<128x128xf32>
      %cst_231 = arith.constant dense<0.000000e+00> : vector<224x128xf32>
      %288 = tpu.matmul %285, %287, %cst_231 {dimension_numbers = #tpu.dot_dimension_numbers<[1], [0], [0], [1], [0, 0, 1, 1], [], []>} : vector<224x128xf32>, vector<128x128xf32>, vector<224x128xf32> -> vector<224x128xf32>
      %289 = arith.addf %284, %288 : vector<224x128xf32>
      %c34 = arith.constant 34 : index
      %c0_232 = arith.constant 0 : index
      %290 = vector.load %arg13[%c34, %c0_232] : memref<258x128xf32, #tpu.memory_space<vmem>>, vector<224x128xf32>
      %c8_233 = arith.constant 8 : index
      %c0_234 = arith.constant 0 : index
      %c0_235 = arith.constant 0 : index
      %291 = vector.load %arg3[%c8_233, %c0_234, %c0_235] : memref<9x128x128xf32, #tpu.memory_space<vmem>>, vector<1x128x128xf32>
      %292 = vector.shape_cast %291 : vector<1x128x128xf32> to vector<128x128xf32>
      %cst_236 = arith.constant dense<0.000000e+00> : vector<224x128xf32>
      %293 = tpu.matmul %290, %292, %cst_236 {dimension_numbers = #tpu.dot_dimension_numbers<[1], [0], [0], [1], [0, 0, 1, 1], [], []>} : vector<224x128xf32>, vector<128x128xf32>, vector<224x128xf32> -> vector<224x128xf32>
      %294 = arith.addf %289, %293 : vector<224x128xf32>
      %c0_237 = arith.constant 0 : index
      %c0_238 = arith.constant 0 : index
      %295 = vector.load %arg4[%c0_237, %c0_238] : memref<1x128xf32, #tpu.memory_space<vmem>>, vector<1x128xf32>
      %296 = vector.broadcast %295 : vector<1x128xf32> to vector<224x128xf32>
      %297 = arith.addf %294, %296 : vector<224x128xf32>
      %cst_239 = arith.constant 0.000000e+00 : f32
      %298 = vector.broadcast %cst_239 : f32 to vector<224x128xf32>
      %299 = arith.maximumf %297, %298 : vector<224x128xf32>
      %c0_240 = arith.constant 0 : index
      %c0_241 = arith.constant 0 : index
      %300 = vector.load %arg14[%c0_240, %c0_241] : memref<224x128xf32, #tpu.memory_space<vmem>>, vector<224x128xf32>
      tpu.vector_store %arg14[%c0_240, %c0_241], %299 {strides = array<i32>} : memref<224x128xf32, #tpu.memory_space<vmem>>, vector<224x128xf32>,
      %c0_242 = arith.constant 0 : index
      %c0_243 = arith.constant 0 : index
      %301 = tpu.strided_load %arg14[%c0_242, %c0_243] {strides = array<i32: 2, 1>} : memref<224x128xf32, #tpu.memory_space<vmem>>, vector<7x128xf32>
      %c1_244 = arith.constant 1 : index
      %c0_245 = arith.constant 0 : index
      %302 = tpu.strided_load %arg14[%c1_244, %c0_245] {strides = array<i32: 2, 1>} : memref<224x128xf32, #tpu.memory_space<vmem>>, vector<7x128xf32>
      %c16_246 = arith.constant 16 : index
      %c0_247 = arith.constant 0 : index
      %303 = tpu.strided_load %arg14[%c16_246, %c0_247] {strides = array<i32: 2, 1>} : memref<224x128xf32, #tpu.memory_space<vmem>>, vector<7x128xf32>
      %c17_248 = arith.constant 17 : index
      %c0_249 = arith.constant 0 : index
      %304 = tpu.strided_load %arg14[%c17_248, %c0_249] {strides = array<i32: 2, 1>} : memref<224x128xf32, #tpu.memory_space<vmem>>, vector<7x128xf32>
      %305 = arith.maximumf %301, %302 : vector<7x128xf32>
      %306 = arith.maximumf %303, %304 : vector<7x128xf32>
      %307 = arith.maximumf %305, %306 : vector<7x128xf32>
      %c10 = arith.constant 10 : index
      %c0_250 = arith.constant 0 : index
      %308 = vector.load %arg15[%c10, %c0_250] : memref<83x128xf32, #tpu.memory_space<vmem>>, vector<7x128xf32>
      tpu.vector_store %arg15[%c10, %c0_250], %307 {strides = array<i32>} : memref<83x128xf32, #tpu.memory_space<vmem>>, vector<7x128xf32>,
      %c32_251 = arith.constant 32 : index
      %c0_252 = arith.constant 0 : index
      %309 = tpu.strided_load %arg14[%c32_251, %c0_252] {strides = array<i32: 2, 1>} : memref<224x128xf32, #tpu.memory_space<vmem>>, vector<7x128xf32>
      %c33_253 = arith.constant 33 : index
      %c0_254 = arith.constant 0 : index
      %310 = tpu.strided_load %arg14[%c33_253, %c0_254] {strides = array<i32: 2, 1>} : memref<224x128xf32, #tpu.memory_space<vmem>>, vector<7x128xf32>
      %c48_255 = arith.constant 48 : index
      %c0_256 = arith.constant 0 : index
      %311 = tpu.strided_load %arg14[%c48_255, %c0_256] {strides = array<i32: 2, 1>} : memref<224x128xf32, #tpu.memory_space<vmem>>, vector<7x128xf32>
      %c49 = arith.constant 49 : index
      %c0_257 = arith.constant 0 : index
      %312 = tpu.strided_load %arg14[%c49, %c0_257] {strides = array<i32: 2, 1>} : memref<224x128xf32, #tpu.memory_space<vmem>>, vector<7x128xf32>
      %313 = arith.maximumf %309, %310 : vector<7x128xf32>
      %314 = arith.maximumf %311, %312 : vector<7x128xf32>
      %315 = arith.maximumf %313, %314 : vector<7x128xf32>
      %c19 = arith.constant 19 : index
      %c0_258 = arith.constant 0 : index
      %316 = vector.load %arg15[%c19, %c0_258] : memref<83x128xf32, #tpu.memory_space<vmem>>, vector<7x128xf32>
      tpu.vector_store %arg15[%c19, %c0_258], %315 {strides = array<i32>} : memref<83x128xf32, #tpu.memory_space<vmem>>, vector<7x128xf32>,
      %c64_259 = arith.constant 64 : index
      %c0_260 = arith.constant 0 : index
      %317 = tpu.strided_load %arg14[%c64_259, %c0_260] {strides = array<i32: 2, 1>} : memref<224x128xf32, #tpu.memory_space<vmem>>, vector<7x128xf32>
      %c65_261 = arith.constant 65 : index
      %c0_262 = arith.constant 0 : index
      %318 = tpu.strided_load %arg14[%c65_261, %c0_262] {strides = array<i32: 2, 1>} : memref<224x128xf32, #tpu.memory_space<vmem>>, vector<7x128xf32>
      %c80_263 = arith.constant 80 : index
      %c0_264 = arith.constant 0 : index
      %319 = tpu.strided_load %arg14[%c80_263, %c0_264] {strides = array<i32: 2, 1>} : memref<224x128xf32, #tpu.memory_space<vmem>>, vector<7x128xf32>
      %c81 = arith.constant 81 : index
      %c0_265 = arith.constant 0 : index
      %320 = tpu.strided_load %arg14[%c81, %c0_265] {strides = array<i32: 2, 1>} : memref<224x128xf32, #tpu.memory_space<vmem>>, vector<7x128xf32>
      %321 = arith.maximumf %317, %318 : vector<7x128xf32>
      %322 = arith.maximumf %319, %320 : vector<7x128xf32>
      %323 = arith.maximumf %321, %322 : vector<7x128xf32>
      %c28 = arith.constant 28 : index
      %c0_266 = arith.constant 0 : index
      %324 = vector.load %arg15[%c28, %c0_266] : memref<83x128xf32, #tpu.memory_space<vmem>>, vector<7x128xf32>
      tpu.vector_store %arg15[%c28, %c0_266], %323 {strides = array<i32>} : memref<83x128xf32, #tpu.memory_space<vmem>>, vector<7x128xf32>,
      %c96_267 = arith.constant 96 : index
      %c0_268 = arith.constant 0 : index
      %325 = tpu.strided_load %arg14[%c96_267, %c0_268] {strides = array<i32: 2, 1>} : memref<224x128xf32, #tpu.memory_space<vmem>>, vector<7x128xf32>
      %c97_269 = arith.constant 97 : index
      %c0_270 = arith.constant 0 : index
      %326 = tpu.strided_load %arg14[%c97_269, %c0_270] {strides = array<i32: 2, 1>} : memref<224x128xf32, #tpu.memory_space<vmem>>, vector<7x128xf32>
      %c112_271 = arith.constant 112 : index
      %c0_272 = arith.constant 0 : index
      %327 = tpu.strided_load %arg14[%c112_271, %c0_272] {strides = array<i32: 2, 1>} : memref<224x128xf32, #tpu.memory_space<vmem>>, vector<7x128xf32>
      %c113 = arith.constant 113 : index
      %c0_273 = arith.constant 0 : index
      %328 = tpu.strided_load %arg14[%c113, %c0_273] {strides = array<i32: 2, 1>} : memref<224x128xf32, #tpu.memory_space<vmem>>, vector<7x128xf32>
      %329 = arith.maximumf %325, %326 : vector<7x128xf32>
      %330 = arith.maximumf %327, %328 : vector<7x128xf32>
      %331 = arith.maximumf %329, %330 : vector<7x128xf32>
      %c37 = arith.constant 37 : index
      %c0_274 = arith.constant 0 : index
      %332 = vector.load %arg15[%c37, %c0_274] : memref<83x128xf32, #tpu.memory_space<vmem>>, vector<7x128xf32>
      tpu.vector_store %arg15[%c37, %c0_274], %331 {strides = array<i32>} : memref<83x128xf32, #tpu.memory_space<vmem>>, vector<7x128xf32>,
      %c128_275 = arith.constant 128 : index
      %c0_276 = arith.constant 0 : index
      %333 = tpu.strided_load %arg14[%c128_275, %c0_276] {strides = array<i32: 2, 1>} : memref<224x128xf32, #tpu.memory_space<vmem>>, vector<7x128xf32>
      %c129_277 = arith.constant 129 : index
      %c0_278 = arith.constant 0 : index
      %334 = tpu.strided_load %arg14[%c129_277, %c0_278] {strides = array<i32: 2, 1>} : memref<224x128xf32, #tpu.memory_space<vmem>>, vector<7x128xf32>
      %c144_279 = arith.constant 144 : index
      %c0_280 = arith.constant 0 : index
      %335 = tpu.strided_load %arg14[%c144_279, %c0_280] {strides = array<i32: 2, 1>} : memref<224x128xf32, #tpu.memory_space<vmem>>, vector<7x128xf32>
      %c145 = arith.constant 145 : index
      %c0_281 = arith.constant 0 : index
      %336 = tpu.strided_load %arg14[%c145, %c0_281] {strides = array<i32: 2, 1>} : memref<224x128xf32, #tpu.memory_space<vmem>>, vector<7x128xf32>
      %337 = arith.maximumf %333, %334 : vector<7x128xf32>
      %338 = arith.maximumf %335, %336 : vector<7x128xf32>
      %339 = arith.maximumf %337, %338 : vector<7x128xf32>
      %c46 = arith.constant 46 : index
      %c0_282 = arith.constant 0 : index
      %340 = vector.load %arg15[%c46, %c0_282] : memref<83x128xf32, #tpu.memory_space<vmem>>, vector<7x128xf32>
      tpu.vector_store %arg15[%c46, %c0_282], %339 {strides = array<i32>} : memref<83x128xf32, #tpu.memory_space<vmem>>, vector<7x128xf32>,
      %c160_283 = arith.constant 160 : index
      %c0_284 = arith.constant 0 : index
      %341 = tpu.strided_load %arg14[%c160_283, %c0_284] {strides = array<i32: 2, 1>} : memref<224x128xf32, #tpu.memory_space<vmem>>, vector<7x128xf32>
      %c161_285 = arith.constant 161 : index
      %c0_286 = arith.constant 0 : index
      %342 = tpu.strided_load %arg14[%c161_285, %c0_286] {strides = array<i32: 2, 1>} : memref<224x128xf32, #tpu.memory_space<vmem>>, vector<7x128xf32>
      %c176_287 = arith.constant 176 : index
      %c0_288 = arith.constant 0 : index
      %343 = tpu.strided_load %arg14[%c176_287, %c0_288] {strides = array<i32: 2, 1>} : memref<224x128xf32, #tpu.memory_space<vmem>>, vector<7x128xf32>
      %c177 = arith.constant 177 : index
      %c0_289 = arith.constant 0 : index
      %344 = tpu.strided_load %arg14[%c177, %c0_289] {strides = array<i32: 2, 1>} : memref<224x128xf32, #tpu.memory_space<vmem>>, vector<7x128xf32>
      %345 = arith.maximumf %341, %342 : vector<7x128xf32>
      %346 = arith.maximumf %343, %344 : vector<7x128xf32>
      %347 = arith.maximumf %345, %346 : vector<7x128xf32>
      %c55 = arith.constant 55 : index
      %c0_290 = arith.constant 0 : index
      %348 = vector.load %arg15[%c55, %c0_290] : memref<83x128xf32, #tpu.memory_space<vmem>>, vector<7x128xf32>
      tpu.vector_store %arg15[%c55, %c0_290], %347 {strides = array<i32>} : memref<83x128xf32, #tpu.memory_space<vmem>>, vector<7x128xf32>,
      %c192_291 = arith.constant 192 : index
      %c0_292 = arith.constant 0 : index
      %349 = tpu.strided_load %arg14[%c192_291, %c0_292] {strides = array<i32: 2, 1>} : memref<224x128xf32, #tpu.memory_space<vmem>>, vector<7x128xf32>
      %c193_293 = arith.constant 193 : index
      %c0_294 = arith.constant 0 : index
      %350 = tpu.strided_load %arg14[%c193_293, %c0_294] {strides = array<i32: 2, 1>} : memref<224x128xf32, #tpu.memory_space<vmem>>, vector<7x128xf32>
      %c208_295 = arith.constant 208 : index
      %c0_296 = arith.constant 0 : index
      %351 = tpu.strided_load %arg14[%c208_295, %c0_296] {strides = array<i32: 2, 1>} : memref<224x128xf32, #tpu.memory_space<vmem>>, vector<7x128xf32>
      %c209 = arith.constant 209 : index
      %c0_297 = arith.constant 0 : index
      %352 = tpu.strided_load %arg14[%c209, %c0_297] {strides = array<i32: 2, 1>} : memref<224x128xf32, #tpu.memory_space<vmem>>, vector<7x128xf32>
      %353 = arith.maximumf %349, %350 : vector<7x128xf32>
      %354 = arith.maximumf %351, %352 : vector<7x128xf32>
      %355 = arith.maximumf %353, %354 : vector<7x128xf32>
      %c64_298 = arith.constant 64 : index
      %c0_299 = arith.constant 0 : index
      %356 = vector.load %arg15[%c64_298, %c0_299] : memref<83x128xf32, #tpu.memory_space<vmem>>, vector<7x128xf32>
      tpu.vector_store %arg15[%c64_298, %c0_299], %355 {strides = array<i32>} : memref<83x128xf32, #tpu.memory_space<vmem>>, vector<7x128xf32>,
      %c0_300 = arith.constant 0 : index
      %c0_301 = arith.constant 0 : index
      %357 = vector.load %arg15[%c0_300, %c0_301] : memref<83x128xf32, #tpu.memory_space<vmem>>, vector<63x128xf32>
      %c0_302 = arith.constant 0 : index
      %c0_303 = arith.constant 0 : index
      %c0_304 = arith.constant 0 : index
      %358 = vector.load %arg5[%c0_302, %c0_303, %c0_304] : memref<9x128x128xf32, #tpu.memory_space<vmem>>, vector<1x128x128xf32>
      %359 = vector.shape_cast %358 : vector<1x128x128xf32> to vector<128x128xf32>
      %cst_305 = arith.constant dense<0.000000e+00> : vector<63x128xf32>
      %360 = tpu.matmul %357, %359, %cst_305 {dimension_numbers = #tpu.dot_dimension_numbers<[1], [0], [0], [1], [0, 0, 1, 1], [], []>} : vector<63x128xf32>, vector<128x128xf32>, vector<63x128xf32> -> vector<63x128xf32>
      %c1_306 = arith.constant 1 : index
      %c0_307 = arith.constant 0 : index
      %361 = vector.load %arg15[%c1_306, %c0_307] : memref<83x128xf32, #tpu.memory_space<vmem>>, vector<63x128xf32>
      %c1_308 = arith.constant 1 : index
      %c0_309 = arith.constant 0 : index
      %c0_310 = arith.constant 0 : index
      %362 = vector.load %arg5[%c1_308, %c0_309, %c0_310] : memref<9x128x128xf32, #tpu.memory_space<vmem>>, vector<1x128x128xf32>
      %363 = vector.shape_cast %362 : vector<1x128x128xf32> to vector<128x128xf32>
      %cst_311 = arith.constant dense<0.000000e+00> : vector<63x128xf32>
      %364 = tpu.matmul %361, %363, %cst_311 {dimension_numbers = #tpu.dot_dimension_numbers<[1], [0], [0], [1], [0, 0, 1, 1], [], []>} : vector<63x128xf32>, vector<128x128xf32>, vector<63x128xf32> -> vector<63x128xf32>
      %365 = arith.addf %360, %364 : vector<63x128xf32>
      %c2_312 = arith.constant 2 : index
      %c0_313 = arith.constant 0 : index
      %366 = vector.load %arg15[%c2_312, %c0_313] : memref<83x128xf32, #tpu.memory_space<vmem>>, vector<63x128xf32>
      %c2_314 = arith.constant 2 : index
      %c0_315 = arith.constant 0 : index
      %c0_316 = arith.constant 0 : index
      %367 = vector.load %arg5[%c2_314, %c0_315, %c0_316] : memref<9x128x128xf32, #tpu.memory_space<vmem>>, vector<1x128x128xf32>
      %368 = vector.shape_cast %367 : vector<1x128x128xf32> to vector<128x128xf32>
      %cst_317 = arith.constant dense<0.000000e+00> : vector<63x128xf32>
      %369 = tpu.matmul %366, %368, %cst_317 {dimension_numbers = #tpu.dot_dimension_numbers<[1], [0], [0], [1], [0, 0, 1, 1], [], []>} : vector<63x128xf32>, vector<128x128xf32>, vector<63x128xf32> -> vector<63x128xf32>
      %370 = arith.addf %365, %369 : vector<63x128xf32>
      %c9 = arith.constant 9 : index
      %c0_318 = arith.constant 0 : index
      %371 = vector.load %arg15[%c9, %c0_318] : memref<83x128xf32, #tpu.memory_space<vmem>>, vector<63x128xf32>
      %c3_319 = arith.constant 3 : index
      %c0_320 = arith.constant 0 : index
      %c0_321 = arith.constant 0 : index
      %372 = vector.load %arg5[%c3_319, %c0_320, %c0_321] : memref<9x128x128xf32, #tpu.memory_space<vmem>>, vector<1x128x128xf32>
      %373 = vector.shape_cast %372 : vector<1x128x128xf32> to vector<128x128xf32>
      %cst_322 = arith.constant dense<0.000000e+00> : vector<63x128xf32>
      %374 = tpu.matmul %371, %373, %cst_322 {dimension_numbers = #tpu.dot_dimension_numbers<[1], [0], [0], [1], [0, 0, 1, 1], [], []>} : vector<63x128xf32>, vector<128x128xf32>, vector<63x128xf32> -> vector<63x128xf32>
      %375 = arith.addf %370, %374 : vector<63x128xf32>
      %c10_323 = arith.constant 10 : index
      %c0_324 = arith.constant 0 : index
      %376 = vector.load %arg15[%c10_323, %c0_324] : memref<83x128xf32, #tpu.memory_space<vmem>>, vector<63x128xf32>
      %c4_325 = arith.constant 4 : index
      %c0_326 = arith.constant 0 : index
      %c0_327 = arith.constant 0 : index
      %377 = vector.load %arg5[%c4_325, %c0_326, %c0_327] : memref<9x128x128xf32, #tpu.memory_space<vmem>>, vector<1x128x128xf32>
      %378 = vector.shape_cast %377 : vector<1x128x128xf32> to vector<128x128xf32>
      %cst_328 = arith.constant dense<0.000000e+00> : vector<63x128xf32>
      %379 = tpu.matmul %376, %378, %cst_328 {dimension_numbers = #tpu.dot_dimension_numbers<[1], [0], [0], [1], [0, 0, 1, 1], [], []>} : vector<63x128xf32>, vector<128x128xf32>, vector<63x128xf32> -> vector<63x128xf32>
      %380 = arith.addf %375, %379 : vector<63x128xf32>
      %c11 = arith.constant 11 : index
      %c0_329 = arith.constant 0 : index
      %381 = vector.load %arg15[%c11, %c0_329] : memref<83x128xf32, #tpu.memory_space<vmem>>, vector<63x128xf32>
      %c5_330 = arith.constant 5 : index
      %c0_331 = arith.constant 0 : index
      %c0_332 = arith.constant 0 : index
      %382 = vector.load %arg5[%c5_330, %c0_331, %c0_332] : memref<9x128x128xf32, #tpu.memory_space<vmem>>, vector<1x128x128xf32>
      %383 = vector.shape_cast %382 : vector<1x128x128xf32> to vector<128x128xf32>
      %cst_333 = arith.constant dense<0.000000e+00> : vector<63x128xf32>
      %384 = tpu.matmul %381, %383, %cst_333 {dimension_numbers = #tpu.dot_dimension_numbers<[1], [0], [0], [1], [0, 0, 1, 1], [], []>} : vector<63x128xf32>, vector<128x128xf32>, vector<63x128xf32> -> vector<63x128xf32>
      %385 = arith.addf %380, %384 : vector<63x128xf32>
      %c18_334 = arith.constant 18 : index
      %c0_335 = arith.constant 0 : index
      %386 = vector.load %arg15[%c18_334, %c0_335] : memref<83x128xf32, #tpu.memory_space<vmem>>, vector<63x128xf32>
      %c6_336 = arith.constant 6 : index
      %c0_337 = arith.constant 0 : index
      %c0_338 = arith.constant 0 : index
      %387 = vector.load %arg5[%c6_336, %c0_337, %c0_338] : memref<9x128x128xf32, #tpu.memory_space<vmem>>, vector<1x128x128xf32>
      %388 = vector.shape_cast %387 : vector<1x128x128xf32> to vector<128x128xf32>
      %cst_339 = arith.constant dense<0.000000e+00> : vector<63x128xf32>
      %389 = tpu.matmul %386, %388, %cst_339 {dimension_numbers = #tpu.dot_dimension_numbers<[1], [0], [0], [1], [0, 0, 1, 1], [], []>} : vector<63x128xf32>, vector<128x128xf32>, vector<63x128xf32> -> vector<63x128xf32>
      %390 = arith.addf %385, %389 : vector<63x128xf32>
      %c19_340 = arith.constant 19 : index
      %c0_341 = arith.constant 0 : index
      %391 = vector.load %arg15[%c19_340, %c0_341] : memref<83x128xf32, #tpu.memory_space<vmem>>, vector<63x128xf32>
      %c7_342 = arith.constant 7 : index
      %c0_343 = arith.constant 0 : index
      %c0_344 = arith.constant 0 : index
      %392 = vector.load %arg5[%c7_342, %c0_343, %c0_344] : memref<9x128x128xf32, #tpu.memory_space<vmem>>, vector<1x128x128xf32>
      %393 = vector.shape_cast %392 : vector<1x128x128xf32> to vector<128x128xf32>
      %cst_345 = arith.constant dense<0.000000e+00> : vector<63x128xf32>
      %394 = tpu.matmul %391, %393, %cst_345 {dimension_numbers = #tpu.dot_dimension_numbers<[1], [0], [0], [1], [0, 0, 1, 1], [], []>} : vector<63x128xf32>, vector<128x128xf32>, vector<63x128xf32> -> vector<63x128xf32>
      %395 = arith.addf %390, %394 : vector<63x128xf32>
      %c20 = arith.constant 20 : index
      %c0_346 = arith.constant 0 : index
      %396 = vector.load %arg15[%c20, %c0_346] : memref<83x128xf32, #tpu.memory_space<vmem>>, vector<63x128xf32>
      %c8_347 = arith.constant 8 : index
      %c0_348 = arith.constant 0 : index
      %c0_349 = arith.constant 0 : index
      %397 = vector.load %arg5[%c8_347, %c0_348, %c0_349] : memref<9x128x128xf32, #tpu.memory_space<vmem>>, vector<1x128x128xf32>
      %398 = vector.shape_cast %397 : vector<1x128x128xf32> to vector<128x128xf32>
      %cst_350 = arith.constant dense<0.000000e+00> : vector<63x128xf32>
      %399 = tpu.matmul %396, %398, %cst_350 {dimension_numbers = #tpu.dot_dimension_numbers<[1], [0], [0], [1], [0, 0, 1, 1], [], []>} : vector<63x128xf32>, vector<128x128xf32>, vector<63x128xf32> -> vector<63x128xf32>
      %400 = arith.addf %395, %399 : vector<63x128xf32>
      %c0_351 = arith.constant 0 : index
      %c0_352 = arith.constant 0 : index
      %401 = vector.load %arg6[%c0_351, %c0_352] : memref<1x128xf32, #tpu.memory_space<vmem>>, vector<1x128xf32>
      %402 = vector.broadcast %401 : vector<1x128xf32> to vector<63x128xf32>
      %403 = arith.addf %400, %402 : vector<63x128xf32>
      %cst_353 = arith.constant 0.000000e+00 : f32
      %404 = vector.broadcast %cst_353 : f32 to vector<63x128xf32>
      %405 = arith.maximumf %403, %404 : vector<63x128xf32>
      %c0_354 = arith.constant 0 : index
      %c0_355 = arith.constant 0 : index
      %406 = vector.load %arg16[%c0_354, %c0_355] : memref<63x128xf32, #tpu.memory_space<vmem>>, vector<63x128xf32>
      tpu.vector_store %arg16[%c0_354, %c0_355], %405 {strides = array<i32>} : memref<63x128xf32, #tpu.memory_space<vmem>>, vector<63x128xf32>,
      %c0_356 = arith.constant 0 : index
      %c0_357 = arith.constant 0 : index
      %407 = tpu.strided_load %arg16[%c0_356, %c0_357] {strides = array<i32: 2, 1>} : memref<63x128xf32, #tpu.memory_space<vmem>>, vector<1x128xf32>
      %c1_358 = arith.constant 1 : index
      %c0_359 = arith.constant 0 : index
      %408 = tpu.strided_load %arg16[%c1_358, %c0_359] {strides = array<i32: 2, 1>} : memref<63x128xf32, #tpu.memory_space<vmem>>, vector<1x128xf32>
      %c9_360 = arith.constant 9 : index
      %c0_361 = arith.constant 0 : index
      %409 = tpu.strided_load %arg16[%c9_360, %c0_361] {strides = array<i32: 2, 1>} : memref<63x128xf32, #tpu.memory_space<vmem>>, vector<1x128xf32>
      %c10_362 = arith.constant 10 : index
      %c0_363 = arith.constant 0 : index
      %410 = tpu.strided_load %arg16[%c10_362, %c0_363] {strides = array<i32: 2, 1>} : memref<63x128xf32, #tpu.memory_space<vmem>>, vector<1x128xf32>
      %411 = arith.maximumf %407, %408 : vector<1x128xf32>
      %412 = arith.maximumf %409, %410 : vector<1x128xf32>
      %413 = arith.maximumf %411, %412 : vector<1x128xf32>
      %c0_364 = arith.constant 0 : index
      %414 = arith.index_cast %arg18 : i32 to index
      %c0_365 = arith.constant 0 : index
      %415 = vector.load %arg17[%c0_364, %414, %c0_365] : memref<9x2x128xf32, #tpu.memory_space<vmem>>, vector<1x1x128xf32>
      %416 = vector.shape_cast %415 : vector<1x1x128xf32> to vector<1x128xf32>
      %417 = vector.shape_cast %413 : vector<1x128xf32> to vector<1x1x128xf32>
      tpu.vector_store %arg17[%c0_364, %414, %c0_365], %417 {strides = array<i32>} : memref<9x2x128xf32, #tpu.memory_space<vmem>>, vector<1x1x128xf32>,
      %c2_366 = arith.constant 2 : index
      %c0_367 = arith.constant 0 : index
      %418 = tpu.strided_load %arg16[%c2_366, %c0_367] {strides = array<i32: 2, 1>} : memref<63x128xf32, #tpu.memory_space<vmem>>, vector<1x128xf32>
      %c3_368 = arith.constant 3 : index
      %c0_369 = arith.constant 0 : index
      %419 = tpu.strided_load %arg16[%c3_368, %c0_369] {strides = array<i32: 2, 1>} : memref<63x128xf32, #tpu.memory_space<vmem>>, vector<1x128xf32>
      %c11_370 = arith.constant 11 : index
      %c0_371 = arith.constant 0 : index
      %420 = tpu.strided_load %arg16[%c11_370, %c0_371] {strides = array<i32: 2, 1>} : memref<63x128xf32, #tpu.memory_space<vmem>>, vector<1x128xf32>
      %c12 = arith.constant 12 : index
      %c0_372 = arith.constant 0 : index
      %421 = tpu.strided_load %arg16[%c12, %c0_372] {strides = array<i32: 2, 1>} : memref<63x128xf32, #tpu.memory_space<vmem>>, vector<1x128xf32>
      %422 = arith.maximumf %418, %419 : vector<1x128xf32>
      %423 = arith.maximumf %420, %421 : vector<1x128xf32>
      %424 = arith.maximumf %422, %423 : vector<1x128xf32>
      %c1_373 = arith.constant 1 : index
      %425 = arith.index_cast %arg18 : i32 to index
      %c0_374 = arith.constant 0 : index
      %426 = vector.load %arg17[%c1_373, %425, %c0_374] : memref<9x2x128xf32, #tpu.memory_space<vmem>>, vector<1x1x128xf32>
      %427 = vector.shape_cast %426 : vector<1x1x128xf32> to vector<1x128xf32>
      %428 = vector.shape_cast %424 : vector<1x128xf32> to vector<1x1x128xf32>
      tpu.vector_store %arg17[%c1_373, %425, %c0_374], %428 {strides = array<i32>} : memref<9x2x128xf32, #tpu.memory_space<vmem>>, vector<1x1x128xf32>,
      %c4_375 = arith.constant 4 : index
      %c0_376 = arith.constant 0 : index
      %429 = tpu.strided_load %arg16[%c4_375, %c0_376] {strides = array<i32: 2, 1>} : memref<63x128xf32, #tpu.memory_space<vmem>>, vector<1x128xf32>
      %c5_377 = arith.constant 5 : index
      %c0_378 = arith.constant 0 : index
      %430 = tpu.strided_load %arg16[%c5_377, %c0_378] {strides = array<i32: 2, 1>} : memref<63x128xf32, #tpu.memory_space<vmem>>, vector<1x128xf32>
      %c13 = arith.constant 13 : index
      %c0_379 = arith.constant 0 : index
      %431 = tpu.strided_load %arg16[%c13, %c0_379] {strides = array<i32: 2, 1>} : memref<63x128xf32, #tpu.memory_space<vmem>>, vector<1x128xf32>
      %c14 = arith.constant 14 : index
      %c0_380 = arith.constant 0 : index
      %432 = tpu.strided_load %arg16[%c14, %c0_380] {strides = array<i32: 2, 1>} : memref<63x128xf32, #tpu.memory_space<vmem>>, vector<1x128xf32>
      %433 = arith.maximumf %429, %430 : vector<1x128xf32>
      %434 = arith.maximumf %431, %432 : vector<1x128xf32>
      %435 = arith.maximumf %433, %434 : vector<1x128xf32>
      %c2_381 = arith.constant 2 : index
      %436 = arith.index_cast %arg18 : i32 to index
      %c0_382 = arith.constant 0 : index
      %437 = vector.load %arg17[%c2_381, %436, %c0_382] : memref<9x2x128xf32, #tpu.memory_space<vmem>>, vector<1x1x128xf32>
      %438 = vector.shape_cast %437 : vector<1x1x128xf32> to vector<1x128xf32>
      %439 = vector.shape_cast %435 : vector<1x128xf32> to vector<1x1x128xf32>
      tpu.vector_store %arg17[%c2_381, %436, %c0_382], %439 {strides = array<i32>} : memref<9x2x128xf32, #tpu.memory_space<vmem>>, vector<1x1x128xf32>,
      %c18_383 = arith.constant 18 : index
      %c0_384 = arith.constant 0 : index
      %440 = tpu.strided_load %arg16[%c18_383, %c0_384] {strides = array<i32: 2, 1>} : memref<63x128xf32, #tpu.memory_space<vmem>>, vector<1x128xf32>
      %c19_385 = arith.constant 19 : index
      %c0_386 = arith.constant 0 : index
      %441 = tpu.strided_load %arg16[%c19_385, %c0_386] {strides = array<i32: 2, 1>} : memref<63x128xf32, #tpu.memory_space<vmem>>, vector<1x128xf32>
      %c27 = arith.constant 27 : index
      %c0_387 = arith.constant 0 : index
      %442 = tpu.strided_load %arg16[%c27, %c0_387] {strides = array<i32: 2, 1>} : memref<63x128xf32, #tpu.memory_space<vmem>>, vector<1x128xf32>
      %c28_388 = arith.constant 28 : index
      %c0_389 = arith.constant 0 : index
      %443 = tpu.strided_load %arg16[%c28_388, %c0_389] {strides = array<i32: 2, 1>} : memref<63x128xf32, #tpu.memory_space<vmem>>, vector<1x128xf32>
      %444 = arith.maximumf %440, %441 : vector<1x128xf32>
      %445 = arith.maximumf %442, %443 : vector<1x128xf32>
      %446 = arith.maximumf %444, %445 : vector<1x128xf32>
      %c3_390 = arith.constant 3 : index
      %447 = arith.index_cast %arg18 : i32 to index
      %c0_391 = arith.constant 0 : index
      %448 = vector.load %arg17[%c3_390, %447, %c0_391] : memref<9x2x128xf32, #tpu.memory_space<vmem>>, vector<1x1x128xf32>
      %449 = vector.shape_cast %448 : vector<1x1x128xf32> to vector<1x128xf32>
      %450 = vector.shape_cast %446 : vector<1x128xf32> to vector<1x1x128xf32>
      tpu.vector_store %arg17[%c3_390, %447, %c0_391], %450 {strides = array<i32>} : memref<9x2x128xf32, #tpu.memory_space<vmem>>, vector<1x1x128xf32>,
      %c20_392 = arith.constant 20 : index
      %c0_393 = arith.constant 0 : index
      %451 = tpu.strided_load %arg16[%c20_392, %c0_393] {strides = array<i32: 2, 1>} : memref<63x128xf32, #tpu.memory_space<vmem>>, vector<1x128xf32>
      %c21 = arith.constant 21 : index
      %c0_394 = arith.constant 0 : index
      %452 = tpu.strided_load %arg16[%c21, %c0_394] {strides = array<i32: 2, 1>} : memref<63x128xf32, #tpu.memory_space<vmem>>, vector<1x128xf32>
      %c29 = arith.constant 29 : index
      %c0_395 = arith.constant 0 : index
      %453 = tpu.strided_load %arg16[%c29, %c0_395] {strides = array<i32: 2, 1>} : memref<63x128xf32, #tpu.memory_space<vmem>>, vector<1x128xf32>
      %c30 = arith.constant 30 : index
      %c0_396 = arith.constant 0 : index
      %454 = tpu.strided_load %arg16[%c30, %c0_396] {strides = array<i32: 2, 1>} : memref<63x128xf32, #tpu.memory_space<vmem>>, vector<1x128xf32>
      %455 = arith.maximumf %451, %452 : vector<1x128xf32>
      %456 = arith.maximumf %453, %454 : vector<1x128xf32>
      %457 = arith.maximumf %455, %456 : vector<1x128xf32>
      %c4_397 = arith.constant 4 : index
      %458 = arith.index_cast %arg18 : i32 to index
      %c0_398 = arith.constant 0 : index
      %459 = vector.load %arg17[%c4_397, %458, %c0_398] : memref<9x2x128xf32, #tpu.memory_space<vmem>>, vector<1x1x128xf32>
      %460 = vector.shape_cast %459 : vector<1x1x128xf32> to vector<1x128xf32>
      %461 = vector.shape_cast %457 : vector<1x128xf32> to vector<1x1x128xf32>
      tpu.vector_store %arg17[%c4_397, %458, %c0_398], %461 {strides = array<i32>} : memref<9x2x128xf32, #tpu.memory_space<vmem>>, vector<1x1x128xf32>,
      %c22 = arith.constant 22 : index
      %c0_399 = arith.constant 0 : index
      %462 = tpu.strided_load %arg16[%c22, %c0_399] {strides = array<i32: 2, 1>} : memref<63x128xf32, #tpu.memory_space<vmem>>, vector<1x128xf32>
      %c23 = arith.constant 23 : index
      %c0_400 = arith.constant 0 : index
      %463 = tpu.strided_load %arg16[%c23, %c0_400] {strides = array<i32: 2, 1>} : memref<63x128xf32, #tpu.memory_space<vmem>>, vector<1x128xf32>
      %c31 = arith.constant 31 : index
      %c0_401 = arith.constant 0 : index
      %464 = tpu.strided_load %arg16[%c31, %c0_401] {strides = array<i32: 2, 1>} : memref<63x128xf32, #tpu.memory_space<vmem>>, vector<1x128xf32>
      %c32_402 = arith.constant 32 : index
      %c0_403 = arith.constant 0 : index
      %465 = tpu.strided_load %arg16[%c32_402, %c0_403] {strides = array<i32: 2, 1>} : memref<63x128xf32, #tpu.memory_space<vmem>>, vector<1x128xf32>
      %466 = arith.maximumf %462, %463 : vector<1x128xf32>
      %467 = arith.maximumf %464, %465 : vector<1x128xf32>
      %468 = arith.maximumf %466, %467 : vector<1x128xf32>
      %c5_404 = arith.constant 5 : index
      %469 = arith.index_cast %arg18 : i32 to index
      %c0_405 = arith.constant 0 : index
      %470 = vector.load %arg17[%c5_404, %469, %c0_405] : memref<9x2x128xf32, #tpu.memory_space<vmem>>, vector<1x1x128xf32>
      %471 = vector.shape_cast %470 : vector<1x1x128xf32> to vector<1x128xf32>
      %472 = vector.shape_cast %468 : vector<1x128xf32> to vector<1x1x128xf32>
      tpu.vector_store %arg17[%c5_404, %469, %c0_405], %472 {strides = array<i32>} : memref<9x2x128xf32, #tpu.memory_space<vmem>>, vector<1x1x128xf32>,
      %c36 = arith.constant 36 : index
      %c0_406 = arith.constant 0 : index
      %473 = tpu.strided_load %arg16[%c36, %c0_406] {strides = array<i32: 2, 1>} : memref<63x128xf32, #tpu.memory_space<vmem>>, vector<1x128xf32>
      %c37_407 = arith.constant 37 : index
      %c0_408 = arith.constant 0 : index
      %474 = tpu.strided_load %arg16[%c37_407, %c0_408] {strides = array<i32: 2, 1>} : memref<63x128xf32, #tpu.memory_space<vmem>>, vector<1x128xf32>
      %c45 = arith.constant 45 : index
      %c0_409 = arith.constant 0 : index
      %475 = tpu.strided_load %arg16[%c45, %c0_409] {strides = array<i32: 2, 1>} : memref<63x128xf32, #tpu.memory_space<vmem>>, vector<1x128xf32>
      %c46_410 = arith.constant 46 : index
      %c0_411 = arith.constant 0 : index
      %476 = tpu.strided_load %arg16[%c46_410, %c0_411] {strides = array<i32: 2, 1>} : memref<63x128xf32, #tpu.memory_space<vmem>>, vector<1x128xf32>
      %477 = arith.maximumf %473, %474 : vector<1x128xf32>
      %478 = arith.maximumf %475, %476 : vector<1x128xf32>
      %479 = arith.maximumf %477, %478 : vector<1x128xf32>
      %c6_412 = arith.constant 6 : index
      %480 = arith.index_cast %arg18 : i32 to index
      %c0_413 = arith.constant 0 : index
      %481 = vector.load %arg17[%c6_412, %480, %c0_413] : memref<9x2x128xf32, #tpu.memory_space<vmem>>, vector<1x1x128xf32>
      %482 = vector.shape_cast %481 : vector<1x1x128xf32> to vector<1x128xf32>
      %483 = vector.shape_cast %479 : vector<1x128xf32> to vector<1x1x128xf32>
      tpu.vector_store %arg17[%c6_412, %480, %c0_413], %483 {strides = array<i32>} : memref<9x2x128xf32, #tpu.memory_space<vmem>>, vector<1x1x128xf32>,
      %c38 = arith.constant 38 : index
      %c0_414 = arith.constant 0 : index
      %484 = tpu.strided_load %arg16[%c38, %c0_414] {strides = array<i32: 2, 1>} : memref<63x128xf32, #tpu.memory_space<vmem>>, vector<1x128xf32>
      %c39 = arith.constant 39 : index
      %c0_415 = arith.constant 0 : index
      %485 = tpu.strided_load %arg16[%c39, %c0_415] {strides = array<i32: 2, 1>} : memref<63x128xf32, #tpu.memory_space<vmem>>, vector<1x128xf32>
      %c47 = arith.constant 47 : index
      %c0_416 = arith.constant 0 : index
      %486 = tpu.strided_load %arg16[%c47, %c0_416] {strides = array<i32: 2, 1>} : memref<63x128xf32, #tpu.memory_space<vmem>>, vector<1x128xf32>
      %c48_417 = arith.constant 48 : index
      %c0_418 = arith.constant 0 : index
      %487 = tpu.strided_load %arg16[%c48_417, %c0_418] {strides = array<i32: 2, 1>} : memref<63x128xf32, #tpu.memory_space<vmem>>, vector<1x128xf32>
      %488 = arith.maximumf %484, %485 : vector<1x128xf32>
      %489 = arith.maximumf %486, %487 : vector<1x128xf32>
      %490 = arith.maximumf %488, %489 : vector<1x128xf32>
      %c7_419 = arith.constant 7 : index
      %491 = arith.index_cast %arg18 : i32 to index
      %c0_420 = arith.constant 0 : index
      %492 = vector.load %arg17[%c7_419, %491, %c0_420] : memref<9x2x128xf32, #tpu.memory_space<vmem>>, vector<1x1x128xf32>
      %493 = vector.shape_cast %492 : vector<1x1x128xf32> to vector<1x128xf32>
      %494 = vector.shape_cast %490 : vector<1x128xf32> to vector<1x1x128xf32>
      tpu.vector_store %arg17[%c7_419, %491, %c0_420], %494 {strides = array<i32>} : memref<9x2x128xf32, #tpu.memory_space<vmem>>, vector<1x1x128xf32>,
      %c40 = arith.constant 40 : index
      %c0_421 = arith.constant 0 : index
      %495 = tpu.strided_load %arg16[%c40, %c0_421] {strides = array<i32: 2, 1>} : memref<63x128xf32, #tpu.memory_space<vmem>>, vector<1x128xf32>
      %c41 = arith.constant 41 : index
      %c0_422 = arith.constant 0 : index
      %496 = tpu.strided_load %arg16[%c41, %c0_422] {strides = array<i32: 2, 1>} : memref<63x128xf32, #tpu.memory_space<vmem>>, vector<1x128xf32>
      %c49_423 = arith.constant 49 : index
      %c0_424 = arith.constant 0 : index
      %497 = tpu.strided_load %arg16[%c49_423, %c0_424] {strides = array<i32: 2, 1>} : memref<63x128xf32, #tpu.memory_space<vmem>>, vector<1x128xf32>
      %c50 = arith.constant 50 : index
      %c0_425 = arith.constant 0 : index
      %498 = tpu.strided_load %arg16[%c50, %c0_425] {strides = array<i32: 2, 1>} : memref<63x128xf32, #tpu.memory_space<vmem>>, vector<1x128xf32>
      %499 = arith.maximumf %495, %496 : vector<1x128xf32>
      %500 = arith.maximumf %497, %498 : vector<1x128xf32>
      %501 = arith.maximumf %499, %500 : vector<1x128xf32>
      %c8_426 = arith.constant 8 : index
      %502 = arith.index_cast %arg18 : i32 to index
      %c0_427 = arith.constant 0 : index
      %503 = vector.load %arg17[%c8_426, %502, %c0_427] : memref<9x2x128xf32, #tpu.memory_space<vmem>>, vector<1x1x128xf32>
      %504 = vector.shape_cast %503 : vector<1x1x128xf32> to vector<1x128xf32>
      %505 = vector.shape_cast %501 : vector<1x128xf32> to vector<1x1x128xf32>
      tpu.vector_store %arg17[%c8_426, %502, %c0_427], %505 {strides = array<i32>} : memref<9x2x128xf32, #tpu.memory_space<vmem>>, vector<1x1x128xf32>,
    }
    %c2_i32_3 = arith.constant 2 : i32
    %c0_4 = arith.constant 0 : index
    %c0_5 = arith.constant 0 : index
    %c0_6 = arith.constant 0 : index
    %5 = vector.load %arg17[%c0_4, %c0_5, %c0_6] : memref<9x2x128xf32, #tpu.memory_space<vmem>>, vector<1x2x128xf32>
    %6 = vector.shape_cast %5 : vector<1x2x128xf32> to vector<2x128xf32>
    %c0_7 = arith.constant 0 : index
    %c0_8 = arith.constant 0 : index
    %c0_9 = arith.constant 0 : index
    %7 = vector.load %arg7[%c0_7, %c0_8, %c0_9] : memref<9x128x128xf32, #tpu.memory_space<vmem>>, vector<1x128x128xf32>
    %8 = vector.shape_cast %7 : vector<1x128x128xf32> to vector<128x128xf32>
    %cst_10 = arith.constant dense<0.000000e+00> : vector<2x128xf32>
    %9 = tpu.matmul %6, %8, %cst_10 {dimension_numbers = #tpu.dot_dimension_numbers<[1], [0], [0], [1], [0, 0, 1, 1], [], []>} : vector<2x128xf32>, vector<128x128xf32>, vector<2x128xf32> -> vector<2x128xf32>
    %c1 = arith.constant 1 : index
    %c0_11 = arith.constant 0 : index
    %c0_12 = arith.constant 0 : index
    %10 = vector.load %arg17[%c1, %c0_11, %c0_12] : memref<9x2x128xf32, #tpu.memory_space<vmem>>, vector<1x2x128xf32>
    %11 = vector.shape_cast %10 : vector<1x2x128xf32> to vector<2x128xf32>
    %c1_13 = arith.constant 1 : index
    %c0_14 = arith.constant 0 : index
    %c0_15 = arith.constant 0 : index
    %12 = vector.load %arg7[%c1_13, %c0_14, %c0_15] : memref<9x128x128xf32, #tpu.memory_space<vmem>>, vector<1x128x128xf32>
    %13 = vector.shape_cast %12 : vector<1x128x128xf32> to vector<128x128xf32>
    %cst_16 = arith.constant dense<0.000000e+00> : vector<2x128xf32>
    %14 = tpu.matmul %11, %13, %cst_16 {dimension_numbers = #tpu.dot_dimension_numbers<[1], [0], [0], [1], [0, 0, 1, 1], [], []>} : vector<2x128xf32>, vector<128x128xf32>, vector<2x128xf32> -> vector<2x128xf32>
    %15 = arith.addf %9, %14 : vector<2x128xf32>
    %c2 = arith.constant 2 : index
    %c0_17 = arith.constant 0 : index
    %c0_18 = arith.constant 0 : index
    %16 = vector.load %arg17[%c2, %c0_17, %c0_18] : memref<9x2x128xf32, #tpu.memory_space<vmem>>, vector<1x2x128xf32>
    %17 = vector.shape_cast %16 : vector<1x2x128xf32> to vector<2x128xf32>
    %c2_19 = arith.constant 2 : index
    %c0_20 = arith.constant 0 : index
    %c0_21 = arith.constant 0 : index
    %18 = vector.load %arg7[%c2_19, %c0_20, %c0_21] : memref<9x128x128xf32, #tpu.memory_space<vmem>>, vector<1x128x128xf32>
    %19 = vector.shape_cast %18 : vector<1x128x128xf32> to vector<128x128xf32>
    %cst_22 = arith.constant dense<0.000000e+00> : vector<2x128xf32>
    %20 = tpu.matmul %17, %19, %cst_22 {dimension_numbers = #tpu.dot_dimension_numbers<[1], [0], [0], [1], [0, 0, 1, 1], [], []>} : vector<2x128xf32>, vector<128x128xf32>, vector<2x128xf32> -> vector<2x128xf32>
    %21 = arith.addf %15, %20 : vector<2x128xf32>
    %c3 = arith.constant 3 : index
    %c0_23 = arith.constant 0 : index
    %c0_24 = arith.constant 0 : index
    %22 = vector.load %arg17[%c3, %c0_23, %c0_24] : memref<9x2x128xf32, #tpu.memory_space<vmem>>, vector<1x2x128xf32>
    %23 = vector.shape_cast %22 : vector<1x2x128xf32> to vector<2x128xf32>
    %c3_25 = arith.constant 3 : index
    %c0_26 = arith.constant 0 : index
    %c0_27 = arith.constant 0 : index
    %24 = vector.load %arg7[%c3_25, %c0_26, %c0_27] : memref<9x128x128xf32, #tpu.memory_space<vmem>>, vector<1x128x128xf32>
    %25 = vector.shape_cast %24 : vector<1x128x128xf32> to vector<128x128xf32>
    %cst_28 = arith.constant dense<0.000000e+00> : vector<2x128xf32>
    %26 = tpu.matmul %23, %25, %cst_28 {dimension_numbers = #tpu.dot_dimension_numbers<[1], [0], [0], [1], [0, 0, 1, 1], [], []>} : vector<2x128xf32>, vector<128x128xf32>, vector<2x128xf32> -> vector<2x128xf32>
    %27 = arith.addf %21, %26 : vector<2x128xf32>
    %c4 = arith.constant 4 : index
    %c0_29 = arith.constant 0 : index
    %c0_30 = arith.constant 0 : index
    %28 = vector.load %arg17[%c4, %c0_29, %c0_30] : memref<9x2x128xf32, #tpu.memory_space<vmem>>, vector<1x2x128xf32>
    %29 = vector.shape_cast %28 : vector<1x2x128xf32> to vector<2x128xf32>
    %c4_31 = arith.constant 4 : index
    %c0_32 = arith.constant 0 : index
    %c0_33 = arith.constant 0 : index
    %30 = vector.load %arg7[%c4_31, %c0_32, %c0_33] : memref<9x128x128xf32, #tpu.memory_space<vmem>>, vector<1x128x128xf32>
    %31 = vector.shape_cast %30 : vector<1x128x128xf32> to vector<128x128xf32>
    %cst_34 = arith.constant dense<0.000000e+00> : vector<2x128xf32>
    %32 = tpu.matmul %29, %31, %cst_34 {dimension_numbers = #tpu.dot_dimension_numbers<[1], [0], [0], [1], [0, 0, 1, 1], [], []>} : vector<2x128xf32>, vector<128x128xf32>, vector<2x128xf32> -> vector<2x128xf32>
    %33 = arith.addf %27, %32 : vector<2x128xf32>
    %c5 = arith.constant 5 : index
    %c0_35 = arith.constant 0 : index
    %c0_36 = arith.constant 0 : index
    %34 = vector.load %arg17[%c5, %c0_35, %c0_36] : memref<9x2x128xf32, #tpu.memory_space<vmem>>, vector<1x2x128xf32>
    %35 = vector.shape_cast %34 : vector<1x2x128xf32> to vector<2x128xf32>
    %c5_37 = arith.constant 5 : index
    %c0_38 = arith.constant 0 : index
    %c0_39 = arith.constant 0 : index
    %36 = vector.load %arg7[%c5_37, %c0_38, %c0_39] : memref<9x128x128xf32, #tpu.memory_space<vmem>>, vector<1x128x128xf32>
    %37 = vector.shape_cast %36 : vector<1x128x128xf32> to vector<128x128xf32>
    %cst_40 = arith.constant dense<0.000000e+00> : vector<2x128xf32>
    %38 = tpu.matmul %35, %37, %cst_40 {dimension_numbers = #tpu.dot_dimension_numbers<[1], [0], [0], [1], [0, 0, 1, 1], [], []>} : vector<2x128xf32>, vector<128x128xf32>, vector<2x128xf32> -> vector<2x128xf32>
    %39 = arith.addf %33, %38 : vector<2x128xf32>
    %c6 = arith.constant 6 : index
    %c0_41 = arith.constant 0 : index
    %c0_42 = arith.constant 0 : index
    %40 = vector.load %arg17[%c6, %c0_41, %c0_42] : memref<9x2x128xf32, #tpu.memory_space<vmem>>, vector<1x2x128xf32>
    %41 = vector.shape_cast %40 : vector<1x2x128xf32> to vector<2x128xf32>
    %c6_43 = arith.constant 6 : index
    %c0_44 = arith.constant 0 : index
    %c0_45 = arith.constant 0 : index
    %42 = vector.load %arg7[%c6_43, %c0_44, %c0_45] : memref<9x128x128xf32, #tpu.memory_space<vmem>>, vector<1x128x128xf32>
    %43 = vector.shape_cast %42 : vector<1x128x128xf32> to vector<128x128xf32>
    %cst_46 = arith.constant dense<0.000000e+00> : vector<2x128xf32>
    %44 = tpu.matmul %41, %43, %cst_46 {dimension_numbers = #tpu.dot_dimension_numbers<[1], [0], [0], [1], [0, 0, 1, 1], [], []>} : vector<2x128xf32>, vector<128x128xf32>, vector<2x128xf32> -> vector<2x128xf32>
    %45 = arith.addf %39, %44 : vector<2x128xf32>
    %c7 = arith.constant 7 : index
    %c0_47 = arith.constant 0 : index
    %c0_48 = arith.constant 0 : index
    %46 = vector.load %arg17[%c7, %c0_47, %c0_48] : memref<9x2x128xf32, #tpu.memory_space<vmem>>, vector<1x2x128xf32>
    %47 = vector.shape_cast %46 : vector<1x2x128xf32> to vector<2x128xf32>
    %c7_49 = arith.constant 7 : index
    %c0_50 = arith.constant 0 : index
    %c0_51 = arith.constant 0 : index
    %48 = vector.load %arg7[%c7_49, %c0_50, %c0_51] : memref<9x128x128xf32, #tpu.memory_space<vmem>>, vector<1x128x128xf32>
    %49 = vector.shape_cast %48 : vector<1x128x128xf32> to vector<128x128xf32>
    %cst_52 = arith.constant dense<0.000000e+00> : vector<2x128xf32>
    %50 = tpu.matmul %47, %49, %cst_52 {dimension_numbers = #tpu.dot_dimension_numbers<[1], [0], [0], [1], [0, 0, 1, 1], [], []>} : vector<2x128xf32>, vector<128x128xf32>, vector<2x128xf32> -> vector<2x128xf32>
    %51 = arith.addf %45, %50 : vector<2x128xf32>
    %c8 = arith.constant 8 : index
    %c0_53 = arith.constant 0 : index
    %c0_54 = arith.constant 0 : index
    %52 = vector.load %arg17[%c8, %c0_53, %c0_54] : memref<9x2x128xf32, #tpu.memory_space<vmem>>, vector<1x2x128xf32>
    %53 = vector.shape_cast %52 : vector<1x2x128xf32> to vector<2x128xf32>
    %c8_55 = arith.constant 8 : index
    %c0_56 = arith.constant 0 : index
    %c0_57 = arith.constant 0 : index
    %54 = vector.load %arg7[%c8_55, %c0_56, %c0_57] : memref<9x128x128xf32, #tpu.memory_space<vmem>>, vector<1x128x128xf32>
    %55 = vector.shape_cast %54 : vector<1x128x128xf32> to vector<128x128xf32>
    %cst_58 = arith.constant dense<0.000000e+00> : vector<2x128xf32>
    %56 = tpu.matmul %53, %55, %cst_58 {dimension_numbers = #tpu.dot_dimension_numbers<[1], [0], [0], [1], [0, 0, 1, 1], [], []>} : vector<2x128xf32>, vector<128x128xf32>, vector<2x128xf32> -> vector<2x128xf32>
    %57 = arith.addf %51, %56 : vector<2x128xf32>
    %c0_59 = arith.constant 0 : index
    %c0_60 = arith.constant 0 : index
    %58 = vector.load %arg8[%c0_59, %c0_60] : memref<1x128xf32, #tpu.memory_space<vmem>>, vector<1x128xf32>
    %59 = vector.broadcast %58 : vector<1x128xf32> to vector<2x128xf32>
    %60 = arith.addf %57, %59 : vector<2x128xf32>
    %cst_61 = arith.constant 0.000000e+00 : f32
    %61 = vector.broadcast %cst_61 : f32 to vector<2x128xf32>
    %62 = arith.maximumf %60, %61 : vector<2x128xf32>
    %c0_62 = arith.constant 0 : index
    %c0_63 = arith.constant 0 : index
    %63 = vector.load %arg9[%c0_62, %c0_63] : memref<128x128xf32, #tpu.memory_space<vmem>>, vector<128x128xf32>
    %cst_64 = arith.constant dense<0.000000e+00> : vector<2x128xf32>
    %64 = tpu.matmul %62, %63, %cst_64 {dimension_numbers = #tpu.dot_dimension_numbers<[1], [0], [0], [1], [0, 0, 1, 1], [], []>} : vector<2x128xf32>, vector<128x128xf32>, vector<2x128xf32> -> vector<2x128xf32>
    %c0_65 = arith.constant 0 : index
    %c0_66 = arith.constant 0 : index
    %65 = vector.load %arg10[%c0_65, %c0_66] : memref<1x128xf32, #tpu.memory_space<vmem>>, vector<1x128xf32>
    %66 = vector.broadcast %65 : vector<1x128xf32> to vector<2x128xf32>
    %67 = arith.addf %64, %66 : vector<2x128xf32>
    %68 = tpu.iota {dimensions = array<i32: 1>} : vector<2x128xi32>
    %c10_i32 = arith.constant 10 : i32
    %69 = vector.broadcast %c10_i32 : i32 to vector<2x128xi32>
    %70 = arith.cmpi slt, %68, %69 : vector<2x128xi32>
    %cst_67 = arith.constant 0xFF800000 : f32
    %71 = vector.broadcast %cst_67 : f32 to vector<2x128xf32>
    %72 = arith.select %70, %67, %71 : vector<2x128xi1>, vector<2x128xf32>
    %cst_68 = arith.constant dense<0xFF800000> : vector<2xf32>
    %73 = vector.multi_reduction <maximumf>, %72, %cst_68 [1] : vector<2x128xf32> to vector<2xf32>
    %74 = vector.shape_cast %73 : vector<2xf32> to vector<2x1xf32>
    %75 = vector.broadcast %74 : vector<2x1xf32> to vector<2x128xf32>
    %76 = arith.subf %72, %75 : vector<2x128xf32>
    %77 = math.exp %76 : vector<2x128xf32>
    %cst_69 = arith.constant dense<0.000000e+00> : vector<2xf32>
    %78 = vector.multi_reduction <add>, %77, %cst_69 [1] : vector<2x128xf32> to vector<2xf32>
    %79 = vector.shape_cast %78 : vector<2xf32> to vector<2x1xf32>
    %80 = math.log %79 : vector<2x1xf32>
    %81 = arith.addf %80, %74 : vector<2x1xf32>
    %82 = vector.broadcast %81 : vector<2x1xf32> to vector<2x128xf32>
    %83 = arith.subf %67, %82 : vector<2x128xf32>
    %c0_70 = arith.constant 0 : index
    %c0_71 = arith.constant 0 : index
    %84 = vector.load %arg11[%c0_70, %c0_71] : memref<2x128xf32, #tpu.memory_space<vmem>>, vector<2x128xf32>
    tpu.vector_store %arg11[%c0_70, %c0_71], %83 {strides = array<i32>} : memref<2x128xf32, #tpu.memory_space<vmem>>, vector<2x128xf32>,
    return
  }
  func.func @transform_0(%arg0: i32) -> (i32, i32, i32) {
    %c0_i32 = arith.constant 0 : i32
    %c0_i32_0 = arith.constant 0 : i32
    %c0_i32_1 = arith.constant 0 : i32
    return %arg0, %c0_i32, %c0_i32_0 : i32, i32, i32
  }
  func.func @transform_1(%arg0: i32) -> (i32, i32) {
    %c0_i32 = arith.constant 0 : i32
    %c0_i32_0 = arith.constant 0 : i32
    %c0_i32_1 = arith.constant 0 : i32
    return %c0_i32, %c0_i32_0 : i32, i32
  }
  func.func @transform_2(%arg0: i32) -> (i32, i32, i32) {
    %c0_i32 = arith.constant 0 : i32
    %c0_i32_0 = arith.constant 0 : i32
    %c0_i32_1 = arith.constant 0 : i32
    %c0_i32_2 = arith.constant 0 : i32
    return %c0_i32, %c0_i32_0, %c0_i32_1 : i32, i32, i32
  }
  func.func @transform_3(%arg0: i32) -> (i32, i32) {
    %c0_i32 = arith.constant 0 : i32
    %c0_i32_0 = arith.constant 0 : i32
    %c0_i32_1 = arith.constant 0 : i32
    return %c0_i32, %c0_i32_0 : i32, i32
  }
  func.func @transform_4(%arg0: i32) -> (i32, i32, i32) {
    %c0_i32 = arith.constant 0 : i32
    %c0_i32_0 = arith.constant 0 : i32
    %c0_i32_1 = arith.constant 0 : i32
    %c0_i32_2 = arith.constant 0 : i32
    return %c0_i32, %c0_i32_0, %c0_i32_1 : i32, i32, i32
  }
  func.func @transform_5(%arg0: i32) -> (i32, i32) {
    %c0_i32 = arith.constant 0 : i32
    %c0_i32_0 = arith.constant 0 : i32
    %c0_i32_1 = arith.constant 0 : i32
    return %c0_i32, %c0_i32_0 : i32, i32
  }
  func.func @transform_6(%arg0: i32) -> (i32, i32, i32) {
    %c0_i32 = arith.constant 0 : i32
    %c0_i32_0 = arith.constant 0 : i32
    %c0_i32_1 = arith.constant 0 : i32
    %c0_i32_2 = arith.constant 0 : i32
    return %c0_i32, %c0_i32_0, %c0_i32_1 : i32, i32, i32
  }
  func.func @transform_7(%arg0: i32) -> (i32, i32) {
    %c0_i32 = arith.constant 0 : i32
    %c0_i32_0 = arith.constant 0 : i32
    %c0_i32_1 = arith.constant 0 : i32
    return %c0_i32, %c0_i32_0 : i32, i32
  }
  func.func @transform_8(%arg0: i32) -> (i32, i32) {
    %c0_i32 = arith.constant 0 : i32
    %c0_i32_0 = arith.constant 0 : i32
    %c0_i32_1 = arith.constant 0 : i32
    return %c0_i32, %c0_i32_0 : i32, i32
  }
  func.func @transform_9(%arg0: i32) -> (i32, i32) {
    %c0_i32 = arith.constant 0 : i32
    %c0_i32_0 = arith.constant 0 : i32
    %c0_i32_1 = arith.constant 0 : i32
    return %c0_i32, %c0_i32_0 : i32, i32
  }
  func.func @transform_10(%arg0: i32) -> (i32, i32) {
    %c0_i32 = arith.constant 0 : i32
    %c0_i32_0 = arith.constant 0 : i32
    return %arg0, %c0_i32 : i32, i32
  }
}

</mosaic_0001>

<bundles_post_ra>
// kernel: net_forward.1
= control target key start
LH: loop header
LB: loop body
LE: loop exit
PB: predicated region body
PF: predicated region fallthrough
CT: control target
= control target key end

     0   :  { %15 = vsyncpa [#allocation9], 0  ;;  %v13377_v0 = vmov 0.0   ;;  %s11059_s13 = smov 0   ;;  %s13366_s0 = inlined_call_operand.vmem [shape: f32[2,1024,16], index: 0, kind: input, shape index: {}]   ;;  %s13367_s1 = inlined_call_operand.vmem [shape: f32[16,128], index: 1, kind: input, shape index: {}]   ;;  %s13368_s2 = inlined_call_operand.vmem [shape: f32[9,128,128], index: 2, kind: input, shape index: {}]   ;;  %s13369_s3 = inlined_call_operand.vmem [shape: f32[1,128], index: 3, kind: input, shape index: {}]   ;;  %s13370_s4 = inlined_call_operand.vmem [shape: f32[9,128,128], index: 4, kind: input, shape index: {}]   ;;  %s13371_s5 = inlined_call_operand.vmem [shape: f32[1,128], index: 5, kind: input, shape index: {}]   ;;  %s13372_s6 = inlined_call_operand.vmem [shape: f32[9,128,128], index: 6, kind: input, shape index: {}]   ;;  %s13373_s7 = inlined_call_operand.vmem [shape: f32[1,128], index: 7, kind: input, shape index: {}]   ;;  %s13374_s8 = inlined_call_operand.vmem [shape: f32[128,128], index: 8, kind: input, shape index: {}]   ;;  %s13375_s9 = inlined_call_operand.vmem [shape: f32[1,128], index: 9, kind: input, shape index: {}]   ;;  %s13376_s10 = inlined_call_operand.hbm [shape: f32[2,128], index: 10, kind: output, shape index: {}]  }
   0x1   :  { %36 = vst [vmem:[#allocation3 + $0x100] sm:$0x3] %v13377_v0  ;;  %37 = vst [vmem:[#allocation5] sm:$0xff] %v13377_v0 }
   0x2   :  { %38 = vst [vmem:[#allocation5 + $0x8] sm:$0xff] %v13377_v0  ;;  %39 = vst [vmem:[#allocation5 + $0x10] sm:$0xff] %v13377_v0 }
   0x3   :  { %40 = vst [vmem:[#allocation5 + $0x18] sm:$0xff] %v13377_v0  ;;  %41 = vst [vmem:[#allocation5 + $0x20] sm:$0xff] %v13377_v0 }
   0x4   :  { %42 = vst [vmem:[#allocation5 + $0x28] sm:$0xff] %v13377_v0  ;;  %43 = vst [vmem:[#allocation5 + $0x30] sm:$0xff] %v13377_v0 }
   0x5   :  { %44 = vst [vmem:[#allocation5 + $0x38] sm:$0xff] %v13377_v0  ;;  %45 = vst [vmem:[#allocation5 + $0x40] sm:$0xff] %v13377_v0 }
   0x6   :  { %46 = vst [vmem:[#allocation5 + $0x48] sm:$0xff] %v13377_v0  ;;  %47 = vst [vmem:[#allocation5 + $0x50] sm:$0x7] %v13377_v0 }
   0x7 LB: > { %v184_v1 = vld [vmem:[%s13367_s1] sm:$0xff]  ;;  %v185_v2 = vld [vmem:[%s13367_s1 + $0x8] sm:$0xff]  ;;  %s6783_s18 = sshll.u32 %s10986_s13, 10  ;;  %vm186_vm0 = vcmask 130048   ;;  %v6914_v60 = vld [vmem:[%s13368_s2 + $0x90] sm:$0xff]  ;;  %s12752_s15 = scalar_lea.vmem [#allocation7], %s10986_s13  ;;  %s10986_s13 = sphi %s11059_s13, %s53_s13  }
   0x8   : > { %v9828_v3 = vpack.c.bf16 %v185_v2, %v184_v1  ;;  %s11074_s21 = scalar_lea.vmem %s13366_s0, %s6783_s18  ;;  %v6912_v55 = vld [vmem:[%s13368_s2 + $0x80] sm:$0xff]  ;;  %v6913_v56 = vld [vmem:[%s13368_s2 + $0x88] sm:$0xff]  ;;  %v6915_v61 = vld [vmem:[%s13368_s2 + $0x98] sm:$0xff]  ;;  %s53_s13 = sadd.s32 1, %s10986_s13  }
   0x9   : > { %v56_v4 = vld [vmem:[%s11074_s21] sm:$0xff]  ;;  %v57_v5 = vld [vmem:[%s11074_s21 + $0x8] sm:$0xff]  ;;  %v58_v6 = vld [vmem:[%s11074_s21 + $0x10] sm:$0xff]  ;;  %v9832_v58 = vpack.c.bf16 %v6913_v56, %v6912_v55  ;;  %v9836_v63 = vpack.c.bf16 %v6915_v61, %v6914_v60  ;;  %p50_p0 = scmp.ge.s32.totalorder %s53_s13, 2  }
   0xa   : > { %9829 = vmatprep.subr.bf16.mxu0 %v9828_v3  ;;  %8224 = vmatprep.mubr.msk.f32.mxu0 %vm186_vm0, %v56_v4  ;;  %v59_v7 = vld [vmem:[%s11074_s21 + $0x18] sm:$0xff]  ;;  %v60_v8 = vld [vmem:[%s11074_s21 + $0x20] sm:$0xff]  ;;  %v61_v9 = vld [vmem:[%s11074_s21 + $0x28] sm:$0xff]  ;;  %vm10990_vm1 = vmmov (%p50_p0), 0   ;;  %vm6730_vm3 = vcmask (%p50_p0), 1041408  }
   0xb   : > { %9831 = vmatpush3.bf16.msra.mxu0 %v9828_v3  ;;  %v62_v10 = vld [vmem:[%s11074_s21 + $0x30] sm:$0xff]  ;;  %v63_v11 = vld [vmem:[%s11074_s21 + $0x38] sm:$0xff]  ;;  %v64_v12 = vld [vmem:[%s11074_s21 + $0x40] sm:$0xff]  ;;  %9833 = vmatprep.subr.bf16.mxu1 %v9832_v58 }
   0xc   : > { %v65_v13 = vld [vmem:[%s11074_s21 + $0x48] sm:$0xff]  ;;  %v66_v14 = vld [vmem:[%s11074_s21 + $0x50] sm:$0xff]  ;;  %v67_v15 = vld [vmem:[%s11074_s21 + $0x58] sm:$0xff]  ;;  %9835 = vmatpush3.bf16.msra.mxu1 %v9832_v58 }
   0xd   : > { %v68_v16 = vld [vmem:[%s11074_s21 + $0x60] sm:$0xff]  ;;  %v69_v17 = vld [vmem:[%s11074_s21 + $0x68] sm:$0xff]  ;;  %v70_v18 = vld [vmem:[%s11074_s21 + $0x70] sm:$0xff]  ;;  %9837 = vmatprep.subr.bf16.mxu1 %v9836_v63 }
   0xe   : > { %8225 = vmatmul.mubr.msk.f32.vlgmr.msra.gmra.mrb[0].mxu0 %vm186_vm0, %v57_v5  ;;  %v71_v19 = vld [vmem:[%s11074_s21 + $0x78] sm:$0xff]  ;;  %v72_v20 = vld [vmem:[%s11074_s21 + $0x80] sm:$0xff]  ;;  %v73_v21 = vld [vmem:[%s11074_s21 + $0x88] sm:$0xff] }
   0xf   : > { %8227 = vmatprep.mubr.msk.f32.mxu0 %vm186_vm0, %v58_v6  ;;  %v74_v22 = vld [vmem:[%s11074_s21 + $0x90] sm:$0xff]  ;;  %v75_v23 = vld [vmem:[%s11074_s21 + $0x98] sm:$0xff]  ;;  %v76_v24 = vld [vmem:[%s11074_s21 + $0xa0] sm:$0xff] }
  0x10   : > { %v77_v25 = vld [vmem:[%s11074_s21 + $0xa8] sm:$0xff]  ;;  %v78_v26 = vld [vmem:[%s11074_s21 + $0xb0] sm:$0xff]  ;;  %v79_v27 = vld [vmem:[%s11074_s21 + $0xb8] sm:$0xff]  ;;  %9839 = vmatpush3.bf16.msra.mxu1 %v9836_v63 }
  0x11   : > { %v80_v28 = vld [vmem:[%s11074_s21 + $0xc0] sm:$0xff]  ;;  %v81_v29 = vld [vmem:[%s11074_s21 + $0xc8] sm:$0xff]  ;;  %v82_v30 = vld [vmem:[%s11074_s21 + $0xd0] sm:$0xff] }
  0x12   : > { %8228 = vmatmul.mubr.msk.f32.gmra.mrb[2].mxu0 %vm186_vm0, %v59_v7  ;;  %v83_v31 = vld [vmem:[%s11074_s21 + $0xd8] sm:$0xff]  ;;  %v84_v32 = vld [vmem:[%s11074_s21 + $0xe0] sm:$0xff]  ;;  %v85_v33 = vld [vmem:[%s11074_s21 + $0xe8] sm:$0xff] }
  0x13   : > { %8230 = vmatprep.mubr.msk.f32.mxu0 %vm186_vm0, %v60_v8  ;;  %v86_v34 = vld [vmem:[%s11074_s21 + $0xf0] sm:$0xff]  ;;  %v87_v35 = vld [vmem:[%s11074_s21 + $0xf8] sm:$0xff]  ;;  %v88_v36 = vld [vmem:[%s11074_s21 + $0x100] sm:$0xff] }
  0x14   : > { %v89_v37 = vld [vmem:[%s11074_s21 + $0x108] sm:$0xff]  ;;  %v90_v38 = vld [vmem:[%s11074_s21 + $0x110] sm:$0xff]  ;;  %v91_v39 = vld [vmem:[%s11074_s21 + $0x118] sm:$0xff] }
  0x15   : > { %v92_v40 = vld [vmem:[%s11074_s21 + $0x120] sm:$0xff]  ;;  %v93_v41 = vld [vmem:[%s11074_s21 + $0x128] sm:$0xff]  ;;  %v94_v42 = vld [vmem:[%s11074_s21 + $0x130] sm:$0xff] }
  0x16   : > { %8231 = vmatmul.mubr.msk.f32.gmra.mrb[4].mxu0 %vm186_vm0, %v61_v9  ;;  %v95_v43 = vld [vmem:[%s11074_s21 + $0x138] sm:$0xff]  ;;  %v96_v44 = vld [vmem:[%s11074_s21 + $0x140] sm:$0xff]  ;;  %v97_v45 = vld [vmem:[%s11074_s21 + $0x148] sm:$0xff] }
  0x17   : > { %8233 = vmatprep.mubr.msk.f32.mxu0 %vm186_vm0, %v62_v10  ;;  %v98_v46 = vld [vmem:[%s11074_s21 + $0x150] sm:$0xff]  ;;  %v99_v47 = vld [vmem:[%s11074_s21 + $0x158] sm:$0xff]  ;;  %v100_v48 = vld [vmem:[%s11074_s21 + $0x160] sm:$0xff] }
  0x18   : > { %v101_v49 = vld [vmem:[%s11074_s21 + $0x168] sm:$0xff]  ;;  %v102_v50 = vld [vmem:[%s11074_s21 + $0x170] sm:$0xff]  ;;  %v103_v51 = vld [vmem:[%s11074_s21 + $0x178] sm:$0xff] }
  0x19   : > { %v104_v52 = vld [vmem:[%s11074_s21 + $0x180] sm:$0xff]  ;;  %v105_v53 = vld [vmem:[%s11074_s21 + $0x188] sm:$0xff]  ;;  %v106_v54 = vld [vmem:[%s11074_s21 + $0x190] sm:$0xff] }
  0x1a   : > { %8234 = vmatmul.mubr.msk.f32.gmra.mrb[6].mxu0 %vm186_vm0, %v63_v11  ;;  %v107_v57 = vld [vmem:[%s11074_s21 + $0x198] sm:$0xff]  ;;  %v108_v59 = vld [vmem:[%s11074_s21 + $0x1a0] sm:$0xff]  ;;  %v109_v62 = vld [vmem:[%s11074_s21 + $0x1a8] sm:$0xff] }
  0x1b   : > { %8236 = vmatprep.mubr.msk.f32.mxu0 %vm186_vm0, %v64_v12  ;;  %v110_v1 = vld [vmem:[%s11074_s21 + $0x1b0] sm:$0xff]  ;;  %v6916_v2 = vld [vmem:[%s13368_s2 + $0xa0] sm:$0xff]  ;;  %v6917_v3 = vld [vmem:[%s13368_s2 + $0xa8] sm:$0xff] }
  0x1c   : > { %v111_v4 = vld [vmem:[%s11074_s21 + $0x1b8] sm:$0xff]  ;;  %v9840_v5 = vpack.c.bf16 %v6917_v3, %v6916_v2  ;;  %v112_v6 = vld [vmem:[%s11074_s21 + $0x1c0] sm:$0xff]  ;;  %v6918_v7 = vld [vmem:[%s13368_s2 + $0xb0] sm:$0xff] }
  0x1d   : > { %v6919_v8 = vld [vmem:[%s13368_s2 + $0xb8] sm:$0xff]  ;;  %v113_v9 = vld [vmem:[%s11074_s21 + $0x1c8] sm:$0xff]  ;;  %v114_v11 = vld [vmem:[%s11074_s21 + $0x1d0] sm:$0xff] }
  0x1e   : > { %8237 = vmatmul.mubr.msk.f32.gmra.mrb[8].mxu0 %vm186_vm0, %v65_v13  ;;  %9841 = vmatprep.subr.bf16.mxu1 %v9840_v5  ;;  %v9844_v10 = vpack.c.bf16 %v6919_v8, %v6918_v7  ;;  %v6920_v12 = vld [vmem:[%s13368_s2 + $0xc0] sm:$0xff]  ;;  %v6921_v13 = vld [vmem:[%s13368_s2 + $0xc8] sm:$0xff]  ;;  %v146_v55 = vld [vmem:[%s11074_s21 + $0x2d0] sm:$0xff] }
  0x1f   : > { %8239 = vmatprep.mubr.msk.f32.mxu0 %vm186_vm0, %v66_v14  ;;  %9843 = vmatpush3.bf16.msra.mxu1 %v9840_v5  ;;  %v115_v14 = vld [vmem:[%s11074_s21 + $0x1d8] sm:$0xff]  ;;  %v149_v58 = vld [vmem:[%s11074_s21 + $0x2e8] sm:$0xff]  ;;  %v152_v61 = vld [vmem:[%s11074_s21 + $0x300] sm:$0xff] }
  0x20   : > { %9845 = vmatprep.subr.bf16.mxu1 %v9844_v10  ;;  %v147_v56 = vld [vmem:[%s11074_s21 + $0x2d8] sm:$0xff]  ;;  %v154_v63 = vld [vmem:[%s11074_s21 + $0x310] sm:$0xff]  ;;  %v156_v2 = vld [vmem:[%s11074_s21 + $0x320] sm:$0xff] }
  0x21   : > { %v151_v60 = vld [vmem:[%s11074_s21 + $0x2f8] sm:$0xff]  ;;  %v157_v3 = vld [vmem:[%s11074_s21 + $0x328] sm:$0xff]  ;;  %v162_v8 = vld [vmem:[%s11074_s21 + $0x350] sm:$0xff] }
  0x22   : > { %8240 = vmatmul.mubr.msk.f32.gmra.mrb[10].mxu0 %vm186_vm0, %v67_v15  ;;  %v9848_v15 = vpack.c.bf16 %v6921_v13, %v6920_v12  ;;  %v159_v5 = vld [vmem:[%s11074_s21 + $0x338] sm:$0xff]  ;;  %v161_v7 = vld [vmem:[%s11074_s21 + $0x348] sm:$0xff] }
  0x23   : > { %8242 = vmatprep.mubr.msk.f32.mxu0 %vm186_vm0, %v68_v16  ;;  %9847 = vmatpush3.bf16.msra.mxu1 %v9844_v10  ;;  %v116_v16 = vld [vmem:[%s11074_s21 + $0x1e0] sm:$0xff]  ;;  %v165_v13 = vld [vmem:[%s11074_s21 + $0x368] sm:$0xff]  ;;  %v6971_v0 = vld [vmem:[%s13368_s2 + $0x258] sm:$0xff] }
  0x24   : > { %9849 = vmatprep.subr.bf16.mxu1 %v9848_v15  ;;  %v164_v10 = vld [vmem:[%s11074_s21 + $0x360] sm:$0xff] }
  0x26   : > { %8243 = vmatmul.mubr.msk.f32.gmra.mrb[12].mxu0 %vm186_vm0, %v69_v17  ;;  %v6922_v17 = vld [vmem:[%s13368_s2 + $0xd0] sm:$0xff] }
  0x27   : > { %8245 = vmatprep.mubr.msk.f32.mxu0 %vm186_vm0, %v70_v18  ;;  %9851 = vmatpush3.bf16.msra.mxu1 %v9848_v15  ;;  %v6923_v18 = vld [vmem:[%s13368_s2 + $0xd8] sm:$0xff] }
  0x2a   : > { %8246 = vmatmul.mubr.msk.f32.gmra.mrb[14].mxu0 %vm186_vm0, %v71_v19  ;;  %v117_v19 = vld [vmem:[%s11074_s21 + $0x1e8] sm:$0xff] }
  0x2b   : > { %8248 = vmatprep.mubr.msk.f32.mxu0 %vm186_vm0, %v72_v20  ;;  %v9852_v20 = vpack.c.bf16 %v6923_v18, %v6922_v17  ;;  %v167_v17 = vld [vmem:[%s11074_s21 + $0x378] sm:$0xff]  ;;  %v168_v18 = vld [vmem:[%s11074_s21 + $0x380] sm:$0xff] }
  0x2d   : > { %9853 = vmatprep.subr.bf16.mxu1 %v9852_v20 }
  0x2e   : > { %8249 = vmatmul.mubr.msk.f32.gmra.mrb[16].mxu0 %vm186_vm0, %v73_v21  ;;  %v118_v21 = vld [vmem:[%s11074_s21 + $0x1f0] sm:$0xff]  ;;  %9855 = vmatpush3.bf16.msra.mxu1 %v9852_v20 }
  0x2f   : > { %8251 = vmatprep.mubr.msk.f32.mxu0 %vm186_vm0, %v74_v22  ;;  %v6924_v22 = vld [vmem:[%s13368_s2 + $0xe0] sm:$0xff] }
  0x32   : > { %8252 = vmatmul.mubr.msk.f32.gmra.mrb[18].mxu0 %vm186_vm0, %v75_v23  ;;  %v6925_v23 = vld [vmem:[%s13368_s2 + $0xe8] sm:$0xff] }
  0x33   : > { %8254 = vmatprep.mubr.msk.f32.mxu0 %vm186_vm0, %v76_v24  ;;  %v119_v24 = vld [vmem:[%s11074_s21 + $0x1f8] sm:$0xff] }
  0x36   : > { %8255 = vmatmul.mubr.msk.f32.gmra.mrb[20].mxu0 %vm186_vm0, %v77_v25  ;;  %v9856_v25 = vpack.c.bf16 %v6925_v23, %v6924_v22  ;;  %v170_v22 = vld [vmem:[%s11074_s21 + $0x390] sm:$0xff] }
  0x37   : > { %8257 = vmatprep.mubr.msk.f32.mxu0 %vm186_vm0, %v78_v26  ;;  %v120_v26 = vld [vmem:[%s11074_s21 + $0x200] sm:$0xff] }
  0x38   : > { %9857 = vmatprep.subr.bf16.mxu1 %v9856_v25 }
  0x39   : > { %9859 = vmatpush3.bf16.msra.mxu1 %v9856_v25  ;;  %v171_v25 = vld [vmem:[%s11074_s21 + $0x398] sm:$0xff] }
  0x3a   : > { %8258 = vmatmul.mubr.msk.f32.gmra.mrb[22].mxu0 %vm186_vm0, %v79_v27  ;;  %v6926_v27 = vld [vmem:[%s13368_s2 + $0xf0] sm:$0xff] }
  0x3b   : > { %8260 = vmatprep.mubr.msk.f32.mxu0 %vm186_vm0, %v80_v28  ;;  %v6927_v28 = vld [vmem:[%s13368_s2 + $0xf8] sm:$0xff] }
  0x3e   : > { %8261 = vmatmul.mubr.msk.f32.gmra.mrb[24].mxu0 %vm186_vm0, %v81_v29  ;;  %v121_v29 = vld [vmem:[%s11074_s21 + $0x208] sm:$0xff] }
  0x3f   : > { %8263 = vmatprep.mubr.msk.f32.mxu0 %vm186_vm0, %v82_v30  ;;  %v9860_v30 = vpack.c.bf16 %v6927_v28, %v6926_v27  ;;  %v172_v28 = vld [vmem:[%s11074_s21 + $0x3a0] sm:$0xff] }
  0x41   : > { %9861 = vmatprep.subr.bf16.mxu1 %v9860_v30 }
  0x42   : > { %8264 = vmatmul.mubr.msk.f32.gmra.mrb[26].mxu0 %vm186_vm0, %v83_v31  ;;  %v122_v31 = vld [vmem:[%s11074_s21 + $0x210] sm:$0xff]  ;;  %9863 = vmatpush3.bf16.msra.mxu1 %v9860_v30 }
  0x43   : > { %8266 = vmatprep.mubr.msk.f32.mxu0 %vm186_vm0, %v84_v32  ;;  %v123_v32 = vld [vmem:[%s11074_s21 + $0x218] sm:$0xff] }
  0x46   : > { %8267 = vmatmul.mubr.msk.f32.gmra.mrb[28].mxu0 %vm186_vm0, %v85_v33  ;;  %v124_v33 = vld [vmem:[%s11074_s21 + $0x220] sm:$0xff] }
  0x47   : > { %8269 = vmatprep.mubr.msk.f32.mxu0 %vm186_vm0, %v86_v34  ;;  %v125_v34 = vld [vmem:[%s11074_s21 + $0x228] sm:$0xff] }
  0x4a   : > { %8270 = vmatmul.mubr.msk.f32.gmra.mrb[30].mxu0 %vm186_vm0, %v87_v35  ;;  %v126_v35 = vld [vmem:[%s11074_s21 + $0x230] sm:$0xff] }
  0x4b   : > { %8272 = vmatprep.mubr.msk.f32.mxu0 %vm186_vm0, %v88_v36  ;;  %v127_v36 = vld [vmem:[%s11074_s21 + $0x238] sm:$0xff] }
  0x4e   : > { %8273 = vmatmul.mubr.msk.f32.gmra.mrb[32].mxu0 %vm186_vm0, %v89_v37  ;;  %v128_v37 = vld [vmem:[%s11074_s21 + $0x240] sm:$0xff] }
  0x4f   : > { %8275 = vmatprep.mubr.msk.f32.mxu0 %vm186_vm0, %v90_v38  ;;  %v129_v38 = vld [vmem:[%s11074_s21 + $0x248] sm:$0xff] }
  0x52   : > { %8276 = vmatmul.mubr.msk.f32.gmra.mrb[34].mxu0 %vm186_vm0, %v91_v39  ;;  %v130_v39 = vld [vmem:[%s11074_s21 + $0x250] sm:$0xff] }
  0x53   : > { %8278 = vmatprep.mubr.msk.f32.mxu0 %vm186_vm0, %v92_v40  ;;  %v131_v40 = vld [vmem:[%s11074_s21 + $0x258] sm:$0xff] }
  0x56   : > { %8279 = vmatmul.mubr.msk.f32.gmra.mrb[36].mxu0 %vm186_vm0, %v93_v41  ;;  %v132_v41 = vld [vmem:[%s11074_s21 + $0x260] sm:$0xff] }
  0x57   : > { %8281 = vmatprep.mubr.msk.f32.mxu0 %vm186_vm0, %v94_v42  ;;  %v133_v42 = vld [vmem:[%s11074_s21 + $0x268] sm:$0xff] }
  0x5a   : > { %8282 = vmatmul.mubr.msk.f32.gmra.mrb[38].mxu0 %vm186_vm0, %v95_v43  ;;  %v134_v43 = vld [vmem:[%s11074_s21 + $0x270] sm:$0xff] }
  0x5b   : > { %8284 = vmatprep.mubr.msk.f32.mxu0 %vm186_vm0, %v96_v44  ;;  %v135_v44 = vld [vmem:[%s11074_s21 + $0x278] sm:$0xff] }
  0x5e   : > { %8285 = vmatmul.mubr.msk.f32.gmra.mrb[40].mxu0 %vm186_vm0, %v97_v45  ;;  %v136_v45 = vld [vmem:[%s11074_s21 + $0x280] sm:$0xff] }
  0x5f   : > { %8287 = vmatprep.mubr.msk.f32.mxu0 %vm186_vm0, %v98_v46  ;;  %v137_v46 = vld [vmem:[%s11074_s21 + $0x288] sm:$0xff] }
  0x62   : > { %8288 = vmatmul.mubr.msk.f32.gmra.mrb[42].mxu0 %vm186_vm0, %v99_v47  ;;  %v138_v47 = vld [vmem:[%s11074_s21 + $0x290] sm:$0xff] }
  0x63   : > { %8290 = vmatprep.mubr.msk.f32.mxu0 %vm186_vm0, %v100_v48  ;;  %v139_v48 = vld [vmem:[%s11074_s21 + $0x298] sm:$0xff] }
  0x66   : > { %8291 = vmatmul.mubr.msk.f32.gmra.mrb[44].mxu0 %vm186_vm0, %v101_v49  ;;  %v140_v49 = vld [vmem:[%s11074_s21 + $0x2a0] sm:$0xff] }
  0x67   : > { %8293 = vmatprep.mubr.msk.f32.mxu0 %vm186_vm0, %v102_v50  ;;  %v141_v50 = vld [vmem:[%s11074_s21 + $0x2a8] sm:$0xff] }
  0x6a   : > { %8294 = vmatmul.mubr.msk.f32.gmra.mrb[46].mxu0 %vm186_vm0, %v103_v51  ;;  %v142_v51 = vld [vmem:[%s11074_s21 + $0x2b0] sm:$0xff] }
  0x6b   : > { %8296 = vmatprep.mubr.msk.f32.mxu0 %vm186_vm0, %v104_v52  ;;  %v143_v52 = vld [vmem:[%s11074_s21 + $0x2b8] sm:$0xff] }
  0x6e   : > { %8297 = vmatmul.mubr.msk.f32.gmra.mrb[48].mxu0 %vm186_vm0, %v105_v53  ;;  %v144_v53 = vld [vmem:[%s11074_s21 + $0x2c0] sm:$0xff] }
  0x6f   : > { %8299 = vmatprep.mubr.msk.f32.mxu0 %vm186_vm0, %v106_v54  ;;  %v145_v54 = vld [vmem:[%s11074_s21 + $0x2c8] sm:$0xff] }
  0x72   : > { %8300 = vmatmul.mubr.msk.f32.gmra.mrb[50].mxu0 %vm186_vm0, %v107_v57  ;;  %v148_v57 = vld [vmem:[%s11074_s21 + $0x2e0] sm:$0xff] }
  0x73   : > { %8302 = vmatprep.mubr.msk.f32.mxu0 %vm186_vm0, %v108_v59  ;;  %v150_v59 = vld [vmem:[%s11074_s21 + $0x2f0] sm:$0xff] }
  0x76   : > { %8303 = vmatmul.mubr.msk.f32.gmra.mrb[52].mxu0 %vm186_vm0, %v109_v62  ;;  %v153_v62 = vld [vmem:[%s11074_s21 + $0x308] sm:$0xff] }
  0x77   : > { %8305 = vmatprep.mubr.msk.f32.mxu0 %vm186_vm0, %v110_v1  ;;  %v155_v1 = vld [vmem:[%s11074_s21 + $0x318] sm:$0xff] }
  0x7a   : > { %8306 = vmatmul.mubr.msk.f32.gmra.mrb[54].mxu0 %vm186_vm0, %v111_v4  ;;  %v158_v4 = vld [vmem:[%s11074_s21 + $0x330] sm:$0xff] }
  0x7b   : > { %8308 = vmatprep.mubr.msk.f32.mxu0 %vm186_vm0, %v112_v6  ;;  %v160_v6 = vld [vmem:[%s11074_s21 + $0x340] sm:$0xff] }
  0x7e   : > { %8309 = vmatmul.mubr.msk.f32.gmra.mrb[56].mxu0 %vm186_vm0, %v113_v9  ;;  %v163_v9 = vld [vmem:[%s11074_s21 + $0x358] sm:$0xff] }
  0x7f   : > { %8311 = vmatprep.mubr.msk.f32.mxu0 %vm186_vm0, %v114_v11 }
  0x82   : > { %8312 = vmatmul.mubr.msk.f32.gmra.mrb[58].mxu0 %vm186_vm0, %v115_v14  ;;  %v166_v14 = vld [vmem:[%s11074_s21 + $0x370] sm:$0xff] }
  0x83   : > { %8314 = vmatprep.mubr.msk.f32.mxu0 %vm186_vm0, %v116_v16 }
  0x86   : > { %8315 = vmatmul.mubr.msk.f32.gmra.mrb[60].mxu0 %vm186_vm0, %v117_v19 }
  0x87   : > { %8317 = vmatprep.mubr.msk.f32.mxu0 %vm186_vm0, %v118_v21  ;;  %v169_v21 = vld [vmem:[%s11074_s21 + $0x388] sm:$0xff] }
  0x8a   : > { %8318 = vmatmul.mubr.msk.f32.gmra.mrb[62].mxu0 %vm186_vm0, %v119_v24 }
  0x8b   : > { %8320 = vmatprep.mubr.msk.f32.mxu0 %vm186_vm0, %v120_v26 }
  0x8e   : > { %8321 = vmatmul.mubr.msk.f32.gmra.mrb[64].mxu0 %vm186_vm0, %v121_v29 }
  0x8f   : > { %8323 = vmatprep.mubr.msk.f32.mxu0 %vm186_vm0, %v122_v31 }
  0x92   : > { %8324 = vmatmul.mubr.msk.f32.gmra.mrb[66].mxu0 %vm186_vm0, %v123_v32 }
  0x93   : > { %8326 = vmatprep.mubr.msk.f32.mxu0 %vm186_vm0, %v124_v33 }
  0x96   : > { %8327 = vmatmul.mubr.msk.f32.gmra.mrb[68].mxu0 %vm186_vm0, %v125_v34 }
  0x97   : > { %8329 = vmatprep.mubr.msk.f32.mxu0 %vm186_vm0, %v126_v35  ;;  %v173_v35 = vld [vmem:[%s11074_s21 + $0x3a8] sm:$0xff] }
  0x9a   : > { %8330 = vmatmul.mubr.msk.f32.gmra.mrb[70].mxu0 %vm186_vm0, %v127_v36 }
  0x9b   : > { %8332 = vmatprep.mubr.msk.f32.mxu0 %vm186_vm0, %v128_v37 }
  0x9e   : > { %8333 = vmatmul.mubr.msk.f32.gmra.mrb[72].mxu0 %vm186_vm0, %v129_v38  ;;  %v174_v38 = vld [vmem:[%s11074_s21 + $0x3b0] sm:$0xff] }
  0x9f   : > { %8335 = vmatprep.mubr.msk.f32.mxu0 %vm186_vm0, %v130_v39 }
  0xa2   : > { %8336 = vmatmul.mubr.msk.f32.gmra.mrb[74].mxu0 %vm186_vm0, %v131_v40 }
  0xa3   : > { %8338 = vmatprep.mubr.msk.f32.mxu0 %vm186_vm0, %v132_v41 }
  0xa6   : > { %8339 = vmatmul.mubr.msk.f32.gmra.mrb[76].mxu0 %vm186_vm0, %v133_v42 }
  0xa7   : > { %8341 = vmatprep.mubr.msk.f32.mxu0 %vm186_vm0, %v134_v43 }
  0xaa   : > { %8342 = vmatmul.mubr.msk.f32.gmra.mrb[78].mxu0 %vm186_vm0, %v135_v44 }
  0xab   : > { %8344 = vmatprep.mubr.msk.f32.mxu0 %vm186_vm0, %v136_v45 }
  0xae   : > { %8345 = vmatmul.mubr.msk.f32.gmra.mrb[80].mxu0 %vm186_vm0, %v137_v46  ;;  %v175_v46 = vld [vmem:[%s11074_s21 + $0x3b8] sm:$0xff] }
  0xaf   : > { %8347 = vmatprep.mubr.msk.f32.mxu0 %vm186_vm0, %v138_v47 }
  0xb2   : > { %8348 = vmatmul.mubr.msk.f32.gmra.mrb[82].mxu0 %vm186_vm0, %v139_v48  ;;  %v176_v48 = vld [vmem:[%s11074_s21 + $0x3c0] sm:$0xff] }
  0xb3   : > { %8350 = vmatprep.mubr.msk.f32.mxu0 %vm186_vm0, %v140_v49 }
  0xb6   : > { %8351 = vmatmul.mubr.msk.f32.gmra.mrb[84].mxu0 %vm186_vm0, %v141_v50 }
  0xb7   : > { %8353 = vmatprep.mubr.msk.f32.mxu0 %vm186_vm0, %v142_v51 }
  0xba   : > { %8354 = vmatmul.mubr.msk.f32.gmra.mrb[86].mxu0 %vm186_vm0, %v143_v52  ;;  %v177_v52 = vld [vmem:[%s11074_s21 + $0x3c8] sm:$0xff] }
  0xbb   : > { %8356 = vmatprep.mubr.msk.f32.mxu0 %vm186_vm0, %v144_v53 }
  0xbe   : > { %8357 = vmatmul.mubr.msk.f32.gmra.mrb[88].mxu0 %vm186_vm0, %v145_v54  ;;  %v178_v54 = vld [vmem:[%s11074_s21 + $0x3d0] sm:$0xff] }
  0xbf   : > { %8359 = vmatprep.mubr.msk.f32.mxu0 %vm186_vm0, %v146_v55 }
  0xc2   : > { %8360 = vmatmul.mubr.msk.f32.gmra.mrb[90].mxu0 %vm186_vm0, %v147_v56 }
  0xc3   : > { %8362 = vmatprep.mubr.msk.f32.mxu0 %vm186_vm0, %v148_v57  ;;  %v179_v57 = vld [vmem:[%s11074_s21 + $0x3d8] sm:$0xff] }
  0xc6   : > { %8363 = vmatmul.mubr.msk.f32.gmra.mrb[92].mxu0 %vm186_vm0, %v149_v58 }
  0xc7   : > { %8365 = vmatprep.mubr.msk.f32.mxu0 %vm186_vm0, %v150_v59 }
  0xca   : > { %8366 = vmatmul.mubr.msk.f32.gmra.mrb[94].mxu0 %vm186_vm0, %v151_v60  ;;  %v180_v60 = vld [vmem:[%s11074_s21 + $0x3e0] sm:$0xff] }
  0xcb   : > { %8368 = vmatprep.mubr.msk.f32.mxu0 %vm186_vm0, %v152_v61 }
  0xce   : > { %8369 = vmatmul.mubr.msk.f32.gmra.mrb[96].mxu0 %vm186_vm0, %v153_v62 }
  0xcf   : > { %8371 = vmatprep.mubr.msk.f32.mxu0 %vm186_vm0, %v154_v63 }
  0xd2   : > { %8372 = vmatmul.mubr.msk.f32.gmra.mrb[98].mxu0 %vm186_vm0, %v155_v1 }
  0xd3   : > { %8374 = vmatprep.mubr.msk.f32.mxu0 %vm186_vm0, %v156_v2 }
  0xd6   : > { %8375 = vmatmul.mubr.msk.f32.gmra.mrb[100].mxu0 %vm186_vm0, %v157_v3 }
  0xd7   : > { %8377 = vmatprep.mubr.msk.f32.mxu0 %vm186_vm0, %v158_v4  ;;  %v181_v4 = vld [vmem:[%s11074_s21 + $0x3e8] sm:$0xff] }
  0xda   : > { %8378 = vmatmul.mubr.msk.f32.gmra.mrb[102].mxu0 %vm186_vm0, %v159_v5 }
  0xdb   : > { %8380 = vmatprep.mubr.msk.f32.mxu0 %vm186_vm0, %v160_v6 }
  0xde   : > { %8381 = vmatmul.mubr.msk.f32.gmra.mrb[104].mxu0 %vm186_vm0, %v161_v7 }
  0xdf   : > { %8383 = vmatprep.mubr.msk.f32.mxu0 %vm186_vm0, %v162_v8 }
  0xe1   : > { %v8226_v11 = vpop.f32.mrb[0].mxu0 }
  0xe2   : > { %1277 = vst [vmem:[#allocation2 + $0x8] sm:$0xff] %v8226_v11  ;;  %v637_v12 = vpop.f32.mrb[1].mxu0  ;;  %8384 = vmatmul.mubr.msk.f32.gmra.mrb[106].mxu0 %vm186_vm0, %v163_v9 }
  0xe3   : > { %1276 = vst [vmem:[#allocation2] sm:$0xff] %v637_v12  ;;  %8386 = vmatprep.mubr.msk.f32.mxu0 %vm186_vm0, %v164_v10 }
  0xe5   : > { %v8229_v15 = vpop.f32.mrb[2].mxu0 }
  0xe6   : > { %1279 = vst [vmem:[#allocation2 + $0x18] sm:$0xff] %v8229_v15  ;;  %v647_v16 = vpop.f32.mrb[3].mxu0  ;;  %8387 = vmatmul.mubr.msk.f32.gmra.mrb[108].mxu0 %vm186_vm0, %v165_v13 }
  0xe7   : > { %1278 = vst [vmem:[#allocation2 + $0x10] sm:$0xff] %v647_v16  ;;  %8389 = vmatprep.mubr.msk.f32.mxu0 %vm186_vm0, %v166_v14 }
  0xe9   : > { %v8232_v19 = vpop.f32.mrb[4].mxu0 }
  0xea   : > { %1281 = vst [vmem:[#allocation2 + $0x28] sm:$0xff] %v8232_v19  ;;  %v657_v20 = vpop.f32.mrb[5].mxu0  ;;  %8390 = vmatmul.mubr.msk.f32.gmra.mrb[110].mxu0 %vm186_vm0, %v167_v17  ;;  %v1404_v26 = vld [vmem:[#allocation2] ss:$2 sm:$0xff]  ;;  %v1408_v27 = vld [vmem:[#allocation2 + $0x1] ss:$2 sm:$0xff] }
  0xeb   : > { %1280 = vst [vmem:[#allocation2 + $0x20] sm:$0xff] %v657_v20  ;;  %8392 = vmatprep.mubr.msk.f32.mxu0 %vm186_vm0, %v168_v18  ;;  %v1419_v33 = vmax.f32 %v1404_v26, %v1408_v27 }
  0xed   : > { %v8235_v23 = vpop.f32.mrb[6].mxu0 }
  0xee   : > { %1283 = vst [vmem:[#allocation2 + $0x38] sm:$0xff] %v8235_v23  ;;  %v667_v24 = vpop.f32.mrb[7].mxu0  ;;  %8393 = vmatmul.mubr.msk.f32.gmra.mrb[112].mxu0 %vm186_vm0, %v169_v21  ;;  %v1406_v36 = vld [vmem:[#allocation2 + $0x10] ss:$2 sm:$0xff]  ;;  %v1410_v37 = vld [vmem:[#allocation2 + $0x11] ss:$2 sm:$0xff] }
  0xef   : > { %1282 = vst [vmem:[#allocation2 + $0x30] sm:$0xff] %v667_v24  ;;  %8395 = vmatprep.mubr.msk.f32.mxu0 %vm186_vm0, %v170_v22  ;;  %v1420_v44 = vmax.f32 %v1406_v36, %v1410_v37 }
  0xf1   : > { %v8238_v29 = vpop.f32.mrb[8].mxu0 }
  0xf2   : > { %v1412_v30 = vld [vmem:[#allocation2 + $0x20] ss:$2 sm:$0xff]  ;;  %v1416_v31 = vld [vmem:[#allocation2 + $0x21] ss:$2 sm:$0xff]  ;;  %1285 = vst [vmem:[#allocation2 + $0x48] sm:$0xff] %v8238_v29  ;;  %v677_v32 = vpop.f32.mrb[9].mxu0  ;;  %8396 = vmatmul.mubr.msk.f32.gmra.mrb[114].mxu0 %vm186_vm0, %v171_v25 }
  0xf3   : > { %v1421_v34 = vmax.f32 %v1412_v30, %v1416_v31  ;;  %1284 = vst [vmem:[#allocation2 + $0x40] sm:$0xff] %v677_v32  ;;  %8398 = vmatprep.mubr.msk.f32.mxu0 %vm186_vm0, %v172_v28 }
  0xf5   : > { %v8241_v39 = vpop.f32.mrb[10].mxu0  ;;  %v1423_v40 = vmax.f32 %v1419_v33, %v1421_v34 }
  0xf6   : > { %v1414_v41 = vld [vmem:[#allocation2 + $0x30] ss:$2 sm:$0xff]  ;;  %v1418_v42 = vld [vmem:[#allocation2 + $0x31] ss:$2 sm:$0xff]  ;;  %1287 = vst [vmem:[#allocation2 + $0x58] sm:$0xff] %v8241_v39  ;;  %v687_v43 = vpop.f32.mrb[11].mxu0  ;;  %8399 = vmatmul.mubr.msk.f32.gmra.mrb[116].mxu0 %vm186_vm0, %v173_v35 }
  0xf7   : > { %v1422_v45 = vmax.f32 %v1414_v41, %v1418_v42  ;;  %1286 = vst [vmem:[#allocation2 + $0x50] sm:$0xff] %v687_v43  ;;  %8401 = vmatprep.mubr.msk.f32.mxu0 %vm186_vm0, %v174_v38  ;;  %v1425_v47 = vmax.f32 %v1423_v40, 0.0 }
  0xf9   : > { %v8244_v49 = vpop.f32.mrb[12].mxu0  ;;  %v1424_v50 = vmax.f32 %v1420_v44, %v1422_v45  ;;  %1427 = vst [vmem:[#allocation3] sm:$0xff] %v1425_v47 }
  0xfa   : > { %1289 = vst [vmem:[#allocation2 + $0x68] sm:$0xff] %v8244_v49  ;;  %v697_v51 = vpop.f32.mrb[13].mxu0  ;;  %8402 = vmatmul.mubr.msk.f32.gmra.mrb[118].mxu0 %vm186_vm0, %v175_v46  ;;  %v1430_v58 = vld [vmem:[#allocation2 + $0x40] ss:$2 sm:$0xff]  ;;  %v1434_v59 = vld [vmem:[#allocation2 + $0x41] ss:$2 sm:$0xff] }
  0xfb   : > { %1288 = vst [vmem:[#allocation2 + $0x60] sm:$0xff] %v697_v51  ;;  %8404 = vmatprep.mubr.msk.f32.mxu0 %vm186_vm0, %v176_v48  ;;  %v1426_v53 = vmax.f32 %v1424_v50, 0.0  ;;  %v1445_v2 = vmax.f32 %v1430_v58, %v1434_v59 }
  0xfd   : > { %v8247_v55 = vpop.f32.mrb[14].mxu0  ;;  %1428 = vst [vmem:[#allocation3 + $0x8] sm:$0xff] %v1426_v53 }
  0xfe   : > { %1291 = vst [vmem:[#allocation2 + $0x78] sm:$0xff] %v8247_v55  ;;  %v707_v56 = vpop.f32.mrb[15].mxu0  ;;  %8405 = vmatmul.mubr.msk.f32.gmra.mrb[120].mxu0 %vm186_vm0, %v177_v52  ;;  %v1432_v5 = vld [vmem:[#allocation2 + $0x50] ss:$2 sm:$0xff]  ;;  %v1436_v6 = vld [vmem:[#allocation2 + $0x51] ss:$2 sm:$0xff] }
  0xff   : > { %1290 = vst [vmem:[#allocation2 + $0x70] sm:$0xff] %v707_v56  ;;  %8407 = vmatprep.mubr.msk.f32.mxu0 %vm186_vm0, %v178_v54  ;;  %v1446_v13 = vmax.f32 %v1432_v5, %v1436_v6 }
 0x101   : > { %v8250_v61 = vpop.f32.mrb[16].mxu0 }
 0x102   : > { %v1438_v62 = vld [vmem:[#allocation2 + $0x60] ss:$2 sm:$0xff]  ;;  %v1442_v63 = vld [vmem:[#allocation2 + $0x61] ss:$2 sm:$0xff]  ;;  %1293 = vst [vmem:[#allocation2 + $0x88] sm:$0xff] %v8250_v61  ;;  %v717_v1 = vpop.f32.mrb[17].mxu0  ;;  %8408 = vmatmul.mubr.msk.f32.gmra.mrb[122].mxu0 %vm186_vm0, %v179_v57 }
 0x103   : > { %v1447_v3 = vmax.f32 %v1438_v62, %v1442_v63  ;;  %1292 = vst [vmem:[#allocation2 + $0x80] sm:$0xff] %v717_v1  ;;  %8410 = vmatprep.mubr.msk.f32.mxu0 %vm186_vm0, %v180_v60 }
 0x104   : > { %v1863_v7 = vld [vmem:[#allocation3 + $0x1] sm:$0xff] }
 0x105   : > { %v8253_v8 = vpop.f32.mrb[18].mxu0  ;;  %8448 = vmatprep.mubr.f32.mxu1 %v1863_v7  ;;  %v1449_v9 = vmax.f32 %v1445_v2, %v1447_v3 }
 0x106   : > { %v1440_v10 = vld [vmem:[#allocation2 + $0x70] ss:$2 sm:$0xff]  ;;  %v1444_v11 = vld [vmem:[#allocation2 + $0x71] ss:$2 sm:$0xff]  ;;  %1295 = vst [vmem:[#allocation2 + $0x98] sm:$0xff] %v8253_v8  ;;  %v727_v12 = vpop.f32.mrb[19].mxu0  ;;  %8411 = vmatmul.mubr.msk.f32.gmra.mrb[124].mxu0 %vm186_vm0, %v181_v4 }
 0x107   : > { %v1448_v14 = vmax.f32 %v1440_v10, %v1444_v11  ;;  %1294 = vst [vmem:[#allocation2 + $0x90] sm:$0xff] %v727_v12  ;;  %v1451_v15 = vmax.f32 %v1449_v9, 0.0 }
 0x109   : > { %v8256_v16 = vpop.f32.mrb[20].mxu0  ;;  %1453 = vst [vmem:[#allocation3 + $0x10] sm:$0xff] %v1451_v15  ;;  %v1450_v17 = vmax.f32 %v1446_v13, %v1448_v14 }
 0x10a   : > { %1297 = vst [vmem:[#allocation2 + $0xa8] sm:$0xff] %v8256_v16  ;;  %v737_v18 = vpop.f32.mrb[21].mxu0  ;;  %v1456_v22 = vld [vmem:[#allocation2 + $0x80] ss:$2 sm:$0xff]  ;;  %v1460_v23 = vld [vmem:[#allocation2 + $0x81] ss:$2 sm:$0xff] }
 0x10b   : > { %1296 = vst [vmem:[#allocation2 + $0xa0] sm:$0xff] %v737_v18  ;;  %v1452_v19 = vmax.f32 %v1450_v17, 0.0  ;;  %v1471_v29 = vmax.f32 %v1456_v22, %v1460_v23 }
 0x10d   : > { %v8259_v20 = vpop.f32.mrb[22].mxu0  ;;  %1454 = vst [vmem:[#allocation3 + $0x18] sm:$0xff] %v1452_v19 }
 0x10e   : > { %1299 = vst [vmem:[#allocation2 + $0xb8] sm:$0xff] %v8259_v20  ;;  %v747_v21 = vpop.f32.mrb[23].mxu0  ;;  %v1458_v31 = vld [vmem:[#allocation2 + $0x90] ss:$2 sm:$0xff]  ;;  %v1462_v32 = vld [vmem:[#allocation2 + $0x91] ss:$2 sm:$0xff] }
 0x10f   : > { %1298 = vst [vmem:[#allocation2 + $0xb0] sm:$0xff] %v747_v21  ;;  %v1472_v39 = vmax.f32 %v1458_v31, %v1462_v32  ;;  %v1847_v20 = vld [vmem:[%s13368_s2] sm:$0xff]  ;;  %v1848_v21 = vld [vmem:[%s13368_s2 + $0x8] sm:$0xff] }
 0x110   : > { %v1864_v24 = vld [vmem:[#allocation3 + $0x9] sm:$0xff] }
 0x111   : > { %v8262_v25 = vpop.f32.mrb[24].mxu0  ;;  %8449 = vmatmul.mubr.f32.vlgmr.msra.gmra.mrb[0].mxu1 %v1864_v24 }
 0x112   : > { %v1464_v26 = vld [vmem:[#allocation2 + $0xa0] ss:$2 sm:$0xff]  ;;  %v1468_v27 = vld [vmem:[#allocation2 + $0xa1] ss:$2 sm:$0xff]  ;;  %1301 = vst [vmem:[#allocation2 + $0xc8] sm:$0xff] %v8262_v25  ;;  %v757_v28 = vpop.f32.mrb[25].mxu0  ;;  %v9864_v25 = vpack.c.bf16 %v1848_v21, %v1847_v20 }
 0x113   : > { %v1473_v30 = vmax.f32 %v1464_v26, %v1468_v27  ;;  %1300 = vst [vmem:[#allocation2 + $0xc0] sm:$0xff] %v757_v28 }
 0x114   : > { %v1865_v33 = vld [vmem:[#allocation3 + $0x11] sm:$0xff]  ;;  %9865 = vmatprep.subr.bf16.mxu1 %v9864_v25 }
 0x115   : > { %v8265_v34 = vpop.f32.mrb[26].mxu0  ;;  %8451 = vmatprep.mubr.f32.mxu1 %v1865_v33  ;;  %v1475_v35 = vmax.f32 %v1471_v29, %v1473_v30  ;;  %9867 = vmatpush3.bf16.msra.mxu1 %v9864_v25 }
 0x116   : > { %v1466_v36 = vld [vmem:[#allocation2 + $0xb0] ss:$2 sm:$0xff]  ;;  %v1470_v37 = vld [vmem:[#allocation2 + $0xb1] ss:$2 sm:$0xff]  ;;  %1303 = vst [vmem:[#allocation2 + $0xd8] sm:$0xff] %v8265_v34  ;;  %v767_v38 = vpop.f32.mrb[27].mxu0 }
 0x117   : > { %v1474_v40 = vmax.f32 %v1466_v36, %v1470_v37  ;;  %1302 = vst [vmem:[#allocation2 + $0xd0] sm:$0xff] %v767_v38  ;;  %v1477_v41 = vmax.f32 %v1475_v35, 0.0  ;;  %v1849_v38 = vld [vmem:[%s13368_s2 + $0x10] sm:$0xff] }
 0x119   : > { %v8268_v42 = vpop.f32.mrb[28].mxu0  ;;  %1479 = vst [vmem:[#allocation3 + $0x20] sm:$0xff] %v1477_v41  ;;  %v1476_v43 = vmax.f32 %v1472_v39, %v1474_v40  ;;  %v1850_v39 = vld [vmem:[%s13368_s2 + $0x18] sm:$0xff] }
 0x11a   : > { %1305 = vst [vmem:[#allocation2 + $0xe8] sm:$0xff] %v8268_v42  ;;  %v777_v44 = vpop.f32.mrb[29].mxu0  ;;  %v1482_v48 = vld [vmem:[#allocation2 + $0xc0] ss:$2 sm:$0xff]  ;;  %v1486_v49 = vld [vmem:[#allocation2 + $0xc1] ss:$2 sm:$0xff]  ;;  %v9868_v40 = vpack.c.bf16 %v1850_v39, %v1849_v38 }
 0x11b   : > { %1304 = vst [vmem:[#allocation2 + $0xe0] sm:$0xff] %v777_v44  ;;  %v1478_v45 = vmax.f32 %v1476_v43, 0.0  ;;  %v1497_v55 = vmax.f32 %v1482_v48, %v1486_v49 }
 0x11c   : > { %9869 = vmatprep.subr.bf16.mxu1 %v9868_v40 }
 0x11d   : > { %v8271_v46 = vpop.f32.mrb[30].mxu0  ;;  %1480 = vst [vmem:[#allocation3 + $0x28] sm:$0xff] %v1478_v45  ;;  %9871 = vmatpush3.bf16.msra.mxu1 %v9868_v40 }
 0x11e   : > { %1307 = vst [vmem:[#allocation2 + $0xf8] sm:$0xff] %v8271_v46  ;;  %v787_v47 = vpop.f32.mrb[31].mxu0  ;;  %v1484_v57 = vld [vmem:[#allocation2 + $0xd0] ss:$2 sm:$0xff]  ;;  %v1488_v58 = vld [vmem:[#allocation2 + $0xd1] ss:$2 sm:$0xff] }
 0x11f   : > { %1306 = vst [vmem:[#allocation2 + $0xf0] sm:$0xff] %v787_v47  ;;  %v1498_v2 = vmax.f32 %v1484_v57, %v1488_v58 }
 0x120   : > { %v1866_v50 = vld [vmem:[#allocation3 + $0x19] sm:$0xff] }
 0x121   : > { %v8274_v51 = vpop.f32.mrb[32].mxu0  ;;  %8452 = vmatmul.mubr.f32.gmra.mrb[2].mxu1 %v1866_v50 }
 0x122   : > { %v1490_v52 = vld [vmem:[#allocation2 + $0xe0] ss:$2 sm:$0xff]  ;;  %v1494_v53 = vld [vmem:[#allocation2 + $0xe1] ss:$2 sm:$0xff]  ;;  %1309 = vst [vmem:[#allocation2 + $0x108] sm:$0xff] %v8274_v51  ;;  %v797_v54 = vpop.f32.mrb[33].mxu0 }
 0x123   : > { %v1499_v56 = vmax.f32 %v1490_v52, %v1494_v53  ;;  %1308 = vst [vmem:[#allocation2 + $0x100] sm:$0xff] %v797_v54  ;;  %v1851_v52 = vld [vmem:[%s13368_s2 + $0x20] sm:$0xff]  ;;  %v1852_v53 = vld [vmem:[%s13368_s2 + $0x28] sm:$0xff] }
 0x124   : > { %v1867_v59 = vld [vmem:[#allocation3 + $0x21] sm:$0xff]  ;;  %v9872_v57 = vpack.c.bf16 %v1852_v53, %v1851_v52 }
 0x125   : > { %v8277_v60 = vpop.f32.mrb[34].mxu0  ;;  %8454 = vmatprep.mubr.f32.mxu1 %v1867_v59  ;;  %v11376_v61 = vmax.f32 %v1497_v55, %v1499_v56  ;;  %v1860_v53 = vld [vmem:[%s13368_s2 + $0x68] sm:$0xff] }
 0x126   : > { %v1492_v62 = vld [vmem:[#allocation2 + $0xf0] ss:$2 sm:$0xff]  ;;  %v1496_v63 = vld [vmem:[#allocation2 + $0xf1] ss:$2 sm:$0xff]  ;;  %1311 = vst [vmem:[#allocation2 + $0x118] sm:$0xff] %v8277_v60  ;;  %v807_v1 = vpop.f32.mrb[35].mxu0  ;;  %9873 = vmatprep.subr.bf16.mxu1 %v9872_v57 }
 0x127   : > { %v1500_v3 = vmax.f32 %v1492_v62, %v1496_v63  ;;  %1310 = vst [vmem:[#allocation2 + $0x110] sm:$0xff] %v807_v1  ;;  %v1503_v4 = vmax.f32 %v11376_v61, 0.0  ;;  %9875 = vmatpush3.bf16.msra.mxu1 %v9872_v57  ;;  %v1861_v57 = vld [vmem:[%s13368_s2 + $0x70] sm:$0xff] }
 0x129   : > { %v8280_v5 = vpop.f32.mrb[36].mxu0  ;;  %1505 = vst [vmem:[#allocation3 + $0x30] sm:$0xff] %v1503_v4  ;;  %v11381_v6 = vmax.f32 %v1498_v2, %v1500_v3 }
 0x12a   : > { %1313 = vst [vmem:[#allocation2 + $0x128] sm:$0xff] %v8280_v5  ;;  %v817_v7 = vpop.f32.mrb[37].mxu0  ;;  %v1508_v11 = vld [vmem:[#allocation2 + $0x100] ss:$2 sm:$0xff]  ;;  %v1512_v12 = vld [vmem:[#allocation2 + $0x101] ss:$2 sm:$0xff] }
 0x12b   : > { %1312 = vst [vmem:[#allocation2 + $0x120] sm:$0xff] %v817_v7  ;;  %v1504_v8 = vmax.f32 %v11381_v6, 0.0  ;;  %v1523_v18 = vmax.f32 %v1508_v11, %v1512_v12  ;;  %v1853_v5 = vld [vmem:[%s13368_s2 + $0x30] sm:$0xff]  ;;  %v1854_v7 = vld [vmem:[%s13368_s2 + $0x38] sm:$0xff] }
 0x12d   : > { %v8283_v9 = vpop.f32.mrb[38].mxu0  ;;  %1506 = vst [vmem:[#allocation3 + $0x38] sm:$0xff] %v1504_v8 }
 0x12e   : > { %1315 = vst [vmem:[#allocation2 + $0x138] sm:$0xff] %v8283_v9  ;;  %v827_v10 = vpop.f32.mrb[39].mxu0  ;;  %v1510_v22 = vld [vmem:[#allocation2 + $0x110] ss:$2 sm:$0xff]  ;;  %v1514_v23 = vld [vmem:[#allocation2 + $0x111] ss:$2 sm:$0xff]  ;;  %v9876_v9 = vpack.c.bf16 %v1854_v7, %v1853_v5 }
 0x12f   : > { %1314 = vst [vmem:[#allocation2 + $0x130] sm:$0xff] %v827_v10  ;;  %v1524_v31 = vmax.f32 %v1510_v22, %v1514_v23 }
 0x130   : > { %v1868_v13 = vld [vmem:[#allocation3 + $0x29] sm:$0xff]  ;;  %9877 = vmatprep.subr.bf16.mxu1 %v9876_v9 }
 0x131   : > { %v8286_v14 = vpop.f32.mrb[40].mxu0  ;;  %8455 = vmatmul.mubr.f32.gmra.mrb[4].mxu1 %v1868_v13 }
 0x132   : > { %v1516_v15 = vld [vmem:[#allocation2 + $0x120] ss:$2 sm:$0xff]  ;;  %v1520_v16 = vld [vmem:[#allocation2 + $0x121] ss:$2 sm:$0xff]  ;;  %1317 = vst [vmem:[#allocation2 + $0x148] sm:$0xff] %v8286_v14  ;;  %v837_v17 = vpop.f32.mrb[41].mxu0  ;;  %9879 = vmatpush3.bf16.msra.mxu1 %v9876_v9 }
 0x133   : > { %v1525_v19 = vmax.f32 %v1516_v15, %v1520_v16  ;;  %1316 = vst [vmem:[#allocation2 + $0x140] sm:$0xff] %v837_v17  ;;  %v182_v14 = vld [vmem:[%s11074_s21 + $0x3f0] sm:$0xff]  ;;  %v183_v15 = vld [vmem:[%s11074_s21 + $0x3f8] sm:$0xff] }
 0x134   : > { %v1869_v24 = vld [vmem:[#allocation3 + $0x31] sm:$0xff]  ;;  %8413 = vmatprep.mubr.msk.f32.mxu0 %vm186_vm0, %v182_v14  ;;  %v6928_v14 = vld [vmem:[%s13368_s2 + $0x100] sm:$0xff] }
 0x135   : > { %v8289_v26 = vpop.f32.mrb[42].mxu0  ;;  %8457 = vmatprep.mubr.f32.mxu1 %v1869_v24  ;;  %v11392_v27 = vmax.f32 %v1523_v18, %v1525_v19  ;;  %8414 = vmatmul.mubr.msk.f32.gmra.mrb[126].mxu0 %vm186_vm0, %v183_v15  ;;  %v1855_v18 = vld [vmem:[%s13368_s2 + $0x40] sm:$0xff]  ;;  %v1856_v19 = vld [vmem:[%s13368_s2 + $0x48] sm:$0xff] }
 0x136   : > { %v1518_v28 = vld [vmem:[#allocation2 + $0x130] ss:$2 sm:$0xff]  ;;  %v1522_v29 = vld [vmem:[#allocation2 + $0x131] ss:$2 sm:$0xff]  ;;  %1319 = vst [vmem:[#allocation2 + $0x158] sm:$0xff] %v8289_v26  ;;  %v847_v30 = vpop.f32.mrb[43].mxu0  ;;  %v9880_v23 = vpack.c.bf16 %v1856_v19, %v1855_v18 }
 0x137   : > { %v1526_v32 = vmax.f32 %v1518_v28, %v1522_v29  ;;  %1318 = vst [vmem:[#allocation2 + $0x150] sm:$0xff] %v847_v30  ;;  %v1529_v33 = vmax.f32 %v11392_v27, 0.0  ;;  %v6929_v15 = vld [vmem:[%s13368_s2 + $0x108] sm:$0xff]  ;;  %v6943_v27 = vld [vmem:[%s13368_s2 + $0x178] sm:$0xff] }
 0x138   : > { %9881 = vmatprep.subr.bf16.mxu1 %v9880_v23  ;;  %v11474_v19 = vpack.c.bf16 %v6929_v15, %v6928_v14 }
 0x139   : > { %v8292_v34 = vpop.f32.mrb[44].mxu0  ;;  %1531 = vst [vmem:[#allocation3 + $0x40] sm:$0xff] %v1529_v33  ;;  %v11397_v35 = vmax.f32 %v1524_v31, %v1526_v32  ;;  %9883 = vmatpush3.bf16.msra.mxu1 %v9880_v23 }
 0x13a   : > { %1321 = vst [vmem:[#allocation2 + $0x168] sm:$0xff] %v8292_v34  ;;  %v857_v36 = vpop.f32.mrb[45].mxu0  ;;  %v1534_v43 = vld [vmem:[#allocation2 + $0x140] ss:$2 sm:$0xff]  ;;  %v1538_v44 = vld [vmem:[#allocation2 + $0x141] ss:$2 sm:$0xff] }
 0x13b   : > { %1320 = vst [vmem:[#allocation2 + $0x160] sm:$0xff] %v857_v36  ;;  %v1530_v37 = vmax.f32 %v11397_v35, 0.0  ;;  %v1549_v50 = vmax.f32 %v1534_v43, %v1538_v44  ;;  %v6944_v35 = vld [vmem:[%s13368_s2 + $0x180] sm:$0xff] }
 0x13d   : > { %v8295_v41 = vpop.f32.mrb[46].mxu0  ;;  %1532 = vst [vmem:[#allocation3 + $0x48] sm:$0xff] %v1530_v37 }
 0x13e   : > { %1323 = vst [vmem:[#allocation2 + $0x178] sm:$0xff] %v8295_v41  ;;  %v867_v42 = vpop.f32.mrb[47].mxu0  ;;  %v1536_v54 = vld [vmem:[#allocation2 + $0x150] ss:$2 sm:$0xff]  ;;  %v1540_v55 = vld [vmem:[#allocation2 + $0x151] ss:$2 sm:$0xff] }
 0x13f   : > { %1322 = vst [vmem:[#allocation2 + $0x170] sm:$0xff] %v867_v42  ;;  %v1550_v1 = vmax.f32 %v1536_v54, %v1540_v55  ;;  %v1857_v42 = vld [vmem:[%s13368_s2 + $0x50] sm:$0xff] }
 0x140   : > { %v1870_v45 = vld [vmem:[#allocation3 + $0x39] sm:$0xff] }
 0x141   : > { %v8298_v46 = vpop.f32.mrb[48].mxu0  ;;  %8458 = vmatmul.mubr.f32.gmra.mrb[6].mxu1 %v1870_v45 }
 0x142   : > { %v1542_v47 = vld [vmem:[#allocation2 + $0x160] ss:$2 sm:$0xff]  ;;  %v1546_v48 = vld [vmem:[#allocation2 + $0x161] ss:$2 sm:$0xff]  ;;  %1325 = vst [vmem:[#allocation2 + $0x188] sm:$0xff] %v8298_v46  ;;  %v877_v49 = vpop.f32.mrb[49].mxu0 }
 0x143   : > { %v1551_v51 = vmax.f32 %v1542_v47, %v1546_v48  ;;  %1324 = vst [vmem:[#allocation2 + $0x180] sm:$0xff] %v877_v49  ;;  %v1858_v46 = vld [vmem:[%s13368_s2 + $0x58] sm:$0xff] }
 0x144   : > { %v1871_v56 = vld [vmem:[#allocation3 + $0x41] sm:$0xff]  ;;  %v9884_v47 = vpack.c.bf16 %v1858_v46, %v1857_v42 }
 0x145   : > { %v8301_v58 = vpop.f32.mrb[50].mxu0  ;;  %8460 = vmatprep.mubr.f32.mxu1 %v1871_v56  ;;  %v11414_v59 = vmax.f32 %v1549_v50, %v1551_v51  ;;  %v1859_v51 = vld [vmem:[%s13368_s2 + $0x60] sm:$0xff] }
 0x146   : > { %v1544_v60 = vld [vmem:[#allocation2 + $0x170] ss:$2 sm:$0xff]  ;;  %v1548_v62 = vld [vmem:[#allocation2 + $0x171] ss:$2 sm:$0xff]  ;;  %1327 = vst [vmem:[#allocation2 + $0x198] sm:$0xff] %v8301_v58  ;;  %v887_v63 = vpop.f32.mrb[51].mxu0  ;;  %9885 = vmatprep.subr.bf16.mxu1 %v9884_v47  ;;  %v9888_v54 = vpack.c.bf16 %v1860_v53, %v1859_v51 }
 0x147   : > { %v1552_v2 = vmax.f32 %v1544_v60, %v1548_v62  ;;  %1326 = vst [vmem:[#allocation2 + $0x190] sm:$0xff] %v887_v63  ;;  %v1555_v3 = vmax.f32 %v11414_v59, 0.0  ;;  %9887 = vmatpush3.bf16.msra.mxu1 %v9884_v47  ;;  %v1862_v58 = vld [vmem:[%s13368_s2 + $0x78] sm:$0xff] }
 0x148   : > { %9889 = vmatprep.subr.bf16.mxu1 %v9888_v54 }
 0x149   : > { %v8304_v10 = vpop.f32.mrb[52].mxu0  ;;  %1557 = vst [vmem:[#allocation3 + $0x50] sm:$0xff] %v1555_v3  ;;  %v11425_v11 = vmax.f32 %v1550_v1, %v1552_v2  ;;  %v9892_v1 = vpack.c.bf16 %v1862_v58, %v1861_v57 }
 0x14a   : > { %1329 = vst [vmem:[#allocation2 + $0x1a8] sm:$0xff] %v8304_v10  ;;  %v897_v12 = vpop.f32.mrb[53].mxu0  ;;  %v1560_v20 = vld [vmem:[#allocation2 + $0x180] ss:$2 sm:$0xff]  ;;  %v1564_v21 = vld [vmem:[#allocation2 + $0x181] ss:$2 sm:$0xff] }
 0x14b   : > { %1328 = vst [vmem:[#allocation2 + $0x1a0] sm:$0xff] %v897_v12  ;;  %v1556_v13 = vmax.f32 %v11425_v11, 0.0  ;;  %v1575_v29 = vmax.f32 %v1560_v20, %v1564_v21  ;;  %9891 = vmatpush3.bf16.msra.mxu1 %v9888_v54  ;;  %v6947_v11 = vld [vmem:[%s13368_s2 + $0x198] sm:$0xff] }
 0x14c   : > { %9893 = vmatprep.subr.bf16.mxu1 %v9892_v1 }
 0x14d   : > { %v8307_v16 = vpop.f32.mrb[54].mxu0  ;;  %1558 = vst [vmem:[#allocation3 + $0x58] sm:$0xff] %v1556_v13 }
 0x14e   : > { %1331 = vst [vmem:[#allocation2 + $0x1b8] sm:$0xff] %v8307_v16  ;;  %v907_v17 = vpop.f32.mrb[55].mxu0  ;;  %v1562_v31 = vld [vmem:[#allocation2 + $0x190] ss:$2 sm:$0xff]  ;;  %v1566_v32 = vld [vmem:[#allocation2 + $0x191] ss:$2 sm:$0xff] }
 0x14f   : > { %1330 = vst [vmem:[#allocation2 + $0x1b0] sm:$0xff] %v907_v17  ;;  %v1576_v43 = vmax.f32 %v1562_v31, %v1566_v32  ;;  %9895 = vmatpush3.bf16.msra.mxu1 %v9892_v1 }
 0x150   : > { %v1872_v22 = vld [vmem:[#allocation3 + $0x49] sm:$0xff]  ;;  %9897 = vmatprep.subr.bf16.mxu1 %v11474_v19 }
 0x151   : > { %v8310_v24 = vpop.f32.mrb[56].mxu0  ;;  %8461 = vmatmul.mubr.f32.gmra.mrb[8].mxu1 %v1872_v22 }
 0x152   : > { %v1568_v25 = vld [vmem:[#allocation2 + $0x1a0] ss:$2 sm:$0xff]  ;;  %v1572_v26 = vld [vmem:[#allocation2 + $0x1a1] ss:$2 sm:$0xff]  ;;  %1333 = vst [vmem:[#allocation2 + $0x1c8] sm:$0xff] %v8310_v24  ;;  %v917_v28 = vpop.f32.mrb[57].mxu0 }
 0x153   : > { %v1577_v30 = vmax.f32 %v1568_v25, %v1572_v26  ;;  %1332 = vst [vmem:[#allocation2 + $0x1c0] sm:$0xff] %v917_v28 }
 0x154   : > { %v1873_v34 = vld [vmem:[#allocation3 + $0x51] sm:$0xff] }
 0x155   : > { %v8313_v36 = vpop.f32.mrb[58].mxu0  ;;  %8463 = vmatprep.mubr.f32.mxu1 %v1873_v34  ;;  %v11440_v38 = vmax.f32 %v1575_v29, %v1577_v30 }
 0x156   : > { %v1570_v39 = vld [vmem:[#allocation2 + $0x1b0] ss:$2 sm:$0xff]  ;;  %v1574_v40 = vld [vmem:[#allocation2 + $0x1b1] ss:$2 sm:$0xff]  ;;  %1335 = vst [vmem:[#allocation2 + $0x1d8] sm:$0xff] %v8313_v36  ;;  %v927_v41 = vpop.f32.mrb[59].mxu0 }
 0x157   : > { %v1578_v44 = vmax.f32 %v1570_v39, %v1574_v40  ;;  %1334 = vst [vmem:[#allocation2 + $0x1d0] sm:$0xff] %v927_v41  ;;  %v1581_v45 = vmax.f32 %v11440_v38, 0.0 }
 0x159   : > { %v8316_v48 = vpop.f32.mrb[60].mxu0  ;;  %1583 = vst [vmem:[#allocation3 + $0x60] sm:$0xff] %v1581_v45  ;;  %v11451_v49 = vmax.f32 %v1576_v43, %v1578_v44 }
 0x15a   : > { %1337 = vst [vmem:[#allocation2 + $0x1e8] sm:$0xff] %v8316_v48  ;;  %v937_v50 = vpop.f32.mrb[61].mxu0  ;;  %v1586_v60 = vld [vmem:[#allocation2 + $0x1c0] ss:$2 sm:$0xff]  ;;  %v1590_v62 = vld [vmem:[#allocation2 + $0x1c1] ss:$2 sm:$0xff] }
 0x15b   : > { %1336 = vst [vmem:[#allocation2 + $0x1e0] sm:$0xff] %v937_v50  ;;  %v1582_v52 = vmax.f32 %v11451_v49, 0.0  ;;  %v1601_v10 = vmax.f32 %v1586_v60, %v1590_v62  ;;  %v6948_v49 = vld [vmem:[%s13368_s2 + $0x1a0] sm:$0xff] }
 0x15d   : > { %v8319_v55 = vpop.f32.mrb[62].mxu0  ;;  %1584 = vst [vmem:[#allocation3 + $0x68] sm:$0xff] %v1582_v52 }
 0x15e   : > { %1339 = vst [vmem:[#allocation2 + $0x1f8] sm:$0xff] %v8319_v55  ;;  %v947_v56 = vpop.f32.mrb[63].mxu0  ;;  %v1588_v16 = vld [vmem:[#allocation2 + $0x1d0] ss:$2 sm:$0xff]  ;;  %v1592_v17 = vld [vmem:[#allocation2 + $0x1d1] ss:$2 sm:$0xff] }
 0x15f   : > { %1338 = vst [vmem:[#allocation2 + $0x1f0] sm:$0xff] %v947_v56  ;;  %v1602_v25 = vmax.f32 %v1588_v16, %v1592_v17 }
 0x160   : > { %v1874_v63 = vld [vmem:[#allocation3 + $0x59] sm:$0xff] }
 0x161   : > { %v8322_v2 = vpop.f32.mrb[64].mxu0  ;;  %8464 = vmatmul.mubr.f32.gmra.mrb[10].mxu1 %v1874_v63 }
 0x162   : > { %v1594_v5 = vld [vmem:[#allocation2 + $0x1e0] ss:$2 sm:$0xff]  ;;  %v1598_v7 = vld [vmem:[#allocation2 + $0x1e1] ss:$2 sm:$0xff]  ;;  %1341 = vst [vmem:[#allocation2 + $0x208] sm:$0xff] %v8322_v2  ;;  %v957_v9 = vpop.f32.mrb[65].mxu0 }
 0x163   : > { %v1603_v12 = vmax.f32 %v1594_v5, %v1598_v7  ;;  %1340 = vst [vmem:[#allocation2 + $0x200] sm:$0xff] %v957_v9 }
 0x164   : > { %v1875_v18 = vld [vmem:[#allocation3 + $0x61] sm:$0xff] }
 0x165   : > { %v8325_v20 = vpop.f32.mrb[66].mxu0  ;;  %8466 = vmatprep.mubr.f32.mxu1 %v1875_v18  ;;  %v11476_v21 = vmax.f32 %v1601_v10, %v1603_v12 }
 0x166   : > { %v1596_v22 = vld [vmem:[#allocation2 + $0x1f0] ss:$2 sm:$0xff]  ;;  %v1600_v23 = vld [vmem:[#allocation2 + $0x1f1] ss:$2 sm:$0xff]  ;;  %1343 = vst [vmem:[#allocation2 + $0x218] sm:$0xff] %v8325_v20  ;;  %v967_v24 = vpop.f32.mrb[67].mxu0 }
 0x167   : > { %v1604_v26 = vmax.f32 %v1596_v22, %v1600_v23  ;;  %1342 = vst [vmem:[#allocation2 + $0x210] sm:$0xff] %v967_v24  ;;  %v1607_v28 = vmax.f32 %v11476_v21, 0.0  ;;  %v11653_v21 = vld [vmem:[#allocation3 + $0x12] sm:$0xff] }
 0x169   : > { %v8328_v29 = vpop.f32.mrb[68].mxu0  ;;  %1609 = vst [vmem:[#allocation3 + $0x70] sm:$0xff] %v1607_v28  ;;  %v11482_v30 = vmax.f32 %v1602_v25, %v1604_v26 }
 0x16a   : > { %1345 = vst [vmem:[#allocation2 + $0x228] sm:$0xff] %v8328_v29  ;;  %v977_v31 = vpop.f32.mrb[69].mxu0  ;;  %v1612_v39 = vld [vmem:[#allocation2 + $0x200] ss:$2 sm:$0xff]  ;;  %v1616_v40 = vld [vmem:[#allocation2 + $0x201] ss:$2 sm:$0xff] }
 0x16b   : > { %1344 = vst [vmem:[#allocation2 + $0x220] sm:$0xff] %v977_v31  ;;  %v1608_v32 = vmax.f32 %v11482_v30, 0.0  ;;  %v1627_v47 = vmax.f32 %v1612_v39, %v1616_v40  ;;  %v11656_v30 = vld [vmem:[#allocation3 + $0x1a] sm:$0xff] }
 0x16d   : > { %v8331_v34 = vpop.f32.mrb[70].mxu0  ;;  %1610 = vst [vmem:[#allocation3 + $0x78] sm:$0xff] %v1608_v32 }
 0x16e   : > { %1347 = vst [vmem:[#allocation2 + $0x238] sm:$0xff] %v8331_v34  ;;  %v987_v36 = vpop.f32.mrb[71].mxu0  ;;  %v1614_v50 = vld [vmem:[#allocation2 + $0x210] ss:$2 sm:$0xff]  ;;  %v1618_v51 = vld [vmem:[#allocation2 + $0x211] ss:$2 sm:$0xff] }
 0x16f   : > { %1346 = vst [vmem:[#allocation2 + $0x230] sm:$0xff] %v987_v36  ;;  %v1628_v60 = vmax.f32 %v1614_v50, %v1618_v51 }
 0x170   : > { %v1876_v41 = vld [vmem:[#allocation3 + $0x69] sm:$0xff] }
 0x171   : > { %v8334_v42 = vpop.f32.mrb[72].mxu0  ;;  %8467 = vmatmul.mubr.f32.gmra.mrb[12].mxu1 %v1876_v41 }
 0x172   : > { %v1620_v43 = vld [vmem:[#allocation2 + $0x220] ss:$2 sm:$0xff]  ;;  %v1624_v44 = vld [vmem:[#allocation2 + $0x221] ss:$2 sm:$0xff]  ;;  %1349 = vst [vmem:[#allocation2 + $0x248] sm:$0xff] %v8334_v42  ;;  %v997_v46 = vpop.f32.mrb[73].mxu0 }
 0x173   : > { %v1629_v48 = vmax.f32 %v1620_v43, %v1624_v44  ;;  %1348 = vst [vmem:[#allocation2 + $0x240] sm:$0xff] %v997_v46 }
 0x174   : > { %v1877_v53 = vld [vmem:[#allocation3 + $0x71] sm:$0xff] }
 0x175   : > { %v8337_v54 = vpop.f32.mrb[74].mxu0  ;;  %8469 = vmatprep.mubr.f32.mxu1 %v1877_v53  ;;  %v1631_v55 = vmax.f32 %v1627_v47, %v1629_v48 }
 0x176   : > { %v1622_v56 = vld [vmem:[#allocation2 + $0x230] ss:$2 sm:$0xff]  ;;  %v1626_v57 = vld [vmem:[#allocation2 + $0x231] ss:$2 sm:$0xff]  ;;  %1351 = vst [vmem:[#allocation2 + $0x258] sm:$0xff] %v8337_v54  ;;  %v1007_v58 = vpop.f32.mrb[75].mxu0 }
 0x177   : > { %v1630_v62 = vmax.f32 %v1622_v56, %v1626_v57  ;;  %1350 = vst [vmem:[#allocation2 + $0x250] sm:$0xff] %v1007_v58  ;;  %v11487_v63 = vmax.f32 %v1631_v55, 0.0 }
 0x179   : > { %v8340_v1 = vpop.f32.mrb[76].mxu0  ;;  %1635 = vst [vmem:[#allocation3 + $0x80] sm:$0xff] %v11487_v63  ;;  %v1632_v2 = vmax.f32 %v1628_v60, %v1630_v62 }
 0x17a   : > { %1353 = vst [vmem:[#allocation2 + $0x268] sm:$0xff] %v8340_v1  ;;  %v1017_v5 = vpop.f32.mrb[77].mxu0  ;;  %v1638_v12 = vld [vmem:[#allocation2 + $0x240] ss:$2 sm:$0xff]  ;;  %v1642_v14 = vld [vmem:[#allocation2 + $0x241] ss:$2 sm:$0xff] }
 0x17b   : > { %1352 = vst [vmem:[#allocation2 + $0x260] sm:$0xff] %v1017_v5  ;;  %v11490_v7 = vmax.f32 %v1632_v2, 0.0  ;;  %v1653_v22 = vmax.f32 %v1638_v12, %v1642_v14 }
 0x17d   : > { %v8343_v9 = vpop.f32.mrb[78].mxu0  ;;  %1636 = vst [vmem:[#allocation3 + $0x88] sm:$0xff] %v11490_v7 }
 0x17e   : > { %1355 = vst [vmem:[#allocation2 + $0x278] sm:$0xff] %v8343_v9  ;;  %v1027_v10 = vpop.f32.mrb[79].mxu0  ;;  %v1640_v24 = vld [vmem:[#allocation2 + $0x250] ss:$2 sm:$0xff]  ;;  %v1644_v25 = vld [vmem:[#allocation2 + $0x251] ss:$2 sm:$0xff] }
 0x17f   : > { %1354 = vst [vmem:[#allocation2 + $0x270] sm:$0xff] %v1027_v10  ;;  %v1654_v40 = vmax.f32 %v1640_v24, %v1644_v25 }
 0x180   : > { %v1878_v15 = vld [vmem:[#allocation3 + $0x79] sm:$0xff] }
 0x181   : > { %v8346_v16 = vpop.f32.mrb[80].mxu0  ;;  %8470 = vmatmul.mubr.f32.gmra.mrb[14].mxu1 %v1878_v15 }
 0x182   : > { %v1646_v17 = vld [vmem:[#allocation2 + $0x260] ss:$2 sm:$0xff]  ;;  %v1650_v18 = vld [vmem:[#allocation2 + $0x261] ss:$2 sm:$0xff]  ;;  %1357 = vst [vmem:[#allocation2 + $0x288] sm:$0xff] %v8346_v16  ;;  %v1037_v20 = vpop.f32.mrb[81].mxu0 }
 0x183   : > { %v1655_v23 = vmax.f32 %v1646_v17, %v1650_v18  ;;  %1356 = vst [vmem:[#allocation2 + $0x280] sm:$0xff] %v1037_v20 }
 0x184   : > { %v1879_v26 = vld [vmem:[#allocation3 + $0x81] sm:$0xff] }
 0x185   : > { %v8349_v29 = vpop.f32.mrb[82].mxu0  ;;  %8472 = vmatprep.mubr.f32.mxu1 %v1879_v26  ;;  %v1657_v31 = vmax.f32 %v1653_v22, %v1655_v23 }
 0x186   : > { %v1648_v34 = vld [vmem:[#allocation2 + $0x270] ss:$2 sm:$0xff]  ;;  %v1652_v36 = vld [vmem:[#allocation2 + $0x271] ss:$2 sm:$0xff]  ;;  %1359 = vst [vmem:[#allocation2 + $0x298] sm:$0xff] %v8349_v29  ;;  %v1047_v39 = vpop.f32.mrb[83].mxu0 }
 0x187   : > { %v1656_v41 = vmax.f32 %v1648_v34, %v1652_v36  ;;  %1358 = vst [vmem:[#allocation2 + $0x290] sm:$0xff] %v1047_v39  ;;  %v11493_v42 = vmax.f32 %v1657_v31, 0.0 }
 0x189   : > { %v8352_v43 = vpop.f32.mrb[84].mxu0  ;;  %1661 = vst [vmem:[#allocation3 + $0x90] sm:$0xff] %v11493_v42  ;;  %v1658_v44 = vmax.f32 %v1654_v40, %v1656_v41 }
 0x18a   : > { %1361 = vst [vmem:[#allocation2 + $0x2a8] sm:$0xff] %v8352_v43  ;;  %v1057_v46 = vpop.f32.mrb[85].mxu0  ;;  %v1664_v51 = vld [vmem:[#allocation2 + $0x280] ss:$2 sm:$0xff]  ;;  %v1668_v53 = vld [vmem:[#allocation2 + $0x281] ss:$2 sm:$0xff] }
 0x18b   : > { %1360 = vst [vmem:[#allocation2 + $0x2a0] sm:$0xff] %v1057_v46  ;;  %v11496_v47 = vmax.f32 %v1658_v44, 0.0  ;;  %v1679_v60 = vmax.f32 %v1664_v51, %v1668_v53 }
 0x18d   : > { %v8355_v48 = vpop.f32.mrb[86].mxu0  ;;  %1662 = vst [vmem:[#allocation3 + $0x98] sm:$0xff] %v11496_v47 }
 0x18e   : > { %1363 = vst [vmem:[#allocation2 + $0x2b8] sm:$0xff] %v8355_v48  ;;  %v1067_v50 = vpop.f32.mrb[87].mxu0  ;;  %v1666_v1 = vld [vmem:[#allocation2 + $0x290] ss:$2 sm:$0xff]  ;;  %v1670_v2 = vld [vmem:[#allocation2 + $0x291] ss:$2 sm:$0xff] }
 0x18f   : > { %1362 = vst [vmem:[#allocation2 + $0x2b0] sm:$0xff] %v1067_v50  ;;  %v1680_v16 = vmax.f32 %v1666_v1, %v1670_v2 }
 0x190   : > { %v1880_v54 = vld [vmem:[#allocation3 + $0x89] sm:$0xff] }
 0x191   : > { %v8358_v55 = vpop.f32.mrb[88].mxu0  ;;  %8473 = vmatmul.mubr.f32.gmra.mrb[16].mxu1 %v1880_v54 }
 0x192   : > { %v1672_v56 = vld [vmem:[#allocation2 + $0x2a0] ss:$2 sm:$0xff]  ;;  %v1676_v57 = vld [vmem:[#allocation2 + $0x2a1] ss:$2 sm:$0xff]  ;;  %1365 = vst [vmem:[#allocation2 + $0x2c8] sm:$0xff] %v8358_v55  ;;  %v1077_v58 = vpop.f32.mrb[89].mxu0 }
 0x193   : > { %v1681_v62 = vmax.f32 %v1672_v56, %v1676_v57  ;;  %1364 = vst [vmem:[#allocation2 + $0x2c0] sm:$0xff] %v1077_v58 }
 0x194   : > { %v1881_v5 = vld [vmem:[#allocation3 + $0x91] sm:$0xff] }
 0x195   : > { %v8361_v9 = vpop.f32.mrb[90].mxu0  ;;  %8475 = vmatprep.mubr.f32.mxu1 %v1881_v5  ;;  %v1683_v10 = vmax.f32 %v1679_v60, %v1681_v62 }
 0x196   : > { %v1674_v12 = vld [vmem:[#allocation2 + $0x2b0] ss:$2 sm:$0xff]  ;;  %v1678_v14 = vld [vmem:[#allocation2 + $0x2b1] ss:$2 sm:$0xff]  ;;  %1367 = vst [vmem:[#allocation2 + $0x2d8] sm:$0xff] %v8361_v9  ;;  %v1087_v15 = vpop.f32.mrb[91].mxu0 }
 0x197   : > { %v1682_v17 = vmax.f32 %v1674_v12, %v1678_v14  ;;  %1366 = vst [vmem:[#allocation2 + $0x2d0] sm:$0xff] %v1087_v15  ;;  %v11499_v18 = vmax.f32 %v1683_v10, 0.0 }
 0x199   : > { %v8364_v20 = vpop.f32.mrb[92].mxu0  ;;  %1687 = vst [vmem:[#allocation3 + $0xa0] sm:$0xff] %v11499_v18  ;;  %v1684_v22 = vmax.f32 %v1680_v16, %v1682_v17 }
 0x19a   : > { %1369 = vst [vmem:[#allocation2 + $0x2e8] sm:$0xff] %v8364_v20  ;;  %v1097_v23 = vpop.f32.mrb[93].mxu0  ;;  %v1690_v29 = vld [vmem:[#allocation2 + $0x2c0] ss:$2 sm:$0xff]  ;;  %v1694_v31 = vld [vmem:[#allocation2 + $0x2c1] ss:$2 sm:$0xff] }
 0x19b   : > { %1368 = vst [vmem:[#allocation2 + $0x2e0] sm:$0xff] %v1097_v23  ;;  %v11502_v24 = vmax.f32 %v1684_v22, 0.0  ;;  %v1705_v43 = vmax.f32 %v1690_v29, %v1694_v31 }
 0x19d   : > { %v8367_v25 = vpop.f32.mrb[94].mxu0  ;;  %1688 = vst [vmem:[#allocation3 + $0xa8] sm:$0xff] %v11502_v24 }
 0x19e   : > { %1371 = vst [vmem:[#allocation2 + $0x2f8] sm:$0xff] %v8367_v25  ;;  %v1107_v26 = vpop.f32.mrb[95].mxu0  ;;  %v1692_v46 = vld [vmem:[#allocation2 + $0x2d0] ss:$2 sm:$0xff]  ;;  %v1696_v48 = vld [vmem:[#allocation2 + $0x2d1] ss:$2 sm:$0xff] }
 0x19f   : > { %1370 = vst [vmem:[#allocation2 + $0x2f0] sm:$0xff] %v1107_v26  ;;  %v1706_v57 = vmax.f32 %v1692_v46, %v1696_v48 }
 0x1a0   : > { %v1882_v34 = vld [vmem:[#allocation3 + $0x99] sm:$0xff] }
 0x1a1   : > { %v8370_v36 = vpop.f32.mrb[96].mxu0  ;;  %8476 = vmatmul.mubr.f32.gmra.mrb[18].mxu1 %v1882_v34 }
 0x1a2   : > { %v1698_v39 = vld [vmem:[#allocation2 + $0x2e0] ss:$2 sm:$0xff]  ;;  %v1702_v40 = vld [vmem:[#allocation2 + $0x2e1] ss:$2 sm:$0xff]  ;;  %1373 = vst [vmem:[#allocation2 + $0x308] sm:$0xff] %v8370_v36  ;;  %v1117_v41 = vpop.f32.mrb[97].mxu0 }
 0x1a3   : > { %v1707_v44 = vmax.f32 %v1698_v39, %v1702_v40  ;;  %1372 = vst [vmem:[#allocation2 + $0x300] sm:$0xff] %v1117_v41 }
 0x1a4   : > { %v1883_v50 = vld [vmem:[#allocation3 + $0xa1] sm:$0xff] }
 0x1a5   : > { %v8373_v51 = vpop.f32.mrb[98].mxu0  ;;  %8478 = vmatprep.mubr.f32.mxu1 %v1883_v50  ;;  %v1709_v53 = vmax.f32 %v1705_v43, %v1707_v44 }
 0x1a6   : > { %v1700_v54 = vld [vmem:[#allocation2 + $0x2f0] ss:$2 sm:$0xff]  ;;  %v1704_v55 = vld [vmem:[#allocation2 + $0x2f1] ss:$2 sm:$0xff]  ;;  %1375 = vst [vmem:[#allocation2 + $0x318] sm:$0xff] %v8373_v51  ;;  %v1127_v56 = vpop.f32.mrb[99].mxu0 }
 0x1a7   : > { %v1708_v58 = vmax.f32 %v1700_v54, %v1704_v55  ;;  %1374 = vst [vmem:[#allocation2 + $0x310] sm:$0xff] %v1127_v56  ;;  %v11505_v60 = vmax.f32 %v1709_v53, 0.0 }
 0x1a9   : > { %v8376_v62 = vpop.f32.mrb[100].mxu0  ;;  %1713 = vst [vmem:[#allocation3 + $0xb0] sm:$0xff] %v11505_v60  ;;  %v1710_v1 = vmax.f32 %v1706_v57, %v1708_v58 }
 0x1aa   : > { %1377 = vst [vmem:[#allocation2 + $0x328] sm:$0xff] %v8376_v62  ;;  %v1137_v2 = vpop.f32.mrb[101].mxu0  ;;  %v1716_v12 = vld [vmem:[#allocation2 + $0x300] ss:$2 sm:$0xff]  ;;  %v1720_v14 = vld [vmem:[#allocation2 + $0x301] ss:$2 sm:$0xff] }
 0x1ab   : > { %1376 = vst [vmem:[#allocation2 + $0x320] sm:$0xff] %v1137_v2  ;;  %v11508_v5 = vmax.f32 %v1710_v1, 0.0  ;;  %v1731_v23 = vmax.f32 %v1716_v12, %v1720_v14 }
 0x1ad   : > { %v8379_v9 = vpop.f32.mrb[102].mxu0  ;;  %1714 = vst [vmem:[#allocation3 + $0xb8] sm:$0xff] %v11508_v5 }
 0x1ae   : > { %1379 = vst [vmem:[#allocation2 + $0x338] sm:$0xff] %v8379_v9  ;;  %v1147_v10 = vpop.f32.mrb[103].mxu0  ;;  %v1718_v26 = vld [vmem:[#allocation2 + $0x310] ss:$2 sm:$0xff]  ;;  %v1722_v29 = vld [vmem:[#allocation2 + $0x311] ss:$2 sm:$0xff] }
 0x1af   : > { %1378 = vst [vmem:[#allocation2 + $0x330] sm:$0xff] %v1147_v10  ;;  %v1732_v43 = vmax.f32 %v1718_v26, %v1722_v29 }
 0x1b0   : > { %v11511_v15 = vld [vmem:[#allocation3 + $0xa9] sm:$0xff] }
 0x1b1   : > { %v8382_v16 = vpop.f32.mrb[104].mxu0  ;;  %8479 = vmatmul.mubr.f32.gmra.mrb[20].mxu1 %v11511_v15 }
 0x1b2   : > { %v1724_v17 = vld [vmem:[#allocation2 + $0x320] ss:$2 sm:$0xff]  ;;  %v1728_v20 = vld [vmem:[#allocation2 + $0x321] ss:$2 sm:$0xff]  ;;  %1381 = vst [vmem:[#allocation2 + $0x348] sm:$0xff] %v8382_v16  ;;  %v1157_v22 = vpop.f32.mrb[105].mxu0 }
 0x1b3   : > { %v1733_v25 = vmax.f32 %v1724_v17, %v1728_v20  ;;  %1380 = vst [vmem:[#allocation2 + $0x340] sm:$0xff] %v1157_v22 }
 0x1b4   : > { %v11514_v31 = vld [vmem:[#allocation3 + $0xb1] sm:$0xff] }
 0x1b5   : > { %v8385_v34 = vpop.f32.mrb[106].mxu0  ;;  %8481 = vmatprep.mubr.f32.mxu1 %v11514_v31  ;;  %v1735_v36 = vmax.f32 %v1731_v23, %v1733_v25 }
 0x1b6   : > { %v1726_v39 = vld [vmem:[#allocation2 + $0x330] ss:$2 sm:$0xff]  ;;  %v1730_v40 = vld [vmem:[#allocation2 + $0x331] ss:$2 sm:$0xff]  ;;  %1383 = vst [vmem:[#allocation2 + $0x358] sm:$0xff] %v8385_v34  ;;  %v1167_v41 = vpop.f32.mrb[107].mxu0 }
 0x1b7   : > { %v1734_v44 = vmax.f32 %v1726_v39, %v1730_v40  ;;  %1382 = vst [vmem:[#allocation2 + $0x350] sm:$0xff] %v1167_v41  ;;  %v11517_v46 = vmax.f32 %v1735_v36, 0.0 }
 0x1b9   : > { %v8388_v48 = vpop.f32.mrb[108].mxu0  ;;  %1739 = vst [vmem:[#allocation3 + $0xc0] sm:$0xff] %v11517_v46  ;;  %v1736_v50 = vmax.f32 %v1732_v43, %v1734_v44 }
 0x1ba   : > { %1385 = vst [vmem:[#allocation2 + $0x368] sm:$0xff] %v8388_v48  ;;  %v1177_v51 = vpop.f32.mrb[109].mxu0  ;;  %v1742_v56 = vld [vmem:[#allocation2 + $0x340] ss:$2 sm:$0xff]  ;;  %v1746_v57 = vld [vmem:[#allocation2 + $0x341] ss:$2 sm:$0xff] }
 0x1bb   : > { %1384 = vst [vmem:[#allocation2 + $0x360] sm:$0xff] %v1177_v51  ;;  %v11520_v53 = vmax.f32 %v1736_v50, 0.0  ;;  %v1757_v10 = vmax.f32 %v1742_v56, %v1746_v57 }
 0x1bd   : > { %v8391_v54 = vpop.f32.mrb[110].mxu0  ;;  %1740 = vst [vmem:[#allocation3 + $0xc8] sm:$0xff] %v11520_v53 }
 0x1be   : > { %1387 = vst [vmem:[#allocation2 + $0x378] sm:$0xff] %v8391_v54  ;;  %v1187_v55 = vpop.f32.mrb[111].mxu0  ;;  %v1744_v14 = vld [vmem:[#allocation2 + $0x350] ss:$2 sm:$0xff]  ;;  %v1748_v16 = vld [vmem:[#allocation2 + $0x351] ss:$2 sm:$0xff] }
 0x1bf   : > { %1386 = vst [vmem:[#allocation2 + $0x370] sm:$0xff] %v1187_v55  ;;  %v1758_v29 = vmax.f32 %v1744_v14, %v1748_v16 }
 0x1c0   : > { %v11523_v58 = vld [vmem:[#allocation3 + $0xb9] sm:$0xff] }
 0x1c1   : > { %v8394_v62 = vpop.f32.mrb[112].mxu0  ;;  %8482 = vmatmul.mubr.f32.gmra.mrb[22].mxu1 %v11523_v58 }
 0x1c2   : > { %v1750_v1 = vld [vmem:[#allocation2 + $0x360] ss:$2 sm:$0xff]  ;;  %v1754_v2 = vld [vmem:[#allocation2 + $0x361] ss:$2 sm:$0xff]  ;;  %1389 = vst [vmem:[#allocation2 + $0x388] sm:$0xff] %v8394_v62  ;;  %v1197_v9 = vpop.f32.mrb[113].mxu0 }
 0x1c3   : > { %v1759_v12 = vmax.f32 %v1750_v1, %v1754_v2  ;;  %1388 = vst [vmem:[#allocation2 + $0x380] sm:$0xff] %v1197_v9 }
 0x1c4   : > { %v11526_v17 = vld [vmem:[#allocation3 + $0xc1] sm:$0xff] }
 0x1c5   : > { %v8397_v20 = vpop.f32.mrb[114].mxu0  ;;  %8484 = vmatprep.mubr.f32.mxu1 %v11526_v17  ;;  %v1761_v22 = vmax.f32 %v1757_v10, %v1759_v12 }
 0x1c6   : > { %v1752_v23 = vld [vmem:[#allocation2 + $0x370] ss:$2 sm:$0xff]  ;;  %v1756_v25 = vld [vmem:[#allocation2 + $0x371] ss:$2 sm:$0xff]  ;;  %1391 = vst [vmem:[#allocation2 + $0x398] sm:$0xff] %v8397_v20  ;;  %v1207_v26 = vpop.f32.mrb[115].mxu0 }
 0x1c7   : > { %v1760_v34 = vmax.f32 %v1752_v23, %v1756_v25  ;;  %1390 = vst [vmem:[#allocation2 + $0x390] sm:$0xff] %v1207_v26  ;;  %v11529_v36 = vmax.f32 %v1761_v22, 0.0 }
 0x1c9   : > { %v8400_v39 = vpop.f32.mrb[116].mxu0  ;;  %1765 = vst [vmem:[#allocation3 + $0xd0] sm:$0xff] %v11529_v36  ;;  %v1762_v40 = vmax.f32 %v1758_v29, %v1760_v34 }
 0x1ca   : > { %1393 = vst [vmem:[#allocation2 + $0x3a8] sm:$0xff] %v8400_v39  ;;  %v1217_v41 = vpop.f32.mrb[117].mxu0  ;;  %v1768_v50 = vld [vmem:[#allocation2 + $0x380] ss:$2 sm:$0xff]  ;;  %v1772_v51 = vld [vmem:[#allocation2 + $0x381] ss:$2 sm:$0xff] }
 0x1cb   : > { %1392 = vst [vmem:[#allocation2 + $0x3a0] sm:$0xff] %v1217_v41  ;;  %v11532_v43 = vmax.f32 %v1762_v40, 0.0  ;;  %v1783_v1 = vmax.f32 %v1768_v50, %v1772_v51  ;;  %v6930_v51 = vld [vmem:[%s13368_s2 + $0x110] sm:$0xff] }
 0x1cd   : > { %v8403_v44 = vpop.f32.mrb[118].mxu0  ;;  %1766 = vst [vmem:[#allocation3 + $0xd8] sm:$0xff] %v11532_v43 }
 0x1ce   : > { %1395 = vst [vmem:[#allocation2 + $0x3b8] sm:$0xff] %v8403_v44  ;;  %v1227_v48 = vpop.f32.mrb[119].mxu0  ;;  %v1770_v9 = vld [vmem:[#allocation2 + $0x390] ss:$2 sm:$0xff]  ;;  %v1774_v10 = vld [vmem:[#allocation2 + $0x391] ss:$2 sm:$0xff] }
 0x1cf   : > { %1394 = vst [vmem:[#allocation2 + $0x3b0] sm:$0xff] %v1227_v48  ;;  %v1784_v25 = vmax.f32 %v1770_v9, %v1774_v10  ;;  %v1820_v10 = vld [vmem:[#allocation3 + $0x8] sm:$0xff] }
 0x1d0   : > { %v11535_v54 = vld [vmem:[#allocation3 + $0xc9] sm:$0xff] }
 0x1d1   : > { %8485 = vmatmul.mubr.f32.gmra.mrb[24].mxu1 %v11535_v54  ;;  %v8406_v55 = vpop.f32.mrb[120].mxu0 }
 0x1d2   : > { %v1776_v56 = vld [vmem:[#allocation2 + $0x3a0] ss:$2 sm:$0xff]  ;;  %v1780_v57 = vld [vmem:[#allocation2 + $0x3a1] ss:$2 sm:$0xff]  ;;  %1397 = vst [vmem:[#allocation2 + $0x3c8] sm:$0xff] %v8406_v55  ;;  %v1237_v62 = vpop.f32.mrb[121].mxu0 }
 0x1d3   : > { %v1785_v2 = vmax.f32 %v1776_v56, %v1780_v57  ;;  %1396 = vst [vmem:[#allocation2 + $0x3c0] sm:$0xff] %v1237_v62  ;;  %v6931_v55 = vld [vmem:[%s13368_s2 + $0x118] sm:$0xff]  ;;  %v1819_v57 = vld [vmem:[#allocation3] sm:$0xff] }
 0x1d4   : > { %v11538_v12 = vld [vmem:[#allocation3 + $0xd1] sm:$0xff]  ;;  %v9900_v9 = vpack.c.bf16 %v6931_v55, %v6930_v51  ;;  %v6936_v51 = vld [vmem:[%s13368_s2 + $0x140] sm:$0xff]  ;;  %v6937_v55 = vld [vmem:[%s13368_s2 + $0x148] sm:$0xff] }
 0x1d5   : > { %8487 = vmatprep.mubr.f32.mxu1 %v11538_v12  ;;  %v8409_v14 = vpop.f32.mrb[122].mxu0  ;;  %v11541_v16 = vmax.f32 %v1783_v1, %v1785_v2 }
 0x1d6   : > { %v1778_v20 = vld [vmem:[#allocation2 + $0x3b0] ss:$2 sm:$0xff]  ;;  %v1782_v22 = vld [vmem:[#allocation2 + $0x3b1] ss:$2 sm:$0xff]  ;;  %1399 = vst [vmem:[#allocation2 + $0x3d8] sm:$0xff] %v8409_v14  ;;  %v1247_v23 = vpop.f32.mrb[123].mxu0 }
 0x1d7   : > { %v1786_v26 = vmax.f32 %v1778_v20, %v1782_v22  ;;  %1398 = vst [vmem:[#allocation2 + $0x3d0] sm:$0xff] %v1247_v23  ;;  %v13381_v29 = vmax.f32 %v11541_v16, 0.0  ;;  %v6932_v14 = vld [vmem:[%s13368_s2 + $0x120] sm:$0xff]  ;;  %v6933_v20 = vld [vmem:[%s13368_s2 + $0x128] sm:$0xff]  ;;  %v11566_v22 = vld [vmem:[#allocation3 + $0x10] sm:$0xff] }
 0x1d9   : > { %v8412_v34 = vpop.f32.mrb[124].mxu0  ;;  %1791 = vst [vmem:[#allocation3 + $0xe0] sm:$0xff] %v13381_v29  ;;  %v11546_v39 = vmax.f32 %v1784_v25, %v1786_v26  ;;  %v9904_v25 = vpack.c.bf16 %v6933_v20, %v6932_v14  ;;  %v11665_v14 = vld [vmem:[#allocation3 + $0x22] sm:$0xff] }
 0x1da   : > { %1401 = vst [vmem:[#allocation2 + $0x3e8] sm:$0xff] %v8412_v34  ;;  %v1257_v40 = vpop.f32.mrb[125].mxu0  ;;  %v1794_v44 = vld [vmem:[#allocation2 + $0x3c0] ss:$2 sm:$0xff]  ;;  %v1798_v48 = vld [vmem:[#allocation2 + $0x3c1] ss:$2 sm:$0xff] }
 0x1db   : > { %1400 = vst [vmem:[#allocation2 + $0x3e0] sm:$0xff] %v1257_v40  ;;  %v13380_v41 = vmax.f32 %v11546_v39, 0.0  ;;  %v1809_v56 = vmax.f32 %v1794_v44, %v1798_v48  ;;  %v11570_v34 = vld [vmem:[#allocation3 + $0x18] sm:$0xff]  ;;  %v6934_v40 = vld [vmem:[%s13368_s2 + $0x130] sm:$0xff]  ;;  %v10948_v48 = vld [vmem:[#allocation3 + $0x20] sm:$0xff] }
 0x1dc   : > { %v6935_v44 = vld [vmem:[%s13368_s2 + $0x138] sm:$0xff]  ;;  %v11834_v29 = vld [vmem:[#allocation3 + $0x60] sm:$0xff] }
 0x1dd   : > { %1792 = vst [vmem:[#allocation3 + $0xe8] sm:$0xff] %v13380_v41  ;;  %v6973_v41 = vld [vmem:[%s13368_s2 + $0x268] sm:$0xff]  ;;  %13388 = vst [vmem:[#allocation13_spill] sm:$0xff] %v11834_v29 }
 0x1e0   : > { %v11551_v50 = vld [vmem:[#allocation3 + $0xd9] sm:$0xff] }
 0x1e1   : > { %8488 = vmatmul.mubr.f32.gmra.mrb[26].mxu1 %v11551_v50 }
 0x1e2   : > { %v1802_v62 = vld [vmem:[#allocation2 + $0x3e0] ss:$2 sm:$0xff]  ;;  %v1806_v1 = vld [vmem:[#allocation2 + $0x3e1] ss:$2 sm:$0xff]  ;;  %8522 = vmatprep.mubr.f32.mxu1 %v1819_v57  ;;  %v9912_v57 = vpack.c.bf16 %v6937_v55, %v6936_v51 }
 0x1e3   : > { %v1811_v2 = vmax.f32 %v1802_v62, %v1806_v1  ;;  %v6938_v62 = vld [vmem:[%s13368_s2 + $0x150] sm:$0xff]  ;;  %v6939_v1 = vld [vmem:[%s13368_s2 + $0x158] sm:$0xff] }
 0x1e4   : > { %v9916_v61 = vpack.c.bf16 %v6939_v1, %v6938_v62  ;;  %v11680_v55 = vld [vmem:[#allocation3 + $0x3a] sm:$0xff]  ;;  %v11689_v1 = vld [vmem:[#allocation3 + $0x42] sm:$0xff] }
 0x1e5   : > { %8523 = vmatmul.mubr.f32.vlgmr.msra.gmra.mrb[0].mxu1 %v1820_v10  ;;  %v1813_v23 = vmax.f32 %v1809_v56, %v1811_v2  ;;  %v10949_v56 = vld [vmem:[#allocation3 + $0x28] sm:$0xff] }
 0x1e6   : > { %9899 = vmatpush3.bf16.msra.mxu1 %v11474_v19  ;;  %8525 = vmatprep.mubr.f32.mxu1 %v11566_v22  ;;  %v9908_v19 = vpack.c.bf16 %v6935_v44, %v6934_v40  ;;  %v6941_v2 = vld [vmem:[%s13368_s2 + $0x168] sm:$0xff]  ;;  %v11677_v44 = vld [vmem:[#allocation3 + $0x32] sm:$0xff] }
 0x1e7   : > { %9901 = vmatprep.subr.bf16.mxu1 %v9900_v9  ;;  %v1815_v26 = vmax.f32 %v1813_v23, 0.0  ;;  %v6953_v40 = vld [vmem:[%s13368_s2 + $0x1c8] sm:$0xff] }
 0x1e9   : > { %8526 = vmatmul.mubr.f32.gmra.mrb[2].mxu1 %v11570_v34  ;;  %1817 = vst [vmem:[#allocation3 + $0xf0] sm:$0xff] %v1815_v26  ;;  %v6952_v26 = vld [vmem:[%s13368_s2 + $0x1c0] sm:$0xff] }
 0x1ea   : > { %8528 = vmatprep.mubr.f32.mxu1 %v10948_v48  ;;  %9903 = vmatpush3.bf16.msra.mxu1 %v9900_v9  ;;  %v6951_v9 = vld [vmem:[%s13368_s2 + $0x1b8] sm:$0xff]  ;;  %v9944_v51 = vpack.c.bf16 %v6953_v40, %v6952_v26  ;;  %v11739_v26 = vld [vmem:[#allocation3 + $0x8a] sm:$0xff] }
 0x1eb   : > { %9905 = vmatprep.subr.bf16.mxu1 %v9904_v25  ;;  %v1796_v48 = vld [vmem:[#allocation2 + $0x3d0] ss:$2 sm:$0xff] }
 0x1ec   : > { %v11742_v40 = vld [vmem:[#allocation3 + $0x92] sm:$0xff] }
 0x1ed   : > { %8529 = vmatmul.mubr.f32.gmra.mrb[4].mxu1 %v10949_v56  ;;  %v6954_v56 = vld [vmem:[%s13368_s2 + $0x1d0] sm:$0xff] }
 0x1ee   : > { %8531 = vmatprep.mubr.f32.mxu1 %v1503_v4  ;;  %9907 = vmatpush3.bf16.msra.mxu1 %v9904_v25  ;;  %v6940_v4 = vld [vmem:[%s13368_s2 + $0x160] sm:$0xff]  ;;  %v11668_v25 = vld [vmem:[#allocation3 + $0x2a] sm:$0xff] }
 0x1ef   : > { %9909 = vmatprep.subr.bf16.mxu1 %v9908_v19  ;;  %v9920_v6 = vpack.c.bf16 %v6941_v2, %v6940_v4 }
 0x1f1   : > { %8532 = vmatmul.mubr.f32.gmra.mrb[6].mxu1 %v1504_v8  ;;  %v6942_v8 = vld [vmem:[%s13368_s2 + $0x170] sm:$0xff] }
 0x1f2   : > { %8534 = vmatprep.mubr.f32.mxu1 %v1529_v33  ;;  %9911 = vmatpush3.bf16.msra.mxu1 %v9908_v19  ;;  %v9924_v33 = vpack.c.bf16 %v6943_v27, %v6942_v8  ;;  %v1800_v19 = vld [vmem:[#allocation2 + $0x3d1] ss:$2 sm:$0xff]  ;;  %v6956_v27 = vld [vmem:[%s13368_s2 + $0x1e0] sm:$0xff] }
 0x1f3   : > { %9913 = vmatprep.subr.bf16.mxu1 %v9912_v57  ;;  %v1810_v62 = vmax.f32 %v1796_v48, %v1800_v19  ;;  %v11692_v8 = vld [vmem:[#allocation3 + $0x4a] sm:$0xff]  ;;  %v11745_v48 = vld [vmem:[#allocation3 + $0x9a] sm:$0xff]  ;;  %v11748_v19 = vld [vmem:[#allocation3 + $0xa2] sm:$0xff] }
 0x1f5   : > { %8535 = vmatmul.mubr.f32.gmra.mrb[8].mxu1 %v1530_v37  ;;  %v6945_v37 = vld [vmem:[%s13368_s2 + $0x188] sm:$0xff] }
 0x1f6   : > { %8537 = vmatprep.mubr.f32.mxu1 %v1555_v3  ;;  %9915 = vmatpush3.bf16.msra.mxu1 %v9912_v57  ;;  %v9928_v59 = vpack.c.bf16 %v6945_v37, %v6944_v35  ;;  %v6946_v3 = vld [vmem:[%s13368_s2 + $0x190] sm:$0xff]  ;;  %v6955_v57 = vld [vmem:[%s13368_s2 + $0x1d8] sm:$0xff] }
 0x1f7   : > { %9917 = vmatprep.subr.bf16.mxu1 %v9916_v61  ;;  %v9932_v38 = vpack.c.bf16 %v6947_v11, %v6946_v3  ;;  %v11701_v35 = vld [vmem:[#allocation3 + $0x52] sm:$0xff]  ;;  %v11707_v11 = vld [vmem:[#allocation3 + $0x5a] sm:$0xff] }
 0x1f9   : > { %8538 = vmatmul.mubr.f32.gmra.mrb[10].mxu1 %v1556_v13  ;;  %v2318_v13 = vld [vmem:[#allocation3 + $0x2] sm:$0xff] }
 0x1fa   : > { %8540 = vmatprep.mubr.f32.mxu1 %v1581_v45  ;;  %9919 = vmatpush3.bf16.msra.mxu1 %v9916_v61  ;;  %v2319_v45 = vld [vmem:[#allocation3 + $0xa] sm:$0xff] }
 0x1fb   : > { %9921 = vmatprep.subr.bf16.mxu1 %v9920_v6 }
 0x1fd   : > { %8541 = vmatmul.mubr.f32.gmra.mrb[12].mxu1 %v1582_v52  ;;  %v6949_v52 = vld [vmem:[%s13368_s2 + $0x1a8] sm:$0xff] }
 0x1fe   : > { %8543 = vmatprep.mubr.f32.mxu1 %v1607_v28  ;;  %9923 = vmatpush3.bf16.msra.mxu1 %v9920_v6  ;;  %v9936_v28 = vpack.c.bf16 %v6949_v52, %v6948_v49  ;;  %v9948_v6 = vpack.c.bf16 %v6955_v57, %v6954_v56  ;;  %v11721_v52 = vld [vmem:[#allocation3 + $0x6a] sm:$0xff]  ;;  %v11754_v56 = vld [vmem:[#allocation3 + $0xb2] sm:$0xff]  ;;  %v11757_v57 = vld [vmem:[#allocation3 + $0xba] sm:$0xff] }
 0x1ff   : > { %9925 = vmatprep.subr.bf16.mxu1 %v9924_v33 }
 0x201   : > { %8544 = vmatmul.mubr.f32.gmra.mrb[14].mxu1 %v1608_v32  ;;  %v6950_v32 = vld [vmem:[%s13368_s2 + $0x1b0] sm:$0xff] }
 0x202   : > { %8546 = vmatprep.mubr.f32.mxu1 %v11487_v63  ;;  %9927 = vmatpush3.bf16.msra.mxu1 %v9924_v33  ;;  %v9940_v23 = vpack.c.bf16 %v6951_v9, %v6950_v32  ;;  %v6957_v33 = vld [vmem:[%s13368_s2 + $0x1e8] sm:$0xff]  ;;  %v11730_v9 = vld [vmem:[#allocation3 + $0x72] sm:$0xff] }
 0x203   : > { %9929 = vmatprep.subr.bf16.mxu1 %v9928_v59  ;;  %v6961_v32 = vld [vmem:[%s13368_s2 + $0x208] sm:$0xff] }
 0x205   : > { %8547 = vmatmul.mubr.f32.gmra.mrb[16].mxu1 %v11490_v7 }
 0x206   : > { %8549 = vmatprep.mubr.f32.mxu1 %v11493_v42 }
 0x208   : > { %v8415_v10 = vpop.f32.mrb[126].mxu0 }
 0x209   : > { %8550 = vmatmul.mubr.f32.gmra.mrb[18].mxu1 %v11496_v47  ;;  %1403 = vst [vmem:[#allocation2 + $0x3f8] sm:$0xff] %v8415_v10  ;;  %v1267_v20 = vpop.f32.mrb[127].mxu0 }
 0x20a   : > { %8552 = vmatprep.mubr.f32.mxu1 %v11499_v18  ;;  %1402 = vst [vmem:[#allocation2 + $0x3f0] sm:$0xff] %v1267_v20  ;;  %v11733_v20 = vld [vmem:[#allocation3 + $0x7a] sm:$0xff] }
 0x20d   : > { %8553 = vmatmul.mubr.f32.gmra.mrb[20].mxu1 %v11502_v24 }
 0x20e   : > { %8555 = vmatprep.mubr.f32.mxu1 %v11505_v60 }
 0x211   : > { %8556 = vmatmul.mubr.f32.gmra.mrb[22].mxu1 %v11508_v5  ;;  %v1804_v61 = vld [vmem:[#allocation2 + $0x3f0] ss:$2 sm:$0xff]  ;;  %v1808_v4 = vld [vmem:[#allocation2 + $0x3f1] ss:$2 sm:$0xff] }
 0x212   : > { %8558 = vmatprep.mubr.f32.mxu1 %v11517_v46  ;;  %v1812_v2 = vmax.f32 %v1804_v61, %v1808_v4  ;;  %v11763_v61 = vld [vmem:[#allocation3 + $0xca] sm:$0xff]  ;;  %v11766_v4 = vld [vmem:[#allocation3 + $0xd2] sm:$0xff] }
 0x214   : > { %v11703_v37 = vmax.f32 %v1810_v62, %v1812_v2  ;;  %v11760_v62 = vld [vmem:[#allocation3 + $0xc2] sm:$0xff]  ;;  %v11769_v2 = vld [vmem:[#allocation3 + $0xda] sm:$0xff] }
 0x215   : > { %8559 = vmatmul.mubr.f32.gmra.mrb[24].mxu1 %v11520_v53 }
 0x216   : > { %8561 = vmatprep.mubr.f32.mxu1 %v11529_v36  ;;  %13386 = vst [vmem:[#allocation11_spill] sm:$0xff] %v11703_v37  ;;  %v13379_v3 = vmax.f32 %v11703_v37, 0.0  ;;  %v6975_v37 = vld [vmem:[%s13368_s2 + $0x278] sm:$0xff] }
 0x218   : > { %1818 = vst [vmem:[#allocation3 + $0xf8] sm:$0xff] %v13379_v3  ;;  %v11822_v3 = vld [vmem:[#allocation3 + $0x50] sm:$0xff] }
 0x219   : > { %8562 = vmatmul.mubr.f32.gmra.mrb[26].mxu1 %v11532_v43 }
 0x21a   : > { %8596 = vmatprep.mubr.f32.mxu1 %v2318_v13  ;;  %v6958_v13 = vld [vmem:[%s13368_s2 + $0x1f0] sm:$0xff] }
 0x21d   : > { %8597 = vmatmul.mubr.f32.vlgmr.msra.gmra.mrb[0].mxu1 %v2319_v45  ;;  %v11716_v45 = vld [vmem:[#allocation3 + $0x62] sm:$0xff] }
 0x21e   : > { %9931 = vmatpush3.bf16.msra.mxu1 %v9928_v59  ;;  %8599 = vmatprep.mubr.f32.mxu1 %v11653_v21  ;;  %v9952_v59 = vpack.c.bf16 %v6957_v33, %v6956_v27  ;;  %v6963_v27 = vld [vmem:[%s13368_s2 + $0x218] sm:$0xff] }
 0x21f   : > { %9933 = vmatprep.subr.bf16.mxu1 %v9932_v38 }
 0x221   : > { %8600 = vmatmul.mubr.f32.gmra.mrb[2].mxu1 %v11656_v30 }
 0x222   : > { %8602 = vmatprep.mubr.f32.mxu1 %v11665_v14  ;;  %9935 = vmatpush3.bf16.msra.mxu1 %v9932_v38  ;;  %v6959_v38 = vld [vmem:[%s13368_s2 + $0x1f8] sm:$0xff] }
 0x223   : > { %9937 = vmatprep.subr.bf16.mxu1 %v9936_v28  ;;  %v9956_v49 = vpack.c.bf16 %v6959_v38, %v6958_v13  ;;  %v6965_v13 = vld [vmem:[%s13368_s2 + $0x228] sm:$0xff]  ;;  %v11786_v38 = vld [vmem:[#allocation3 + $0x20] sm:$0xff] }
 0x225   : > { %8603 = vmatmul.mubr.f32.gmra.mrb[4].mxu1 %v11668_v25 }
 0x226   : > { %8605 = vmatprep.mubr.f32.mxu1 %v11677_v44  ;;  %9939 = vmatpush3.bf16.msra.mxu1 %v9936_v28  ;;  %v6960_v28 = vld [vmem:[%s13368_s2 + $0x200] sm:$0xff] }
 0x227   : > { %9941 = vmatprep.subr.bf16.mxu1 %v9940_v23  ;;  %v9960_v10 = vpack.c.bf16 %v6961_v32, %v6960_v28  ;;  %v11789_v28 = vld [vmem:[#allocation3 + $0x28] sm:$0xff]  ;;  %v6967_v32 = vld [vmem:[%s13368_s2 + $0x238] sm:$0xff] }
 0x229   : > { %8606 = vmatmul.mubr.f32.gmra.mrb[6].mxu1 %v11680_v55 }
 0x22a   : > { %8608 = vmatprep.mubr.f32.mxu1 %v11689_v1  ;;  %9943 = vmatpush3.bf16.msra.mxu1 %v9940_v23  ;;  %v11736_v23 = vld [vmem:[#allocation3 + $0x82] sm:$0xff] }
 0x22b   : > { %9945 = vmatprep.subr.bf16.mxu1 %v9944_v51 }
 0x22d   : > { %8609 = vmatmul.mubr.f32.gmra.mrb[8].mxu1 %v11692_v8 }
 0x22e   : > { %8611 = vmatprep.mubr.f32.mxu1 %v11701_v35  ;;  %9947 = vmatpush3.bf16.msra.mxu1 %v9944_v51  ;;  %v11751_v51 = vld [vmem:[#allocation3 + $0xaa] sm:$0xff] }
 0x22f   : > { %9949 = vmatprep.subr.bf16.mxu1 %v9948_v6 }
 0x231   : > { %8612 = vmatmul.mubr.f32.gmra.mrb[10].mxu1 %v11707_v11 }
 0x232   : > { %8614 = vmatprep.mubr.f32.mxu1 %v11716_v45  ;;  %9951 = vmatpush3.bf16.msra.mxu1 %v9948_v6  ;;  %v6962_v6 = vld [vmem:[%s13368_s2 + $0x210] sm:$0xff] }
 0x233   : > { %9953 = vmatprep.subr.bf16.mxu1 %v9952_v59  ;;  %v9964_v33 = vpack.c.bf16 %v6963_v27, %v6962_v6  ;;  %v11801_v6 = vld [vmem:[#allocation3 + $0x38] sm:$0xff]  ;;  %v6968_v27 = vld [vmem:[%s13368_s2 + $0x240] sm:$0xff] }
 0x235   : > { %8615 = vmatmul.mubr.f32.gmra.mrb[12].mxu1 %v11721_v52 }
 0x236   : > { %8617 = vmatprep.mubr.f32.mxu1 %v11730_v9  ;;  %9955 = vmatpush3.bf16.msra.mxu1 %v9952_v59  ;;  %v6964_v59 = vld [vmem:[%s13368_s2 + $0x220] sm:$0xff] }
 0x237   : > { %9957 = vmatprep.subr.bf16.mxu1 %v9956_v49 }
 0x239   : > { %8618 = vmatmul.mubr.f32.gmra.mrb[14].mxu1 %v11733_v20 }
 0x23a   : > { %8620 = vmatprep.mubr.f32.mxu1 %v11736_v23  ;;  %9959 = vmatpush3.bf16.msra.mxu1 %v9956_v49  ;;  %v9968_v49 = vpack.c.bf16 %v6965_v13, %v6964_v59  ;;  %v6969_v59 = vld [vmem:[%s13368_s2 + $0x248] sm:$0xff]  ;;  %v11810_v13 = vld [vmem:[#allocation3 + $0x40] sm:$0xff] }
 0x23b   : > { %9961 = vmatprep.subr.bf16.mxu1 %v9960_v10 }
 0x23d   : > { %8621 = vmatmul.mubr.f32.gmra.mrb[16].mxu1 %v11739_v26 }
 0x23e   : > { %8623 = vmatprep.mubr.f32.mxu1 %v11742_v40 }
 0x241   : > { %8624 = vmatmul.mubr.f32.gmra.mrb[18].mxu1 %v11745_v48 }
 0x242   : > { %8626 = vmatprep.mubr.f32.mxu1 %v11748_v19 }
 0x245   : > { %8627 = vmatmul.mubr.f32.gmra.mrb[20].mxu1 %v11751_v51 }
 0x246   : > { %8629 = vmatprep.mubr.f32.mxu1 %v11754_v56 }
 0x249   : > { %8630 = vmatmul.mubr.f32.gmra.mrb[22].mxu1 %v11757_v57 }
 0x24a   : > { %8632 = vmatprep.mubr.f32.mxu1 %v11760_v62 }
 0x24d   : > { %8633 = vmatmul.mubr.f32.gmra.mrb[24].mxu1 %v11763_v61 }
 0x24e   : > { %8635 = vmatprep.mubr.f32.mxu1 %v11766_v4 }
 0x251   : > { %8636 = vmatmul.mubr.f32.gmra.mrb[26].mxu1 %v11769_v2 }
 0x252   : > { %8670 = vmatprep.mubr.f32.mxu1 %v11566_v22  ;;  %v6966_v22 = vld [vmem:[%s13368_s2 + $0x230] sm:$0xff] }
 0x255   : > { %8671 = vmatmul.mubr.f32.vlgmr.msra.gmra.mrb[0].mxu1 %v11570_v34  ;;  %v11798_v34 = vld [vmem:[#allocation3 + $0x30] sm:$0xff] }
 0x256   : > { %9963 = vmatpush3.bf16.msra.mxu1 %v9960_v10  ;;  %8673 = vmatprep.mubr.f32.mxu1 %v11786_v38  ;;  %v9972_v10 = vpack.c.bf16 %v6967_v32, %v6966_v22  ;;  %v11813_v22 = vld [vmem:[#allocation3 + $0x48] sm:$0xff]  ;;  %v6970_v32 = vld [vmem:[%s13368_s2 + $0x250] sm:$0xff] }
 0x257   : > { %9965 = vmatprep.subr.bf16.mxu1 %v9964_v33 }
 0x259   : > { %8674 = vmatmul.mubr.f32.gmra.mrb[2].mxu1 %v11789_v28 }
 0x25a   : > { %8676 = vmatprep.mubr.f32.mxu1 %v11798_v34  ;;  %9967 = vmatpush3.bf16.msra.mxu1 %v9964_v33  ;;  %v9976_v33 = vpack.c.bf16 %v6969_v59, %v6968_v27  ;;  %v11825_v27 = vld [vmem:[#allocation3 + $0x58] sm:$0xff]  ;;  %v6972_v59 = vld [vmem:[%s13368_s2 + $0x260] sm:$0xff] }
 0x25b   : > { %9969 = vmatprep.subr.bf16.mxu1 %v9968_v49  ;;  %13387 = vst [vmem:[#allocation12_spill] sm:$0xff] %v11825_v27 }
 0x25d   : > { %8677 = vmatmul.mubr.f32.gmra.mrb[4].mxu1 %v11801_v6 }
 0x25e   : > { %8679 = vmatprep.mubr.f32.mxu1 %v11810_v13  ;;  %9971 = vmatpush3.bf16.msra.mxu1 %v9968_v49  ;;  %v9980_v49 = vpack.c.bf16 %v6971_v0, %v6970_v32  ;;  %v11837_v0 = vld [vmem:[#allocation3 + $0x68] sm:$0xff]  ;;  %v6974_v32 = vld [vmem:[%s13368_s2 + $0x270] sm:$0xff] }
 0x25f   : > { %9973 = vmatprep.subr.bf16.mxu1 %v9972_v10 }
 0x261   : > { %8680 = vmatmul.mubr.f32.gmra.mrb[6].mxu1 %v11813_v22 }
 0x262   : > { %8682 = vmatprep.mubr.f32.mxu1 %v11822_v3  ;;  %9975 = vmatpush3.bf16.msra.mxu1 %v9972_v10  ;;  %v9984_v10 = vpack.c.bf16 %v6973_v41, %v6972_v59  ;;  %v11849_v41 = vld [vmem:[#allocation3 + $0x78] sm:$0xff]  ;;  %v6976_v59 = vld [vmem:[%s13368_s2 + $0x280] sm:$0xff] }
 0x263   : > { %9977 = vmatprep.subr.bf16.mxu1 %v9976_v33 }
 0x265   : > { %8683 = vmatmul.mubr.f32.gmra.mrb[8].mxu1 %v11825_v27  ;;  %v11846_v27 = vld [vmem:[#allocation3 + $0x70] sm:$0xff] }
 0x266   : > { %8685 = vmatprep.mubr.f32.mxu1 %v11834_v29  ;;  %9979 = vmatpush3.bf16.msra.mxu1 %v9976_v33  ;;  %13389 = vst [vmem:[#allocation14_spill] sm:$0xff] %v11846_v27  ;;  %v9988_v33 = vpack.c.bf16 %v6975_v37, %v6974_v32  ;;  %v6977_v29 = vld [vmem:[%s13368_s2 + $0x288] sm:$0xff] }
 0x267   : > { %9981 = vmatprep.subr.bf16.mxu1 %v9980_v49  ;;  %v11910_v32 = vld [vmem:[#allocation3 + $0x41] sm:$0xff] }
 0x269   : > { %8686 = vmatmul.mubr.f32.gmra.mrb[10].mxu1 %v11837_v0 }
 0x26a   : > { %8688 = vmatprep.mubr.f32.mxu1 %v11846_v27  ;;  %9983 = vmatpush3.bf16.msra.mxu1 %v9980_v49  ;;  %v9992_v27 = vpack.c.bf16 %v6977_v29, %v6976_v59  ;;  %v6983_v29 = vld [vmem:[%s13368_s2 + $0x2b8] sm:$0xff]  ;;  %v11913_v59 = vld [vmem:[#allocation3 + $0x49] sm:$0xff] }
 0x26b   : > { %9985 = vmatprep.subr.bf16.mxu1 %v9984_v10  ;;  %v11901_v49 = vld [vmem:[#allocation3 + $0x39] sm:$0xff] }
 0x26d   : > { %8689 = vmatmul.mubr.f32.gmra.mrb[12].mxu1 %v11849_v41 }
 0x26e   : > { %8691 = vmatprep.mubr.f32.mxu1 %v11487_v63  ;;  %9987 = vmatpush3.bf16.msra.mxu1 %v9984_v10  ;;  %v13390_v63 = vmax.f32 %v11541_v16, 0.0  ;;  %v6982_v16 = vld [vmem:[%s13368_s2 + $0x2b0] sm:$0xff]  ;;  %v6985_v10 = vld [vmem:[%s13368_s2 + $0x2c8] sm:$0xff] }
 0x26f   : > { %9989 = vmatprep.subr.bf16.mxu1 %v9988_v33  ;;  %v10004_v37 = vpack.c.bf16 %v6983_v29, %v6982_v16  ;;  %v6990_v16 = vld [vmem:[%s13368_s2 + $0x2f0] sm:$0xff]  ;;  %v6991_v29 = vld [vmem:[%s13368_s2 + $0x2f8] sm:$0xff] }
 0x271   : > { %8692 = vmatmul.mubr.f32.gmra.mrb[14].mxu1 %v11490_v7  ;;  %v6978_v7 = vld [vmem:[%s13368_s2 + $0x290] sm:$0xff] }
 0x272   : > { %8694 = vmatprep.mubr.f32.mxu1 %v11493_v42  ;;  %9991 = vmatpush3.bf16.msra.mxu1 %v9988_v33  ;;  %v6979_v42 = vld [vmem:[%s13368_s2 + $0x298] sm:$0xff] }
 0x273   : > { %9993 = vmatprep.subr.bf16.mxu1 %v9992_v27 }
 0x275   : > { %8695 = vmatmul.mubr.f32.gmra.mrb[16].mxu1 %v11496_v47  ;;  %v13391_v47 = vmax.f32 %v11546_v39, 0.0  ;;  %v11898_v39 = vld [vmem:[#allocation3 + $0x31] sm:$0xff] }
 0x276   : > { %8697 = vmatprep.mubr.f32.mxu1 %v11499_v18  ;;  %v2874_v18 = vld [vmem:[#allocation3 + $0x11] sm:$0xff] }
 0x279   : > { %8698 = vmatmul.mubr.f32.gmra.mrb[18].mxu1 %v11502_v24  ;;  %v9996_v24 = vpack.c.bf16 %v6979_v42, %v6978_v7  ;;  %v6987_v7 = vld [vmem:[%s13368_s2 + $0x2d8] sm:$0xff] }
 0x27a   : > { %8700 = vmatprep.mubr.f32.mxu1 %v11505_v60  ;;  %v2875_v60 = vld [vmem:[#allocation3 + $0x19] sm:$0xff]  ;;  %v11922_v42 = vld [vmem:[#allocation3 + $0x51] sm:$0xff] }
 0x27d   : > { %8701 = vmatmul.mubr.f32.gmra.mrb[20].mxu1 %v11508_v5  ;;  %v6980_v5 = vld [vmem:[%s13368_s2 + $0x2a0] sm:$0xff] }
 0x27e   : > { %8703 = vmatprep.mubr.f32.mxu1 %v11517_v46  ;;  %v6981_v46 = vld [vmem:[%s13368_s2 + $0x2a8] sm:$0xff] }
 0x281   : > { %8704 = vmatmul.mubr.f32.gmra.mrb[22].mxu1 %v11520_v53  ;;  %v11886_v53 = vld [vmem:[#allocation3 + $0x21] sm:$0xff] }
 0x282   : > { %8706 = vmatprep.mubr.f32.mxu1 %v11529_v36  ;;  %v10000_v36 = vpack.c.bf16 %v6981_v46, %v6980_v5  ;;  %v11934_v5 = vld [vmem:[#allocation3 + $0x61] sm:$0xff] }
 0x285   : > { %8707 = vmatmul.mubr.f32.gmra.mrb[24].mxu1 %v11532_v43  ;;  %v11889_v43 = vld [vmem:[#allocation3 + $0x29] sm:$0xff] }
 0x286   : > { %8709 = vmatprep.mubr.f32.mxu1 %v13390_v63  ;;  %v6986_v63 = vld [vmem:[%s13368_s2 + $0x2d0] sm:$0xff] }
 0x289   : > { %8710 = vmatmul.mubr.f32.gmra.mrb[26].mxu1 %v13391_v47  ;;  %v10012_v47 = vpack.c.bf16 %v6987_v7, %v6986_v63  ;;  %v6993_v63 = vld [vmem:[%s13368_s2 + $0x308] sm:$0xff] }
 0x28a   : > { %8744 = vmatprep.mubr.f32.mxu1 %v2874_v18  ;;  %v11925_v18 = vld [vmem:[#allocation3 + $0x59] sm:$0xff]  ;;  %v11958_v7 = vld [vmem:[#allocation3 + $0x81] sm:$0xff] }
 0x28d   : > { %8745 = vmatmul.mubr.f32.vlgmr.msra.gmra.mrb[0].mxu1 %v2875_v60  ;;  %v6989_v60 = vld [vmem:[%s13368_s2 + $0x2e8] sm:$0xff] }
 0x28e   : > { %9995 = vmatpush3.bf16.msra.mxu1 %v9992_v27  ;;  %8747 = vmatprep.mubr.f32.mxu1 %v11886_v53  ;;  %v6984_v27 = vld [vmem:[%s13368_s2 + $0x2c0] sm:$0xff] }
 0x28f   : > { %9997 = vmatprep.subr.bf16.mxu1 %v9996_v24  ;;  %v10008_v33 = vpack.c.bf16 %v6985_v10, %v6984_v27  ;;  %v10020_v27 = vpack.c.bf16 %v6991_v29, %v6990_v16  ;;  %v11949_v10 = vld [vmem:[#allocation3 + $0x79] sm:$0xff]  ;;  %v11970_v29 = vld [vmem:[#allocation3 + $0xa1] sm:$0xff] }
 0x290   : > { %v11967_v16 = vld [vmem:[#allocation3 + $0x99] sm:$0xff] }
 0x291   : > { %8748 = vmatmul.mubr.f32.gmra.mrb[2].mxu1 %v11889_v43 }
 0x292   : > { %8750 = vmatprep.mubr.f32.mxu1 %v11898_v39  ;;  %9999 = vmatpush3.bf16.msra.mxu1 %v9996_v24  ;;  %v6988_v24 = vld [vmem:[%s13368_s2 + $0x2e0] sm:$0xff] }
 0x293   : > { %10001 = vmatprep.subr.bf16.mxu1 %v10000_v36  ;;  %v10016_v46 = vpack.c.bf16 %v6989_v60, %v6988_v24  ;;  %v11961_v24 = vld [vmem:[#allocation3 + $0x89] sm:$0xff]  ;;  %v11964_v60 = vld [vmem:[#allocation3 + $0x91] sm:$0xff] }
 0x295   : > { %8751 = vmatmul.mubr.f32.gmra.mrb[4].mxu1 %v11901_v49 }
 0x296   : > { %8753 = vmatprep.mubr.f32.mxu1 %v11910_v32  ;;  %10003 = vmatpush3.bf16.msra.mxu1 %v10000_v36  ;;  %v11937_v36 = vld [vmem:[#allocation3 + $0x69] sm:$0xff] }
 0x297   : > { %10005 = vmatprep.subr.bf16.mxu1 %v10004_v37 }
 0x299   : > { %8754 = vmatmul.mubr.f32.gmra.mrb[6].mxu1 %v11913_v59 }
 0x29a   : > { %8756 = vmatprep.mubr.f32.mxu1 %v11922_v42  ;;  %10007 = vmatpush3.bf16.msra.mxu1 %v10004_v37  ;;  %v11946_v37 = vld [vmem:[#allocation3 + $0x71] sm:$0xff] }
 0x29b   : > { %10009 = vmatprep.subr.bf16.mxu1 %v10008_v33 }
 0x29d   : > { %8757 = vmatmul.mubr.f32.gmra.mrb[8].mxu1 %v11925_v18 }
 0x29e   : > { %8759 = vmatprep.mubr.f32.mxu1 %v11934_v5  ;;  %10011 = vmatpush3.bf16.msra.mxu1 %v10008_v33  ;;  %v6992_v33 = vld [vmem:[%s13368_s2 + $0x300] sm:$0xff] }
 0x29f   : > { %10013 = vmatprep.subr.bf16.mxu1 %v10012_v47 }
 0x2a1   : > { %8760 = vmatmul.mubr.f32.gmra.mrb[10].mxu1 %v11937_v36 }
 0x2a2   : > { %8762 = vmatprep.mubr.f32.mxu1 %v11946_v37  ;;  %10015 = vmatpush3.bf16.msra.mxu1 %v10012_v47  ;;  %v10024_v47 = vpack.c.bf16 %v6993_v63, %v6992_v33  ;;  %v7001_v33 = vld [vmem:[%s13368_s2 + $0x348] sm:$0xff]  ;;  %v7003_v63 = vld [vmem:[%s13368_s2 + $0x358] sm:$0xff] }
 0x2a3   : > { %10017 = vmatprep.subr.bf16.mxu1 %v10016_v46 }
 0x2a5   : > { %8763 = vmatmul.mubr.f32.gmra.mrb[12].mxu1 %v11949_v10 }
 0x2a6   : > { %8765 = vmatprep.mubr.f32.mxu1 %v11958_v7  ;;  %10019 = vmatpush3.bf16.msra.mxu1 %v10016_v46  ;;  %v11980_v46 = vld [vmem:[#allocation3 + $0xe1] sm:$0xff] }
 0x2a7   : > { %10021 = vmatprep.subr.bf16.mxu1 %v10020_v27 }
 0x2a9   : > { %8766 = vmatmul.mubr.f32.gmra.mrb[14].mxu1 %v11961_v24 }
 0x2aa   : > { %8768 = vmatprep.mubr.f32.mxu1 %v11964_v60  ;;  %10023 = vmatpush3.bf16.msra.mxu1 %v10020_v27  ;;  %v11983_v27 = vld [vmem:[#allocation3 + $0xe9] sm:$0xff] }
 0x2ab   : > { %10025 = vmatprep.subr.bf16.mxu1 %v10024_v47 }
 0x2ad   : > { %8769 = vmatmul.mubr.f32.gmra.mrb[16].mxu1 %v11967_v16 }
 0x2ae   : > { %8771 = vmatprep.mubr.f32.mxu1 %v11970_v29 }
 0x2b1   : > { %8772 = vmatmul.mubr.f32.gmra.mrb[18].mxu1 %v11511_v15  ;;  %v6994_v15 = vld [vmem:[%s13368_s2 + $0x310] sm:$0xff] }
 0x2b2   : > { %8774 = vmatprep.mubr.f32.mxu1 %v11514_v31  ;;  %v6995_v31 = vld [vmem:[%s13368_s2 + $0x318] sm:$0xff] }
 0x2b5   : > { %8775 = vmatmul.mubr.f32.gmra.mrb[20].mxu1 %v11523_v58  ;;  %v10028_v58 = vpack.c.bf16 %v6995_v31, %v6994_v15  ;;  %v7007_v15 = vld [vmem:[%s13368_s2 + $0x378] sm:$0xff]  ;;  %v7009_v31 = vld [vmem:[%s13368_s2 + $0x388] sm:$0xff] }
 0x2b6   : > { %8777 = vmatprep.mubr.f32.mxu1 %v11526_v17  ;;  %v6996_v17 = vld [vmem:[%s13368_s2 + $0x320] sm:$0xff] }
 0x2b9   : > { %8778 = vmatmul.mubr.f32.gmra.mrb[22].mxu1 %v11535_v54  ;;  %v6997_v54 = vld [vmem:[%s13368_s2 + $0x328] sm:$0xff] }
 0x2ba   : > { %8780 = vmatprep.mubr.f32.mxu1 %v11538_v12  ;;  %v10032_v12 = vpack.c.bf16 %v6997_v54, %v6996_v17  ;;  %v13393_v17 = vld [vmem:[#allocation13_spill] sm:$0xff] }
 0x2bd   : > { %8781 = vmatmul.mubr.f32.gmra.mrb[24].mxu1 %v11551_v50  ;;  %v6998_v50 = vld [vmem:[%s13368_s2 + $0x330] sm:$0xff] }
 0x2be   : > { %8783 = vmatprep.mubr.f32.mxu1 %v11980_v46 }
 0x2c1   : > { %8784 = vmatmul.mubr.f32.gmra.mrb[26].mxu1 %v11983_v27 }
 0x2c2   : > { %8818 = vmatprep.mubr.f32.mxu1 %v11653_v21  ;;  %v6999_v21 = vld [vmem:[%s13368_s2 + $0x338] sm:$0xff] }
 0x2c5   : > { %8819 = vmatmul.mubr.f32.vlgmr.msra.gmra.mrb[0].mxu1 %v11656_v30  ;;  %v10036_v30 = vpack.c.bf16 %v6999_v21, %v6998_v50  ;;  %v7020_v50 = vld [vmem:[%s13368_s2 + $0x3e0] sm:$0xff]  ;;  %v7021_v21 = vld [vmem:[%s13368_s2 + $0x3e8] sm:$0xff] }
 0x2c6   : > { %10027 = vmatpush3.bf16.msra.mxu1 %v10024_v47  ;;  %8821 = vmatprep.mubr.f32.mxu1 %v11665_v14  ;;  %v7000_v14 = vld [vmem:[%s13368_s2 + $0x340] sm:$0xff]  ;;  %v7005_v47 = vld [vmem:[%s13368_s2 + $0x368] sm:$0xff] }
 0x2c7   : > { %10029 = vmatprep.subr.bf16.mxu1 %v10028_v58 }
 0x2c9   : > { %8822 = vmatmul.mubr.f32.gmra.mrb[2].mxu1 %v11668_v25  ;;  %v10040_v25 = vpack.c.bf16 %v7001_v33, %v7000_v14  ;;  %v10080_v14 = vpack.c.bf16 %v7021_v21, %v7020_v50  ;;  %v7022_v33 = vld [vmem:[%s13368_s2 + $0x3f0] sm:$0xff] }
 0x2ca   : > { %8824 = vmatprep.mubr.f32.mxu1 %v11677_v44  ;;  %10031 = vmatpush3.bf16.msra.mxu1 %v10028_v58  ;;  %v7002_v44 = vld [vmem:[%s13368_s2 + $0x350] sm:$0xff]  ;;  %v13392_v58 = vld [vmem:[#allocation12_spill] sm:$0xff] }
 0x2cb   : > { %10033 = vmatprep.subr.bf16.mxu1 %v10032_v12 }
 0x2cd   : > { %8825 = vmatmul.mubr.f32.gmra.mrb[4].mxu1 %v11680_v55  ;;  %v10044_v55 = vpack.c.bf16 %v7003_v63, %v7002_v44  ;;  %v3442_v44 = vld [vmem:[#allocation3 + $0x80] sm:$0xff]  ;;  %v3443_v63 = vld [vmem:[#allocation3 + $0x88] sm:$0xff] }
 0x2ce   : > { %8827 = vmatprep.mubr.f32.mxu1 %v11689_v1  ;;  %10035 = vmatpush3.bf16.msra.mxu1 %v10032_v12  ;;  %v7004_v1 = vld [vmem:[%s13368_s2 + $0x360] sm:$0xff] }
 0x2cf   : > { %10037 = vmatprep.subr.bf16.mxu1 %v10036_v30 }
 0x2d1   : > { %8828 = vmatmul.mubr.f32.gmra.mrb[6].mxu1 %v11692_v8  ;;  %v10048_v8 = vpack.c.bf16 %v7005_v47, %v7004_v1  ;;  %v7025_v1 = vld [vmem:[%s13368_s2 + $0x408] sm:$0xff]  ;;  %v3444_v47 = vld [vmem:[#allocation3 + $0x90] sm:$0xff] }
 0x2d2   : > { %8830 = vmatprep.mubr.f32.mxu1 %v11701_v35  ;;  %10039 = vmatpush3.bf16.msra.mxu1 %v10036_v30  ;;  %v7006_v35 = vld [vmem:[%s13368_s2 + $0x370] sm:$0xff] }
 0x2d3   : > { %10041 = vmatprep.subr.bf16.mxu1 %v10040_v25  ;;  %v13394_v30 = vld [vmem:[#allocation14_spill] sm:$0xff] }
 0x2d5   : > { %8831 = vmatmul.mubr.f32.gmra.mrb[8].mxu1 %v11707_v11  ;;  %v10052_v11 = vpack.c.bf16 %v7007_v15, %v7006_v35  ;;  %v3446_v35 = vld [vmem:[#allocation3 + $0xa0] sm:$0xff]  ;;  %v3447_v15 = vld [vmem:[#allocation3 + $0xa8] sm:$0xff] }
 0x2d6   : > { %8833 = vmatprep.mubr.f32.mxu1 %v11716_v45  ;;  %10043 = vmatpush3.bf16.msra.mxu1 %v10040_v25  ;;  %v7008_v45 = vld [vmem:[%s13368_s2 + $0x380] sm:$0xff]  ;;  %v7023_v25 = vld [vmem:[%s13368_s2 + $0x3f8] sm:$0xff] }
 0x2d7   : > { %10045 = vmatprep.subr.bf16.mxu1 %v10044_v55 }
 0x2d9   : > { %8834 = vmatmul.mubr.f32.gmra.mrb[10].mxu1 %v11721_v52  ;;  %v10056_v52 = vpack.c.bf16 %v7009_v31, %v7008_v45  ;;  %v3449_v45 = vld [vmem:[#allocation3 + $0xb8] sm:$0xff]  ;;  %v3450_v31 = vld [vmem:[#allocation3 + $0xc0] sm:$0xff] }
 0x2da   : > { %8836 = vmatprep.mubr.f32.mxu1 %v11730_v9  ;;  %10047 = vmatpush3.bf16.msra.mxu1 %v10044_v55  ;;  %v7041_v9 = vld [vmem:[%s13370_s4 + $0x80] sm:$0xff] }
 0x2db   : > { %10049 = vmatprep.subr.bf16.mxu1 %v10048_v8  ;;  %v7024_v55 = vld [vmem:[%s13368_s2 + $0x400] sm:$0xff] }
 0x2dd   : > { %8837 = vmatmul.mubr.f32.gmra.mrb[12].mxu1 %v11733_v20  ;;  %v7042_v20 = vld [vmem:[%s13370_s4 + $0x88] sm:$0xff] }
 0x2de   : > { %8839 = vmatprep.mubr.f32.mxu1 %v11736_v23  ;;  %10051 = vmatpush3.bf16.msra.mxu1 %v10048_v8  ;;  %v10120_v23 = vpack.c.bf16 %v7042_v20, %v7041_v9  ;;  %v3445_v8 = vld [vmem:[#allocation3 + $0x98] sm:$0xff]  ;;  %v7046_v9 = vld [vmem:[%s13370_s4 + $0xa8] sm:$0xff]  ;;  %v7047_v20 = vld [vmem:[%s13370_s4 + $0xb0] sm:$0xff] }
 0x2df   : > { %10053 = vmatprep.subr.bf16.mxu1 %v10052_v11 }
 0x2e0   : > { %10121 = vmatprep.subr.bf16.mxu0 %v10120_v23 }
 0x2e1   : > { %8840 = vmatmul.mubr.f32.gmra.mrb[14].mxu1 %v11739_v26  ;;  %10123 = vmatpush3.bf16.msra.mxu0 %v10120_v23  ;;  %v12066_v26 = vld [vmem:[#allocation3 + $0xe2] sm:$0xff] }
 0x2e2   : > { %8842 = vmatprep.mubr.f32.mxu1 %v11742_v40  ;;  %10055 = vmatpush3.bf16.msra.mxu1 %v10052_v11  ;;  %v12069_v40 = vld [vmem:[#allocation3 + $0xea] sm:$0xff] }
 0x2e3   : > { %10057 = vmatprep.subr.bf16.mxu1 %v10056_v52  ;;  %v3448_v11 = vld [vmem:[#allocation3 + $0xb0] sm:$0xff] }
 0x2e5   : > { %8843 = vmatmul.mubr.f32.gmra.mrb[16].mxu1 %v11745_v48  ;;  %v7010_v48 = vld [vmem:[%s13368_s2 + $0x390] sm:$0xff] }
 0x2e6   : > { %8845 = vmatprep.mubr.f32.mxu1 %v11748_v19  ;;  %v7011_v19 = vld [vmem:[%s13368_s2 + $0x398] sm:$0xff] }
 0x2e9   : > { %8846 = vmatmul.mubr.f32.gmra.mrb[18].mxu1 %v11751_v51  ;;  %v10060_v51 = vpack.c.bf16 %v7011_v19, %v7010_v48  ;;  %v7048_v48 = vld [vmem:[%s13370_s4 + $0xb8] sm:$0xff] }
 0x2ea   : > { %8848 = vmatprep.mubr.f32.mxu1 %v11754_v56  ;;  %v7012_v56 = vld [vmem:[%s13368_s2 + $0x3a0] sm:$0xff]  ;;  %v10132_v19 = vpack.c.bf16 %v7048_v48, %v7047_v20  ;;  %v3999_v48 = vld [vmem:[#allocation3 + $0x8a] sm:$0xff] }
 0x2eb   : > { %v3997_v20 = vld [vmem:[#allocation3 + $0x7a] sm:$0xff] }
 0x2ed   : > { %8849 = vmatmul.mubr.f32.gmra.mrb[20].mxu1 %v11757_v57  ;;  %v7013_v57 = vld [vmem:[%s13368_s2 + $0x3a8] sm:$0xff] }
 0x2ee   : > { %8851 = vmatprep.mubr.f32.mxu1 %v11760_v62  ;;  %v10064_v62 = vpack.c.bf16 %v7013_v57, %v7012_v56  ;;  %v7050_v56 = vld [vmem:[%s13370_s4 + $0xc8] sm:$0xff] }
 0x2ef   : > { %v3451_v57 = vld [vmem:[#allocation3 + $0xc8] sm:$0xff] }
 0x2f1   : > { %8852 = vmatmul.mubr.f32.gmra.mrb[22].mxu1 %v11763_v61  ;;  %v7014_v61 = vld [vmem:[%s13368_s2 + $0x3b0] sm:$0xff] }
 0x2f2   : > { %8854 = vmatprep.mubr.f32.mxu1 %v11766_v4  ;;  %v7015_v4 = vld [vmem:[%s13368_s2 + $0x3b8] sm:$0xff] }
 0x2f5   : > { %8855 = vmatmul.mubr.f32.gmra.mrb[24].mxu1 %v11769_v2  ;;  %v10068_v2 = vpack.c.bf16 %v7015_v4, %v7014_v61  ;;  %v7051_v4 = vld [vmem:[%s13370_s4 + $0xd0] sm:$0xff] }
 0x2f6   : > { %8857 = vmatprep.mubr.f32.mxu1 %v12066_v26 }
 0x2f9   : > { %8858 = vmatmul.mubr.f32.gmra.mrb[26].mxu1 %v12069_v40 }
 0x2fa   : > { %8892 = vmatprep.mubr.f32.mxu1 %v11786_v38  ;;  %v7016_v38 = vld [vmem:[%s13368_s2 + $0x3c0] sm:$0xff] }
 0x2fd   : > { %8893 = vmatmul.mubr.f32.vlgmr.msra.gmra.mrb[0].mxu1 %v11789_v28  ;;  %v7017_v28 = vld [vmem:[%s13368_s2 + $0x3c8] sm:$0xff] }
 0x2fe   : > { %10059 = vmatpush3.bf16.msra.mxu1 %v10056_v52  ;;  %8895 = vmatprep.mubr.f32.mxu1 %v11798_v34  ;;  %v10072_v34 = vpack.c.bf16 %v7017_v28, %v7016_v38  ;;  %v7045_v52 = vld [vmem:[%s13370_s4 + $0xa0] sm:$0xff]  ;;  %v3453_v38 = vld [vmem:[#allocation3 + $0xd8] sm:$0xff] }
 0x2ff   : > { %10061 = vmatprep.subr.bf16.mxu1 %v10060_v51  ;;  %v10128_v23 = vpack.c.bf16 %v7046_v9, %v7045_v52  ;;  %v3454_v28 = vld [vmem:[#allocation3 + $0xe0] sm:$0xff]  ;;  %v3995_v52 = vld [vmem:[#allocation3 + $0x6a] sm:$0xff]  ;;  %v3996_v9 = vld [vmem:[#allocation3 + $0x72] sm:$0xff] }
 0x301   : > { %8896 = vmatmul.mubr.f32.gmra.mrb[2].mxu1 %v11801_v6  ;;  %v7018_v6 = vld [vmem:[%s13368_s2 + $0x3d0] sm:$0xff] }
 0x302   : > { %8898 = vmatprep.mubr.f32.mxu1 %v11810_v13  ;;  %10063 = vmatpush3.bf16.msra.mxu1 %v10060_v51  ;;  %v7019_v13 = vld [vmem:[%s13368_s2 + $0x3d8] sm:$0xff]  ;;  %v7049_v51 = vld [vmem:[%s13370_s4 + $0xc0] sm:$0xff] }
 0x303   : > { %10065 = vmatprep.subr.bf16.mxu1 %v10064_v62  ;;  %v10076_v54 = vpack.c.bf16 %v7019_v13, %v7018_v6  ;;  %v10136_v61 = vpack.c.bf16 %v7050_v56, %v7049_v51  ;;  %v7053_v6 = vld [vmem:[%s13370_s4 + $0xe0] sm:$0xff]  ;;  %v7054_v13 = vld [vmem:[%s13370_s4 + $0xe8] sm:$0xff] }
 0x304   : > { %v4001_v51 = vld [vmem:[#allocation3 + $0x9a] sm:$0xff]  ;;  %v4002_v56 = vld [vmem:[#allocation3 + $0xa2] sm:$0xff] }
 0x305   : > { %8899 = vmatmul.mubr.f32.gmra.mrb[4].mxu1 %v11813_v22  ;;  %v7044_v22 = vld [vmem:[%s13370_s4 + $0x98] sm:$0xff] }
 0x306   : > { %8901 = vmatprep.mubr.f32.mxu1 %v11822_v3  ;;  %10067 = vmatpush3.bf16.msra.mxu1 %v10064_v62  ;;  %v7043_v3 = vld [vmem:[%s13370_s4 + $0x90] sm:$0xff] }
 0x307   : > { %10069 = vmatprep.subr.bf16.mxu1 %v10068_v2  ;;  %v10124_v12 = vpack.c.bf16 %v7044_v22, %v7043_v3  ;;  %v3452_v62 = vld [vmem:[#allocation3 + $0xd0] sm:$0xff]  ;;  %v10144_v3 = vpack.c.bf16 %v7054_v13, %v7053_v6  ;;  %v4013_v6 = vld [vmem:[#allocation3 + $0xfa] sm:$0xff] }
 0x308   : > { %v7026_v22 = vld [vmem:[%s13368_s2 + $0x410] sm:$0xff] }
 0x309   : > { %8902 = vmatmul.mubr.f32.gmra.mrb[6].mxu1 %v13392_v58  ;;  %10125 = vmatprep.subr.bf16.mxu0 %v10124_v12  ;;  %v10950_v58 = vld [vmem:[#allocation3 + $0xe8] sm:$0xff]  ;;  %v7055_v13 = vld [vmem:[%s13370_s4 + $0xf0] sm:$0xff] }
 0x30a   : > { %8904 = vmatprep.mubr.f32.mxu1 %v13393_v17  ;;  %10071 = vmatpush3.bf16.msra.mxu1 %v10068_v2  ;;  %v7052_v2 = vld [vmem:[%s13370_s4 + $0xd8] sm:$0xff]  ;;  %v10951_v17 = vld [vmem:[#allocation3 + $0xf0] sm:$0xff] }
 0x30b   : > { %10073 = vmatprep.subr.bf16.mxu1 %v10072_v34  ;;  %10127 = vmatpush3.bf16.msra.mxu0 %v10124_v12  ;;  %v13395_v12 = vld [vmem:[#allocation11_spill] sm:$0xff] }
 0x30c   : > { %10129 = vmatprep.subr.bf16.mxu0 %v10128_v23  ;;  %v13396_v50 = vmax.f32 %v13395_v12, 0.0 }
 0x30d   : > { %8905 = vmatmul.mubr.f32.gmra.mrb[8].mxu1 %v11837_v0  ;;  %v10084_v0 = vpack.c.bf16 %v7023_v25, %v7022_v33  ;;  %v7031_v25 = vld [vmem:[%s13368_s2 + $0x438] sm:$0xff] }
 0x30e   : > { %8907 = vmatprep.mubr.f32.mxu1 %v13394_v30  ;;  %10075 = vmatpush3.bf16.msra.mxu1 %v10072_v34  ;;  %v10140_v34 = vpack.c.bf16 %v7052_v2, %v7051_v4  ;;  %v7028_v30 = vld [vmem:[%s13368_s2 + $0x420] sm:$0xff]  ;;  %v4007_v2 = vld [vmem:[#allocation3 + $0xca] sm:$0xff] }
 0x30f   : > { %10077 = vmatprep.subr.bf16.mxu1 %v10076_v54  ;;  %10131 = vmatpush3.bf16.msra.mxu0 %v10128_v23  ;;  %v3998_v23 = vld [vmem:[#allocation3 + $0x82] sm:$0xff] }
 0x310   : > { %10133 = vmatprep.subr.bf16.mxu0 %v10132_v19  ;;  %v4006_v4 = vld [vmem:[#allocation3 + $0xc2] sm:$0xff] }
 0x311   : > { %8908 = vmatmul.mubr.f32.gmra.mrb[10].mxu1 %v11849_v41  ;;  %v10088_v41 = vpack.c.bf16 %v7025_v1, %v7024_v55  ;;  %v7039_v55 = vld [vmem:[%s13368_s2 + $0x478] sm:$0xff] }
 0x312   : > { %8910 = vmatprep.mubr.f32.mxu1 %v3442_v44  ;;  %10079 = vmatpush3.bf16.msra.mxu1 %v10076_v54  ;;  %v7027_v54 = vld [vmem:[%s13368_s2 + $0x418] sm:$0xff]  ;;  %v7033_v44 = vld [vmem:[%s13368_s2 + $0x448] sm:$0xff] }
 0x313   : > { %10081 = vmatprep.subr.bf16.mxu1 %v10080_v14  ;;  %10135 = vmatpush3.bf16.msra.mxu0 %v10132_v19  ;;  %v10092_v21 = vpack.c.bf16 %v7027_v54, %v7026_v22  ;;  %v3726_v1 = vld [vmem:[#allocation3 + $0xb1] sm:$0xff]  ;;  %v12251_v54 = vld [vmem:[%s13369_s3] ss:$0 sm:$0xff] }
 0x314   : > { %10137 = vmatprep.subr.bf16.mxu0 %v10136_v61  ;;  %v4000_v19 = vld [vmem:[#allocation3 + $0x92] sm:$0xff] }
 0x315   : > { %8911 = vmatmul.mubr.f32.gmra.mrb[12].mxu1 %v3443_v63  ;;  %v7037_v63 = vld [vmem:[%s13368_s2 + $0x468] sm:$0xff] }
 0x316   : > { %8913 = vmatprep.mubr.f32.mxu1 %v3444_v47  ;;  %10083 = vmatpush3.bf16.msra.mxu1 %v10080_v14  ;;  %v7029_v14 = vld [vmem:[%s13368_s2 + $0x428] sm:$0xff] }
 0x317   : > { %10085 = vmatprep.subr.bf16.mxu1 %v10084_v0  ;;  %10139 = vmatpush3.bf16.msra.mxu0 %v10136_v61  ;;  %v10096_v33 = vpack.c.bf16 %v7029_v14, %v7028_v30  ;;  %v3729_v47 = vld [vmem:[#allocation3 + $0xc9] sm:$0xff]  ;;  %v4005_v61 = vld [vmem:[#allocation3 + $0xba] sm:$0xff] }
 0x318   : > { %10141 = vmatprep.subr.bf16.mxu0 %v10140_v34 }
 0x319   : > { %8914 = vmatmul.mubr.f32.gmra.mrb[14].mxu1 %v3445_v8  ;;  %v3987_v8 = vld [vmem:[#allocation3 + $0x2a] sm:$0xff] }
 0x31a   : > { %8916 = vmatprep.mubr.f32.mxu1 %v3446_v35  ;;  %10087 = vmatpush3.bf16.msra.mxu1 %v10084_v0  ;;  %v7035_v0 = vld [vmem:[%s13368_s2 + $0x458] sm:$0xff] }
 0x31b   : > { %10089 = vmatprep.subr.bf16.mxu1 %v10088_v41  ;;  %10143 = vmatpush3.bf16.msra.mxu0 %v10140_v34  ;;  %v3988_v35 = vld [vmem:[#allocation3 + $0x32] sm:$0xff] }
 0x31c   : > { %10145 = vmatprep.subr.bf16.mxu0 %v10144_v3  ;;  %v4012_v34 = vld [vmem:[#allocation3 + $0xf2] sm:$0xff] }
 0x31d   : > { %8917 = vmatmul.mubr.f32.gmra.mrb[16].mxu1 %v3447_v15  ;;  %v3989_v15 = vld [vmem:[#allocation3 + $0x3a] sm:$0xff] }
 0x31e   : > { %8919 = vmatprep.mubr.f32.mxu1 %v3448_v11  ;;  %v3990_v11 = vld [vmem:[#allocation3 + $0x42] sm:$0xff] }
 0x31f   : > { %10147 = vmatpush3.bf16.msra.mxu0 %v10144_v3  ;;  %v4462_v3 = vld [vmem:[#allocation5 + $0x1] sm:$0xff] }
 0x320   : > { %9114 = vmatprep.mubr.f32.mxu0 %v4462_v3 }
 0x321   : > { %8920 = vmatmul.mubr.f32.gmra.mrb[18].mxu1 %v3449_v45  ;;  %v3991_v45 = vld [vmem:[#allocation3 + $0x4a] sm:$0xff] }
 0x322   : > { %8922 = vmatprep.mubr.f32.mxu1 %v3450_v31  ;;  %v3992_v31 = vld [vmem:[#allocation3 + $0x52] sm:$0xff] }
 0x325   : > { %8923 = vmatmul.mubr.f32.gmra.mrb[20].mxu1 %v3451_v57  ;;  %v4003_v57 = vld [vmem:[#allocation3 + $0xaa] sm:$0xff] }
 0x326   : > { %8925 = vmatprep.mubr.f32.mxu1 %v3452_v62  ;;  %v4004_v62 = vld [vmem:[#allocation3 + $0xb2] sm:$0xff] }
 0x329   : > { %8926 = vmatmul.mubr.f32.gmra.mrb[22].mxu1 %v3453_v38  ;;  %v4008_v38 = vld [vmem:[#allocation3 + $0xd2] sm:$0xff] }
 0x32a   : > { %8928 = vmatprep.mubr.f32.mxu1 %v3454_v28  ;;  %v4009_v28 = vld [vmem:[#allocation3 + $0xda] sm:$0xff] }
 0x32d   : > { %8929 = vmatmul.mubr.f32.gmra.mrb[24].mxu1 %v10950_v58  ;;  %v7056_v58 = vld [vmem:[%s13370_s4 + $0xf8] sm:$0xff] }
 0x32e   : > { %8931 = vmatprep.mubr.f32.mxu1 %v10951_v17  ;;  %v10148_v17 = vpack.c.bf16 %v7056_v58, %v7055_v13 }
 0x330   : > { %10149 = vmatprep.subr.bf16.mxu0 %v10148_v17 }
 0x331   : > { %8932 = vmatmul.mubr.f32.gmra.mrb[26].mxu1 %v13396_v50  ;;  %10151 = vmatpush3.bf16.msra.mxu0 %v10148_v17 }
 0x332   : > { %8966 = vmatprep.mubr.f32.mxu1 %v11886_v53  ;;  %v7030_v53 = vld [vmem:[%s13368_s2 + $0x430] sm:$0xff] }
 0x335   : > { %8967 = vmatmul.mubr.f32.vlgmr.msra.gmra.mrb[0].mxu1 %v11889_v43  ;;  %v10100_v43 = vpack.c.bf16 %v7031_v25, %v7030_v53 }
 0x336   : > { %10091 = vmatpush3.bf16.msra.mxu1 %v10088_v41  ;;  %8969 = vmatprep.mubr.f32.mxu1 %v11898_v39  ;;  %v7032_v39 = vld [vmem:[%s13368_s2 + $0x440] sm:$0xff] }
 0x337   : > { %10093 = vmatprep.subr.bf16.mxu1 %v10092_v21  ;;  %v3986_v41 = vld [vmem:[#allocation3 + $0x22] sm:$0xff] }
 0x339   : > { %8970 = vmatmul.mubr.f32.gmra.mrb[2].mxu1 %v11901_v49  ;;  %v10104_v49 = vpack.c.bf16 %v7033_v44, %v7032_v39 }
 0x33a   : > { %8972 = vmatprep.mubr.f32.mxu1 %v11910_v32  ;;  %10095 = vmatpush3.bf16.msra.mxu1 %v10092_v21  ;;  %v7034_v32 = vld [vmem:[%s13368_s2 + $0x450] sm:$0xff] }
 0x33b   : > { %10097 = vmatprep.subr.bf16.mxu1 %v10096_v33 }
 0x33d   : > { %8973 = vmatmul.mubr.f32.gmra.mrb[4].mxu1 %v11913_v59  ;;  %v10108_v59 = vpack.c.bf16 %v7035_v0, %v7034_v32 }
 0x33e   : > { %8975 = vmatprep.mubr.f32.mxu1 %v11922_v42  ;;  %10099 = vmatpush3.bf16.msra.mxu1 %v10096_v33  ;;  %v7036_v42 = vld [vmem:[%s13368_s2 + $0x460] sm:$0xff] }
 0x33f   : > { %10101 = vmatprep.subr.bf16.mxu1 %v10100_v43 }
 0x341   : > { %8976 = vmatmul.mubr.f32.gmra.mrb[6].mxu1 %v11925_v18  ;;  %v10112_v18 = vpack.c.bf16 %v7037_v63, %v7036_v42 }
 0x342   : > { %8978 = vmatprep.mubr.f32.mxu1 %v11934_v5  ;;  %10103 = vmatpush3.bf16.msra.mxu1 %v10100_v43  ;;  %v7038_v5 = vld [vmem:[%s13368_s2 + $0x470] sm:$0xff] }
 0x343   : > { %10105 = vmatprep.subr.bf16.mxu1 %v10104_v49 }
 0x345   : > { %8979 = vmatmul.mubr.f32.gmra.mrb[8].mxu1 %v11937_v36  ;;  %v10116_v36 = vpack.c.bf16 %v7039_v55, %v7038_v5 }
 0x346   : > { %8981 = vmatprep.mubr.f32.mxu1 %v11946_v37  ;;  %10107 = vmatpush3.bf16.msra.mxu1 %v10104_v49  ;;  %v3725_v37 = vld [vmem:[#allocation3 + $0xa9] sm:$0xff] }
 0x347   : > { %10109 = vmatprep.subr.bf16.mxu1 %v10108_v59 }
 0x349   : > { %8982 = vmatmul.mubr.f32.gmra.mrb[10].mxu1 %v11949_v10  ;;  %v3727_v10 = vld [vmem:[#allocation3 + $0xb9] sm:$0xff] }
 0x34a   : > { %8984 = vmatprep.mubr.f32.mxu1 %v11958_v7  ;;  %10111 = vmatpush3.bf16.msra.mxu1 %v10108_v59  ;;  %v3728_v7 = vld [vmem:[#allocation3 + $0xc1] sm:$0xff] }
 0x34b   : > { %10113 = vmatprep.subr.bf16.mxu1 %v10112_v18 }
 0x34d   : > { %8985 = vmatmul.mubr.f32.gmra.mrb[12].mxu1 %v11961_v24  ;;  %v3730_v24 = vld [vmem:[#allocation3 + $0xd1] sm:$0xff] }
 0x34e   : > { %8987 = vmatprep.mubr.f32.mxu1 %v11964_v60  ;;  %10115 = vmatpush3.bf16.msra.mxu1 %v10112_v18  ;;  %v3731_v60 = vld [vmem:[#allocation3 + $0xd9] sm:$0xff] }
 0x34f   : > { %10117 = vmatprep.subr.bf16.mxu1 %v10116_v36 }
 0x351   : > { %8988 = vmatmul.mubr.f32.gmra.mrb[14].mxu1 %v11967_v16  ;;  %v3734_v16 = vld [vmem:[#allocation3 + $0xf1] sm:$0xff] }
 0x352   : > { %8990 = vmatprep.mubr.f32.mxu1 %v11970_v29  ;;  %10119 = vmatpush3.bf16.msra.mxu1 %v10116_v36  ;;  %v3735_v29 = vld [vmem:[#allocation3 + $0xf9] sm:$0xff] }
 0x355   : > { %8991 = vmatmul.mubr.f32.gmra.mrb[16].mxu1 %v3725_v37 }
 0x356   : > { %8993 = vmatprep.mubr.f32.mxu1 %v3726_v1 }
 0x359   : > { %8994 = vmatmul.mubr.f32.gmra.mrb[18].mxu1 %v3727_v10 }
 0x35a   : > { %8996 = vmatprep.mubr.f32.mxu1 %v3728_v7 }
 0x35d   : > { %8997 = vmatmul.mubr.f32.gmra.mrb[20].mxu1 %v3729_v47 }
 0x35e   : > { %8999 = vmatprep.mubr.f32.mxu1 %v3730_v24 }
 0x361   : > { %9000 = vmatmul.mubr.f32.gmra.mrb[22].mxu1 %v3731_v60 }
 0x362   : > { %9002 = vmatprep.mubr.f32.mxu1 %v11980_v46  ;;  %v3993_v46 = vld [vmem:[#allocation3 + $0x5a] sm:$0xff] }
 0x365   : > { %9003 = vmatmul.mubr.f32.gmra.mrb[24].mxu1 %v11983_v27  ;;  %v3994_v27 = vld [vmem:[#allocation3 + $0x62] sm:$0xff] }
 0x366   : > { %9005 = vmatprep.mubr.f32.mxu1 %v3734_v16 }
 0x369   : > { %9006 = vmatmul.mubr.f32.gmra.mrb[26].mxu1 %v3735_v29 }
 0x36a   : > { %9040 = vmatprep.mubr.f32.mxu1 %v3986_v41 }
 0x36d   : > { %9041 = vmatmul.mubr.f32.vlgmr.msra.gmra.mrb[0].mxu1 %v3987_v8 }
 0x36e   : > { %9043 = vmatprep.mubr.f32.mxu1 %v3988_v35 }
 0x371   : > { %9044 = vmatmul.mubr.f32.gmra.mrb[2].mxu1 %v3989_v15 }
 0x372   : > { %9046 = vmatprep.mubr.f32.mxu1 %v3990_v11 }
 0x375   : > { %9047 = vmatmul.mubr.f32.gmra.mrb[4].mxu1 %v3991_v45 }
 0x376   : > { %9049 = vmatprep.mubr.f32.mxu1 %v3992_v31 }
 0x379   : > { %9050 = vmatmul.mubr.f32.gmra.mrb[6].mxu1 %v3993_v46 }
 0x37a   : > { %9052 = vmatprep.mubr.f32.mxu1 %v3994_v27 }
 0x37d   : > { %9053 = vmatmul.mubr.f32.gmra.mrb[8].mxu1 %v3995_v52 }
 0x37e   : > { %9055 = vmatprep.mubr.f32.mxu1 %v3996_v9 }
 0x381   : > { %9056 = vmatmul.mubr.f32.gmra.mrb[10].mxu1 %v3997_v20 }
 0x382   : > { %9058 = vmatprep.mubr.f32.mxu1 %v3998_v23 }
 0x385   : > { %9059 = vmatmul.mubr.f32.gmra.mrb[12].mxu1 %v3999_v48 }
 0x386   : > { %9061 = vmatprep.mubr.f32.mxu1 %v4000_v19  ;;  %v4448_v19 = vld [vmem:[%s13370_s4 + $0x10] sm:$0xff] }
 0x389   : > { %9062 = vmatmul.mubr.f32.gmra.mrb[14].mxu1 %v4001_v51  ;;  %v4449_v51 = vld [vmem:[%s13370_s4 + $0x18] sm:$0xff] }
 0x38a   : > { %9064 = vmatprep.mubr.f32.mxu1 %v4002_v56 }
 0x38d   : > { %9065 = vmatmul.mubr.f32.gmra.mrb[16].mxu1 %v4003_v57 }
 0x38e   : > { %9067 = vmatprep.mubr.f32.mxu1 %v4004_v62 }
 0x391   : > { %9068 = vmatmul.mubr.f32.gmra.mrb[18].mxu1 %v4005_v61 }
 0x392   : > { %9070 = vmatprep.mubr.f32.mxu1 %v4006_v4 }
 0x395   : > { %9071 = vmatmul.mubr.f32.gmra.mrb[20].mxu1 %v4007_v2 }
 0x396   : > { %9073 = vmatprep.mubr.f32.mxu1 %v4008_v38 }
 0x399   : > { %9074 = vmatmul.mubr.f32.gmra.mrb[22].mxu1 %v4009_v28  ;;  %v10156_v28 = vpack.c.bf16 %v4449_v51, %v4448_v19 }
 0x39a   : > { %9076 = vmatprep.mubr.f32.mxu1 %v12066_v26  ;;  %v4446_v26 = vld [vmem:[%s13370_s4] sm:$0xff] }
 0x39d   : > { %9077 = vmatmul.mubr.f32.gmra.mrb[24].mxu1 %v12069_v40  ;;  %v4447_v40 = vld [vmem:[%s13370_s4 + $0x8] sm:$0xff] }
 0x39e   : > { %9079 = vmatprep.mubr.f32.mxu1 %v4012_v34  ;;  %v12245_v22 = vpack.c.bf16 %v4447_v40, %v4446_v26 }
 0x3a0   : > { %10153 = vmatprep.subr.bf16.mxu0 %v12245_v22 }
 0x3a1   : > { %9080 = vmatmul.mubr.f32.gmra.mrb[26].mxu1 %v4013_v6 }
 0x440   : > { %v9042_v12 = vpop.f32.mrb[0].mxu1 }
 0x441   : > { %v4272_v50 = vadd.f32 %v9042_v12, %v12251_v54  ;;  %v4097_v21 = vpop.f32.mrb[1].mxu1  ;;  %v4450_v12 = vld [vmem:[%s13370_s4 + $0x20] sm:$0xff] }
 0x442   : > { %v4271_v30 = vadd.f32 %v12251_v54, %v4097_v21 }
 0x443   : > { %v4300_v14 = vmax.f32 %v4272_v50, 0.0  ;;  %v4451_v50 = vld [vmem:[%s13370_s4 + $0x28] sm:$0xff] }
 0x444   : > { %v4299_v33 = vmax.f32 %v4271_v30, 0.0  ;;  %v9045_v53 = vpop.f32.mrb[2].mxu1 }
 0x445   : > { %4328 = vst [vmem:[#allocation4 + $0x8] sm:$0xff] %v4300_v14  ;;  %v4274_v25 = vadd.f32 %v9045_v53, %v12251_v54  ;;  %v4107_v43 = vpop.f32.mrb[3].mxu1 }
 0x446   : > { %4327 = vst [vmem:[#allocation4] sm:$0xff] %v4299_v33  ;;  %v4273_v39 = vadd.f32 %v12251_v54, %v4107_v43 }
 0x447   : > { %v4302_v44 = vmax.f32 %v4274_v25, 0.0 }
 0x448   : > { %v4301_v49 = vmax.f32 %v4273_v39, 0.0  ;;  %v9048_v32 = vpop.f32.mrb[4].mxu1  ;;  %v10160_v39 = vpack.c.bf16 %v4451_v50, %v4450_v12 }
 0x449   : > { %4330 = vst [vmem:[#allocation4 + $0x18] sm:$0xff] %v4302_v44  ;;  %v4276_v0 = vadd.f32 %v9048_v32, %v12251_v54  ;;  %v4117_v59 = vpop.f32.mrb[5].mxu1  ;;  %v4452_v32 = vld [vmem:[%s13370_s4 + $0x30] sm:$0xff] }
 0x44a   : > { %4329 = vst [vmem:[#allocation4 + $0x10] sm:$0xff] %v4301_v49  ;;  %v4275_v42 = vadd.f32 %v12251_v54, %v4117_v59 }
 0x44b   : > { %v4304_v63 = vmax.f32 %v4276_v0, 0.0  ;;  %v4453_v0 = vld [vmem:[%s13370_s4 + $0x38] sm:$0xff] }
 0x44c   : > { %v4303_v18 = vmax.f32 %v4275_v42, 0.0  ;;  %v9051_v5 = vpop.f32.mrb[6].mxu1 }
 0x44d   : > { %4332 = vst [vmem:[#allocation4 + $0x28] sm:$0xff] %v4304_v63  ;;  %v4278_v55 = vadd.f32 %v9051_v5, %v12251_v54  ;;  %v4355_v36 = vld [vmem:[#allocation4] ss:$2 sm:$0x7f]  ;;  %v4127_v37 = vpop.f32.mrb[7].mxu1 }
 0x44e   : > { %4331 = vst [vmem:[#allocation4 + $0x20] sm:$0xff] %v4303_v18  ;;  %v4357_v1 = vld [vmem:[#allocation4 + $0x1] ss:$2 sm:$0x7f]  ;;  %v4277_v7 = vadd.f32 %v12251_v54, %v4127_v37  ;;  %v10164_v37 = vpack.c.bf16 %v4453_v0, %v4452_v32 }
 0x44f   : > { %v4306_v10 = vmax.f32 %v4278_v55, 0.0  ;;  %v4362_v29 = vmax.f32 %v4355_v36, %v4357_v1 }
 0x450   : > { %v9054_v47 = vpop.f32.mrb[8].mxu1  ;;  %v4305_v8 = vmax.f32 %v4277_v7, 0.0  ;;  %v4454_v7 = vld [vmem:[%s13370_s4 + $0x40] sm:$0xff] }
 0x451   : > { %v4359_v24 = vld [vmem:[#allocation4 + $0x10] ss:$2 sm:$0x7f]  ;;  %v4361_v60 = vld [vmem:[#allocation4 + $0x11] ss:$2 sm:$0x7f]  ;;  %v4280_v16 = vadd.f32 %v9054_v47, %v12251_v54 }
 0x452   : > { %4334 = vst [vmem:[#allocation4 + $0x38] sm:$0xff] %v4306_v10  ;;  %v4363_v41 = vmax.f32 %v4359_v24, %v4361_v60  ;;  %v4137_v35 = vpop.f32.mrb[9].mxu1  ;;  %4333 = vst [vmem:[#allocation4 + $0x30] sm:$0xff] %v4305_v8  ;;  %v4455_v47 = vld [vmem:[%s13370_s4 + $0x48] sm:$0xff] }
 0x453   : > { %v4308_v15 = vmax.f32 %v4280_v16, 0.0  ;;  %v4279_v11 = vadd.f32 %v12251_v54, %v4137_v35 }
 0x454   : > { %v4364_v45 = vmax.f32 %v4362_v29, %v4363_v41  ;;  %v9057_v31 = vpop.f32.mrb[10].mxu1 }
 0x455   : > { %4336 = vst [vmem:[#allocation4 + $0x48] sm:$0xff] %v4308_v15  ;;  %v4282_v46 = vadd.f32 %v9057_v31, %v12251_v54  ;;  %v4307_v27 = vmax.f32 %v4279_v11, 0.0  ;;  %v4147_v52 = vpop.f32.mrb[11].mxu1  ;;  %v4367_v23 = vld [vmem:[#allocation4 + $0x20] ss:$2 sm:$0x7f]  ;;  %v10168_v15 = vpack.c.bf16 %v4455_v47, %v4454_v7 }
 0x456   : > { %4365 = vst [vmem:[#allocation5 + $0xa] sm:$0x7f] %v4364_v45  ;;  %v4281_v20 = vadd.f32 %v12251_v54, %v4147_v52  ;;  %v4369_v56 = vld [vmem:[#allocation4 + $0x21] ss:$2 sm:$0x7f] }
 0x457   : > { %v4310_v9 = vmax.f32 %v4282_v46, 0.0  ;;  %4335 = vst [vmem:[#allocation4 + $0x40] sm:$0xff] %v4307_v27  ;;  %v4374_v34 = vmax.f32 %v4367_v23, %v4369_v56  ;;  %v4457_v23 = vld [vmem:[%s13370_s4 + $0x58] sm:$0xff] }
 0x458   : > { %v9060_v48 = vpop.f32.mrb[12].mxu1  ;;  %v4309_v57 = vmax.f32 %v4281_v20, 0.0  ;;  %v4456_v20 = vld [vmem:[%s13370_s4 + $0x50] sm:$0xff] }
 0x459   : > { %4338 = vst [vmem:[#allocation4 + $0x58] sm:$0xff] %v4310_v9  ;;  %v4284_v62 = vadd.f32 %v9060_v48, %v12251_v54  ;;  %v4157_v61 = vpop.f32.mrb[13].mxu1  ;;  %v4371_v2 = vld [vmem:[#allocation4 + $0x30] ss:$2 sm:$0x7f] }
 0x45a   : > { %v4283_v4 = vadd.f32 %v12251_v54, %v4157_v61  ;;  %v4373_v38 = vld [vmem:[#allocation4 + $0x31] ss:$2 sm:$0x7f]  ;;  %4337 = vst [vmem:[#allocation4 + $0x50] sm:$0xff] %v4309_v57 }
 0x45b   : > { %v4375_v6 = vmax.f32 %v4371_v2, %v4373_v38  ;;  %v4312_v13 = vmax.f32 %v4284_v62, 0.0  ;;  %v10172_v62 = vpack.c.bf16 %v4457_v23, %v4456_v20  ;;  %v4458_v38 = vld [vmem:[%s13370_s4 + $0x60] sm:$0xff]  ;;  %v7060_v20 = vld [vmem:[%s13370_s4 + $0x118] sm:$0xff] }
 0x45c   : > { %v4311_v58 = vmax.f32 %v4283_v4, 0.0  ;;  %v9063_v17 = vpop.f32.mrb[14].mxu1 }
 0x45d   : > { %v4286_v3 = vadd.f32 %v9063_v17, %v12251_v54  ;;  %v4167_v26 = vpop.f32.mrb[15].mxu1  ;;  %v12274_v40 = vld [vmem:[#allocation5 + $0x9] sm:$0xff]  ;;  %4340 = vst [vmem:[#allocation4 + $0x68] sm:$0xff] %v4312_v13  ;;  %v4376_v30 = vmax.f32 %v4374_v34, %v4375_v6 }
 0x45e   : > { %4339 = vst [vmem:[#allocation4 + $0x60] sm:$0xff] %v4311_v58  ;;  %v4285_v21 = vadd.f32 %v12251_v54, %v4167_v26  ;;  %9115 = vmatmul.mubr.f32.vlgmr.msra.gmra.mrb[128].mxu0 %v12274_v40  ;;  %v4379_v14 = vld [vmem:[#allocation4 + $0x40] ss:$2 sm:$0x7f] }
 0x45f   : > { %10155 = vmatpush3.bf16.msra.mxu0 %v12245_v22  ;;  %v4381_v33 = vld [vmem:[#allocation4 + $0x41] ss:$2 sm:$0x7f]  ;;  %v4314_v53 = vmax.f32 %v4286_v3, 0.0  ;;  %4377 = vst [vmem:[#allocation5 + $0x13] sm:$0x7f] %v4376_v30 }
 0x460   : > { %v4313_v25 = vmax.f32 %v4285_v21, 0.0  ;;  %v9066_v43 = vpop.f32.mrb[16].mxu1  ;;  %10157 = vmatprep.subr.bf16.mxu0 %v10156_v28  ;;  %v4386_v63 = vmax.f32 %v4379_v14, %v4381_v33  ;;  %v4460_v30 = vld [vmem:[%s13370_s4 + $0x70] sm:$0xff]  ;;  %v4461_v14 = vld [vmem:[%s13370_s4 + $0x78] sm:$0xff] }
 0x461   : > { %v4288_v44 = vadd.f32 %v9066_v43, %v12251_v54  ;;  %v4177_v49 = vpop.f32.mrb[17].mxu1  ;;  %v4383_v59 = vld [vmem:[#allocation4 + $0x50] ss:$2 sm:$0x7f]  ;;  %4342 = vst [vmem:[#allocation4 + $0x78] sm:$0xff] %v4314_v53 }
 0x462   : > { %v4385_v22 = vld [vmem:[#allocation4 + $0x51] ss:$2 sm:$0x7f]  ;;  %4341 = vst [vmem:[#allocation4 + $0x70] sm:$0xff] %v4313_v25  ;;  %v4287_v42 = vadd.f32 %v12251_v54, %v4177_v49 }
 0x463   : > { %v4387_v18 = vmax.f32 %v4383_v59, %v4385_v22  ;;  %v4316_v5 = vmax.f32 %v4288_v44, 0.0  ;;  %10159 = vmatpush3.bf16.msra.mxu0 %v10156_v28  ;;  %v4459_v28 = vld [vmem:[%s13370_s4 + $0x68] sm:$0xff]  ;;  %v10180_v22 = vpack.c.bf16 %v4461_v14, %v4460_v30  ;;  %v7069_v30 = vld [vmem:[%s13370_s4 + $0x160] sm:$0xff] }
 0x464   : > { %v4315_v55 = vmax.f32 %v4287_v42, 0.0  ;;  %v9069_v36 = vpop.f32.mrb[18].mxu1  ;;  %10161 = vmatprep.subr.bf16.mxu0 %v10160_v39  ;;  %v10176_v50 = vpack.c.bf16 %v4459_v28, %v4458_v38  ;;  %v7070_v14 = vld [vmem:[%s13370_s4 + $0x168] sm:$0xff] }
 0x465   : > { %4344 = vst [vmem:[#allocation4 + $0x88] sm:$0xff] %v4316_v5  ;;  %v4290_v1 = vadd.f32 %v9069_v36, %v12251_v54  ;;  %v4388_v10 = vmax.f32 %v4386_v63, %v4387_v18  ;;  %v4391_v24 = vld [vmem:[#allocation4 + $0x60] ss:$2 sm:$0x7f]  ;;  %v4187_v60 = vpop.f32.mrb[19].mxu1  ;;  %v7057_v18 = vld [vmem:[%s13370_s4 + $0x100] sm:$0xff] }
 0x466   : > { %4343 = vst [vmem:[#allocation4 + $0x80] sm:$0xff] %v4315_v55  ;;  %v4393_v16 = vld [vmem:[#allocation4 + $0x61] ss:$2 sm:$0x7f]  ;;  %v4289_v41 = vadd.f32 %v12251_v54, %v4187_v60  ;;  %v12301_v8 = vld [vmem:[#allocation5 + $0x11] sm:$0xff] }
 0x467   : > { %v4318_v29 = vmax.f32 %v4290_v1, 0.0  ;;  %4389 = vst [vmem:[#allocation5 + $0x1c] sm:$0x7f] %v4388_v10  ;;  %10163 = vmatpush3.bf16.msra.mxu0 %v10160_v39  ;;  %9117 = vmatprep.mubr.f32.mxu0 %v12301_v8  ;;  %v4398_v46 = vmax.f32 %v4391_v24, %v4393_v16  ;;  %v7058_v5 = vld [vmem:[%s13370_s4 + $0x108] sm:$0xff] }
 0x468   : > { %v9072_v35 = vpop.f32.mrb[20].mxu1  ;;  %10165 = vmatprep.subr.bf16.mxu0 %v10164_v37  ;;  %v4317_v52 = vmax.f32 %v4289_v41, 0.0  ;;  %v10184_v10 = vpack.c.bf16 %v7058_v5, %v7057_v18  ;;  %v7078_v18 = vld [vmem:[%s13370_s4 + $0x1a8] sm:$0xff]  ;;  %v12411_v5 = vld [vmem:[#allocation5 + $0x12] sm:$0xff] }
 0x469   : > { %v4395_v11 = vld [vmem:[#allocation4 + $0x70] ss:$2 sm:$0x7f]  ;;  %v4397_v45 = vld [vmem:[#allocation4 + $0x71] ss:$2 sm:$0x7f]  ;;  %v4292_v31 = vadd.f32 %v9072_v35, %v12251_v54 }
 0x46a   : > { %4346 = vst [vmem:[#allocation4 + $0x98] sm:$0xff] %v4318_v29  ;;  %v4399_v27 = vmax.f32 %v4395_v11, %v4397_v45  ;;  %v4197_v9 = vpop.f32.mrb[21].mxu1  ;;  %4345 = vst [vmem:[#allocation4 + $0x90] sm:$0xff] %v4317_v52  ;;  %v4438_v52 = vld [vmem:[#allocation5] sm:$0xff] }
 0x46b   : > { %v4320_v48 = vmax.f32 %v4292_v31, 0.0  ;;  %v4291_v19 = vadd.f32 %v12251_v54, %v4197_v9  ;;  %10167 = vmatpush3.bf16.msra.mxu0 %v10164_v37  ;;  %v7059_v9 = vld [vmem:[%s13370_s4 + $0x110] sm:$0xff] }
 0x46c   : > { %v9075_v51 = vpop.f32.mrb[22].mxu1  ;;  %v4400_v56 = vmax.f32 %v4398_v46, %v4399_v27  ;;  %10169 = vmatprep.subr.bf16.mxu0 %v10168_v15  ;;  %v10188_v23 = vpack.c.bf16 %v7060_v20, %v7059_v9  ;;  %v7089_v20 = vld [vmem:[%s13370_s4 + $0x200] sm:$0xff] }
 0x46d   : > { %4348 = vst [vmem:[#allocation4 + $0xa8] sm:$0xff] %v4320_v48  ;;  %v4294_v57 = vadd.f32 %v9075_v51, %v12251_v54  ;;  %v4319_v61 = vmax.f32 %v4291_v19, 0.0  ;;  %v4207_v4 = vpop.f32.mrb[23].mxu1  ;;  %v4403_v13 = vld [vmem:[#allocation4 + $0x80] ss:$2 sm:$0x7f] }
 0x46e   : > { %v12313_v2 = vld [vmem:[#allocation5 + $0x19] sm:$0xff]  ;;  %4401 = vst [vmem:[#allocation5 + $0x25] sm:$0x7f] %v4400_v56  ;;  %v4293_v6 = vadd.f32 %v12251_v54, %v4207_v4  ;;  %v4405_v17 = vld [vmem:[#allocation4 + $0x81] ss:$2 sm:$0x7f] }
 0x46f   : > { %v4322_v34 = vmax.f32 %v4294_v57, 0.0  ;;  %9118 = vmatmul.mubr.f32.gmra.mrb[130].mxu0 %v12313_v2  ;;  %4347 = vst [vmem:[#allocation4 + $0xa0] sm:$0xff] %v4319_v61  ;;  %v4410_v25 = vmax.f32 %v4403_v13, %v4405_v17  ;;  %v4439_v48 = vld [vmem:[#allocation5 + $0x8] sm:$0xff]  ;;  %v7061_v19 = vld [vmem:[%s13370_s4 + $0x120] sm:$0xff]  ;;  %v7062_v51 = vld [vmem:[%s13370_s4 + $0x128] sm:$0xff] }
 0x470   : > { %v9078_v58 = vpop.f32.mrb[24].mxu1  ;;  %10171 = vmatpush3.bf16.msra.mxu0 %v10168_v15  ;;  %v4321_v3 = vmax.f32 %v4293_v6, 0.0  ;;  %v4440_v56 = vld [vmem:[#allocation5 + $0x10] sm:$0xff]  ;;  %v10192_v57 = vpack.c.bf16 %v7062_v51, %v7061_v19  ;;  %v7063_v61 = vld [vmem:[%s13370_s4 + $0x130] sm:$0xff]  ;;  %v7065_v6 = vld [vmem:[%s13370_s4 + $0x140] sm:$0xff] }
 0x471   : > { %4350 = vst [vmem:[#allocation4 + $0xb8] sm:$0xff] %v4322_v34  ;;  %v4296_v26 = vadd.f32 %v9078_v58, %v12251_v54  ;;  %v4217_v12 = vpop.f32.mrb[25].mxu1  ;;  %10173 = vmatprep.subr.bf16.mxu0 %v10172_v62  ;;  %v4407_v33 = vld [vmem:[#allocation4 + $0x90] ss:$2 sm:$0x7f]  ;;  %v7066_v13 = vld [vmem:[%s13370_s4 + $0x148] sm:$0xff] }
 0x472   : > { %v4295_v21 = vadd.f32 %v12251_v54, %v4217_v12  ;;  %v4409_v53 = vld [vmem:[#allocation4 + $0x91] ss:$2 sm:$0x7f]  ;;  %4349 = vst [vmem:[#allocation4 + $0xb0] sm:$0xff] %v4321_v3  ;;  %v10200_v17 = vpack.c.bf16 %v7066_v13, %v7065_v6  ;;  %v4697_v3 = vld [vmem:[#allocation5 + $0x2] sm:$0xff] }
 0x473   : > { %v4411_v43 = vmax.f32 %v4407_v33, %v4409_v53  ;;  %v4324_v39 = vmax.f32 %v4296_v26, 0.0  ;;  %v7064_v4 = vld [vmem:[%s13370_s4 + $0x138] sm:$0xff]  ;;  %v7067_v12 = vld [vmem:[%s13370_s4 + $0x150] sm:$0xff]  ;;  %v10208_v33 = vpack.c.bf16 %v7070_v14, %v7069_v30  ;;  %v7106_v30 = vld [vmem:[%s13370_s4 + $0x288] sm:$0xff] }
 0x474   : > { %v4323_v44 = vmax.f32 %v4295_v21, 0.0  ;;  %v9081_v49 = vpop.f32.mrb[26].mxu1  ;;  %10175 = vmatpush3.bf16.msra.mxu0 %v10172_v62  ;;  %v4441_v62 = vld [vmem:[#allocation5 + $0x18] sm:$0xff]  ;;  %v10196_v28 = vpack.c.bf16 %v7064_v4, %v7063_v61  ;;  %v7071_v53 = vld [vmem:[%s13370_s4 + $0x170] sm:$0xff]  ;;  %v7092_v51 = vld [vmem:[%s13370_s4 + $0x218] sm:$0xff] }
 0x475   : > { %v4298_v32 = vadd.f32 %v9081_v49, %v12251_v54  ;;  %v4227_v0 = vpop.f32.mrb[27].mxu1  ;;  %v12332_v59 = vld [vmem:[#allocation5 + $0x21] sm:$0xff]  ;;  %10177 = vmatprep.subr.bf16.mxu0 %v10176_v50  ;;  %4352 = vst [vmem:[#allocation4 + $0xc8] sm:$0xff] %v4324_v39  ;;  %v4412_v63 = vmax.f32 %v4410_v25, %v4411_v43  ;;  %v7072_v25 = vld [vmem:[%s13370_s4 + $0x178] sm:$0xff]  ;;  %v7073_v39 = vld [vmem:[%s13370_s4 + $0x180] sm:$0xff] }
 0x476   : > { %4351 = vst [vmem:[#allocation4 + $0xc0] sm:$0xff] %v4323_v44  ;;  %v4297_v42 = vadd.f32 %v12251_v54, %v4227_v0  ;;  %9120 = vmatprep.mubr.f32.mxu0 %v12332_v59  ;;  %v4415_v55 = vld [vmem:[#allocation4 + $0xa0] ss:$2 sm:$0x7f]  ;;  %v10212_v43 = vpack.c.bf16 %v7072_v25, %v7071_v53  ;;  %v7076_v0 = vld [vmem:[%s13370_s4 + $0x198] sm:$0xff] }
 0x477   : > { %v4417_v36 = vld [vmem:[#allocation4 + $0xa1] ss:$2 sm:$0x7f]  ;;  %v4326_v37 = vmax.f32 %v4298_v32, 0.0  ;;  %4413 = vst [vmem:[#allocation5 + $0x2e] sm:$0x7f] %v4412_v63 }
 0x478   : > { %v4325_v1 = vmax.f32 %v4297_v42, 0.0  ;;  %10179 = vmatpush3.bf16.msra.mxu0 %v10176_v50  ;;  %v4422_v47 = vmax.f32 %v4415_v55, %v4417_v36  ;;  %v4442_v38 = vld [vmem:[#allocation5 + $0x20] sm:$0xff]  ;;  %v7068_v50 = vld [vmem:[%s13370_s4 + $0x158] sm:$0xff]  ;;  %v7075_v32 = vld [vmem:[%s13370_s4 + $0x190] sm:$0xff] }
 0x479   : > { %10181 = vmatprep.subr.bf16.mxu0 %v10180_v22  ;;  %v4419_v54 = vld [vmem:[#allocation4 + $0xb0] ss:$2 sm:$0x7f]  ;;  %v4421_v7 = vld [vmem:[#allocation4 + $0xb1] ss:$2 sm:$0x7f]  ;;  %v10204_v21 = vpack.c.bf16 %v7068_v50, %v7067_v12 }
 0x47a   : > { %4354 = vst [vmem:[#allocation4 + $0xd8] sm:$0xff] %v4326_v37  ;;  %4353 = vst [vmem:[#allocation4 + $0xd0] sm:$0xff] %v4325_v1  ;;  %v4423_v24 = vmax.f32 %v4419_v54, %v4421_v7  ;;  %v7074_v44 = vld [vmem:[%s13370_s4 + $0x188] sm:$0xff]  ;;  %v12402_v42 = vld [vmem:[#allocation5 + $0xa] sm:$0xff] }
 0x47b   : > { %v10216_v49 = vpack.c.bf16 %v7074_v44, %v7073_v39  ;;  %v7077_v63 = vld [vmem:[%s13370_s4 + $0x1a0] sm:$0xff]  ;;  %v7079_v37 = vld [vmem:[%s13370_s4 + $0x1b0] sm:$0xff]  ;;  %v7080_v1 = vld [vmem:[%s13370_s4 + $0x1b8] sm:$0xff] }
 0x47c   : > { %10183 = vmatpush3.bf16.msra.mxu0 %v10180_v22  ;;  %v4424_v60 = vmax.f32 %v4422_v47, %v4423_v24  ;;  %v10220_v22 = vpack.c.bf16 %v7076_v0, %v7075_v32  ;;  %v10224_v55 = vpack.c.bf16 %v7078_v18, %v7077_v63  ;;  %v12414_v36 = vld [vmem:[#allocation5 + $0x1a] sm:$0xff]  ;;  %v10228_v54 = vpack.c.bf16 %v7080_v1, %v7079_v37  ;;  %v7091_v19 = vld [vmem:[%s13370_s4 + $0x210] sm:$0xff]  ;;  %v7100_v13 = vld [vmem:[%s13370_s4 + $0x258] sm:$0xff] }
 0x47d   : > { %10185 = vmatprep.subr.bf16.mxu0 %v10184_v10  ;;  %v4427_v16 = vld [vmem:[#allocation4 + $0xc0] ss:$2 sm:$0x7f]  ;;  %v4429_v29 = vld [vmem:[#allocation4 + $0xc1] ss:$2 sm:$0x7f] }
 0x47e   : > { %v12342_v41 = vld [vmem:[#allocation5 + $0x29] sm:$0xff]  ;;  %4425 = vst [vmem:[#allocation5 + $0x37] sm:$0x7f] %v4424_v60  ;;  %v4434_v11 = vmax.f32 %v4427_v16, %v4429_v29  ;;  %v7081_v47 = vld [vmem:[%s13370_s4 + $0x1c0] sm:$0xff]  ;;  %v7082_v24 = vld [vmem:[%s13370_s4 + $0x1c8] sm:$0xff] }
 0x47f   : > { %9121 = vmatmul.mubr.f32.gmra.mrb[132].mxu0 %v12342_v41  ;;  %v4443_v34 = vld [vmem:[#allocation5 + $0x28] sm:$0xff]  ;;  %v10232_v16 = vpack.c.bf16 %v7082_v24, %v7081_v47  ;;  %v7104_v12 = vld [vmem:[%s13370_s4 + $0x278] sm:$0xff]  ;;  %v7110_v39 = vld [vmem:[%s13370_s4 + $0x2a8] sm:$0xff] }
 0x480   : > { %v12426_v7 = vld [vmem:[#allocation5 + $0x2a] sm:$0xff]  ;;  %v7117_v24 = vld [vmem:[%s13370_s4 + $0x2e0] sm:$0xff] }
 0x481   : > { %v4431_v35 = vld [vmem:[#allocation4 + $0xd0] ss:$2 sm:$0x7f]  ;;  %v4433_v15 = vld [vmem:[#allocation4 + $0xd1] ss:$2 sm:$0x7f] }
 0x482   : > { %v4435_v45 = vmax.f32 %v4431_v35, %v4433_v15  ;;  %v7083_v35 = vld [vmem:[%s13370_s4 + $0x1d0] sm:$0xff]  ;;  %v7084_v15 = vld [vmem:[%s13370_s4 + $0x1d8] sm:$0xff] }
 0x483   : > { %v7095_v4 = vld [vmem:[%s13370_s4 + $0x230] sm:$0xff]  ;;  %v7108_v53 = vld [vmem:[%s13370_s4 + $0x298] sm:$0xff] }
 0x484   : > { %v4436_v31 = vmax.f32 %v4434_v11, %v4435_v45  ;;  %v10236_v11 = vpack.c.bf16 %v7084_v15, %v7083_v35  ;;  %v7085_v45 = vld [vmem:[%s13370_s4 + $0x1e0] sm:$0xff]  ;;  %v7112_v32 = vld [vmem:[%s13370_s4 + $0x2b8] sm:$0xff]  ;;  %v7115_v37 = vld [vmem:[%s13370_s4 + $0x2d0] sm:$0xff] }
 0x485   : > { %v12345_v46 = vld [vmem:[#allocation5 + $0x31] sm:$0xff]  ;;  %v4469_v27 = vld [vmem:[#allocation5 + $0x39] sm:$0x7f]  ;;  %v7119_v35 = vld [vmem:[%s13370_s4 + $0x2f0] sm:$0xff] }
 0x486   : > { %4437 = vst [vmem:[#allocation5 + $0x40] sm:$0x7f] %v4436_v31  ;;  %9123 = vmatprep.mubr.f32.mxu0 %v12345_v46  ;;  %v4444_v58 = vld [vmem:[#allocation5 + $0x30] sm:$0xff]  ;;  %v4445_v26 = vld [vmem:[#allocation5 + $0x38] sm:$0x7f]  ;;  %v7086_v31 = vld [vmem:[%s13370_s4 + $0x1e8] sm:$0xff] }
 0x487   : > { %9124 = vmatmul.mubr.f32.gmra.mrb[134].mxu0 %v4469_v27  ;;  %v12435_v60 = vld [vmem:[#allocation5 + $0x32] sm:$0xff]  ;;  %v10240_v27 = vpack.c.bf16 %v7086_v31, %v7085_v45  ;;  %v7122_v31 = vld [vmem:[%s13370_s4 + $0x308] sm:$0xff] }
 0x488   : > { %9158 = vmatprep.mubr.f32.mxu0 %v4438_v52  ;;  %v7087_v52 = vld [vmem:[%s13370_s4 + $0x1f0] sm:$0xff]  ;;  %v7116_v1 = vld [vmem:[%s13370_s4 + $0x2d8] sm:$0xff]  ;;  %v7121_v45 = vld [vmem:[%s13370_s4 + $0x300] sm:$0xff] }
 0x489   : > { %v10300_v47 = vpack.c.bf16 %v7116_v1, %v7115_v37  ;;  %v7120_v15 = vld [vmem:[%s13370_s4 + $0x2f8] sm:$0xff]  ;;  %v7151_v37 = vld [vmem:[%s13370_s4 + $0x3f0] sm:$0xff] }
 0x48a   : > { %v7152_v1 = vld [vmem:[%s13370_s4 + $0x3f8] sm:$0xff] }
 0x48b   : > { %9159 = vmatmul.mubr.f32.vlgmr.msra.gmra.mrb[128].mxu0 %v4439_v48 }
 0x48c   : > { %10187 = vmatpush3.bf16.msra.mxu0 %v10184_v10  ;;  %9161 = vmatprep.mubr.f32.mxu0 %v4440_v56  ;;  %v12423_v10 = vld [vmem:[#allocation5 + $0x22] sm:$0xff]  ;;  %v10252_v56 = vpack.c.bf16 %v7092_v51, %v7091_v19 }
 0x48d   : > { %10189 = vmatprep.subr.bf16.mxu0 %v10188_v23  ;;  %v4704_v29 = vld [vmem:[#allocation5 + $0x3a] sm:$0x7f]  ;;  %v4842_v6 = vld [vmem:[#allocation5 + $0x41] sm:$0x7f] }
 0x48e   : > { %v12546_v63 = vld [vmem:[#allocation5 + $0x3a] sm:$0xff] }
 0x48f   : > { %9162 = vmatmul.mubr.f32.gmra.mrb[130].mxu0 %v4441_v62  ;;  %v7094_v62 = vld [vmem:[%s13370_s4 + $0x228] sm:$0xff] }
 0x490   : > { %10191 = vmatpush3.bf16.msra.mxu0 %v10188_v23  ;;  %9164 = vmatprep.mubr.f32.mxu0 %v4442_v38  ;;  %v7090_v23 = vld [vmem:[%s13370_s4 + $0x208] sm:$0xff]  ;;  %v7096_v38 = vld [vmem:[%s13370_s4 + $0x238] sm:$0xff] }
 0x491   : > { %10193 = vmatprep.subr.bf16.mxu0 %v10192_v57  ;;  %v10248_v48 = vpack.c.bf16 %v7090_v23, %v7089_v20  ;;  %v12579_v20 = vld [vmem:[#allocation5 + $0x13] sm:$0xff]  ;;  %v12588_v19 = vld [vmem:[#allocation5 + $0x1b] sm:$0xff] }
 0x492   : > { %v7125_v23 = vld [vmem:[%s13370_s4 + $0x320] sm:$0xff] }
 0x493   : > { %9165 = vmatmul.mubr.f32.gmra.mrb[132].mxu0 %v4443_v34  ;;  %v4841_v34 = vld [vmem:[#allocation5 + $0x39] sm:$0xff] }
 0x494   : > { %10195 = vmatpush3.bf16.msra.mxu0 %v10192_v57  ;;  %9167 = vmatprep.mubr.f32.mxu0 %v4444_v58  ;;  %v7093_v57 = vld [vmem:[%s13370_s4 + $0x220] sm:$0xff] }
 0x495   : > { %10197 = vmatprep.subr.bf16.mxu0 %v10196_v28  ;;  %v10256_v61 = vpack.c.bf16 %v7094_v62, %v7093_v57  ;;  %v7101_v58 = vld [vmem:[%s13370_s4 + $0x260] sm:$0xff]  ;;  %v7127_v57 = vld [vmem:[%s13370_s4 + $0x330] sm:$0xff]  ;;  %v7128_v62 = vld [vmem:[%s13370_s4 + $0x338] sm:$0xff] }
 0x497   : > { %9168 = vmatmul.mubr.f32.gmra.mrb[134].mxu0 %v4445_v26  ;;  %v7103_v26 = vld [vmem:[%s13370_s4 + $0x270] sm:$0xff] }
 0x498   : > { %10199 = vmatpush3.bf16.msra.mxu0 %v10196_v28  ;;  %9202 = vmatprep.mubr.f32.mxu0 %v4697_v3  ;;  %v7098_v28 = vld [vmem:[%s13370_s4 + $0x248] sm:$0xff]  ;;  %v10276_v50 = vpack.c.bf16 %v7104_v12, %v7103_v26  ;;  %v7137_v12 = vld [vmem:[%s13370_s4 + $0x380] sm:$0xff] }
 0x499   : > { %10201 = vmatprep.subr.bf16.mxu0 %v10200_v17 }
 0x49c   : > { %10203 = vmatpush3.bf16.msra.mxu0 %v10200_v17  ;;  %v7102_v17 = vld [vmem:[%s13370_s4 + $0x268] sm:$0xff] }
 0x49d   : > { %10205 = vmatprep.subr.bf16.mxu0 %v10204_v21  ;;  %v10272_v3 = vpack.c.bf16 %v7102_v17, %v7101_v58  ;;  %v7134_v58 = vld [vmem:[%s13370_s4 + $0x368] sm:$0xff] }
 0x4a0   : > { %10207 = vmatpush3.bf16.msra.mxu0 %v10204_v21  ;;  %v7105_v21 = vld [vmem:[%s13370_s4 + $0x280] sm:$0xff] }
 0x4a1   : > { %10209 = vmatprep.subr.bf16.mxu0 %v10208_v33  ;;  %v10280_v14 = vpack.c.bf16 %v7106_v30, %v7105_v21  ;;  %v7139_v30 = vld [vmem:[%s13370_s4 + $0x390] sm:$0xff] }
 0x4a4   : > { %10211 = vmatpush3.bf16.msra.mxu0 %v10208_v33  ;;  %v7107_v33 = vld [vmem:[%s13370_s4 + $0x290] sm:$0xff] }
 0x4a5   : > { %10213 = vmatprep.subr.bf16.mxu0 %v10212_v43  ;;  %v10284_v25 = vpack.c.bf16 %v7108_v53, %v7107_v33  ;;  %v7141_v53 = vld [vmem:[%s13370_s4 + $0x3a0] sm:$0xff] }
 0x4a8   : > { %10215 = vmatpush3.bf16.msra.mxu0 %v10212_v43  ;;  %v7109_v43 = vld [vmem:[%s13370_s4 + $0x2a0] sm:$0xff] }
 0x4a9   : > { %10217 = vmatprep.subr.bf16.mxu0 %v10216_v49  ;;  %v10288_v44 = vpack.c.bf16 %v7110_v39, %v7109_v43  ;;  %v7143_v39 = vld [vmem:[%s13370_s4 + $0x3b0] sm:$0xff] }
 0x4ab   : > { %9203 = vmatmul.mubr.f32.vlgmr.msra.gmra.mrb[128].mxu0 %v12402_v42 }
 0x4ac   : > { %9205 = vmatprep.mubr.f32.mxu0 %v12411_v5  ;;  %10219 = vmatpush3.bf16.msra.mxu0 %v10216_v49  ;;  %v7111_v49 = vld [vmem:[%s13370_s4 + $0x2b0] sm:$0xff] }
 0x4ad   : > { %10221 = vmatprep.subr.bf16.mxu0 %v10220_v22  ;;  %v10292_v0 = vpack.c.bf16 %v7112_v32, %v7111_v49  ;;  %v7146_v49 = vld [vmem:[%s13370_s4 + $0x3c8] sm:$0xff] }
 0x4ae   : > { %v5255_v32 = vld [vmem:[#allocation5 + $0x42] sm:$0xff] }
 0x4af   : > { %9206 = vmatmul.mubr.f32.gmra.mrb[130].mxu0 %v12414_v36 }
 0x4b0   : > { %9208 = vmatprep.mubr.f32.mxu0 %v12423_v10  ;;  %10223 = vmatpush3.bf16.msra.mxu0 %v10220_v22  ;;  %v7113_v22 = vld [vmem:[%s13370_s4 + $0x2c0] sm:$0xff] }
 0x4b1   : > { %10225 = vmatprep.subr.bf16.mxu0 %v10224_v55 }
 0x4b3   : > { %9209 = vmatmul.mubr.f32.gmra.mrb[132].mxu0 %v12426_v7 }
 0x4b4   : > { %9211 = vmatprep.mubr.f32.mxu0 %v12435_v60  ;;  %10227 = vmatpush3.bf16.msra.mxu0 %v10224_v55  ;;  %v4980_v55 = vld [vmem:[#allocation5 + $0x42] sm:$0x7f] }
 0x4b5   : > { %10229 = vmatprep.subr.bf16.mxu0 %v10228_v54 }
 0x4b7   : > { %9212 = vmatmul.mubr.f32.gmra.mrb[134].mxu0 %v4704_v29 }
 0x4b8   : > { %10231 = vmatpush3.bf16.msra.mxu0 %v10228_v54  ;;  %9246 = vmatprep.mubr.f32.mxu0 %v12274_v40  ;;  %v7088_v40 = vld [vmem:[%s13370_s4 + $0x1f8] sm:$0xff] }
 0x4b9   : > { %10233 = vmatprep.subr.bf16.mxu0 %v10232_v16  ;;  %v10244_v9 = vpack.c.bf16 %v7088_v40, %v7087_v52  ;;  %v5111_v54 = vld [vmem:[#allocation5 + $0xb] sm:$0xff] }
 0x4ba   : > { %v7123_v52 = vld [vmem:[%s13370_s4 + $0x310] sm:$0xff]  ;;  %v7124_v40 = vld [vmem:[%s13370_s4 + $0x318] sm:$0xff] }
 0x4bc   : > { %10235 = vmatpush3.bf16.msra.mxu0 %v10232_v16  ;;  %v7118_v16 = vld [vmem:[%s13370_s4 + $0x2e8] sm:$0xff] }
 0x4bd   : > { %10237 = vmatprep.subr.bf16.mxu0 %v10236_v11  ;;  %v10304_v29 = vpack.c.bf16 %v7118_v16, %v7117_v24  ;;  %v7154_v24 = vld [vmem:[%s13370_s4 + $0x408] sm:$0xff] }
 0x4c0   : > { %10239 = vmatpush3.bf16.msra.mxu0 %v10236_v11  ;;  %v10308_v11 = vpack.c.bf16 %v7120_v15, %v7119_v35  ;;  %v7156_v35 = vld [vmem:[%s13370_s4 + $0x418] sm:$0xff] }
 0x4c1   : > { %10241 = vmatprep.subr.bf16.mxu0 %v10240_v27 }
 0x4c4   : > { %10243 = vmatpush3.bf16.msra.mxu0 %v10240_v27  ;;  %v10312_v27 = vpack.c.bf16 %v7122_v31, %v7121_v45  ;;  %v7158_v45 = vld [vmem:[%s13370_s4 + $0x428] sm:$0xff] }
 0x4c5   : > { %10245 = vmatprep.subr.bf16.mxu0 %v10244_v9 }
 0x4c8   : > { %10247 = vmatpush3.bf16.msra.mxu0 %v10244_v9  ;;  %v10316_v9 = vpack.c.bf16 %v7124_v40, %v7123_v52  ;;  %v7160_v52 = vld [vmem:[%s13370_s4 + $0x438] sm:$0xff] }
 0x4c9   : > { %10249 = vmatprep.subr.bf16.mxu0 %v10248_v48 }
 0x4cb   : > { %9247 = vmatmul.mubr.f32.vlgmr.msra.gmra.mrb[128].mxu0 %v12301_v8  ;;  %v10260_v8 = vpack.c.bf16 %v7096_v38, %v7095_v4  ;;  %v10324_v4 = vpack.c.bf16 %v7128_v62, %v7127_v57  ;;  %v12603_v38 = vld [vmem:[#allocation5 + $0x33] sm:$0xff] }
 0x4cc   : > { %9249 = vmatprep.mubr.f32.mxu0 %v12313_v2  ;;  %10251 = vmatpush3.bf16.msra.mxu0 %v10248_v48  ;;  %v7097_v2 = vld [vmem:[%s13370_s4 + $0x240] sm:$0xff]  ;;  %v7126_v48 = vld [vmem:[%s13370_s4 + $0x328] sm:$0xff] }
 0x4cd   : > { %10253 = vmatprep.subr.bf16.mxu0 %v10252_v56  ;;  %v10320_v51 = vpack.c.bf16 %v7126_v48, %v7125_v23  ;;  %v5393_v23 = vld [vmem:[#allocation5 + $0x43] sm:$0xff]  ;;  %v5394_v48 = vld [vmem:[#allocation5 + $0x4b] sm:$0x7f]  ;;  %v5525_v57 = vld [vmem:[#allocation5 + $0x14] sm:$0xff] }
 0x4cf   : > { %9250 = vmatmul.mubr.f32.gmra.mrb[130].mxu0 %v12332_v59  ;;  %v10264_v59 = vpack.c.bf16 %v7098_v28, %v7097_v2  ;;  %v7130_v2 = vld [vmem:[%s13370_s4 + $0x348] sm:$0xff] }
 0x4d0   : > { %9252 = vmatprep.mubr.f32.mxu0 %v12342_v41  ;;  %10255 = vmatpush3.bf16.msra.mxu0 %v10252_v56  ;;  %v7099_v41 = vld [vmem:[%s13370_s4 + $0x250] sm:$0xff]  ;;  %v12612_v28 = vld [vmem:[#allocation5 + $0x3b] sm:$0xff] }
 0x4d1   : > { %10257 = vmatprep.subr.bf16.mxu0 %v10256_v61  ;;  %v12591_v56 = vld [vmem:[#allocation5 + $0x23] sm:$0xff] }
 0x4d3   : > { %9253 = vmatmul.mubr.f32.gmra.mrb[132].mxu0 %v12345_v46  ;;  %v10268_v46 = vpack.c.bf16 %v7100_v13, %v7099_v41  ;;  %v7132_v41 = vld [vmem:[%s13370_s4 + $0x358] sm:$0xff] }
 0x4d4   : > { %9255 = vmatprep.mubr.f32.mxu0 %v4841_v34  ;;  %10259 = vmatpush3.bf16.msra.mxu0 %v10256_v61  ;;  %v12600_v61 = vld [vmem:[#allocation5 + $0x2b] sm:$0xff] }
 0x4d5   : > { %10261 = vmatprep.subr.bf16.mxu0 %v10260_v8 }
 0x4d7   : > { %9256 = vmatmul.mubr.f32.gmra.mrb[134].mxu0 %v4842_v6  ;;  %v7131_v6 = vld [vmem:[%s13370_s4 + $0x350] sm:$0xff] }
 0x4d8   : > { %10263 = vmatpush3.bf16.msra.mxu0 %v10260_v8  ;;  %9290 = vmatprep.mubr.f32.mxu0 %v12402_v42  ;;  %v7114_v42 = vld [vmem:[%s13370_s4 + $0x2c8] sm:$0xff]  ;;  %v7129_v8 = vld [vmem:[%s13370_s4 + $0x340] sm:$0xff]  ;;  %v10332_v13 = vpack.c.bf16 %v7132_v41, %v7131_v6  ;;  %v5528_v6 = vld [vmem:[#allocation5 + $0x2c] sm:$0xff] }
 0x4d9   : > { %10265 = vmatprep.subr.bf16.mxu0 %v10264_v59  ;;  %v10296_v18 = vpack.c.bf16 %v7114_v42, %v7113_v22  ;;  %v10328_v34 = vpack.c.bf16 %v7130_v2, %v7129_v8  ;;  %v7148_v22 = vld [vmem:[%s13370_s4 + $0x3d8] sm:$0xff]  ;;  %v7167_v8 = vld [vmem:[%s13370_s4 + $0x470] sm:$0xff] }
 0x4da   : > { %v7168_v2 = vld [vmem:[%s13370_s4 + $0x478] sm:$0xff] }
 0x4db   : > { %v5529_v41 = vld [vmem:[#allocation5 + $0x34] sm:$0xff] }
 0x4dc   : > { %10267 = vmatpush3.bf16.msra.mxu0 %v10264_v59  ;;  %v5118_v59 = vld [vmem:[#allocation5 + $0x43] sm:$0x7f] }
 0x4dd   : > { %10269 = vmatprep.subr.bf16.mxu0 %v10268_v46 }
 0x4e0   : > { %10271 = vmatpush3.bf16.msra.mxu0 %v10268_v46  ;;  %v7133_v46 = vld [vmem:[%s13370_s4 + $0x360] sm:$0xff] }
 0x4e1   : > { %10273 = vmatprep.subr.bf16.mxu0 %v10272_v3  ;;  %v10336_v17 = vpack.c.bf16 %v7134_v58, %v7133_v46  ;;  %v5531_v46 = vld [vmem:[#allocation5 + $0x44] sm:$0xff]  ;;  %v5532_v58 = vld [vmem:[#allocation5 + $0x4c] sm:$0x7f] }
 0x4e4   : > { %10275 = vmatpush3.bf16.msra.mxu0 %v10272_v3  ;;  %v7135_v3 = vld [vmem:[%s13370_s4 + $0x370] sm:$0xff] }
 0x4e5   : > { %10277 = vmatprep.subr.bf16.mxu0 %v10276_v50 }
 0x4e8   : > { %10279 = vmatpush3.bf16.msra.mxu0 %v10276_v50  ;;  %v7138_v50 = vld [vmem:[%s13370_s4 + $0x388] sm:$0xff] }
 0x4e9   : > { %10281 = vmatprep.subr.bf16.mxu0 %v10280_v14  ;;  %v10344_v21 = vpack.c.bf16 %v7138_v50, %v7137_v12 }
 0x4eb   : > { %9291 = vmatmul.mubr.f32.vlgmr.msra.gmra.mrb[128].mxu0 %v12411_v5 }
 0x4ec   : > { %9293 = vmatprep.mubr.f32.mxu0 %v12414_v36  ;;  %10283 = vmatpush3.bf16.msra.mxu0 %v10280_v14  ;;  %v7140_v14 = vld [vmem:[%s13370_s4 + $0x398] sm:$0xff] }
 0x4ed   : > { %10285 = vmatprep.subr.bf16.mxu0 %v10284_v25  ;;  %v10348_v33 = vpack.c.bf16 %v7140_v14, %v7139_v30 }
 0x4ef   : > { %9294 = vmatmul.mubr.f32.gmra.mrb[130].mxu0 %v12423_v10 }
 0x4f0   : > { %9296 = vmatprep.mubr.f32.mxu0 %v12426_v7  ;;  %10287 = vmatpush3.bf16.msra.mxu0 %v10284_v25  ;;  %v7142_v25 = vld [vmem:[%s13370_s4 + $0x3a8] sm:$0xff] }
 0x4f1   : > { %10289 = vmatprep.subr.bf16.mxu0 %v10288_v44  ;;  %v10352_v43 = vpack.c.bf16 %v7142_v25, %v7141_v53 }
 0x4f3   : > { %9297 = vmatmul.mubr.f32.gmra.mrb[132].mxu0 %v12435_v60 }
 0x4f4   : > { %9299 = vmatprep.mubr.f32.mxu0 %v12546_v63  ;;  %10291 = vmatpush3.bf16.msra.mxu0 %v10288_v44  ;;  %v7144_v44 = vld [vmem:[%s13370_s4 + $0x3b8] sm:$0xff] }
 0x4f5   : > { %10293 = vmatprep.subr.bf16.mxu0 %v10292_v0 }
 0x4f7   : > { %9300 = vmatmul.mubr.f32.gmra.mrb[134].mxu0 %v4980_v55 }
 0x4f8   : > { %10295 = vmatpush3.bf16.msra.mxu0 %v10292_v0  ;;  %9334 = vmatprep.mubr.f32.mxu0 %v5111_v54  ;;  %v5256_v0 = vld [vmem:[#allocation5 + $0x4a] sm:$0x7f]  ;;  %v10372_v54 = vpack.c.bf16 %v7152_v1, %v7151_v37 }
 0x4f9   : > { %10297 = vmatprep.subr.bf16.mxu0 %v10296_v18 }
 0x4fc   : > { %10299 = vmatpush3.bf16.msra.mxu0 %v10296_v18  ;;  %v7150_v18 = vld [vmem:[%s13370_s4 + $0x3e8] sm:$0xff] }
 0x4fd   : > { %10301 = vmatprep.subr.bf16.mxu0 %v10300_v47 }
 0x500   : > { %10303 = vmatpush3.bf16.msra.mxu0 %v10300_v47  ;;  %v7153_v47 = vld [vmem:[%s13370_s4 + $0x400] sm:$0xff] }
 0x501   : > { %10305 = vmatprep.subr.bf16.mxu0 %v10304_v29  ;;  %v10376_v16 = vpack.c.bf16 %v7154_v24, %v7153_v47 }
 0x504   : > { %10307 = vmatpush3.bf16.msra.mxu0 %v10304_v29  ;;  %v7155_v29 = vld [vmem:[%s13370_s4 + $0x410] sm:$0xff] }
 0x505   : > { %10309 = vmatprep.subr.bf16.mxu0 %v10308_v11  ;;  %v10380_v15 = vpack.c.bf16 %v7156_v35, %v7155_v29 }
 0x508   : > { %10311 = vmatpush3.bf16.msra.mxu0 %v10308_v11  ;;  %v7157_v11 = vld [vmem:[%s13370_s4 + $0x420] sm:$0xff] }
 0x509   : > { %10313 = vmatprep.subr.bf16.mxu0 %v10312_v27  ;;  %v10384_v31 = vpack.c.bf16 %v7158_v45, %v7157_v11 }
 0x50b   : > { %9335 = vmatmul.mubr.f32.vlgmr.msra.gmra.mrb[128].mxu0 %v12579_v20 }
 0x50c   : > { %9337 = vmatprep.mubr.f32.mxu0 %v12588_v19  ;;  %10315 = vmatpush3.bf16.msra.mxu0 %v10312_v27  ;;  %v7159_v27 = vld [vmem:[%s13370_s4 + $0x430] sm:$0xff] }
 0x50d   : > { %10317 = vmatprep.subr.bf16.mxu0 %v10316_v9  ;;  %v10388_v40 = vpack.c.bf16 %v7160_v52, %v7159_v27 }
 0x50f   : > { %9338 = vmatmul.mubr.f32.gmra.mrb[130].mxu0 %v12591_v56 }
 0x510   : > { %9340 = vmatprep.mubr.f32.mxu0 %v12600_v61  ;;  %10319 = vmatpush3.bf16.msra.mxu0 %v10316_v9  ;;  %v7161_v9 = vld [vmem:[%s13370_s4 + $0x440] sm:$0xff] }
 0x511   : > { %10321 = vmatprep.subr.bf16.mxu0 %v10320_v51 }
 0x513   : > { %9341 = vmatmul.mubr.f32.gmra.mrb[132].mxu0 %v12603_v38 }
 0x514   : > { %9343 = vmatprep.mubr.f32.mxu0 %v12612_v28  ;;  %10323 = vmatpush3.bf16.msra.mxu0 %v10320_v51  ;;  %v7163_v51 = vld [vmem:[%s13370_s4 + $0x450] sm:$0xff] }
 0x515   : > { %10325 = vmatprep.subr.bf16.mxu0 %v10324_v4 }
 0x517   : > { %9344 = vmatmul.mubr.f32.gmra.mrb[134].mxu0 %v5118_v59  ;;  %v5527_v59 = vld [vmem:[#allocation5 + $0x24] sm:$0xff] }
 0x518   : > { %10327 = vmatpush3.bf16.msra.mxu0 %v10324_v4  ;;  %9378 = vmatprep.mubr.f32.mxu0 %v12411_v5  ;;  %v7136_v5 = vld [vmem:[%s13370_s4 + $0x378] sm:$0xff]  ;;  %v7166_v4 = vld [vmem:[%s13370_s4 + $0x468] sm:$0xff] }
 0x519   : > { %10329 = vmatprep.subr.bf16.mxu0 %v10328_v34  ;;  %v10340_v26 = vpack.c.bf16 %v7136_v5, %v7135_v3 }
 0x51c   : > { %10331 = vmatpush3.bf16.msra.mxu0 %v10328_v34  ;;  %v5526_v34 = vld [vmem:[#allocation5 + $0x1c] sm:$0xff] }
 0x51d   : > { %10333 = vmatprep.subr.bf16.mxu0 %v10332_v13 }
 0x520   : > { %10335 = vmatpush3.bf16.msra.mxu0 %v10332_v13  ;;  %v5530_v13 = vld [vmem:[#allocation5 + $0x3c] sm:$0xff] }
 0x521   : > { %10337 = vmatprep.subr.bf16.mxu0 %v10336_v17 }
 0x524   : > { %10339 = vmatpush3.bf16.msra.mxu0 %v10336_v17  ;;  %v12744_v17 = vld [vmem:[%s13371_s5] ss:$0 sm:$0xff] }
 0x525   : > { %10341 = vmatprep.subr.bf16.mxu0 %v10340_v26 }
 0x528   : > { %10343 = vmatpush3.bf16.msra.mxu0 %v10340_v26 }
 0x529   : > { %10345 = vmatprep.subr.bf16.mxu0 %v10344_v21 }
 0x52b   : > { %9379 = vmatmul.mubr.f32.vlgmr.msra.gmra.mrb[128].mxu0 %v12414_v36  ;;  %v10356_v36 = vpack.c.bf16 %v7144_v44, %v7143_v39 }
 0x52c   : > { %9381 = vmatprep.mubr.f32.mxu0 %v12423_v10  ;;  %10347 = vmatpush3.bf16.msra.mxu0 %v10344_v21  ;;  %v7145_v10 = vld [vmem:[%s13370_s4 + $0x3c0] sm:$0xff] }
 0x52d   : > { %10349 = vmatprep.subr.bf16.mxu0 %v10348_v33 }
 0x52f   : > { %9382 = vmatmul.mubr.f32.gmra.mrb[130].mxu0 %v12426_v7  ;;  %v10360_v7 = vpack.c.bf16 %v7146_v49, %v7145_v10 }
 0x530   : > { %9384 = vmatprep.mubr.f32.mxu0 %v12435_v60  ;;  %10351 = vmatpush3.bf16.msra.mxu0 %v10348_v33  ;;  %v7147_v60 = vld [vmem:[%s13370_s4 + $0x3d0] sm:$0xff] }
 0x531   : > { %10353 = vmatprep.subr.bf16.mxu0 %v10352_v43  ;;  %v10364_v42 = vpack.c.bf16 %v7148_v22, %v7147_v60 }
 0x533   : > { %9385 = vmatmul.mubr.f32.gmra.mrb[132].mxu0 %v12546_v63  ;;  %v7149_v63 = vld [vmem:[%s13370_s4 + $0x3e0] sm:$0xff] }
 0x534   : > { %9387 = vmatprep.mubr.f32.mxu0 %v5255_v32  ;;  %10355 = vmatpush3.bf16.msra.mxu0 %v10352_v43  ;;  %v10368_v55 = vpack.c.bf16 %v7150_v18, %v7149_v63 }
 0x535   : > { %10357 = vmatprep.subr.bf16.mxu0 %v10356_v36 }
 0x537   : > { %9388 = vmatmul.mubr.f32.gmra.mrb[134].mxu0 %v5256_v0 }
 0x538   : > { %10359 = vmatpush3.bf16.msra.mxu0 %v10356_v36  ;;  %9422 = vmatprep.mubr.f32.mxu0 %v12579_v20  ;;  %v7162_v20 = vld [vmem:[%s13370_s4 + $0x448] sm:$0xff] }
 0x539   : > { %10361 = vmatprep.subr.bf16.mxu0 %v10360_v7 }
 0x53c   : > { %10363 = vmatpush3.bf16.msra.mxu0 %v10360_v7 }
 0x53d   : > { %10365 = vmatprep.subr.bf16.mxu0 %v10364_v42 }
 0x540   : > { %10367 = vmatpush3.bf16.msra.mxu0 %v10364_v42 }
 0x541   : > { %10369 = vmatprep.subr.bf16.mxu0 %v10368_v55 }
 0x544   : > { %10371 = vmatpush3.bf16.msra.mxu0 %v10368_v55 }
 0x545   : > { %10373 = vmatprep.subr.bf16.mxu0 %v10372_v54 }
 0x548   : > { %10375 = vmatpush3.bf16.msra.mxu0 %v10372_v54 }
 0x549   : > { %10377 = vmatprep.subr.bf16.mxu0 %v10376_v16 }
 0x54b   : > { %9423 = vmatmul.mubr.f32.vlgmr.msra.gmra.mrb[128].mxu0 %v12588_v19  ;;  %v10392_v19 = vpack.c.bf16 %v7162_v20, %v7161_v9 }
 0x54c   : > { %9425 = vmatprep.mubr.f32.mxu0 %v12591_v56  ;;  %10379 = vmatpush3.bf16.msra.mxu0 %v10376_v16  ;;  %v7164_v56 = vld [vmem:[%s13370_s4 + $0x458] sm:$0xff] }
 0x54d   : > { %10381 = vmatprep.subr.bf16.mxu0 %v10380_v15  ;;  %v10396_v62 = vpack.c.bf16 %v7164_v56, %v7163_v51 }
 0x54f   : > { %9426 = vmatmul.mubr.f32.gmra.mrb[130].mxu0 %v12600_v61  ;;  %v7165_v61 = vld [vmem:[%s13370_s4 + $0x460] sm:$0xff] }
 0x550   : > { %9428 = vmatprep.mubr.f32.mxu0 %v12603_v38  ;;  %10383 = vmatpush3.bf16.msra.mxu0 %v10380_v15  ;;  %v10400_v38 = vpack.c.bf16 %v7166_v4, %v7165_v61 }
 0x551   : > { %10385 = vmatprep.subr.bf16.mxu0 %v10384_v31 }
 0x553   : > { %9429 = vmatmul.mubr.f32.gmra.mrb[132].mxu0 %v12612_v28  ;;  %v10404_v28 = vpack.c.bf16 %v7168_v2, %v7167_v8 }
 0x554   : > { %9431 = vmatprep.mubr.f32.mxu0 %v5393_v23  ;;  %10387 = vmatpush3.bf16.msra.mxu0 %v10384_v31 }
 0x555   : > { %10389 = vmatprep.subr.bf16.mxu0 %v10388_v40 }
 0x557   : > { %9432 = vmatmul.mubr.f32.gmra.mrb[134].mxu0 %v5394_v48 }
 0x558   : > { %10391 = vmatpush3.bf16.msra.mxu0 %v10388_v40  ;;  %9466 = vmatprep.mubr.f32.mxu0 %v5525_v57 }
 0x559   : > { %10393 = vmatprep.subr.bf16.mxu0 %v10392_v19 }
 0x55c   : > { %10395 = vmatpush3.bf16.msra.mxu0 %v10392_v19 }
 0x55d   : > { %10397 = vmatprep.subr.bf16.mxu0 %v10396_v62 }
 0x560   : > { %10399 = vmatpush3.bf16.msra.mxu0 %v10396_v62 }
 0x561   : > { %10401 = vmatprep.subr.bf16.mxu0 %v10400_v38 }
 0x564   : > { %10403 = vmatpush3.bf16.msra.mxu0 %v10400_v38 }
 0x565   : > { %10405 = vmatprep.subr.bf16.mxu0 %v10404_v28 }
 0x568   : > { %10407 = vmatpush3.bf16.msra.mxu0 %v10404_v28 }
 0x56b   : > { %9467 = vmatmul.mubr.f32.vlgmr.msra.gmra.mrb[128].mxu0 %v5526_v34 }
 0x56c   : > { %9469 = vmatprep.mubr.f32.mxu0 %v5527_v59 }
 0x56f   : > { %9470 = vmatmul.mubr.f32.gmra.mrb[130].mxu0 %v5528_v6 }
 0x570   : > { %9472 = vmatprep.mubr.f32.mxu0 %v5529_v41 }
 0x573   : > { %9473 = vmatmul.mubr.f32.gmra.mrb[132].mxu0 %v5530_v13 }
 0x574   : > { %9475 = vmatprep.mubr.f32.mxu0 %v5531_v46 }
 0x577   : > { %9476 = vmatmul.mubr.f32.gmra.mrb[134].mxu0 %v5532_v58 }
 0x63e   : > { %v9468_v3 = vpop.f32.mrb[128].mxu0 }
 0x63f   : > { %v5671_v5 = vadd.f32 %v9468_v3, %v12744_v17  ;;  %v5616_v26 = vpop.f32.mrb[129].mxu0 }
 0x640   : > { %v5670_v12 = vadd.f32 %v12744_v17, %v5616_v26 }
 0x641   : > { %v5679_v50 = vmax.f32 %v5671_v5, 0.0 }
 0x642   : > { %v5678_v21 = vmax.f32 %v5670_v12, 0.0  ;;  %v9471_v30 = vpop.f32.mrb[130].mxu0 }
 0x643   : > { %5687 = vst [vmem:[#allocation6 + $0x8] sm:$0xff] %v5679_v50  ;;  %v5673_v14 = vadd.f32 %v9471_v30, %v12744_v17  ;;  %v5626_v33 = vpop.f32.mrb[131].mxu0 }
 0x644   : > { %5686 = vst [vmem:[#allocation6] sm:$0xff] %v5678_v21  ;;  %v5672_v53 = vadd.f32 %v12744_v17, %v5626_v33 }
 0x645   : > { %v5681_v25 = vmax.f32 %v5673_v14, 0.0 }
 0x646   : > { %v5680_v43 = vmax.f32 %v5672_v53, 0.0  ;;  %v9474_v39 = vpop.f32.mrb[132].mxu0 }
 0x647   : > { %5689 = vst [vmem:[#allocation6 + $0x18] sm:$0xff] %v5681_v25  ;;  %v5675_v44 = vadd.f32 %v9474_v39, %v12744_v17  ;;  %v5636_v36 = vpop.f32.mrb[133].mxu0 }
 0x648   : > { %5688 = vst [vmem:[#allocation6 + $0x10] sm:$0xff] %v5680_v43  ;;  %v5674_v57 = vadd.f32 %v12744_v17, %v5636_v36 }
 0x649   : > { %v5683_v10 = vmax.f32 %v5675_v44, 0.0 }
 0x64a   : > { %v5698_v49 = vld [vmem:[#allocation6 + $0x9] ss:$2 sm:$0x1]  ;;  %v5700_v32 = vld [vmem:[#allocation6 + $0xa] ss:$2 sm:$0x1] }
 0x64b   : > { %v5711_v0 = vld [vmem:[#allocation6 + $0xb] ss:$2 sm:$0x1]  ;;  %v5713_v7 = vld [vmem:[#allocation6 + $0xc] ss:$2 sm:$0x1]  ;;  %v5702_v60 = vmax.f32 %v5698_v49, %v5700_v32 }
 0x64c   : > { %5691 = vst [vmem:[#allocation6 + $0x28] sm:$0xff] %v5683_v10  ;;  %v5725_v22 = vld [vmem:[#allocation6 + $0xd] ss:$2 sm:$0x1]  ;;  %v5715_v63 = vmax.f32 %v5711_v0, %v5713_v7  ;;  %v5682_v38 = vmax.f32 %v5674_v57, 0.0  ;;  %v9477_v8 = vpop.f32.mrb[134].mxu0 }
 0x64d   : > { %v5727_v42 = vld [vmem:[#allocation6 + $0xe] ss:$2 sm:$0x1]  ;;  %v5694_v18 = vld [vmem:[#allocation6] ss:$2 sm:$0x1] }
 0x64e   : > { %v5696_v55 = vld [vmem:[#allocation6 + $0x1] ss:$2 sm:$0x1]  ;;  %v5729_v37 = vmax.f32 %v5725_v22, %v5727_v42  ;;  %v5707_v54 = vld [vmem:[#allocation6 + $0x2] ss:$2 sm:$0x1] }
 0x64f   : > { %v5701_v1 = vmax.f32 %v5694_v18, %v5696_v55  ;;  %v5709_v47 = vld [vmem:[#allocation6 + $0x3] ss:$2 sm:$0x1]  ;;  %v5721_v16 = vld [vmem:[#allocation6 + $0x4] ss:$2 sm:$0x1] }
 0x650   : > { %v5714_v24 = vmax.f32 %v5707_v54, %v5709_v47  ;;  %v5723_v29 = vld [vmem:[#allocation6 + $0x5] ss:$2 sm:$0x1]  ;;  %v5739_v11 = vld [vmem:[#allocation6 + $0x1b] ss:$2 sm:$0x1] }
 0x651   : > { %v5703_v35 = vmax.f32 %v5701_v1, %v5702_v60  ;;  %v5728_v15 = vmax.f32 %v5721_v16, %v5723_v29  ;;  %v5741_v45 = vld [vmem:[#allocation6 + $0x1c] ss:$2 sm:$0x1]  ;;  %v5753_v27 = vld [vmem:[#allocation6 + $0x1d] ss:$2 sm:$0x1] }
 0x652   : > { %v5716_v31 = vmax.f32 %v5714_v24, %v5715_v63  ;;  %v5755_v52 = vld [vmem:[#allocation6 + $0x1e] ss:$2 sm:$0x1]  ;;  %v5743_v9 = vmax.f32 %v5739_v11, %v5741_v45  ;;  %v5735_v20 = vld [vmem:[#allocation6 + $0x12] ss:$2 sm:$0x1] }
 0x653   : > { %5705 = vst [vmem:[%s12752_s15] sm:$0x1] %v5703_v35  ;;  %v5730_v40 = vmax.f32 %v5728_v15, %v5729_v37  ;;  %v5757_v23 = vmax.f32 %v5753_v27, %v5755_v52  ;;  %v5737_v48 = vld [vmem:[#allocation6 + $0x13] ss:$2 sm:$0x1]  ;;  %v5646_v2 = vpop.f32.mrb[135].mxu0  ;;  %5690 = vst [vmem:[#allocation6 + $0x20] sm:$0xff] %v5682_v38 }
 0x654   : > { %7170 = vst [vmem:[%s12752_s15 + $0x2] sm:$0x1] %v5716_v31  ;;  %v5749_v19 = vld [vmem:[#allocation6 + $0x14] ss:$2 sm:$0x1]  ;;  %v5742_v51 = vmax.f32 %v5735_v20, %v5737_v48  ;;  %v5676_v28 = vadd.f32 %v12744_v17, %v5646_v2  ;;  %v7178_v22 = vld [vmem:[%s13372_s6 + $0x80] sm:$0xff] (%p50_p0) }
 0x655   : > { %7171 = vst [vmem:[%s12752_s15 + $0x4] sm:$0x1] %v5730_v40  ;;  %v5751_v56 = vld [vmem:[#allocation6 + $0x15] ss:$2 sm:$0x1]  ;;  %v7179_v42 = vld [vmem:[%s13372_s6 + $0x88] sm:$0xff] (%p50_p0) }
 0x656   : > { %v5756_v62 = vmax.f32 %v5749_v19, %v5751_v56  ;;  %v5744_v61 = vmax.f32 %v5742_v51, %v5743_v9  ;;  %v5684_v34 = vmax.f32 %v5676_v28, 0.0  ;;  %v5781_v59 = vld [vmem:[#allocation6 + $0x2d] ss:$2 sm:$0x1]  ;;  %v5819_v63 = vld [vmem:[%s13372_s6] sm:$0xff] (%p50_p0)  ;;  %v10989_v18 = vmov (%p50_p0), 0.0|0.0  }
 0x657   : > { %v5783_v6 = vld [vmem:[#allocation6 + $0x2e] ss:$2 sm:$0x1]  ;;  %v5763_v41 = vld [vmem:[#allocation6 + $0x16] ss:$2 sm:$0x1]  ;;  %10408 = vmatprep.subr.bf16.mxu0 (%p50_p0), %v10989_v18  ;;  %v10409_v55 = vpack.c.bf16 (%p50_p0), %v7179_v42, %v7178_v22  ;;  %10432 = vmatprep.subr.bf16.mxu1 (%p50_p0), %v10989_v18 }
 0x658   : > { %v5758_v4 = vmax.f32 %v5756_v62, %v5757_v23  ;;  %7172 = vst [vmem:[%s12752_s15 + $0x6] sm:$0x1] %v5744_v61  ;;  %5692 = vst [vmem:[#allocation6 + $0x30] sm:$0xff] %v5684_v34  ;;  %v5765_v13 = vld [vmem:[#allocation6 + $0x17] ss:$2 sm:$0x1]  ;;  %v5785_v58 = vmax.f32 %v5781_v59, %v5783_v6 }
 0x659   : > { %v5767_v46 = vld [vmem:[#allocation6 + $0x1f] ss:$2 sm:$0x1]  ;;  %v5770_v26 = vmax.f32 %v5763_v41, %v5765_v13  ;;  %v5795_v21 = vld [vmem:[#allocation6 + $0x2f] ss:$2 sm:$0x1]  ;;  %10410 = vmatpush3.bf16.msra.mxu0 (%p50_p0), %v10409_v55 }
 0x65a   : > { %7173 = vst [vmem:[%s12752_s15 + $0x8] sm:$0x1] %v5758_v4  ;;  %v5769_v3 = vld [vmem:[#allocation6 + $0x20] ss:$2 sm:$0x1]  ;;  %v5820_v37 = vld [vmem:[%s13372_s6 + $0x8] sm:$0xff] (%p50_p0)  ;;  %10411 = vmatprep.subr.bf16.mxu0 (%p50_p0), %v10989_v18 }
 0x65b   : > { %v5777_v5 = vld [vmem:[#allocation6 + $0x24] ss:$2 sm:$0x1]  ;;  %v5771_v12 = vmax.f32 %v5767_v46, %v5769_v3  ;;  %v5779_v50 = vld [vmem:[#allocation6 + $0x25] ss:$2 sm:$0x1]  ;;  %v10433_v47 = vpack.c.bf16 (%p50_p0), %v5820_v37, %v5819_v63 }
 0x65c   : > { %v5784_v30 = vmax.f32 %v5777_v5, %v5779_v50  ;;  %v5791_v14 = vld [vmem:[#allocation6 + $0x26] ss:$2 sm:$0x1]  ;;  %v5793_v33 = vld [vmem:[#allocation6 + $0x27] ss:$2 sm:$0x1] }
 0x65d   : > { %v5805_v17 = vld [vmem:[#allocation6 + $0x28] ss:$2 sm:$0x1]  ;;  %v5807_v53 = vld [vmem:[#allocation6 + $0x29] ss:$2 sm:$0x1]  ;;  %v5772_v25 = vmax.f32 %v5770_v26, %v5771_v12  ;;  %v5798_v36 = vmax.f32 %v5791_v14, %v5793_v33  ;;  %10434 = vmatpush3.bf16.msra.mxu1 (%p50_p0), %v10433_v47 }
 0x65e   : > { %v5786_v43 = vmax.f32 %v5784_v30, %v5785_v58  ;;  %v5812_v32 = vmax.f32 %v5805_v17, %v5807_v53  ;;  %v7180_v1 = vld [vmem:[%s13372_s6 + $0x90] sm:$0xff] (%p50_p0)  ;;  %v7181_v54 = vld [vmem:[%s13372_s6 + $0x98] sm:$0xff] (%p50_p0)  ;;  %v13397_v29 = vmov (%p50_p0), 0.0   ;;  %v7182_v11 = vld [vmem:[%s13372_s6 + $0xa0] sm:$0xff] (%p50_p0)  ;;  %10435 = vmatprep.subr.bf16.mxu1 (%p50_p0), %v10989_v18 }
 0x65f   : > { %v5797_v39 = vld [vmem:[#allocation6 + $0x30] ss:$2 sm:$0x1]  ;;  %v5809_v44 = vld [vmem:[#allocation6 + $0x31] ss:$2 sm:$0x1]  ;;  %9510 = vmatprep.mubr.msk.f32.mxu0 (%p50_p0), %vm10990_vm1, %v13397_v29  ;;  %9545 = vmatprep.mubr.msk.f32.mxu1 (%p50_p0), %vm10990_vm1, %v13397_v29  ;;  %v10412_v35 = vpack.c.bf16 (%p50_p0), %v7181_v54, %v7180_v1 }
 0x660   : > { %7174 = vst [vmem:[%s12752_s15 + $0xa] sm:$0x1] %v5772_v25  ;;  %v5799_v10 = vmax.f32 %v5795_v21, %v5797_v39  ;;  %v5811_v49 = vld [vmem:[#allocation6 + $0x32] ss:$2 sm:$0x1]  ;;  %52 = sbr.rel (!%p50_p0) target bundleno = 7 (0x7), region = 298 }
 0x661   : > { %7175 = vst [vmem:[%s12752_s15 + $0xc] sm:$0x1] %v5786_v43  ;;  %v5813_v0 = vmax.f32 %v5809_v44, %v5811_v49  ;;  %v5821_v24 = vld [vmem:[%s13372_s6 + $0x10] sm:$0xff] (%p50_p0)  ;;  %v5822_v16 = vld [vmem:[%s13372_s6 + $0x18] sm:$0xff] (%p50_p0)  ;;  %v7183_v45 = vld [vmem:[%s13372_s6 + $0xa8] sm:$0xff] (%p50_p0)  ;;  %10413 = vmatpush3.bf16.msra.mxu0 (%p50_p0), %v10412_v35 }
 0x662   : > { %v5800_v7 = vmax.f32 %v5798_v36, %v5799_v10  ;;  %v10436_v15 = vpack.c.bf16 (%p50_p0), %v5822_v16, %v5821_v24  ;;  %v5823_v31 = vld [vmem:[%s13372_s6 + $0x20] sm:$0xff] (%p50_p0)  ;;  %v5824_v27 = vld [vmem:[%s13372_s6 + $0x28] sm:$0xff] (%p50_p0)  ;;  %v10415_v52 = vpack.c.bf16 (%p50_p0), %v7183_v45, %v7182_v11  ;;  %10414 = vmatprep.subr.bf16.mxu0 (%p50_p0), %v10989_v18  ;;  %v7184_v9 = vld [vmem:[%s13372_s6 + $0xb0] sm:$0xff] (%p50_p0) }
 0x663   : > { %v5814_v60 = vmax.f32 %v5812_v32, %v5813_v0  ;;  %v10439_v40 = vpack.c.bf16 (%p50_p0), %v5824_v27, %v5823_v31  ;;  %v7185_v20 = vld [vmem:[%s13372_s6 + $0xb8] sm:$0xff] (%p50_p0)  ;;  %v5825_v23 = vld [vmem:[%s13372_s6 + $0x30] sm:$0xff] (%p50_p0)  ;;  %v7186_v56 = vld [vmem:[%s13372_s6 + $0xc0] sm:$0xff] (%p50_p0) }
 0x664   : > { %7176 = vst [vmem:[%s12752_s15 + $0xe] sm:$0x1] %v5800_v7  ;;  %10437 = vmatpush3.bf16.msra.mxu1 (%p50_p0), %v10436_v15  ;;  %v5826_v48 = vld [vmem:[%s13372_s6 + $0x38] sm:$0xff] (%p50_p0)  ;;  %v10418_v19 = vpack.c.bf16 (%p50_p0), %v7185_v20, %v7184_v9  ;;  %v7187_v57 = vld [vmem:[%s13372_s6 + $0xc8] sm:$0xff] (%p50_p0)  ;;  %v5827_v62 = vld [vmem:[%s13372_s6 + $0x40] sm:$0xff] (%p50_p0) }
 0x665   : > { %7177 = vst [vmem:[%s12752_s15 + $0x10] sm:$0x1] %v5814_v60  ;;  %10438 = vmatprep.subr.bf16.mxu1 (%p50_p0), %v10989_v18  ;;  %10416 = vmatpush3.bf16.msra.mxu0 (%p50_p0), %v10415_v52  ;;  %v10442_v51 = vpack.c.bf16 (%p50_p0), %v5826_v48, %v5825_v23  ;;  %v5828_v61 = vld [vmem:[%s13372_s6 + $0x48] sm:$0xff] (%p50_p0)  ;;  %v10421_v4 = vpack.c.bf16 (%p50_p0), %v7187_v57, %v7186_v56  ;;  %v7188_v8 = vld [vmem:[%s13372_s6 + $0xd0] sm:$0xff] (%p50_p0)  ;;  %v7189_v2 = vld [vmem:[%s13372_s6 + $0xd8] sm:$0xff] (%p50_p0) }
 0x666   :  { %10417 = vmatprep.subr.bf16.mxu0 (%p50_p0), %v10989_v18  ;;  %v10445_v38 = vpack.c.bf16 (%p50_p0), %v5828_v61, %v5827_v62  ;;  %v5829_v28 = vld [vmem:[%s13372_s6 + $0x50] sm:$0xff] (%p50_p0)  ;;  %v5830_v34 = vld [vmem:[%s13372_s6 + $0x58] sm:$0xff] (%p50_p0)  ;;  %v10424_v59 = vpack.c.bf16 (%p50_p0), %v7189_v2, %v7188_v8  ;;  %v7190_v41 = vld [vmem:[%s13372_s6 + $0xe0] sm:$0xff] (%p50_p0) }
 0x667   :  { %v10448_v6 = vpack.c.bf16 %v5830_v34, %v5829_v28  ;;  %v7191_v13 = vld [vmem:[%s13372_s6 + $0xe8] sm:$0xff]  ;;  %v5831_v46 = vld [vmem:[%s13372_s6 + $0x60] sm:$0xff]  ;;  %v7192_v26 = vld [vmem:[%s13372_s6 + $0xf0] sm:$0xff] }
 0x668   :  { %10440 = vmatpush3.bf16.msra.mxu1 %v10439_v40  ;;  %v5832_v58 = vld [vmem:[%s13372_s6 + $0x68] sm:$0xff]  ;;  %v10427_v3 = vpack.c.bf16 %v7191_v13, %v7190_v41  ;;  %v7193_v12 = vld [vmem:[%s13372_s6 + $0xf8] sm:$0xff]  ;;  %v5833_v50 = vld [vmem:[%s13372_s6 + $0x70] sm:$0xff] }
 0x669   :  { %10441 = vmatprep.subr.bf16.mxu1 %v10989_v18  ;;  %10419 = vmatpush3.bf16.msra.mxu0 %v10418_v19  ;;  %v10451_v5 = vpack.c.bf16 %v5832_v58, %v5831_v46  ;;  %v5834_v21 = vld [vmem:[%s13372_s6 + $0x78] sm:$0xff]  ;;  %v10430_v30 = vpack.c.bf16 %v7193_v12, %v7192_v26  ;;  %v7194_v33 = vld [vmem:[%s13372_s6 + $0x100] sm:$0xff]  ;;  %v7195_v17 = vld [vmem:[%s13372_s6 + $0x108] sm:$0xff] }
 0x66a   :  { %10420 = vmatprep.subr.bf16.mxu0 %v10989_v18  ;;  %v10454_v14 = vpack.c.bf16 %v5834_v21, %v5833_v50  ;;  %v7210_v53 = vld [vmem:[%s13372_s6 + $0x180] sm:$0xff]  ;;  %v7211_v25 = vld [vmem:[%s13372_s6 + $0x188] sm:$0xff]  ;;  %v10457_v39 = vpack.c.bf16 %v7195_v17, %v7194_v33  ;;  %v7196_v10 = vld [vmem:[%s13372_s6 + $0x110] sm:$0xff] }
 0x66b   :  { %v10481_v36 = vpack.c.bf16 %v7211_v25, %v7210_v53  ;;  %v7197_v49 = vld [vmem:[%s13372_s6 + $0x118] sm:$0xff]  ;;  %v7212_v32 = vld [vmem:[%s13372_s6 + $0x190] sm:$0xff]  ;;  %v7198_v22 = vld [vmem:[%s13372_s6 + $0x120] sm:$0xff] }
 0x66c   :  { %10443 = vmatpush3.bf16.msra.mxu1 %v10442_v51  ;;  %v5836_v43 = vld [vmem:[#allocation7 + $0x2] sm:$0x3]  ;;  %v5818_v44 = vld [vmem:[#allocation7] sm:$0x3]  ;;  %v7213_v0 = vld [vmem:[%s13372_s6 + $0x198] sm:$0xff]  ;;  %v10460_v7 = vpack.c.bf16 %v7197_v49, %v7196_v10 }
 0x66d   :  { %10444 = vmatprep.subr.bf16.mxu1 %v10989_v18  ;;  %10422 = vmatpush3.bf16.msra.mxu0 %v10421_v4  ;;  %v10484_v60 = vpack.c.bf16 %v7213_v0, %v7212_v32  ;;  %v7199_v42 = vld [vmem:[%s13372_s6 + $0x128] sm:$0xff]  ;;  %v7214_v63 = vld [vmem:[%s13372_s6 + $0x1a0] sm:$0xff]  ;;  %v7200_v54 = vld [vmem:[%s13372_s6 + $0x130] sm:$0xff] }
 0x66e   :  { %10423 = vmatprep.subr.bf16.mxu0 %v10989_v18  ;;  %v7215_v55 = vld [vmem:[%s13372_s6 + $0x1a8] sm:$0xff]  ;;  %v10463_v37 = vpack.c.bf16 %v7199_v42, %v7198_v22  ;;  %v7201_v47 = vld [vmem:[%s13372_s6 + $0x138] sm:$0xff]  ;;  %v7216_v24 = vld [vmem:[%s13372_s6 + $0x1b0] sm:$0xff] }
 0x66f   :  { %v10487_v1 = vpack.c.bf16 %v7215_v55, %v7214_v63  ;;  %v7217_v16 = vld [vmem:[%s13372_s6 + $0x1b8] sm:$0xff]  ;;  %v10466_v35 = vpack.c.bf16 %v7201_v47, %v7200_v54  ;;  %v7202_v11 = vld [vmem:[%s13372_s6 + $0x140] sm:$0xff]  ;;  %v7203_v45 = vld [vmem:[%s13372_s6 + $0x148] sm:$0xff] }
 0x670   :  { %10446 = vmatpush3.bf16.msra.mxu1 %v10445_v38  ;;  %v10490_v15 = vpack.c.bf16 %v7217_v16, %v7216_v24  ;;  %v7218_v31 = vld [vmem:[%s13372_s6 + $0x1c0] sm:$0xff]  ;;  %v7219_v27 = vld [vmem:[%s13372_s6 + $0x1c8] sm:$0xff]  ;;  %v10469_v52 = vpack.c.bf16 %v7203_v45, %v7202_v11  ;;  %v7204_v9 = vld [vmem:[%s13372_s6 + $0x150] sm:$0xff] }
 0x671   :  { %10447 = vmatprep.subr.bf16.mxu1 %v10989_v18  ;;  %10425 = vmatpush3.bf16.msra.mxu0 %v10424_v59  ;;  %v10493_v40 = vpack.c.bf16 %v7219_v27, %v7218_v31  ;;  %v7205_v20 = vld [vmem:[%s13372_s6 + $0x158] sm:$0xff]  ;;  %v7220_v23 = vld [vmem:[%s13372_s6 + $0x1d0] sm:$0xff]  ;;  %v7206_v56 = vld [vmem:[%s13372_s6 + $0x160] sm:$0xff] }
 0x672   :  { %10426 = vmatprep.subr.bf16.mxu0 %v10989_v18  ;;  %v7221_v48 = vld [vmem:[%s13372_s6 + $0x1d8] sm:$0xff]  ;;  %v10472_v19 = vpack.c.bf16 %v7205_v20, %v7204_v9  ;;  %v7207_v57 = vld [vmem:[%s13372_s6 + $0x168] sm:$0xff]  ;;  %v7222_v62 = vld [vmem:[%s13372_s6 + $0x1e0] sm:$0xff] }
 0x673   :  { %v10496_v51 = vpack.c.bf16 %v7221_v48, %v7220_v23  ;;  %v7223_v61 = vld [vmem:[%s13372_s6 + $0x1e8] sm:$0xff]  ;;  %v10475_v4 = vpack.c.bf16 %v7207_v57, %v7206_v56  ;;  %v7208_v8 = vld [vmem:[%s13372_s6 + $0x170] sm:$0xff]  ;;  %v7209_v2 = vld [vmem:[%s13372_s6 + $0x178] sm:$0xff] }
 0x674   :  { %10449 = vmatpush3.bf16.msra.mxu1 %v10448_v6  ;;  %v10499_v38 = vpack.c.bf16 %v7223_v61, %v7222_v62  ;;  %v7224_v28 = vld [vmem:[%s13372_s6 + $0x1f0] sm:$0xff]  ;;  %v7225_v34 = vld [vmem:[%s13372_s6 + $0x1f8] sm:$0xff]  ;;  %v10478_v59 = vpack.c.bf16 %v7209_v2, %v7208_v8  ;;  %v7226_v41 = vld [vmem:[%s13372_s6 + $0x200] sm:$0xff] }
 0x675   :  { %10450 = vmatprep.subr.bf16.mxu1 %v10989_v18  ;;  %10428 = vmatpush3.bf16.msra.mxu0 %v10427_v3  ;;  %v10502_v6 = vpack.c.bf16 %v7225_v34, %v7224_v28  ;;  %v7227_v13 = vld [vmem:[%s13372_s6 + $0x208] sm:$0xff]  ;;  %v7242_v46 = vld [vmem:[%s13372_s6 + $0x280] sm:$0xff]  ;;  %v7228_v50 = vld [vmem:[%s13372_s6 + $0x210] sm:$0xff] }
 0x676   :  { %10429 = vmatprep.subr.bf16.mxu0 %v10989_v18  ;;  %v7243_v58 = vld [vmem:[%s13372_s6 + $0x288] sm:$0xff]  ;;  %v5995_v3 = vld [vmem:[#allocation7 + $0x4] sm:$0x3]  ;;  %v6085_v26 = vld [vmem:[#allocation7 + $0x6] sm:$0x3] }
 0x677   :  { %v10529_v12 = vpack.c.bf16 %v7243_v58, %v7242_v46  ;;  %v7229_v21 = vld [vmem:[%s13372_s6 + $0x218] sm:$0xff]  ;;  %v7230_v53 = vld [vmem:[%s13372_s6 + $0x220] sm:$0xff]  ;;  %v7231_v25 = vld [vmem:[%s13372_s6 + $0x228] sm:$0xff] }
 0x678   :  { %10452 = vmatpush3.bf16.msra.mxu1 %v10451_v5  ;;  %v10505_v5 = vpack.c.bf16 %v7227_v13, %v7226_v41  ;;  %v10508_v33 = vpack.c.bf16 %v7229_v21, %v7228_v50  ;;  %v7232_v10 = vld [vmem:[%s13372_s6 + $0x230] sm:$0xff]  ;;  %v7233_v49 = vld [vmem:[%s13372_s6 + $0x238] sm:$0xff]  ;;  %v7234_v22 = vld [vmem:[%s13372_s6 + $0x240] sm:$0xff] }
 0x679   :  { %10453 = vmatprep.subr.bf16.mxu1 %v10989_v18  ;;  %10431 = vmatpush3.bf16.msra.mxu0 %v10430_v30  ;;  %v7244_v30 = vld [vmem:[%s13372_s6 + $0x290] sm:$0xff]  ;;  %v7249_v0 = vld [vmem:[%s13372_s6 + $0x2b8] sm:$0xff]  ;;  %v7235_v42 = vld [vmem:[%s13372_s6 + $0x248] sm:$0xff] }
 0x67a   :  { %10456 = vmatprep.subr.bf16.mxu0 %v10989_v18  ;;  %v7248_v32 = vld [vmem:[%s13372_s6 + $0x2b0] sm:$0xff]  ;;  %v7250_v63 = vld [vmem:[%s13372_s6 + $0x2c0] sm:$0xff]  ;;  %v7251_v55 = vld [vmem:[%s13372_s6 + $0x2c8] sm:$0xff] }
 0x67b   :  { %v7236_v54 = vld [vmem:[%s13372_s6 + $0x250] sm:$0xff]  ;;  %v7237_v47 = vld [vmem:[%s13372_s6 + $0x258] sm:$0xff]  ;;  %v7238_v11 = vld [vmem:[%s13372_s6 + $0x260] sm:$0xff] }
 0x67c   :  { %10455 = vmatpush3.bf16.msra.mxu1 %v10454_v14  ;;  %9511 = vmatmul.mubr.f32.vlgmr.msra.gmra.mrb[0].mxu0 %v5836_v43  ;;  %v7245_v14 = vld [vmem:[%s13372_s6 + $0x298] sm:$0xff]  ;;  %v7246_v43 = vld [vmem:[%s13372_s6 + $0x2a0] sm:$0xff]  ;;  %v7252_v24 = vld [vmem:[%s13372_s6 + $0x2d0] sm:$0xff] }
 0x67d   :  { %10480 = vmatprep.subr.bf16.mxu1 %v10989_v18  ;;  %10458 = vmatpush3.bf16.msra.mxu0 %v10457_v39  ;;  %v10532_v17 = vpack.c.bf16 %v7245_v14, %v7244_v30  ;;  %v7247_v39 = vld [vmem:[%s13372_s6 + $0x2a8] sm:$0xff]  ;;  %v7253_v16 = vld [vmem:[%s13372_s6 + $0x2d8] sm:$0xff]  ;;  %v7254_v31 = vld [vmem:[%s13372_s6 + $0x2e0] sm:$0xff] }
 0x67e   :  { %10459 = vmatprep.subr.bf16.mxu0 %v10989_v18  ;;  %9580 = vmatprep.mubr.msk.f32.mxu0 %vm10990_vm1, %v13397_v29  ;;  %v7239_v45 = vld [vmem:[%s13372_s6 + $0x268] sm:$0xff]  ;;  %v7240_v9 = vld [vmem:[%s13372_s6 + $0x270] sm:$0xff]  ;;  %v7241_v20 = vld [vmem:[%s13372_s6 + $0x278] sm:$0xff] }
 0x67f   :  { %9546 = vmatmul.mubr.f32.vlgmr.msra.gmra.mrb[0].mxu1 %v5818_v44  ;;  %v10511_v44 = vpack.c.bf16 %v7231_v25, %v7230_v53  ;;  %v7255_v27 = vld [vmem:[%s13372_s6 + $0x2e8] sm:$0xff]  ;;  %v7256_v23 = vld [vmem:[%s13372_s6 + $0x2f0] sm:$0xff]  ;;  %v7257_v48 = vld [vmem:[%s13372_s6 + $0x2f8] sm:$0xff] }
 0x680   :  { %10482 = vmatpush3.bf16.msra.mxu1 %v10481_v36  ;;  %9615 = vmatprep.mubr.msk.f32.mxu1 %vm10990_vm1, %v13397_v29  ;;  %v10535_v36 = vpack.c.bf16 %v7247_v39, %v7246_v43  ;;  %v7258_v56 = vld [vmem:[%s13372_s6 + $0x300] sm:$0xff]  ;;  %v7259_v57 = vld [vmem:[%s13372_s6 + $0x308] sm:$0xff]  ;;  %v7260_v28 = vld [vmem:[%s13372_s6 + $0x310] sm:$0xff] }
 0x681   :  { %10483 = vmatprep.subr.bf16.mxu1 %v10989_v18  ;;  %10461 = vmatpush3.bf16.msra.mxu0 %v10460_v7  ;;  %v10514_v7 = vpack.c.bf16 %v7233_v49, %v7232_v10  ;;  %v7274_v62 = vld [vmem:[%s13372_s6 + $0x380] sm:$0xff]  ;;  %v7275_v61 = vld [vmem:[%s13372_s6 + $0x388] sm:$0xff]  ;;  %v7261_v34 = vld [vmem:[%s13372_s6 + $0x318] sm:$0xff] }
 0x682   :  { %10462 = vmatprep.subr.bf16.mxu0 %v10989_v18  ;;  %v6265_v8 = vld [vmem:[#allocation7 + $0xa] sm:$0x3]  ;;  %v10577_v2 = vpack.c.bf16 %v7275_v61, %v7274_v62  ;;  %v10556_v41 = vpack.c.bf16 %v7261_v34, %v7260_v28  ;;  %v7262_v46 = vld [vmem:[%s13372_s6 + $0x320] sm:$0xff]  ;;  %v7264_v50 = vld [vmem:[%s13372_s6 + $0x330] sm:$0xff] }
 0x683   :  { %v7263_v58 = vld [vmem:[%s13372_s6 + $0x328] sm:$0xff]  ;;  %v7265_v21 = vld [vmem:[%s13372_s6 + $0x338] sm:$0xff]  ;;  %v7280_v30 = vld [vmem:[%s13372_s6 + $0x3b0] sm:$0xff] }
 0x684   :  { %10485 = vmatpush3.bf16.msra.mxu1 %v10484_v60  ;;  %v10538_v60 = vpack.c.bf16 %v7249_v0, %v7248_v32  ;;  %v7281_v14 = vld [vmem:[%s13372_s6 + $0x3b8] sm:$0xff]  ;;  %v7266_v53 = vld [vmem:[%s13372_s6 + $0x340] sm:$0xff]  ;;  %v7267_v25 = vld [vmem:[%s13372_s6 + $0x348] sm:$0xff] }
 0x685   :  { %10486 = vmatprep.subr.bf16.mxu1 %v10989_v18  ;;  %10464 = vmatpush3.bf16.msra.mxu0 %v10463_v37  ;;  %v10517_v37 = vpack.c.bf16 %v7235_v42, %v7234_v22  ;;  %v7282_v43 = vld [vmem:[%s13372_s6 + $0x3c0] sm:$0xff]  ;;  %v7283_v39 = vld [vmem:[%s13372_s6 + $0x3c8] sm:$0xff]  ;;  %v7268_v10 = vld [vmem:[%s13372_s6 + $0x350] sm:$0xff] }
 0x686   :  { %10465 = vmatprep.subr.bf16.mxu0 %v10989_v18  ;;  %v7269_v49 = vld [vmem:[%s13372_s6 + $0x358] sm:$0xff]  ;;  %v7284_v32 = vld [vmem:[%s13372_s6 + $0x3d0] sm:$0xff]  ;;  %v7270_v22 = vld [vmem:[%s13372_s6 + $0x360] sm:$0xff] }
 0x687   :  { %v7285_v0 = vld [vmem:[%s13372_s6 + $0x3d8] sm:$0xff]  ;;  %v7271_v42 = vld [vmem:[%s13372_s6 + $0x368] sm:$0xff] }
 0x688   :  { %10488 = vmatpush3.bf16.msra.mxu1 %v10487_v1  ;;  %v10541_v1 = vpack.c.bf16 %v7251_v55, %v7250_v63  ;;  %v7286_v63 = vld [vmem:[%s13372_s6 + $0x3e0] sm:$0xff]  ;;  %v7287_v55 = vld [vmem:[%s13372_s6 + $0x3e8] sm:$0xff] }
 0x689   :  { %10489 = vmatprep.subr.bf16.mxu1 %v10989_v18  ;;  %10467 = vmatpush3.bf16.msra.mxu0 %v10466_v35  ;;  %v10520_v35 = vpack.c.bf16 %v7237_v47, %v7236_v54  ;;  %v7272_v54 = vld [vmem:[%s13372_s6 + $0x370] sm:$0xff]  ;;  %v7273_v47 = vld [vmem:[%s13372_s6 + $0x378] sm:$0xff]  ;;  %v7299_v62 = vld [vmem:[%s13372_s6 + $0x448] sm:$0xff] }
 0x68a   :  { %10468 = vmatprep.subr.bf16.mxu0 %v10989_v18  ;;  %v7303_v28 = vld [vmem:[%s13372_s6 + $0x468] sm:$0xff] }
 0x68c   :  { %10491 = vmatpush3.bf16.msra.mxu1 %v10490_v15  ;;  %v10544_v15 = vpack.c.bf16 %v7253_v16, %v7252_v24  ;;  %v7288_v24 = vld [vmem:[%s13372_s6 + $0x3f0] sm:$0xff]  ;;  %v7289_v16 = vld [vmem:[%s13372_s6 + $0x3f8] sm:$0xff] }
 0x68d   :  { %10492 = vmatprep.subr.bf16.mxu1 %v10989_v18  ;;  %10470 = vmatpush3.bf16.msra.mxu0 %v10469_v52  ;;  %v10523_v52 = vpack.c.bf16 %v7239_v45, %v7238_v11  ;;  %v7290_v11 = vld [vmem:[%s13372_s6 + $0x400] sm:$0xff]  ;;  %v7291_v45 = vld [vmem:[%s13372_s6 + $0x408] sm:$0xff] }
 0x68e   :  { %10471 = vmatprep.subr.bf16.mxu0 %v10989_v18 }
 0x690   :  { %10494 = vmatpush3.bf16.msra.mxu1 %v10493_v40  ;;  %v10547_v40 = vpack.c.bf16 %v7255_v27, %v7254_v31  ;;  %v6355_v31 = vld [vmem:[#allocation7 + $0xc] sm:$0x3]  ;;  %v10601_v27 = vpack.c.bf16 %v7291_v45, %v7290_v11 }
 0x691   :  { %10495 = vmatprep.subr.bf16.mxu1 %v10989_v18  ;;  %10473 = vmatpush3.bf16.msra.mxu0 %v10472_v19  ;;  %v10526_v19 = vpack.c.bf16 %v7241_v20, %v7240_v9  ;;  %v7293_v9 = vld [vmem:[%s13372_s6 + $0x418] sm:$0xff] }
 0x692   :  { %10474 = vmatprep.subr.bf16.mxu0 %v10989_v18 }
 0x694   :  { %10497 = vmatpush3.bf16.msra.mxu1 %v10496_v51  ;;  %v10550_v51 = vpack.c.bf16 %v7257_v48, %v7256_v23  ;;  %v7294_v23 = vld [vmem:[%s13372_s6 + $0x420] sm:$0xff]  ;;  %v7295_v48 = vld [vmem:[%s13372_s6 + $0x428] sm:$0xff] }
 0x695   :  { %10498 = vmatprep.subr.bf16.mxu1 %v10989_v18  ;;  %10476 = vmatpush3.bf16.msra.mxu0 %v10475_v4  ;;  %v6175_v4 = vld [vmem:[#allocation7 + $0x8] sm:$0x3] }
 0x696   :  { %10477 = vmatprep.subr.bf16.mxu0 %v10989_v18 }
 0x698   :  { %10500 = vmatpush3.bf16.msra.mxu1 %v10499_v38  ;;  %v10553_v38 = vpack.c.bf16 %v7259_v57, %v7258_v56  ;;  %v7297_v56 = vld [vmem:[%s13372_s6 + $0x438] sm:$0xff] }
 0x699   :  { %10501 = vmatprep.subr.bf16.mxu1 %v10989_v18  ;;  %10479 = vmatpush3.bf16.msra.mxu0 %v10478_v59  ;;  %v7276_v59 = vld [vmem:[%s13372_s6 + $0x390] sm:$0xff] }
 0x69a   :  { %10504 = vmatprep.subr.bf16.mxu0 %v10989_v18 }
 0x69c   :  { %10503 = vmatpush3.bf16.msra.mxu1 %v10502_v6  ;;  %9581 = vmatmul.mubr.f32.vlgmr.msra.gmra.mrb[2].mxu0 %v5995_v3  ;;  %v7277_v6 = vld [vmem:[%s13372_s6 + $0x398] sm:$0xff]  ;;  %v7278_v3 = vld [vmem:[%s13372_s6 + $0x3a0] sm:$0xff] }
 0x69d   :  { %10528 = vmatprep.subr.bf16.mxu1 %v10989_v18  ;;  %10506 = vmatpush3.bf16.msra.mxu0 %v10505_v5  ;;  %v10580_v13 = vpack.c.bf16 %v7277_v6, %v7276_v59  ;;  %v7279_v5 = vld [vmem:[%s13372_s6 + $0x3a8] sm:$0xff]  ;;  %v7304_v59 = vld [vmem:[%s13372_s6 + $0x470] sm:$0xff]  ;;  %v7305_v6 = vld [vmem:[%s13372_s6 + $0x478] sm:$0xff] }
 0x69e   :  { %10507 = vmatprep.subr.bf16.mxu0 %v10989_v18  ;;  %9650 = vmatprep.mubr.msk.f32.mxu0 %vm10990_vm1, %v13397_v29 }
 0x69f   :  { %9616 = vmatmul.mubr.f32.vlgmr.msra.gmra.mrb[2].mxu1 %v6085_v26  ;;  %v10559_v26 = vpack.c.bf16 %v7263_v58, %v7262_v46  ;;  %v6633_v46 = vld [vmem:[%s13374_s8] sm:$0xff]  ;;  %v6634_v58 = vld [vmem:[%s13374_s8 + $0x8] sm:$0xff] }
 0x6a0   :  { %10530 = vmatpush3.bf16.msra.mxu1 %v10529_v12  ;;  %9685 = vmatprep.mubr.msk.f32.mxu1 %vm10990_vm1, %v13397_v29  ;;  %v10583_v12 = vpack.c.bf16 %v7279_v5, %v7278_v3  ;;  %v6635_v3 = vld [vmem:[%s13374_s8 + $0x10] sm:$0xff]  ;;  %v10625_v5 = vpack.c.bf16 %v6634_v58, %v6633_v46 }
 0x6a1   :  { %10531 = vmatprep.subr.bf16.mxu1 %v10989_v18  ;;  %10509 = vmatpush3.bf16.msra.mxu0 %v10508_v33  ;;  %v10562_v33 = vpack.c.bf16 %v7265_v21, %v7264_v50  ;;  %v6637_v50 = vld [vmem:[%s13374_s8 + $0x20] sm:$0xff]  ;;  %v6638_v21 = vld [vmem:[%s13374_s8 + $0x28] sm:$0xff] }
 0x6a2   :  { %10510 = vmatprep.subr.bf16.mxu0 %v10989_v18 }
 0x6a4   :  { %10533 = vmatpush3.bf16.msra.mxu1 %v10532_v17  ;;  %v10586_v17 = vpack.c.bf16 %v7281_v14, %v7280_v30  ;;  %v10631_v30 = vpack.c.bf16 %v6638_v21, %v6637_v50  ;;  %v6639_v14 = vld [vmem:[%s13374_s8 + $0x30] sm:$0xff] }
 0x6a5   :  { %10534 = vmatprep.subr.bf16.mxu1 %v10989_v18  ;;  %10512 = vmatpush3.bf16.msra.mxu0 %v10511_v44  ;;  %v10565_v44 = vpack.c.bf16 %v7267_v25, %v7266_v53  ;;  %v6641_v53 = vld [vmem:[%s13374_s8 + $0x40] sm:$0xff]  ;;  %v6642_v25 = vld [vmem:[%s13374_s8 + $0x48] sm:$0xff] }
 0x6a6   :  { %10513 = vmatprep.subr.bf16.mxu0 %v10989_v18 }
 0x6a8   :  { %10536 = vmatpush3.bf16.msra.mxu1 %v10535_v36  ;;  %v10589_v36 = vpack.c.bf16 %v7283_v39, %v7282_v43  ;;  %v10637_v43 = vpack.c.bf16 %v6642_v25, %v6641_v53  ;;  %v6643_v39 = vld [vmem:[%s13374_s8 + $0x50] sm:$0xff] }
 0x6a9   :  { %10537 = vmatprep.subr.bf16.mxu1 %v10989_v18  ;;  %10515 = vmatpush3.bf16.msra.mxu0 %v10514_v7  ;;  %v10568_v7 = vpack.c.bf16 %v7269_v49, %v7268_v10  ;;  %v6645_v10 = vld [vmem:[%s13374_s8 + $0x60] sm:$0xff]  ;;  %v6646_v49 = vld [vmem:[%s13374_s8 + $0x68] sm:$0xff] }
 0x6aa   :  { %10516 = vmatprep.subr.bf16.mxu0 %v10989_v18 }
 0x6ac   :  { %10539 = vmatpush3.bf16.msra.mxu1 %v10538_v60  ;;  %v10592_v60 = vpack.c.bf16 %v7285_v0, %v7284_v32  ;;  %v10643_v32 = vpack.c.bf16 %v6646_v49, %v6645_v10 }
 0x6ad   :  { %10540 = vmatprep.subr.bf16.mxu1 %v10989_v18  ;;  %10518 = vmatpush3.bf16.msra.mxu0 %v10517_v37  ;;  %v10571_v37 = vpack.c.bf16 %v7271_v42, %v7270_v22  ;;  %v6647_v22 = vld [vmem:[%s13374_s8 + $0x70] sm:$0xff]  ;;  %v6648_v42 = vld [vmem:[%s13374_s8 + $0x78] sm:$0xff] }
 0x6ae   :  { %10519 = vmatprep.subr.bf16.mxu0 %v10989_v18 }
 0x6b0   :  { %10542 = vmatpush3.bf16.msra.mxu1 %v10541_v1  ;;  %v10595_v1 = vpack.c.bf16 %v7287_v55, %v7286_v63 }
 0x6b1   :  { %10543 = vmatprep.subr.bf16.mxu1 %v10989_v18  ;;  %10521 = vmatpush3.bf16.msra.mxu0 %v10520_v35  ;;  %v10574_v35 = vpack.c.bf16 %v7273_v47, %v7272_v54 }
 0x6b2   :  { %10522 = vmatprep.subr.bf16.mxu0 %v10989_v18 }
 0x6b4   :  { %10545 = vmatpush3.bf16.msra.mxu1 %v10544_v15  ;;  %v10598_v15 = vpack.c.bf16 %v7289_v16, %v7288_v24 }
 0x6b5   :  { %10546 = vmatprep.subr.bf16.mxu1 %v10989_v18  ;;  %10524 = vmatpush3.bf16.msra.mxu0 %v10523_v52  ;;  %v6445_v52 = vld [vmem:[#allocation7 + $0xe] sm:$0x3] }
 0x6b6   :  { %10525 = vmatprep.subr.bf16.mxu0 %v10989_v18 }
 0x6b8   :  { %10548 = vmatpush3.bf16.msra.mxu1 %v10547_v40  ;;  %v7292_v40 = vld [vmem:[%s13372_s6 + $0x410] sm:$0xff] }
 0x6b9   :  { %10549 = vmatprep.subr.bf16.mxu1 %v10989_v18  ;;  %10527 = vmatpush3.bf16.msra.mxu0 %v10526_v19  ;;  %v10604_v20 = vpack.c.bf16 %v7293_v9, %v7292_v40  ;;  %v10607_v19 = vpack.c.bf16 %v7295_v48, %v7294_v23 }
 0x6ba   :  { %10552 = vmatprep.subr.bf16.mxu0 %v10989_v18 }
 0x6bc   :  { %10551 = vmatpush3.bf16.msra.mxu1 %v10550_v51  ;;  %9651 = vmatmul.mubr.f32.vlgmr.msra.gmra.mrb[4].mxu0 %v6175_v4  ;;  %v7296_v51 = vld [vmem:[%s13372_s6 + $0x430] sm:$0xff] }
 0x6bd   :  { %10576 = vmatprep.subr.bf16.mxu1 %v10989_v18  ;;  %10554 = vmatpush3.bf16.msra.mxu0 %v10553_v38  ;;  %v10610_v57 = vpack.c.bf16 %v7297_v56, %v7296_v51  ;;  %v7300_v4 = vld [vmem:[%s13372_s6 + $0x450] sm:$0xff]  ;;  %v7301_v38 = vld [vmem:[%s13372_s6 + $0x458] sm:$0xff]  ;;  %v7306_v51 = vld [vmem:[%s13373_s7] ss:$0 sm:$0xff]  ;;  %s10991_s7 = smov [#allocation8]  }
 0x6be   :  { %10555 = vmatprep.subr.bf16.mxu0 %v10989_v18  ;;  %9720 = vmatprep.mubr.msk.f32.mxu0 %vm10990_vm1, %v13397_v29 }
 0x6bf   :  { %9686 = vmatmul.mubr.f32.vlgmr.msra.gmra.mrb[4].mxu1 %v6265_v8  ;;  %v10616_v8 = vpack.c.bf16 %v7301_v38, %v7300_v4  ;;  %v7307_v38 = vld [vmem:[%s13375_s9] ss:$0 sm:$0xff]  ;;  %s6751_s9 = sshll.u32 %s10991_s7, 4  ;;  %s6752_s9 = int_to_ptr.vmem [resolvable:$true] %s6751_s9 }
 0x6c0   :  { %10578 = vmatpush3.bf16.msra.mxu1 %v10577_v2  ;;  %9755 = vmatprep.mubr.msk.f32.mxu1 %vm10990_vm1, %v13397_v29  ;;  %v7302_v2 = vld [vmem:[%s13372_s6 + $0x460] sm:$0xff]  ;;  %s10956_s1 = scalar_lea.vmem %s6752_s9, 32  ;;  %p10961_p2 = scmp.lt.s32.totalorder %s6752_s9, %s6752_s9 }
 0x6c1   :  { %10579 = vmatprep.subr.bf16.mxu1 %v10989_v18  ;;  %10557 = vmatpush3.bf16.msra.mxu0 %v10556_v41  ;;  %v10619_v34 = vpack.c.bf16 %v7303_v28, %v7302_v2  ;;  %v10622_v41 = vpack.c.bf16 %v7305_v6, %v7304_v59  ;;  %p10957_p1 = scmp.ne.s32.totalorder %s6752_s9, %s10956_s1  ;;  %p10962_p3 = scmp.lt.s32.totalorder %s10956_s1, %s10956_s1 }
 0x6c2   :  { %10558 = vmatprep.subr.bf16.mxu0 %v10989_v18 }
 0x6c3   :  { %p10963_p4 = por %p10962_p3, %p10961_p2 }
 0x6c4   :  { %10581 = vmatpush3.bf16.msra.mxu1 %v10580_v13  ;;  %v6535_v13 = vld [vmem:[#allocation7 + $0x10] sm:$0x3] }
 0x6c5   :  { %10582 = vmatprep.subr.bf16.mxu1 %v10989_v18  ;;  %10560 = vmatpush3.bf16.msra.mxu0 %v10559_v26  ;;  %v6636_v26 = vld [vmem:[%s13374_s8 + $0x18] sm:$0xff]  ;;  %p10964_p5 = pnand %p10963_p4, %p10957_p1 }
 0x6c6   :  { %10561 = vmatprep.subr.bf16.mxu0 %v10989_v18 }
 0x6c8   :  { %10584 = vmatpush3.bf16.msra.mxu1 %v10583_v12  ;;  %v10628_v12 = vpack.c.bf16 %v6636_v26, %v6635_v3 }
 0x6c9   :  { %10585 = vmatprep.subr.bf16.mxu1 %v10989_v18  ;;  %10563 = vmatpush3.bf16.msra.mxu0 %v10562_v33  ;;  %v6640_v33 = vld [vmem:[%s13374_s8 + $0x38] sm:$0xff] }
 0x6ca   :  { %10564 = vmatprep.subr.bf16.mxu0 %v10989_v18 }
 0x6cc   :  { %10587 = vmatpush3.bf16.msra.mxu1 %v10586_v17  ;;  %v10634_v17 = vpack.c.bf16 %v6640_v33, %v6639_v14 }
 0x6cd   :  { %10588 = vmatprep.subr.bf16.mxu1 %v10989_v18  ;;  %10566 = vmatpush3.bf16.msra.mxu0 %v10565_v44  ;;  %v6644_v44 = vld [vmem:[%s13374_s8 + $0x58] sm:$0xff] }
 0x6ce   :  { %10567 = vmatprep.subr.bf16.mxu0 %v10989_v18 }
 0x6d0   :  { %10590 = vmatpush3.bf16.msra.mxu1 %v10589_v36  ;;  %v10640_v36 = vpack.c.bf16 %v6644_v44, %v6643_v39 }
 0x6d1   :  { %10591 = vmatprep.subr.bf16.mxu1 %v10989_v18  ;;  %10569 = vmatpush3.bf16.msra.mxu0 %v10568_v7 }
 0x6d2   :  { %10570 = vmatprep.subr.bf16.mxu0 %v10989_v18 }
 0x6d4   :  { %10593 = vmatpush3.bf16.msra.mxu1 %v10592_v60 }
 0x6d5   :  { %10594 = vmatprep.subr.bf16.mxu1 %v10989_v18  ;;  %10572 = vmatpush3.bf16.msra.mxu0 %v10571_v37  ;;  %v10646_v37 = vpack.c.bf16 %v6648_v42, %v6647_v22 }
 0x6d6   :  { %10573 = vmatprep.subr.bf16.mxu0 %v10989_v18 }
 0x6d8   :  { %10596 = vmatpush3.bf16.msra.mxu1 %v10595_v1 }
 0x6d9   :  { %10597 = vmatprep.subr.bf16.mxu1 %v10989_v18  ;;  %10575 = vmatpush3.bf16.msra.mxu0 %v10574_v35 }
 0x6da   :  { %10600 = vmatprep.subr.bf16.mxu0 %v10989_v18 }
 0x6dc   :  { %10599 = vmatpush3.bf16.msra.mxu1 %v10598_v15  ;;  %9721 = vmatmul.mubr.f32.vlgmr.msra.gmra.mrb[6].mxu0 %v6355_v31 }
 0x6dd   :  { %10624 = vmatprep.subr.bf16.mxu1 %v10989_v18  ;;  %10602 = vmatpush3.bf16.msra.mxu0 %v10601_v27 }
 0x6de   :  { %10603 = vmatprep.subr.bf16.mxu0 %v10989_v18  ;;  %9790 = vmatprep.mubr.msk.f32.mxu0 %vm10990_vm1, %v13397_v29 }
 0x6df   :  { %9756 = vmatmul.mubr.f32.vlgmr.msra.gmra.mrb[6].mxu1 %v6445_v52 }
 0x6e0   :  { %9825 = vmatprep.mubr.msk.f32.mxu1 %vm10990_vm1, %v13397_v29  ;;  %v7298_v29 = vld [vmem:[%s13372_s6 + $0x440] sm:$0xff]  ;;  %10626 = vmatpush3.bf16.msra.mxu1 %v10625_v5 }
 0x6e1   :  { %10605 = vmatpush3.bf16.msra.mxu0 %v10604_v20  ;;  %v10613_v61 = vpack.c.bf16 %v7299_v62, %v7298_v29  ;;  %10627 = vmatprep.subr.bf16.mxu1 %v10989_v18 }
 0x6e2   :  { %10606 = vmatprep.subr.bf16.mxu0 %v10989_v18 }
 0x6e4   :  { %10629 = vmatpush3.bf16.msra.mxu1 %v10628_v12 }
 0x6e5   :  { %10608 = vmatpush3.bf16.msra.mxu0 %v10607_v19  ;;  %10630 = vmatprep.subr.bf16.mxu1 %v10989_v18 }
 0x6e6   :  { %10609 = vmatprep.subr.bf16.mxu0 %v10989_v18 }
 0x6e8   :  { %10632 = vmatpush3.bf16.msra.mxu1 %v10631_v30 }
 0x6e9   :  { %10611 = vmatpush3.bf16.msra.mxu0 %v10610_v57  ;;  %10633 = vmatprep.subr.bf16.mxu1 %v10989_v18 }
 0x6ea   :  { %10612 = vmatprep.subr.bf16.mxu0 %v10989_v18 }
 0x6ec   :  { %10635 = vmatpush3.bf16.msra.mxu1 %v10634_v17 }
 0x6ed   :  { %10614 = vmatpush3.bf16.msra.mxu0 %v10613_v61  ;;  %10636 = vmatprep.subr.bf16.mxu1 %v10989_v18  ;;  %v6726_v61 = vlaneseq }
 0x6ee   :  { %10615 = vmatprep.subr.bf16.mxu0 %v10989_v18 }
 0x6ef   :  { %v6727_v4 = vand.u32 127, %v6726_v61 }
 0x6f0   :  { %10638 = vmatpush3.bf16.msra.mxu1 %v10637_v43 }
 0x6f1   :  { %10617 = vmatpush3.bf16.msra.mxu0 %v10616_v8  ;;  %10639 = vmatprep.subr.bf16.mxu1 %v10989_v18  ;;  %vm6728_vm2 = vcmp.lt.s32.totalorder %v6727_v4, 10 }
 0x6f2   :  { %10618 = vmatprep.subr.bf16.mxu0 %v10989_v18 }
 0x6f4   :  { %10641 = vmatpush3.bf16.msra.mxu1 %v10640_v36 }
 0x6f5   :  { %10620 = vmatpush3.bf16.msra.mxu0 %v10619_v34  ;;  %10642 = vmatprep.subr.bf16.mxu1 %v10989_v18 }
 0x6f6   :  { %10621 = vmatprep.subr.bf16.mxu0 %v10989_v18 }
 0x6f8   :  { %10644 = vmatpush3.bf16.msra.mxu1 %v10643_v32 }
 0x6f9   :  { %10623 = vmatpush3.bf16.msra.mxu0 %v10622_v41  ;;  %10645 = vmatprep.subr.bf16.mxu1 %v10989_v18 }
 0x6fc   :  { %9791 = vmatmul.mubr.f32.vlgmr.msra.gmra.mrb[8].mxu0 %v6535_v13  ;;  %10647 = vmatpush3.bf16.msra.mxu1 %v10646_v37 }
 0x74f   :  { %v5920_v0 = vpop.f32.mrb[0].mxu0 }
 0x750   :  { %v9512_v7 = vpop.f32.mrb[1].mxu0 }
 0x752   :  { %v5990_v60 = vpop.f32.mrb[0].mxu1 }
 0x753   :  { %v5991_v63 = vadd.f32 %v5990_v60, %v5920_v0  ;;  %v9547_v55 = vpop.f32.mrb[1].mxu1 }
 0x76f   :  { %v6079_v1 = vpop.f32.mrb[2].mxu0 }
 0x770   :  { %v6083_v54 = vadd.f32 %v6079_v1, %v5991_v63  ;;  %v9582_v47 = vpop.f32.mrb[3].mxu0 }
 0x772   :  { %v6169_v24 = vpop.f32.mrb[2].mxu1 }
 0x773   :  { %v9617_v16 = vpop.f32.mrb[3].mxu1  ;;  %v6173_v35 = vadd.f32 %v6169_v24, %v6083_v54 }
 0x78f   :  { %v6259_v15 = vpop.f32.mrb[4].mxu0 }
 0x790   :  { %v6263_v18 = vadd.f32 %v6259_v15, %v6173_v35  ;;  %v9652_v11 = vpop.f32.mrb[5].mxu0 }
 0x792   :  { %v6349_v45 = vpop.f32.mrb[4].mxu1 }
 0x793   :  { %v9687_v31 = vpop.f32.mrb[5].mxu1  ;;  %v6353_v27 = vadd.f32 %v6349_v45, %v6263_v18 }
 0x7af   :  { %v6439_v52 = vpop.f32.mrb[6].mxu0 }
 0x7b0   :  { %v6443_v40 = vadd.f32 %v6439_v52, %v6353_v27  ;;  %v9722_v9 = vpop.f32.mrb[7].mxu0 }
 0x7b2   :  { %v6529_v20 = vpop.f32.mrb[6].mxu1 }
 0x7b3   :  { %v9757_v23 = vpop.f32.mrb[7].mxu1  ;;  %v6533_v48 = vadd.f32 %v6529_v20, %v6443_v40 }
 0x7cf   :  { %v6619_v19 = vpop.f32.mrb[8].mxu0 }
 0x7d0   :  { %v6623_v56 = vadd.f32 %v6619_v19, %v6533_v48  ;;  %v9792_v57 = vpop.f32.mrb[9].mxu0 }
 0x7d2   :  { %v6631_v29 = vadd.f32 %v7306_v51, %v6623_v56 }
 0x7d4   :  { %v6632_v62 = vmax.f32 %v6631_v29, 0.0 }
 0x7d6   :  { %9826 = vmatmul.mubr.f32.vlgmr.msra.gmra.mrb[8].mxu1 %v6632_v62 }
 0x8a9   :  { %v6722_v8 = vpop.f32.mrb[8].mxu1 }
 0x8aa   :  { %v6723_v2 = vadd.f32 %v7307_v38, %v6722_v8  ;;  %v9827_v28 = vpop.f32.mrb[9].mxu1 }
 0x8ac   :  { %v6729_v34 = vsel %vm6728_vm2, %v6723_v2, -inf }
 0x8ad   :  { %v6731_v59 = vsel %vm6730_vm3, %v6729_v34, -inf }
 0x8ae   :  { %6732 = vmax.xlane.f32.xlu0 %v6731_v59 }
 0x93b   :  { %v6733_v6 = vpop.xlane.xlu0 %6732 }
 0x93c   :  { %v6734_v41 = vsub.f32 %v6729_v34, %v6733_v6 }
 0x93e   :  { %v6735_v13 = vmul.f32 1.442695, %v6734_v41 }
 0x940   :  { %10952 = vpow2.f32 %v6735_v13 }
 0x94a   :  { %v10953_v46 = vpop.eup %10952 }
 0x94b   :  { %v6737_v58 = vsel %vm6730_vm3, %v10953_v46, 0.0 }
 0x94c   :  { %6738 = vadd.xlane.f32.xlu0 %v6737_v58 }
 0x9d9   :  { %v6739_v3 = vpop.xlane.xlu0 %6738 }
 0x9da   :  { %10954 = vlog2.f32 %v6739_v3 }
 0x9e4   :  { %v10955_v5 = vpop.eup %10954 }
 0x9e5   :  { %v6741_v26 = vmul.f32 0.6931472, %v10955_v5 }
 0x9e7   :  { %v6742_v12 = vadd.f32 %v6741_v26, %v6733_v6 }
 0x9e9   :  { %v6743_v50 = vsub.f32 %v6723_v2, %v6742_v12 }
 0x9eb   :  { %6744 = vst [vmem:[#allocation8] sm:$0x3] %v6743_v50 }
 0x9ec   :  { %10967 = shalt.err (!%p10964_p5)
}
 0x9ed   :  { %s10968_s4 = scalar_lea.hbm %s13376_s10, 32 }
 0x9ee   :  { %p10969_p6 = scmp.ne.s32.totalorder %s13376_s10, %s10968_s4  ;;  %p10972_p7 = scmp.lt.u32.totalorder %s10968_s4, %s13376_s10 }
 0x9f0   :  { %p10974_p8 = pnand %p10972_p7, %p10969_p6 }
 0x9f2   :  { %10977 = shalt.err (!%p10974_p8)
}
 0x9f3   :  { %6754 = dma.vmem_to_hbm [thread:$0]  %s6752_s9, 32, %s13376_s10, [#allocation9]  }
 0x9f4   :  { %10982 = dma.done.wait [#allocation9], 32  }
 0x9f5   :  { %10983 = vsyncadd [#allocation9], 4294967264 }
 0x9f6   :  { %6758 = vsyncpa [#allocation9], 1 }

</bundles_post_ra>
